<compile_context>
chip_gen: v5e
topology: v5e:2x2
jax: 0.10.0
libtpu: 0.0.40
codegen_flags: <defaults>
</compile_context>

<pallas_src>
import functools

import numpy as np
import jax
import jax.numpy as jnp
from jax.experimental import pallas as pl
from jax.experimental.pallas import tpu as pltpu

WINDOW_SIZE = 20   # seq_len pinned to window_size by feature_attn = Linear(20, 1)
FC_HIDDEN = 128    # fc hidden width fixed by the model


# ------------------------------ fused kernel --------------------------------

def _build_kernel(Bp, T, F, H, offA, offB):
    D = 2 * H
    G8 = 8 * H
    TB = T * Bp
    f32 = jnp.float32
    bf16 = jnp.bfloat16
    (aF0, aB0, aR0, ab0, aF1, aB1, aR1, ab1) = offA
    (bwg, bmisc, bwa1, bwa2, bwp, bw1, bw2) = offB

    def kernel(x_ref,      # [T*Bp, F]   time-major flat gated-input source
               noise_ref,  # [Bp, 1]     standard-normal noise
               wf_ref,     # [T*Bp, 1]   feature_attn weight broadcast per row
               A_ref,      # bf16 LSTM slab
               Bk_ref,     # f32 head slab
               out_ref,    # [Bp, 1]
               xg_ref, xwF_ref, xwB_ref, seq0_ref, seq1_ref):
        # ---------------- feature gate: sigmoid(Linear(mean_t(x))) ----------------
        xm = x_ref[0:Bp, :]
        for t in range(1, T):
            xm = xm + x_ref[t * Bp:(t + 1) * Bp, :]
        xm = xm * (1.0 / T)                                              # [Bp, F]
        wgT = Bk_ref[bwg:bwg + F, 0:F]
        bg = Bk_ref[bmisc:bmisc + 1, 0:F]
        g = jax.nn.sigmoid(jnp.dot(xm, wgT, preferred_element_type=f32) + bg)
        for t in range(T):                                               # gated input
            r0 = t * Bp
            xg_ref[r0:r0 + Bp, :] = (x_ref[r0:r0 + Bp, :] * g).astype(bf16)

        # ---------------- one fused bidirectional LSTM layer ----------------
        def run_layer(inp_bf, aF, aB, aR, ab, din, seq_ref):
            wihF = A_ref[aF:aF + din, :]                                 # [din, 8H] bf16
            wihB = A_ref[aB:aB + din, :]
            bias = A_ref[ab:ab + 1, :].astype(f32)                       # [1, 8H]
            # Hoisted input projections (bias folded into the fwd slab).
            xwF_ref[...] = jnp.dot(inp_bf, wihF, preferred_element_type=f32) + bias
            xwB_ref[...] = jnp.dot(inp_bf, wihB, preferred_element_type=f32)
            wrec = A_ref[aR:aR + D, :]                                   # [2H, 8H] bf16
            c = jnp.zeros((Bp, D), f32)
            h = jnp.zeros((Bp, D), f32)
            for s in range(T):                                           # fully unrolled
                rs = T - 1 - s
                gates = (xwF_ref[s * Bp:(s + 1) * Bp, :]
                         + xwB_ref[rs * Bp:(rs + 1) * Bp, :]
                         + jnp.dot(h.astype(bf16), wrec,
                                   preferred_element_type=f32))          # [Bp, 8H]
                sig = jax.nn.sigmoid(gates[:, 0:3 * D])                  # f | i | o
                ga = jnp.tanh(gates[:, 3 * D:4 * D])                     # g
                c = sig[:, 0:D] * c + sig[:, D:2 * D] * ga
                h = sig[:, 2 * D:3 * D] * jnp.tanh(c)
                seq_ref[s * Bp:(s + 1) * Bp, 0:H] = h[:, 0:H]            # fwd @ time s
                seq_ref[rs * Bp:(rs + 1) * Bp, H:D] = h[:, H:D]          # bwd @ time rs

        run_layer(xg_ref[...], aF0, aB0, aR0, ab0, F, seq0_ref)
        # inter-layer LSTM dropout: identity in eval mode
        run_layer(seq0_ref[...].astype(bf16), aF1, aB1, aR1, ab1, D, seq1_ref)

        h1 = seq1_ref[...]                                               # [TB, D] f32

        # -------- temporal attention (exact per-batch softmax over time) --------
        wa1T = Bk_ref[bwa1:bwa1 + D, 0:D]
        ba1 = Bk_ref[bmisc + 1:bmisc + 2, 0:D]
        a1 = jnp.tanh(jnp.dot(h1, wa1T, preferred_element_type=f32) + ba1)
        wa2 = Bk_ref[bwa2:bwa2 + D, 0:1]
        scores = jnp.dot(a1, wa2, preferred_element_type=f32)            # [TB, 1]
        # (Linear(D,1) bias is a constant shift -> cancels exactly in softmax.)
        m = scores[0:Bp, :]
        for t in range(1, T):
            m = jnp.maximum(m, scores[t * Bp:(t + 1) * Bp, :])           # [Bp, 1]
        wf = wf_ref[...]                                                 # [TB, 1]
        denom = jnp.zeros((Bp, 1), f32)
        numer = jnp.zeros((Bp, D), f32)
        fpre = jnp.zeros((Bp, D), f32)
        for t in range(T):
            r0 = t * Bp
            h1t = seq1_ref[r0:r0 + Bp, :]
            et = jnp.exp(scores[r0:r0 + Bp, :] - m)
            denom = denom + et
            numer = numer + et * h1t
            fpre = fpre + wf[r0:r0 + Bp, :] * h1t
        temporal = numer / denom                                         # [Bp, D]

        # -------- feature path: sigmoid(Linear_T over time) -> proj --------
        bfa = Bk_ref[bmisc + 2:bmisc + 3, 0:D]                           # bfa replicated
        feat_raw = jax.nn.sigmoid(fpre + bfa)
        wpT = Bk_ref[bwp:bwp + D, 0:D]
        bp = Bk_ref[bmisc + 3:bmisc + 4, 0:D]
        feature = jnp.dot(feat_raw, wpT, preferred_element_type=f32) + bp

        # -------- fc head (W1 split to avoid a lane concat) + reparam output --------
        w1a = Bk_ref[bw1:bw1 + D, 0:FC_HIDDEN]
        w1b = Bk_ref[bw1 + D:bw1 + 2 * D, 0:FC_HIDDEN]
        b1 = Bk_ref[bmisc + 4:bmisc + 5, 0:FC_HIDDEN]
        hfc = jnp.maximum(
            jnp.dot(temporal, w1a, preferred_element_type=f32)
            + jnp.dot(feature, w1b, preferred_element_type=f32) + b1, 0.0)
        w2T = Bk_ref[bw2:bw2 + FC_HIDDEN, 0:2]
        b2 = Bk_ref[bmisc + 5:bmisc + 6, 0:2]
        o2 = jnp.dot(hfc, w2T, preferred_element_type=f32) + b2          # [Bp, 2]
        mu = o2[:, 0:1]
        logvar = o2[:, 1:2]
        out_ref[...] = mu + 0.1 * noise_ref[...] * jnp.exp(0.5 * logvar)

    return kernel


# -------------------------------- parameters --------------------------------

def init_params(seed, feature_dim, hidden, *, batch_pad=8, window=WINDOW_SIZE):
    rng = np.random.default_rng(seed)
    F, H, T, Bp = feature_dim, hidden, window, batch_pad
    D, G8 = 2 * H, 8 * H

    def unif(shape, fan_in):
        b = 1.0 / np.sqrt(fan_in)
        return rng.uniform(-b, b, size=shape).astype(np.float32)

    def xavier(shape):
        b = np.sqrt(6.0 / (shape[0] + shape[1]))
        return rng.uniform(-b, b, size=shape).astype(np.float32)

    def orth(shape):
        a = rng.standard_normal(shape).astype(np.float32)
        q, _ = np.linalg.qr(a)
        return np.ascontiguousarray(q[:shape[0], :shape[1]]).astype(np.float32)

    # Gate grouping used by the kernel: columns ordered (f | i | o | g),
    # each 2H-wide group holding [fwd (H) | bwd (H)].
    GATES = ('f', 'i', 'o', 'g')

    def gate_blocks(a):  # PyTorch order (i, f, g, o) row blocks
        return {'i': a[0:H], 'f': a[H:2 * H], 'g': a[2 * H:3 * H], 'o': a[3 * H:4 * H]}

    def pack_ih(w_ih, d):                      # [4H, Din] -> [Din, 8H], dir-d cols only
        din = w_ih.shape[1]
        out = np.zeros((din, G8), np.float32)
        blk = gate_blocks(w_ih)
        for gi, gn in enumerate(GATES):
            c0 = gi * D + d * H
            out[:, c0:c0 + H] = blk[gn].T
        return out

    def pack_hh(whh_f, whh_b):                 # each [4H, H] -> block-diag [2H, 8H]
        out = np.zeros((D, G8), np.float32)
        for d, w in enumerate((whh_f, whh_b)):
            blk = gate_blocks(w)
            for gi, gn in enumerate(GATES):
                c0 = gi * D + d * H
                out[d * H:(d + 1) * H, c0:c0 + H] = blk[gn].T
        return out

    def pack_bias(bf, bb):                     # each [4H] combined (b_ih+b_hh) -> [1, 8H]
        out = np.zeros((1, G8), np.float32)
        for d, b in enumerate((bf, bb)):
            blk = gate_blocks(b)
            for gi, gn in enumerate(GATES):
                c0 = gi * D + d * H
                out[0, c0:c0 + H] = blk[gn]
        return out

    def lstm_dir(din):
        w_ih = xavier((4 * H, din))
        w_hh = orth((4 * H, H))
        b = np.zeros((4 * H,), np.float32)
        b[H:2 * H] = 1.0                       # forget-gate bias, both b_ih and b_hh
        return w_ih, w_hh, 2.0 * b             # combined b_ih + b_hh

    # ---- slab A: bf16 LSTM weights, 8H lanes, 16-row aligned blocks ----
    def p16(n): return ((n + 15) // 16) * 16
    Fp16, Dp16 = p16(F), p16(D)
    aF0 = 0
    aB0 = aF0 + Fp16
    aR0 = aB0 + Fp16
    ab0 = aR0 + Dp16
    aF1 = ab0 + 16
    aB1 = aF1 + Dp16
    aR1 = aB1 + Dp16
    ab1 = aR1 + Dp16
    RA = ab1 + 16
    slabA = np.zeros((RA, G8), np.float32)

    wih0f, whh0f, bc0f = lstm_dir(F)
    wih0b, whh0b, bc0b = lstm_dir(F)
    wih1f, whh1f, bc1f = lstm_dir(D)
    wih1b, whh1b, bc1b = lstm_dir(D)
    slabA[aF0:aF0 + F, :] = pack_ih(wih0f, 0)
    slabA[aB0:aB0 + F, :] = pack_ih(wih0b, 1)
    slabA[aR0:aR0 + D, :] = pack_hh(whh0f, whh0b)
    slabA[ab0:ab0 + 1, :] = pack_bias(bc0f, bc0b)
    slabA[aF1:aF1 + D, :] = pack_ih(wih1f, 0)
    slabA[aB1:aB1 + D, :] = pack_ih(wih1b, 1)
    slabA[aR1:aR1 + D, :] = pack_hh(whh1f, whh1b)
    slabA[ab1:ab1 + 1, :] = pack_bias(bc1f, bc1b)

    # ---- slab B: f32 head weights, 8-row aligned blocks ----
    def p8(n): return ((n + 7) // 8) * 8
    LW = ((max(F, D, FC_HIDDEN) + 127) // 128) * 128
    bwg = 0
    bmisc = bwg + p8(F)
    bwa1 = bmisc + 8
    bwa2 = bwa1 + p8(D)
    bwp = bwa2 + p8(D)
    bw1 = bwp + p8(D)
    bw2 = bw1 + p8(2 * D)
    RB = bw2 + p8(FC_HIDDEN)
    slabB = np.zeros((RB, LW), np.float32)

    wg = unif((F, F), F); bg = unif((F,), F)                  # feature_gate
    slabB[bwg:bwg + F, 0:F] = wg.T
    slabB[bmisc, 0:F] = bg
    wa1 = unif((D, D), D); ba1 = unif((D,), D)                # temporal attention
    wa2 = unif((1, D), D)                                     # (its bias cancels in softmax)
    slabB[bwa1:bwa1 + D, 0:D] = wa1.T
    slabB[bmisc + 1, 0:D] = ba1
    slabB[bwa2:bwa2 + D, 0:1] = wa2.T
    wfa = unif((1, T), T); bfa = unif((1,), T)                # feature_attn Linear(T,1)
    slabB[bmisc + 2, 0:D] = bfa[0]                            # scalar bias replicated
    wp = unif((D, D), D); bp = unif((D,), D)                  # feature_proj
    slabB[bwp:bwp + D, 0:D] = wp.T
    slabB[bmisc + 3, 0:D] = bp
    w1 = unif((FC_HIDDEN, 2 * D), 2 * D); b1 = unif((FC_HIDDEN,), 2 * D)   # fc
    w2 = unif((2, FC_HIDDEN), FC_HIDDEN); b2 = unif((2,), FC_HIDDEN)
    slabB[bw1:bw1 + 2 * D, 0:FC_HIDDEN] = w1.T
    slabB[bmisc + 4, 0:FC_HIDDEN] = b1
    slabB[bw2:bw2 + FC_HIDDEN, 0:2] = w2.T
    slabB[bmisc + 5, 0:2] = b2

    # feature_attn weight broadcast per flat row (row t*Bp+b -> wfa[t]).
    wf3 = np.repeat(wfa[0], Bp)[:, None].astype(np.float32)   # [T*Bp, 1]

    # NOTE: self.feature_importance is a Parameter but unused in forward().
    params = {
        "slabA": jnp.asarray(slabA).astype(jnp.bfloat16),
        "slabB": jnp.asarray(slabB),
        "wf3": jnp.asarray(wf3),
    }
    meta = {
        "T": T, "F": F, "H": H, "Bp": Bp,
        "offA": (aF0, aB0, aR0, ab0, aF1, aB1, aR1, ab1),
        "offB": (bwg, bmisc, bwa1, bwa2, bwp, bw1, bw2),
    }
    return params, meta


# --------------------------------- wrapper -----------------------------------

def emodel_feature_weight1_forward(params, x, noise, *, meta):
    T, F, H, Bp = meta["T"], meta["F"], meta["H"], meta["Bp"]
    B = x.shape[0]
    assert x.shape == (B, T, F) and B <= Bp
    TB = T * Bp
    D, G8 = 2 * H, 8 * H

    # Time-major flat layout (row t*Bp + b <-> x[b, t, :]) with the batch padded
    # to a full 8-row sublane group.
    xt = jnp.transpose(x, (1, 0, 2)).astype(jnp.float32)
    noise = noise.astype(jnp.float32)
    if B < Bp:
        xt = jnp.pad(xt, ((0, 0), (0, Bp - B), (0, 0)))
        noise = jnp.pad(noise, ((0, Bp - B), (0, 0)))
    x2 = xt.reshape(TB, F)

    kernel = _build_kernel(Bp, T, F, H, meta["offA"], meta["offB"])
    args = (x2, noise, params["wf3"], params["slabA"], params["slabB"])
    in_specs = [pl.BlockSpec(a.shape, lambda *_, nd=a.ndim: (0,) * nd) for a in args]

    out = pl.pallas_call(
        kernel,
        out_shape=jax.ShapeDtypeStruct((Bp, 1), jnp.float32),
        grid=(1,),
        in_specs=in_specs,
        out_specs=pl.BlockSpec((Bp, 1), lambda *_: (0, 0)),
        scratch_shapes=[
            pltpu.VMEM((TB, F), jnp.bfloat16),   # gated input (bf16 MXU operand)
            pltpu.VMEM((TB, G8), jnp.float32),   # hoisted x@W_ih (+bias), fwd columns
            pltpu.VMEM((TB, G8), jnp.float32),   # hoisted x@W_ih, bwd columns
            pltpu.VMEM((TB, D), jnp.float32),    # layer-0 output sequence
            pltpu.VMEM((TB, D), jnp.float32),    # layer-1 output sequence
        ],
        compiler_params=pltpu.CompilerParams(dimension_semantics=("arbitrary",)),
    )(*args)
    return out[:B, 0]                             # [B]


if __name__ == "__main__":
    B, T, F, H = 2, WINDOW_SIZE, 8, 32    # batch, seq(=window_size), feature_dim, hidden
    params, meta = init_params(0, feature_dim=F, hidden=H)

    key = jax.random.PRNGKey(0)
    kx, kn = jax.random.split(key)
    x = jax.random.normal(kx, (B, T, F), dtype=jnp.float32)
    noise = jax.random.normal(kn, (B, 1), dtype=jnp.float32)   # randn_like(mu)

    fwd = jax.jit(functools.partial(emodel_feature_weight1_forward, meta=meta))
    y = jax.block_until_ready(fwd(params, x, noise))
    assert y.shape == (B,) and bool(jnp.all(jnp.isfinite(y)))
    print("KERNEL_OK")
</pallas_src>

<mosaic_0001>
module attributes {stable_mosaic.version = 11 : i64} {
  func.func @kernel(%arg0: i32, %arg1: memref<160x8xf32, #tpu.memory_space<vmem>>, %arg2: memref<8x1xf32, #tpu.memory_space<vmem>>, %arg3: memref<160x1xf32, #tpu.memory_space<vmem>>, %arg4: memref<320x256xbf16, #tpu.memory_space<vmem>>, %arg5: memref<464x128xf32, #tpu.memory_space<vmem>>, %arg6: memref<8x1xf32, #tpu.memory_space<vmem>>, %arg7: memref<160x8xbf16, #tpu.memory_space<vmem>>, %arg8: memref<160x256xf32, #tpu.memory_space<vmem>>, %arg9: memref<160x256xf32, #tpu.memory_space<vmem>>, %arg10: memref<160x64xf32, #tpu.memory_space<vmem>>, %arg11: memref<160x64xf32, #tpu.memory_space<vmem>>) attributes {dimension_semantics = [#tpu.dimension_semantics<arbitrary>], iteration_bounds = array<i64: 1>, scalar_prefetch = 0 : i64, scratch_operands = 5 : i64, tpu.core_type = #tpu.core_type<tc>, window_params = [{pipeline_mode = #tpu.pipeline_mode<synchronous>, transform_indices = @transform_0, window_bounds = array<i64: 160, 8>}, {pipeline_mode = #tpu.pipeline_mode<synchronous>, transform_indices = @transform_1, window_bounds = array<i64: 8, 1>}, {pipeline_mode = #tpu.pipeline_mode<synchronous>, transform_indices = @transform_2, window_bounds = array<i64: 160, 1>}, {pipeline_mode = #tpu.pipeline_mode<synchronous>, transform_indices = @transform_3, window_bounds = array<i64: 320, 256>}, {pipeline_mode = #tpu.pipeline_mode<synchronous>, transform_indices = @transform_4, window_bounds = array<i64: 464, 128>}, {pipeline_mode = #tpu.pipeline_mode<synchronous>, transform_indices = @transform_5, window_bounds = array<i64: 8, 1>}]} {
    %c0 = arith.constant 0 : index
    %c0_0 = arith.constant 0 : index
    %0 = vector.load %arg1[%c0, %c0_0] : memref<160x8xf32, #tpu.memory_space<vmem>>, vector<8x8xf32>
    %c8 = arith.constant 8 : index
    %c0_1 = arith.constant 0 : index
    %1 = vector.load %arg1[%c8, %c0_1] : memref<160x8xf32, #tpu.memory_space<vmem>>, vector<8x8xf32>
    %2 = arith.addf %0, %1 : vector<8x8xf32>
    %c16 = arith.constant 16 : index
    %c0_2 = arith.constant 0 : index
    %3 = vector.load %arg1[%c16, %c0_2] : memref<160x8xf32, #tpu.memory_space<vmem>>, vector<8x8xf32>
    %4 = arith.addf %2, %3 : vector<8x8xf32>
    %c24 = arith.constant 24 : index
    %c0_3 = arith.constant 0 : index
    %5 = vector.load %arg1[%c24, %c0_3] : memref<160x8xf32, #tpu.memory_space<vmem>>, vector<8x8xf32>
    %6 = arith.addf %4, %5 : vector<8x8xf32>
    %c32 = arith.constant 32 : index
    %c0_4 = arith.constant 0 : index
    %7 = vector.load %arg1[%c32, %c0_4] : memref<160x8xf32, #tpu.memory_space<vmem>>, vector<8x8xf32>
    %8 = arith.addf %6, %7 : vector<8x8xf32>
    %c40 = arith.constant 40 : index
    %c0_5 = arith.constant 0 : index
    %9 = vector.load %arg1[%c40, %c0_5] : memref<160x8xf32, #tpu.memory_space<vmem>>, vector<8x8xf32>
    %10 = arith.addf %8, %9 : vector<8x8xf32>
    %c48 = arith.constant 48 : index
    %c0_6 = arith.constant 0 : index
    %11 = vector.load %arg1[%c48, %c0_6] : memref<160x8xf32, #tpu.memory_space<vmem>>, vector<8x8xf32>
    %12 = arith.addf %10, %11 : vector<8x8xf32>
    %c56 = arith.constant 56 : index
    %c0_7 = arith.constant 0 : index
    %13 = vector.load %arg1[%c56, %c0_7] : memref<160x8xf32, #tpu.memory_space<vmem>>, vector<8x8xf32>
    %14 = arith.addf %12, %13 : vector<8x8xf32>
    %c64 = arith.constant 64 : index
    %c0_8 = arith.constant 0 : index
    %15 = vector.load %arg1[%c64, %c0_8] : memref<160x8xf32, #tpu.memory_space<vmem>>, vector<8x8xf32>
    %16 = arith.addf %14, %15 : vector<8x8xf32>
    %c72 = arith.constant 72 : index
    %c0_9 = arith.constant 0 : index
    %17 = vector.load %arg1[%c72, %c0_9] : memref<160x8xf32, #tpu.memory_space<vmem>>, vector<8x8xf32>
    %18 = arith.addf %16, %17 : vector<8x8xf32>
    %c80 = arith.constant 80 : index
    %c0_10 = arith.constant 0 : index
    %19 = vector.load %arg1[%c80, %c0_10] : memref<160x8xf32, #tpu.memory_space<vmem>>, vector<8x8xf32>
    %20 = arith.addf %18, %19 : vector<8x8xf32>
    %c88 = arith.constant 88 : index
    %c0_11 = arith.constant 0 : index
    %21 = vector.load %arg1[%c88, %c0_11] : memref<160x8xf32, #tpu.memory_space<vmem>>, vector<8x8xf32>
    %22 = arith.addf %20, %21 : vector<8x8xf32>
    %c96 = arith.constant 96 : index
    %c0_12 = arith.constant 0 : index
    %23 = vector.load %arg1[%c96, %c0_12] : memref<160x8xf32, #tpu.memory_space<vmem>>, vector<8x8xf32>
    %24 = arith.addf %22, %23 : vector<8x8xf32>
    %c104 = arith.constant 104 : index
    %c0_13 = arith.constant 0 : index
    %25 = vector.load %arg1[%c104, %c0_13] : memref<160x8xf32, #tpu.memory_space<vmem>>, vector<8x8xf32>
    %26 = arith.addf %24, %25 : vector<8x8xf32>
    %c112 = arith.constant 112 : index
    %c0_14 = arith.constant 0 : index
    %27 = vector.load %arg1[%c112, %c0_14] : memref<160x8xf32, #tpu.memory_space<vmem>>, vector<8x8xf32>
    %28 = arith.addf %26, %27 : vector<8x8xf32>
    %c120 = arith.constant 120 : index
    %c0_15 = arith.constant 0 : index
    %29 = vector.load %arg1[%c120, %c0_15] : memref<160x8xf32, #tpu.memory_space<vmem>>, vector<8x8xf32>
    %30 = arith.addf %28, %29 : vector<8x8xf32>
    %c128 = arith.constant 128 : index
    %c0_16 = arith.constant 0 : index
    %31 = vector.load %arg1[%c128, %c0_16] : memref<160x8xf32, #tpu.memory_space<vmem>>, vector<8x8xf32>
    %32 = arith.addf %30, %31 : vector<8x8xf32>
    %c136 = arith.constant 136 : index
    %c0_17 = arith.constant 0 : index
    %33 = vector.load %arg1[%c136, %c0_17] : memref<160x8xf32, #tpu.memory_space<vmem>>, vector<8x8xf32>
    %34 = arith.addf %32, %33 : vector<8x8xf32>
    %c144 = arith.constant 144 : index
    %c0_18 = arith.constant 0 : index
    %35 = vector.load %arg1[%c144, %c0_18] : memref<160x8xf32, #tpu.memory_space<vmem>>, vector<8x8xf32>
    %36 = arith.addf %34, %35 : vector<8x8xf32>
    %c152 = arith.constant 152 : index
    %c0_19 = arith.constant 0 : index
    %37 = vector.load %arg1[%c152, %c0_19] : memref<160x8xf32, #tpu.memory_space<vmem>>, vector<8x8xf32>
    %38 = arith.addf %36, %37 : vector<8x8xf32>
    %cst = arith.constant 5.000000e-02 : f32
    %39 = vector.broadcast %cst : f32 to vector<8x8xf32>
    %40 = arith.mulf %38, %39 : vector<8x8xf32>
    %c0_20 = arith.constant 0 : index
    %c0_21 = arith.constant 0 : index
    %41 = vector.load %arg5[%c0_20, %c0_21] : memref<464x128xf32, #tpu.memory_space<vmem>>, vector<8x8xf32>
    %c8_22 = arith.constant 8 : index
    %c0_23 = arith.constant 0 : index
    %42 = vector.load %arg5[%c8_22, %c0_23] : memref<464x128xf32, #tpu.memory_space<vmem>>, vector<1x8xf32>
    %cst_24 = arith.constant dense<0.000000e+00> : vector<8x8xf32>
    %43 = tpu.matmul %40, %41, %cst_24 {dimension_numbers = #tpu.dot_dimension_numbers<[1], [0], [0], [1], [0, 0, 1, 1], [], []>} : vector<8x8xf32>, vector<8x8xf32>, vector<8x8xf32> -> vector<8x8xf32>
    %44 = vector.broadcast %42 : vector<1x8xf32> to vector<8x8xf32>
    %45 = arith.addf %43, %44 : vector<8x8xf32>
    %46 = arith.negf %45 : vector<8x8xf32>
    %47 = math.exp %46 : vector<8x8xf32>
    %cst_25 = arith.constant 1.000000e+00 : f32
    %48 = vector.broadcast %cst_25 : f32 to vector<8x8xf32>
    %49 = arith.addf %48, %47 : vector<8x8xf32>
    %50 = arith.divf %48, %49 : vector<8x8xf32>
    %c0_26 = arith.constant 0 : index
    %c0_27 = arith.constant 0 : index
    %51 = vector.load %arg1[%c0_26, %c0_27] : memref<160x8xf32, #tpu.memory_space<vmem>>, vector<8x8xf32>
    %52 = arith.mulf %51, %50 : vector<8x8xf32>
    %53 = arith.truncf %52 : vector<8x8xf32> to vector<8x8xbf16>
    %c0_28 = arith.constant 0 : index
    %c0_29 = arith.constant 0 : index
    %54 = vector.load %arg7[%c0_28, %c0_29] : memref<160x8xbf16, #tpu.memory_space<vmem>>, vector<8x8xbf16>
    tpu.vector_store %arg7[%c0_28, %c0_29], %53 {strides = array<i32>} : memref<160x8xbf16, #tpu.memory_space<vmem>>, vector<8x8xbf16>,
    %c8_30 = arith.constant 8 : index
    %c0_31 = arith.constant 0 : index
    %55 = vector.load %arg1[%c8_30, %c0_31] : memref<160x8xf32, #tpu.memory_space<vmem>>, vector<8x8xf32>
    %56 = arith.mulf %55, %50 : vector<8x8xf32>
    %57 = arith.truncf %56 : vector<8x8xf32> to vector<8x8xbf16>
    %c8_32 = arith.constant 8 : index
    %c0_33 = arith.constant 0 : index
    %58 = vector.load %arg7[%c8_32, %c0_33] : memref<160x8xbf16, #tpu.memory_space<vmem>>, vector<8x8xbf16>
    tpu.vector_store %arg7[%c8_32, %c0_33], %57 {strides = array<i32>} : memref<160x8xbf16, #tpu.memory_space<vmem>>, vector<8x8xbf16>,
    %c16_34 = arith.constant 16 : index
    %c0_35 = arith.constant 0 : index
    %59 = vector.load %arg1[%c16_34, %c0_35] : memref<160x8xf32, #tpu.memory_space<vmem>>, vector<8x8xf32>
    %60 = arith.mulf %59, %50 : vector<8x8xf32>
    %61 = arith.truncf %60 : vector<8x8xf32> to vector<8x8xbf16>
    %c16_36 = arith.constant 16 : index
    %c0_37 = arith.constant 0 : index
    %62 = vector.load %arg7[%c16_36, %c0_37] : memref<160x8xbf16, #tpu.memory_space<vmem>>, vector<8x8xbf16>
    tpu.vector_store %arg7[%c16_36, %c0_37], %61 {strides = array<i32>} : memref<160x8xbf16, #tpu.memory_space<vmem>>, vector<8x8xbf16>,
    %c24_38 = arith.constant 24 : index
    %c0_39 = arith.constant 0 : index
    %63 = vector.load %arg1[%c24_38, %c0_39] : memref<160x8xf32, #tpu.memory_space<vmem>>, vector<8x8xf32>
    %64 = arith.mulf %63, %50 : vector<8x8xf32>
    %65 = arith.truncf %64 : vector<8x8xf32> to vector<8x8xbf16>
    %c24_40 = arith.constant 24 : index
    %c0_41 = arith.constant 0 : index
    %66 = vector.load %arg7[%c24_40, %c0_41] : memref<160x8xbf16, #tpu.memory_space<vmem>>, vector<8x8xbf16>
    tpu.vector_store %arg7[%c24_40, %c0_41], %65 {strides = array<i32>} : memref<160x8xbf16, #tpu.memory_space<vmem>>, vector<8x8xbf16>,
    %c32_42 = arith.constant 32 : index
    %c0_43 = arith.constant 0 : index
    %67 = vector.load %arg1[%c32_42, %c0_43] : memref<160x8xf32, #tpu.memory_space<vmem>>, vector<8x8xf32>
    %68 = arith.mulf %67, %50 : vector<8x8xf32>
    %69 = arith.truncf %68 : vector<8x8xf32> to vector<8x8xbf16>
    %c32_44 = arith.constant 32 : index
    %c0_45 = arith.constant 0 : index
    %70 = vector.load %arg7[%c32_44, %c0_45] : memref<160x8xbf16, #tpu.memory_space<vmem>>, vector<8x8xbf16>
    tpu.vector_store %arg7[%c32_44, %c0_45], %69 {strides = array<i32>} : memref<160x8xbf16, #tpu.memory_space<vmem>>, vector<8x8xbf16>,
    %c40_46 = arith.constant 40 : index
    %c0_47 = arith.constant 0 : index
    %71 = vector.load %arg1[%c40_46, %c0_47] : memref<160x8xf32, #tpu.memory_space<vmem>>, vector<8x8xf32>
    %72 = arith.mulf %71, %50 : vector<8x8xf32>
    %73 = arith.truncf %72 : vector<8x8xf32> to vector<8x8xbf16>
    %c40_48 = arith.constant 40 : index
    %c0_49 = arith.constant 0 : index
    %74 = vector.load %arg7[%c40_48, %c0_49] : memref<160x8xbf16, #tpu.memory_space<vmem>>, vector<8x8xbf16>
    tpu.vector_store %arg7[%c40_48, %c0_49], %73 {strides = array<i32>} : memref<160x8xbf16, #tpu.memory_space<vmem>>, vector<8x8xbf16>,
    %c48_50 = arith.constant 48 : index
    %c0_51 = arith.constant 0 : index
    %75 = vector.load %arg1[%c48_50, %c0_51] : memref<160x8xf32, #tpu.memory_space<vmem>>, vector<8x8xf32>
    %76 = arith.mulf %75, %50 : vector<8x8xf32>
    %77 = arith.truncf %76 : vector<8x8xf32> to vector<8x8xbf16>
    %c48_52 = arith.constant 48 : index
    %c0_53 = arith.constant 0 : index
    %78 = vector.load %arg7[%c48_52, %c0_53] : memref<160x8xbf16, #tpu.memory_space<vmem>>, vector<8x8xbf16>
    tpu.vector_store %arg7[%c48_52, %c0_53], %77 {strides = array<i32>} : memref<160x8xbf16, #tpu.memory_space<vmem>>, vector<8x8xbf16>,
    %c56_54 = arith.constant 56 : index
    %c0_55 = arith.constant 0 : index
    %79 = vector.load %arg1[%c56_54, %c0_55] : memref<160x8xf32, #tpu.memory_space<vmem>>, vector<8x8xf32>
    %80 = arith.mulf %79, %50 : vector<8x8xf32>
    %81 = arith.truncf %80 : vector<8x8xf32> to vector<8x8xbf16>
    %c56_56 = arith.constant 56 : index
    %c0_57 = arith.constant 0 : index
    %82 = vector.load %arg7[%c56_56, %c0_57] : memref<160x8xbf16, #tpu.memory_space<vmem>>, vector<8x8xbf16>
    tpu.vector_store %arg7[%c56_56, %c0_57], %81 {strides = array<i32>} : memref<160x8xbf16, #tpu.memory_space<vmem>>, vector<8x8xbf16>,
    %c64_58 = arith.constant 64 : index
    %c0_59 = arith.constant 0 : index
    %83 = vector.load %arg1[%c64_58, %c0_59] : memref<160x8xf32, #tpu.memory_space<vmem>>, vector<8x8xf32>
    %84 = arith.mulf %83, %50 : vector<8x8xf32>
    %85 = arith.truncf %84 : vector<8x8xf32> to vector<8x8xbf16>
    %c64_60 = arith.constant 64 : index
    %c0_61 = arith.constant 0 : index
    %86 = vector.load %arg7[%c64_60, %c0_61] : memref<160x8xbf16, #tpu.memory_space<vmem>>, vector<8x8xbf16>
    tpu.vector_store %arg7[%c64_60, %c0_61], %85 {strides = array<i32>} : memref<160x8xbf16, #tpu.memory_space<vmem>>, vector<8x8xbf16>,
    %c72_62 = arith.constant 72 : index
    %c0_63 = arith.constant 0 : index
    %87 = vector.load %arg1[%c72_62, %c0_63] : memref<160x8xf32, #tpu.memory_space<vmem>>, vector<8x8xf32>
    %88 = arith.mulf %87, %50 : vector<8x8xf32>
    %89 = arith.truncf %88 : vector<8x8xf32> to vector<8x8xbf16>
    %c72_64 = arith.constant 72 : index
    %c0_65 = arith.constant 0 : index
    %90 = vector.load %arg7[%c72_64, %c0_65] : memref<160x8xbf16, #tpu.memory_space<vmem>>, vector<8x8xbf16>
    tpu.vector_store %arg7[%c72_64, %c0_65], %89 {strides = array<i32>} : memref<160x8xbf16, #tpu.memory_space<vmem>>, vector<8x8xbf16>,
    %c80_66 = arith.constant 80 : index
    %c0_67 = arith.constant 0 : index
    %91 = vector.load %arg1[%c80_66, %c0_67] : memref<160x8xf32, #tpu.memory_space<vmem>>, vector<8x8xf32>
    %92 = arith.mulf %91, %50 : vector<8x8xf32>
    %93 = arith.truncf %92 : vector<8x8xf32> to vector<8x8xbf16>
    %c80_68 = arith.constant 80 : index
    %c0_69 = arith.constant 0 : index
    %94 = vector.load %arg7[%c80_68, %c0_69] : memref<160x8xbf16, #tpu.memory_space<vmem>>, vector<8x8xbf16>
    tpu.vector_store %arg7[%c80_68, %c0_69], %93 {strides = array<i32>} : memref<160x8xbf16, #tpu.memory_space<vmem>>, vector<8x8xbf16>,
    %c88_70 = arith.constant 88 : index
    %c0_71 = arith.constant 0 : index
    %95 = vector.load %arg1[%c88_70, %c0_71] : memref<160x8xf32, #tpu.memory_space<vmem>>, vector<8x8xf32>
    %96 = arith.mulf %95, %50 : vector<8x8xf32>
    %97 = arith.truncf %96 : vector<8x8xf32> to vector<8x8xbf16>
    %c88_72 = arith.constant 88 : index
    %c0_73 = arith.constant 0 : index
    %98 = vector.load %arg7[%c88_72, %c0_73] : memref<160x8xbf16, #tpu.memory_space<vmem>>, vector<8x8xbf16>
    tpu.vector_store %arg7[%c88_72, %c0_73], %97 {strides = array<i32>} : memref<160x8xbf16, #tpu.memory_space<vmem>>, vector<8x8xbf16>,
    %c96_74 = arith.constant 96 : index
    %c0_75 = arith.constant 0 : index
    %99 = vector.load %arg1[%c96_74, %c0_75] : memref<160x8xf32, #tpu.memory_space<vmem>>, vector<8x8xf32>
    %100 = arith.mulf %99, %50 : vector<8x8xf32>
    %101 = arith.truncf %100 : vector<8x8xf32> to vector<8x8xbf16>
    %c96_76 = arith.constant 96 : index
    %c0_77 = arith.constant 0 : index
    %102 = vector.load %arg7[%c96_76, %c0_77] : memref<160x8xbf16, #tpu.memory_space<vmem>>, vector<8x8xbf16>
    tpu.vector_store %arg7[%c96_76, %c0_77], %101 {strides = array<i32>} : memref<160x8xbf16, #tpu.memory_space<vmem>>, vector<8x8xbf16>,
    %c104_78 = arith.constant 104 : index
    %c0_79 = arith.constant 0 : index
    %103 = vector.load %arg1[%c104_78, %c0_79] : memref<160x8xf32, #tpu.memory_space<vmem>>, vector<8x8xf32>
    %104 = arith.mulf %103, %50 : vector<8x8xf32>
    %105 = arith.truncf %104 : vector<8x8xf32> to vector<8x8xbf16>
    %c104_80 = arith.constant 104 : index
    %c0_81 = arith.constant 0 : index
    %106 = vector.load %arg7[%c104_80, %c0_81] : memref<160x8xbf16, #tpu.memory_space<vmem>>, vector<8x8xbf16>
    tpu.vector_store %arg7[%c104_80, %c0_81], %105 {strides = array<i32>} : memref<160x8xbf16, #tpu.memory_space<vmem>>, vector<8x8xbf16>,
    %c112_82 = arith.constant 112 : index
    %c0_83 = arith.constant 0 : index
    %107 = vector.load %arg1[%c112_82, %c0_83] : memref<160x8xf32, #tpu.memory_space<vmem>>, vector<8x8xf32>
    %108 = arith.mulf %107, %50 : vector<8x8xf32>
    %109 = arith.truncf %108 : vector<8x8xf32> to vector<8x8xbf16>
    %c112_84 = arith.constant 112 : index
    %c0_85 = arith.constant 0 : index
    %110 = vector.load %arg7[%c112_84, %c0_85] : memref<160x8xbf16, #tpu.memory_space<vmem>>, vector<8x8xbf16>
    tpu.vector_store %arg7[%c112_84, %c0_85], %109 {strides = array<i32>} : memref<160x8xbf16, #tpu.memory_space<vmem>>, vector<8x8xbf16>,
    %c120_86 = arith.constant 120 : index
    %c0_87 = arith.constant 0 : index
    %111 = vector.load %arg1[%c120_86, %c0_87] : memref<160x8xf32, #tpu.memory_space<vmem>>, vector<8x8xf32>
    %112 = arith.mulf %111, %50 : vector<8x8xf32>
    %113 = arith.truncf %112 : vector<8x8xf32> to vector<8x8xbf16>
    %c120_88 = arith.constant 120 : index
    %c0_89 = arith.constant 0 : index
    %114 = vector.load %arg7[%c120_88, %c0_89] : memref<160x8xbf16, #tpu.memory_space<vmem>>, vector<8x8xbf16>
    tpu.vector_store %arg7[%c120_88, %c0_89], %113 {strides = array<i32>} : memref<160x8xbf16, #tpu.memory_space<vmem>>, vector<8x8xbf16>,
    %c128_90 = arith.constant 128 : index
    %c0_91 = arith.constant 0 : index
    %115 = vector.load %arg1[%c128_90, %c0_91] : memref<160x8xf32, #tpu.memory_space<vmem>>, vector<8x8xf32>
    %116 = arith.mulf %115, %50 : vector<8x8xf32>
    %117 = arith.truncf %116 : vector<8x8xf32> to vector<8x8xbf16>
    %c128_92 = arith.constant 128 : index
    %c0_93 = arith.constant 0 : index
    %118 = vector.load %arg7[%c128_92, %c0_93] : memref<160x8xbf16, #tpu.memory_space<vmem>>, vector<8x8xbf16>
    tpu.vector_store %arg7[%c128_92, %c0_93], %117 {strides = array<i32>} : memref<160x8xbf16, #tpu.memory_space<vmem>>, vector<8x8xbf16>,
    %c136_94 = arith.constant 136 : index
    %c0_95 = arith.constant 0 : index
    %119 = vector.load %arg1[%c136_94, %c0_95] : memref<160x8xf32, #tpu.memory_space<vmem>>, vector<8x8xf32>
    %120 = arith.mulf %119, %50 : vector<8x8xf32>
    %121 = arith.truncf %120 : vector<8x8xf32> to vector<8x8xbf16>
    %c136_96 = arith.constant 136 : index
    %c0_97 = arith.constant 0 : index
    %122 = vector.load %arg7[%c136_96, %c0_97] : memref<160x8xbf16, #tpu.memory_space<vmem>>, vector<8x8xbf16>
    tpu.vector_store %arg7[%c136_96, %c0_97], %121 {strides = array<i32>} : memref<160x8xbf16, #tpu.memory_space<vmem>>, vector<8x8xbf16>,
    %c144_98 = arith.constant 144 : index
    %c0_99 = arith.constant 0 : index
    %123 = vector.load %arg1[%c144_98, %c0_99] : memref<160x8xf32, #tpu.memory_space<vmem>>, vector<8x8xf32>
    %124 = arith.mulf %123, %50 : vector<8x8xf32>
    %125 = arith.truncf %124 : vector<8x8xf32> to vector<8x8xbf16>
    %c144_100 = arith.constant 144 : index
    %c0_101 = arith.constant 0 : index
    %126 = vector.load %arg7[%c144_100, %c0_101] : memref<160x8xbf16, #tpu.memory_space<vmem>>, vector<8x8xbf16>
    tpu.vector_store %arg7[%c144_100, %c0_101], %125 {strides = array<i32>} : memref<160x8xbf16, #tpu.memory_space<vmem>>, vector<8x8xbf16>,
    %c152_102 = arith.constant 152 : index
    %c0_103 = arith.constant 0 : index
    %127 = vector.load %arg1[%c152_102, %c0_103] : memref<160x8xf32, #tpu.memory_space<vmem>>, vector<8x8xf32>
    %128 = arith.mulf %127, %50 : vector<8x8xf32>
    %129 = arith.truncf %128 : vector<8x8xf32> to vector<8x8xbf16>
    %c152_104 = arith.constant 152 : index
    %c0_105 = arith.constant 0 : index
    %130 = vector.load %arg7[%c152_104, %c0_105] : memref<160x8xbf16, #tpu.memory_space<vmem>>, vector<8x8xbf16>
    tpu.vector_store %arg7[%c152_104, %c0_105], %129 {strides = array<i32>} : memref<160x8xbf16, #tpu.memory_space<vmem>>, vector<8x8xbf16>,
    %c0_106 = arith.constant 0 : index
    %c0_107 = arith.constant 0 : index
    %131 = vector.load %arg7[%c0_106, %c0_107] : memref<160x8xbf16, #tpu.memory_space<vmem>>, vector<160x8xbf16>
    %c0_108 = arith.constant 0 : index
    %c0_109 = arith.constant 0 : index
    %132 = vector.load %arg4[%c0_108, %c0_109] : memref<320x256xbf16, #tpu.memory_space<vmem>>, vector<8x256xbf16>
    %c16_110 = arith.constant 16 : index
    %c0_111 = arith.constant 0 : index
    %133 = vector.load %arg4[%c16_110, %c0_111] : memref<320x256xbf16, #tpu.memory_space<vmem>>, vector<8x256xbf16>
    %c96_112 = arith.constant 96 : index
    %c0_113 = arith.constant 0 : index
    %134 = vector.load %arg4[%c96_112, %c0_113] : memref<320x256xbf16, #tpu.memory_space<vmem>>, vector<1x256xbf16>
    %135 = arith.extf %134 : vector<1x256xbf16> to vector<1x256xf32>
    %cst_114 = arith.constant dense<0.000000e+00> : vector<160x256xf32>
    %136 = tpu.matmul %131, %132, %cst_114 {dimension_numbers = #tpu.dot_dimension_numbers<[1], [0], [0], [1], [0, 0, 1, 1], [], []>} : vector<160x8xbf16>, vector<8x256xbf16>, vector<160x256xf32> -> vector<160x256xf32>
    %137 = vector.broadcast %135 : vector<1x256xf32> to vector<160x256xf32>
    %138 = arith.addf %136, %137 : vector<160x256xf32>
    %c0_115 = arith.constant 0 : index
    %c0_116 = arith.constant 0 : index
    %139 = vector.load %arg8[%c0_115, %c0_116] : memref<160x256xf32, #tpu.memory_space<vmem>>, vector<160x256xf32>
    tpu.vector_store %arg8[%c0_115, %c0_116], %138 {strides = array<i32>} : memref<160x256xf32, #tpu.memory_space<vmem>>, vector<160x256xf32>,
    %cst_117 = arith.constant dense<0.000000e+00> : vector<160x256xf32>
    %140 = tpu.matmul %131, %133, %cst_117 {dimension_numbers = #tpu.dot_dimension_numbers<[1], [0], [0], [1], [0, 0, 1, 1], [], []>} : vector<160x8xbf16>, vector<8x256xbf16>, vector<160x256xf32> -> vector<160x256xf32>
    %c0_118 = arith.constant 0 : index
    %c0_119 = arith.constant 0 : index
    %141 = vector.load %arg9[%c0_118, %c0_119] : memref<160x256xf32, #tpu.memory_space<vmem>>, vector<160x256xf32>
    tpu.vector_store %arg9[%c0_118, %c0_119], %140 {strides = array<i32>} : memref<160x256xf32, #tpu.memory_space<vmem>>, vector<160x256xf32>,
    %c32_120 = arith.constant 32 : index
    %c0_121 = arith.constant 0 : index
    %142 = vector.load %arg4[%c32_120, %c0_121] : memref<320x256xbf16, #tpu.memory_space<vmem>>, vector<64x256xbf16>
    %cst_122 = arith.constant 0.000000e+00 : f32
    %143 = vector.broadcast %cst_122 : f32 to vector<8x64xf32>
    %cst_123 = arith.constant 0.000000e+00 : f32
    %144 = vector.broadcast %cst_123 : f32 to vector<8x64xf32>
    %c0_124 = arith.constant 0 : index
    %c0_125 = arith.constant 0 : index
    %145 = vector.load %arg8[%c0_124, %c0_125] : memref<160x256xf32, #tpu.memory_space<vmem>>, vector<8x256xf32>
    %c152_126 = arith.constant 152 : index
    %c0_127 = arith.constant 0 : index
    %146 = vector.load %arg9[%c152_126, %c0_127] : memref<160x256xf32, #tpu.memory_space<vmem>>, vector<8x256xf32>
    %147 = arith.addf %145, %146 : vector<8x256xf32>
    %148 = arith.truncf %144 : vector<8x64xf32> to vector<8x64xbf16>
    %cst_128 = arith.constant dense<0.000000e+00> : vector<8x256xf32>
    %149 = tpu.matmul %148, %142, %cst_128 {dimension_numbers = #tpu.dot_dimension_numbers<[1], [0], [0], [1], [0, 0, 1, 1], [], []>} : vector<8x64xbf16>, vector<64x256xbf16>, vector<8x256xf32> -> vector<8x256xf32>
    %150 = arith.addf %147, %149 : vector<8x256xf32>
    %151 = vector.extract_strided_slice %150 {offsets = [0, 0], sizes = [8, 192], strides = [1, 1]} : vector<8x256xf32> to vector<8x192xf32>
    %152 = arith.negf %151 : vector<8x192xf32>
    %153 = math.exp %152 : vector<8x192xf32>
    %cst_129 = arith.constant 1.000000e+00 : f32
    %154 = vector.broadcast %cst_129 : f32 to vector<8x192xf32>
    %155 = arith.addf %154, %153 : vector<8x192xf32>
    %156 = arith.divf %154, %155 : vector<8x192xf32>
    %157 = vector.extract_strided_slice %150 {offsets = [0, 192], sizes = [8, 64], strides = [1, 1]} : vector<8x256xf32> to vector<8x64xf32>
    %158 = math.tanh %157 : vector<8x64xf32>
    %159 = vector.extract_strided_slice %156 {offsets = [0, 0], sizes = [8, 64], strides = [1, 1]} : vector<8x192xf32> to vector<8x64xf32>
    %160 = arith.mulf %159, %143 : vector<8x64xf32>
    %161 = vector.extract_strided_slice %156 {offsets = [0, 64], sizes = [8, 64], strides = [1, 1]} : vector<8x192xf32> to vector<8x64xf32>
    %162 = arith.mulf %161, %158 : vector<8x64xf32>
    %163 = arith.addf %160, %162 : vector<8x64xf32>
    %164 = vector.extract_strided_slice %156 {offsets = [0, 128], sizes = [8, 64], strides = [1, 1]} : vector<8x192xf32> to vector<8x64xf32>
    %165 = math.tanh %163 : vector<8x64xf32>
    %166 = arith.mulf %164, %165 : vector<8x64xf32>
    %167 = vector.extract_strided_slice %166 {offsets = [0, 0], sizes = [8, 32], strides = [1, 1]} : vector<8x64xf32> to vector<8x32xf32>
    %c0_130 = arith.constant 0 : index
    %c0_131 = arith.constant 0 : index
    %168 = vector.load %arg10[%c0_130, %c0_131] : memref<160x64xf32, #tpu.memory_space<vmem>>, vector<8x32xf32>
    tpu.vector_store %arg10[%c0_130, %c0_131], %167 {strides = array<i32>} : memref<160x64xf32, #tpu.memory_space<vmem>>, vector<8x32xf32>,
    %169 = vector.extract_strided_slice %166 {offsets = [0, 32], sizes = [8, 32], strides = [1, 1]} : vector<8x64xf32> to vector<8x32xf32>
    %c152_132 = arith.constant 152 : index
    %c32_133 = arith.constant 32 : index
    %170 = vector.load %arg10[%c152_132, %c32_133] : memref<160x64xf32, #tpu.memory_space<vmem>>, vector<8x32xf32>
    tpu.vector_store %arg10[%c152_132, %c32_133], %169 {strides = array<i32>} : memref<160x64xf32, #tpu.memory_space<vmem>>, vector<8x32xf32>,
    %c8_134 = arith.constant 8 : index
    %c0_135 = arith.constant 0 : index
    %171 = vector.load %arg8[%c8_134, %c0_135] : memref<160x256xf32, #tpu.memory_space<vmem>>, vector<8x256xf32>
    %c144_136 = arith.constant 144 : index
    %c0_137 = arith.constant 0 : index
    %172 = vector.load %arg9[%c144_136, %c0_137] : memref<160x256xf32, #tpu.memory_space<vmem>>, vector<8x256xf32>
    %173 = arith.addf %171, %172 : vector<8x256xf32>
    %174 = arith.truncf %166 : vector<8x64xf32> to vector<8x64xbf16>
    %cst_138 = arith.constant dense<0.000000e+00> : vector<8x256xf32>
    %175 = tpu.matmul %174, %142, %cst_138 {dimension_numbers = #tpu.dot_dimension_numbers<[1], [0], [0], [1], [0, 0, 1, 1], [], []>} : vector<8x64xbf16>, vector<64x256xbf16>, vector<8x256xf32> -> vector<8x256xf32>
    %176 = arith.addf %173, %175 : vector<8x256xf32>
    %177 = vector.extract_strided_slice %176 {offsets = [0, 0], sizes = [8, 192], strides = [1, 1]} : vector<8x256xf32> to vector<8x192xf32>
    %178 = arith.negf %177 : vector<8x192xf32>
    %179 = math.exp %178 : vector<8x192xf32>
    %cst_139 = arith.constant 1.000000e+00 : f32
    %180 = vector.broadcast %cst_139 : f32 to vector<8x192xf32>
    %181 = arith.addf %180, %179 : vector<8x192xf32>
    %182 = arith.divf %180, %181 : vector<8x192xf32>
    %183 = vector.extract_strided_slice %176 {offsets = [0, 192], sizes = [8, 64], strides = [1, 1]} : vector<8x256xf32> to vector<8x64xf32>
    %184 = math.tanh %183 : vector<8x64xf32>
    %185 = vector.extract_strided_slice %182 {offsets = [0, 0], sizes = [8, 64], strides = [1, 1]} : vector<8x192xf32> to vector<8x64xf32>
    %186 = arith.mulf %185, %163 : vector<8x64xf32>
    %187 = vector.extract_strided_slice %182 {offsets = [0, 64], sizes = [8, 64], strides = [1, 1]} : vector<8x192xf32> to vector<8x64xf32>
    %188 = arith.mulf %187, %184 : vector<8x64xf32>
    %189 = arith.addf %186, %188 : vector<8x64xf32>
    %190 = vector.extract_strided_slice %182 {offsets = [0, 128], sizes = [8, 64], strides = [1, 1]} : vector<8x192xf32> to vector<8x64xf32>
    %191 = math.tanh %189 : vector<8x64xf32>
    %192 = arith.mulf %190, %191 : vector<8x64xf32>
    %193 = vector.extract_strided_slice %192 {offsets = [0, 0], sizes = [8, 32], strides = [1, 1]} : vector<8x64xf32> to vector<8x32xf32>
    %c8_140 = arith.constant 8 : index
    %c0_141 = arith.constant 0 : index
    %194 = vector.load %arg10[%c8_140, %c0_141] : memref<160x64xf32, #tpu.memory_space<vmem>>, vector<8x32xf32>
    tpu.vector_store %arg10[%c8_140, %c0_141], %193 {strides = array<i32>} : memref<160x64xf32, #tpu.memory_space<vmem>>, vector<8x32xf32>,
    %195 = vector.extract_strided_slice %192 {offsets = [0, 32], sizes = [8, 32], strides = [1, 1]} : vector<8x64xf32> to vector<8x32xf32>
    %c144_142 = arith.constant 144 : index
    %c32_143 = arith.constant 32 : index
    %196 = vector.load %arg10[%c144_142, %c32_143] : memref<160x64xf32, #tpu.memory_space<vmem>>, vector<8x32xf32>
    tpu.vector_store %arg10[%c144_142, %c32_143], %195 {strides = array<i32>} : memref<160x64xf32, #tpu.memory_space<vmem>>, vector<8x32xf32>,
    %c16_144 = arith.constant 16 : index
    %c0_145 = arith.constant 0 : index
    %197 = vector.load %arg8[%c16_144, %c0_145] : memref<160x256xf32, #tpu.memory_space<vmem>>, vector<8x256xf32>
    %c136_146 = arith.constant 136 : index
    %c0_147 = arith.constant 0 : index
    %198 = vector.load %arg9[%c136_146, %c0_147] : memref<160x256xf32, #tpu.memory_space<vmem>>, vector<8x256xf32>
    %199 = arith.addf %197, %198 : vector<8x256xf32>
    %200 = arith.truncf %192 : vector<8x64xf32> to vector<8x64xbf16>
    %cst_148 = arith.constant dense<0.000000e+00> : vector<8x256xf32>
    %201 = tpu.matmul %200, %142, %cst_148 {dimension_numbers = #tpu.dot_dimension_numbers<[1], [0], [0], [1], [0, 0, 1, 1], [], []>} : vector<8x64xbf16>, vector<64x256xbf16>, vector<8x256xf32> -> vector<8x256xf32>
    %202 = arith.addf %199, %201 : vector<8x256xf32>
    %203 = vector.extract_strided_slice %202 {offsets = [0, 0], sizes = [8, 192], strides = [1, 1]} : vector<8x256xf32> to vector<8x192xf32>
    %204 = arith.negf %203 : vector<8x192xf32>
    %205 = math.exp %204 : vector<8x192xf32>
    %cst_149 = arith.constant 1.000000e+00 : f32
    %206 = vector.broadcast %cst_149 : f32 to vector<8x192xf32>
    %207 = arith.addf %206, %205 : vector<8x192xf32>
    %208 = arith.divf %206, %207 : vector<8x192xf32>
    %209 = vector.extract_strided_slice %202 {offsets = [0, 192], sizes = [8, 64], strides = [1, 1]} : vector<8x256xf32> to vector<8x64xf32>
    %210 = math.tanh %209 : vector<8x64xf32>
    %211 = vector.extract_strided_slice %208 {offsets = [0, 0], sizes = [8, 64], strides = [1, 1]} : vector<8x192xf32> to vector<8x64xf32>
    %212 = arith.mulf %211, %189 : vector<8x64xf32>
    %213 = vector.extract_strided_slice %208 {offsets = [0, 64], sizes = [8, 64], strides = [1, 1]} : vector<8x192xf32> to vector<8x64xf32>
    %214 = arith.mulf %213, %210 : vector<8x64xf32>
    %215 = arith.addf %212, %214 : vector<8x64xf32>
    %216 = vector.extract_strided_slice %208 {offsets = [0, 128], sizes = [8, 64], strides = [1, 1]} : vector<8x192xf32> to vector<8x64xf32>
    %217 = math.tanh %215 : vector<8x64xf32>
    %218 = arith.mulf %216, %217 : vector<8x64xf32>
    %219 = vector.extract_strided_slice %218 {offsets = [0, 0], sizes = [8, 32], strides = [1, 1]} : vector<8x64xf32> to vector<8x32xf32>
    %c16_150 = arith.constant 16 : index
    %c0_151 = arith.constant 0 : index
    %220 = vector.load %arg10[%c16_150, %c0_151] : memref<160x64xf32, #tpu.memory_space<vmem>>, vector<8x32xf32>
    tpu.vector_store %arg10[%c16_150, %c0_151], %219 {strides = array<i32>} : memref<160x64xf32, #tpu.memory_space<vmem>>, vector<8x32xf32>,
    %221 = vector.extract_strided_slice %218 {offsets = [0, 32], sizes = [8, 32], strides = [1, 1]} : vector<8x64xf32> to vector<8x32xf32>
    %c136_152 = arith.constant 136 : index
    %c32_153 = arith.constant 32 : index
    %222 = vector.load %arg10[%c136_152, %c32_153] : memref<160x64xf32, #tpu.memory_space<vmem>>, vector<8x32xf32>
    tpu.vector_store %arg10[%c136_152, %c32_153], %221 {strides = array<i32>} : memref<160x64xf32, #tpu.memory_space<vmem>>, vector<8x32xf32>,
    %c24_154 = arith.constant 24 : index
    %c0_155 = arith.constant 0 : index
    %223 = vector.load %arg8[%c24_154, %c0_155] : memref<160x256xf32, #tpu.memory_space<vmem>>, vector<8x256xf32>
    %c128_156 = arith.constant 128 : index
    %c0_157 = arith.constant 0 : index
    %224 = vector.load %arg9[%c128_156, %c0_157] : memref<160x256xf32, #tpu.memory_space<vmem>>, vector<8x256xf32>
    %225 = arith.addf %223, %224 : vector<8x256xf32>
    %226 = arith.truncf %218 : vector<8x64xf32> to vector<8x64xbf16>
    %cst_158 = arith.constant dense<0.000000e+00> : vector<8x256xf32>
    %227 = tpu.matmul %226, %142, %cst_158 {dimension_numbers = #tpu.dot_dimension_numbers<[1], [0], [0], [1], [0, 0, 1, 1], [], []>} : vector<8x64xbf16>, vector<64x256xbf16>, vector<8x256xf32> -> vector<8x256xf32>
    %228 = arith.addf %225, %227 : vector<8x256xf32>
    %229 = vector.extract_strided_slice %228 {offsets = [0, 0], sizes = [8, 192], strides = [1, 1]} : vector<8x256xf32> to vector<8x192xf32>
    %230 = arith.negf %229 : vector<8x192xf32>
    %231 = math.exp %230 : vector<8x192xf32>
    %cst_159 = arith.constant 1.000000e+00 : f32
    %232 = vector.broadcast %cst_159 : f32 to vector<8x192xf32>
    %233 = arith.addf %232, %231 : vector<8x192xf32>
    %234 = arith.divf %232, %233 : vector<8x192xf32>
    %235 = vector.extract_strided_slice %228 {offsets = [0, 192], sizes = [8, 64], strides = [1, 1]} : vector<8x256xf32> to vector<8x64xf32>
    %236 = math.tanh %235 : vector<8x64xf32>
    %237 = vector.extract_strided_slice %234 {offsets = [0, 0], sizes = [8, 64], strides = [1, 1]} : vector<8x192xf32> to vector<8x64xf32>
    %238 = arith.mulf %237, %215 : vector<8x64xf32>
    %239 = vector.extract_strided_slice %234 {offsets = [0, 64], sizes = [8, 64], strides = [1, 1]} : vector<8x192xf32> to vector<8x64xf32>
    %240 = arith.mulf %239, %236 : vector<8x64xf32>
    %241 = arith.addf %238, %240 : vector<8x64xf32>
    %242 = vector.extract_strided_slice %234 {offsets = [0, 128], sizes = [8, 64], strides = [1, 1]} : vector<8x192xf32> to vector<8x64xf32>
    %243 = math.tanh %241 : vector<8x64xf32>
    %244 = arith.mulf %242, %243 : vector<8x64xf32>
    %245 = vector.extract_strided_slice %244 {offsets = [0, 0], sizes = [8, 32], strides = [1, 1]} : vector<8x64xf32> to vector<8x32xf32>
    %c24_160 = arith.constant 24 : index
    %c0_161 = arith.constant 0 : index
    %246 = vector.load %arg10[%c24_160, %c0_161] : memref<160x64xf32, #tpu.memory_space<vmem>>, vector<8x32xf32>
    tpu.vector_store %arg10[%c24_160, %c0_161], %245 {strides = array<i32>} : memref<160x64xf32, #tpu.memory_space<vmem>>, vector<8x32xf32>,
    %247 = vector.extract_strided_slice %244 {offsets = [0, 32], sizes = [8, 32], strides = [1, 1]} : vector<8x64xf32> to vector<8x32xf32>
    %c128_162 = arith.constant 128 : index
    %c32_163 = arith.constant 32 : index
    %248 = vector.load %arg10[%c128_162, %c32_163] : memref<160x64xf32, #tpu.memory_space<vmem>>, vector<8x32xf32>
    tpu.vector_store %arg10[%c128_162, %c32_163], %247 {strides = array<i32>} : memref<160x64xf32, #tpu.memory_space<vmem>>, vector<8x32xf32>,
    %c32_164 = arith.constant 32 : index
    %c0_165 = arith.constant 0 : index
    %249 = vector.load %arg8[%c32_164, %c0_165] : memref<160x256xf32, #tpu.memory_space<vmem>>, vector<8x256xf32>
    %c120_166 = arith.constant 120 : index
    %c0_167 = arith.constant 0 : index
    %250 = vector.load %arg9[%c120_166, %c0_167] : memref<160x256xf32, #tpu.memory_space<vmem>>, vector<8x256xf32>
    %251 = arith.addf %249, %250 : vector<8x256xf32>
    %252 = arith.truncf %244 : vector<8x64xf32> to vector<8x64xbf16>
    %cst_168 = arith.constant dense<0.000000e+00> : vector<8x256xf32>
    %253 = tpu.matmul %252, %142, %cst_168 {dimension_numbers = #tpu.dot_dimension_numbers<[1], [0], [0], [1], [0, 0, 1, 1], [], []>} : vector<8x64xbf16>, vector<64x256xbf16>, vector<8x256xf32> -> vector<8x256xf32>
    %254 = arith.addf %251, %253 : vector<8x256xf32>
    %255 = vector.extract_strided_slice %254 {offsets = [0, 0], sizes = [8, 192], strides = [1, 1]} : vector<8x256xf32> to vector<8x192xf32>
    %256 = arith.negf %255 : vector<8x192xf32>
    %257 = math.exp %256 : vector<8x192xf32>
    %cst_169 = arith.constant 1.000000e+00 : f32
    %258 = vector.broadcast %cst_169 : f32 to vector<8x192xf32>
    %259 = arith.addf %258, %257 : vector<8x192xf32>
    %260 = arith.divf %258, %259 : vector<8x192xf32>
    %261 = vector.extract_strided_slice %254 {offsets = [0, 192], sizes = [8, 64], strides = [1, 1]} : vector<8x256xf32> to vector<8x64xf32>
    %262 = math.tanh %261 : vector<8x64xf32>
    %263 = vector.extract_strided_slice %260 {offsets = [0, 0], sizes = [8, 64], strides = [1, 1]} : vector<8x192xf32> to vector<8x64xf32>
    %264 = arith.mulf %263, %241 : vector<8x64xf32>
    %265 = vector.extract_strided_slice %260 {offsets = [0, 64], sizes = [8, 64], strides = [1, 1]} : vector<8x192xf32> to vector<8x64xf32>
    %266 = arith.mulf %265, %262 : vector<8x64xf32>
    %267 = arith.addf %264, %266 : vector<8x64xf32>
    %268 = vector.extract_strided_slice %260 {offsets = [0, 128], sizes = [8, 64], strides = [1, 1]} : vector<8x192xf32> to vector<8x64xf32>
    %269 = math.tanh %267 : vector<8x64xf32>
    %270 = arith.mulf %268, %269 : vector<8x64xf32>
    %271 = vector.extract_strided_slice %270 {offsets = [0, 0], sizes = [8, 32], strides = [1, 1]} : vector<8x64xf32> to vector<8x32xf32>
    %c32_170 = arith.constant 32 : index
    %c0_171 = arith.constant 0 : index
    %272 = vector.load %arg10[%c32_170, %c0_171] : memref<160x64xf32, #tpu.memory_space<vmem>>, vector<8x32xf32>
    tpu.vector_store %arg10[%c32_170, %c0_171], %271 {strides = array<i32>} : memref<160x64xf32, #tpu.memory_space<vmem>>, vector<8x32xf32>,
    %273 = vector.extract_strided_slice %270 {offsets = [0, 32], sizes = [8, 32], strides = [1, 1]} : vector<8x64xf32> to vector<8x32xf32>
    %c120_172 = arith.constant 120 : index
    %c32_173 = arith.constant 32 : index
    %274 = vector.load %arg10[%c120_172, %c32_173] : memref<160x64xf32, #tpu.memory_space<vmem>>, vector<8x32xf32>
    tpu.vector_store %arg10[%c120_172, %c32_173], %273 {strides = array<i32>} : memref<160x64xf32, #tpu.memory_space<vmem>>, vector<8x32xf32>,
    %c40_174 = arith.constant 40 : index
    %c0_175 = arith.constant 0 : index
    %275 = vector.load %arg8[%c40_174, %c0_175] : memref<160x256xf32, #tpu.memory_space<vmem>>, vector<8x256xf32>
    %c112_176 = arith.constant 112 : index
    %c0_177 = arith.constant 0 : index
    %276 = vector.load %arg9[%c112_176, %c0_177] : memref<160x256xf32, #tpu.memory_space<vmem>>, vector<8x256xf32>
    %277 = arith.addf %275, %276 : vector<8x256xf32>
    %278 = arith.truncf %270 : vector<8x64xf32> to vector<8x64xbf16>
    %cst_178 = arith.constant dense<0.000000e+00> : vector<8x256xf32>
    %279 = tpu.matmul %278, %142, %cst_178 {dimension_numbers = #tpu.dot_dimension_numbers<[1], [0], [0], [1], [0, 0, 1, 1], [], []>} : vector<8x64xbf16>, vector<64x256xbf16>, vector<8x256xf32> -> vector<8x256xf32>
    %280 = arith.addf %277, %279 : vector<8x256xf32>
    %281 = vector.extract_strided_slice %280 {offsets = [0, 0], sizes = [8, 192], strides = [1, 1]} : vector<8x256xf32> to vector<8x192xf32>
    %282 = arith.negf %281 : vector<8x192xf32>
    %283 = math.exp %282 : vector<8x192xf32>
    %cst_179 = arith.constant 1.000000e+00 : f32
    %284 = vector.broadcast %cst_179 : f32 to vector<8x192xf32>
    %285 = arith.addf %284, %283 : vector<8x192xf32>
    %286 = arith.divf %284, %285 : vector<8x192xf32>
    %287 = vector.extract_strided_slice %280 {offsets = [0, 192], sizes = [8, 64], strides = [1, 1]} : vector<8x256xf32> to vector<8x64xf32>
    %288 = math.tanh %287 : vector<8x64xf32>
    %289 = vector.extract_strided_slice %286 {offsets = [0, 0], sizes = [8, 64], strides = [1, 1]} : vector<8x192xf32> to vector<8x64xf32>
    %290 = arith.mulf %289, %267 : vector<8x64xf32>
    %291 = vector.extract_strided_slice %286 {offsets = [0, 64], sizes = [8, 64], strides = [1, 1]} : vector<8x192xf32> to vector<8x64xf32>
    %292 = arith.mulf %291, %288 : vector<8x64xf32>
    %293 = arith.addf %290, %292 : vector<8x64xf32>
    %294 = vector.extract_strided_slice %286 {offsets = [0, 128], sizes = [8, 64], strides = [1, 1]} : vector<8x192xf32> to vector<8x64xf32>
    %295 = math.tanh %293 : vector<8x64xf32>
    %296 = arith.mulf %294, %295 : vector<8x64xf32>
    %297 = vector.extract_strided_slice %296 {offsets = [0, 0], sizes = [8, 32], strides = [1, 1]} : vector<8x64xf32> to vector<8x32xf32>
    %c40_180 = arith.constant 40 : index
    %c0_181 = arith.constant 0 : index
    %298 = vector.load %arg10[%c40_180, %c0_181] : memref<160x64xf32, #tpu.memory_space<vmem>>, vector<8x32xf32>
    tpu.vector_store %arg10[%c40_180, %c0_181], %297 {strides = array<i32>} : memref<160x64xf32, #tpu.memory_space<vmem>>, vector<8x32xf32>,
    %299 = vector.extract_strided_slice %296 {offsets = [0, 32], sizes = [8, 32], strides = [1, 1]} : vector<8x64xf32> to vector<8x32xf32>
    %c112_182 = arith.constant 112 : index
    %c32_183 = arith.constant 32 : index
    %300 = vector.load %arg10[%c112_182, %c32_183] : memref<160x64xf32, #tpu.memory_space<vmem>>, vector<8x32xf32>
    tpu.vector_store %arg10[%c112_182, %c32_183], %299 {strides = array<i32>} : memref<160x64xf32, #tpu.memory_space<vmem>>, vector<8x32xf32>,
    %c48_184 = arith.constant 48 : index
    %c0_185 = arith.constant 0 : index
    %301 = vector.load %arg8[%c48_184, %c0_185] : memref<160x256xf32, #tpu.memory_space<vmem>>, vector<8x256xf32>
    %c104_186 = arith.constant 104 : index
    %c0_187 = arith.constant 0 : index
    %302 = vector.load %arg9[%c104_186, %c0_187] : memref<160x256xf32, #tpu.memory_space<vmem>>, vector<8x256xf32>
    %303 = arith.addf %301, %302 : vector<8x256xf32>
    %304 = arith.truncf %296 : vector<8x64xf32> to vector<8x64xbf16>
    %cst_188 = arith.constant dense<0.000000e+00> : vector<8x256xf32>
    %305 = tpu.matmul %304, %142, %cst_188 {dimension_numbers = #tpu.dot_dimension_numbers<[1], [0], [0], [1], [0, 0, 1, 1], [], []>} : vector<8x64xbf16>, vector<64x256xbf16>, vector<8x256xf32> -> vector<8x256xf32>
    %306 = arith.addf %303, %305 : vector<8x256xf32>
    %307 = vector.extract_strided_slice %306 {offsets = [0, 0], sizes = [8, 192], strides = [1, 1]} : vector<8x256xf32> to vector<8x192xf32>
    %308 = arith.negf %307 : vector<8x192xf32>
    %309 = math.exp %308 : vector<8x192xf32>
    %cst_189 = arith.constant 1.000000e+00 : f32
    %310 = vector.broadcast %cst_189 : f32 to vector<8x192xf32>
    %311 = arith.addf %310, %309 : vector<8x192xf32>
    %312 = arith.divf %310, %311 : vector<8x192xf32>
    %313 = vector.extract_strided_slice %306 {offsets = [0, 192], sizes = [8, 64], strides = [1, 1]} : vector<8x256xf32> to vector<8x64xf32>
    %314 = math.tanh %313 : vector<8x64xf32>
    %315 = vector.extract_strided_slice %312 {offsets = [0, 0], sizes = [8, 64], strides = [1, 1]} : vector<8x192xf32> to vector<8x64xf32>
    %316 = arith.mulf %315, %293 : vector<8x64xf32>
    %317 = vector.extract_strided_slice %312 {offsets = [0, 64], sizes = [8, 64], strides = [1, 1]} : vector<8x192xf32> to vector<8x64xf32>
    %318 = arith.mulf %317, %314 : vector<8x64xf32>
    %319 = arith.addf %316, %318 : vector<8x64xf32>
    %320 = vector.extract_strided_slice %312 {offsets = [0, 128], sizes = [8, 64], strides = [1, 1]} : vector<8x192xf32> to vector<8x64xf32>
    %321 = math.tanh %319 : vector<8x64xf32>
    %322 = arith.mulf %320, %321 : vector<8x64xf32>
    %323 = vector.extract_strided_slice %322 {offsets = [0, 0], sizes = [8, 32], strides = [1, 1]} : vector<8x64xf32> to vector<8x32xf32>
    %c48_190 = arith.constant 48 : index
    %c0_191 = arith.constant 0 : index
    %324 = vector.load %arg10[%c48_190, %c0_191] : memref<160x64xf32, #tpu.memory_space<vmem>>, vector<8x32xf32>
    tpu.vector_store %arg10[%c48_190, %c0_191], %323 {strides = array<i32>} : memref<160x64xf32, #tpu.memory_space<vmem>>, vector<8x32xf32>,
    %325 = vector.extract_strided_slice %322 {offsets = [0, 32], sizes = [8, 32], strides = [1, 1]} : vector<8x64xf32> to vector<8x32xf32>
    %c104_192 = arith.constant 104 : index
    %c32_193 = arith.constant 32 : index
    %326 = vector.load %arg10[%c104_192, %c32_193] : memref<160x64xf32, #tpu.memory_space<vmem>>, vector<8x32xf32>
    tpu.vector_store %arg10[%c104_192, %c32_193], %325 {strides = array<i32>} : memref<160x64xf32, #tpu.memory_space<vmem>>, vector<8x32xf32>,
    %c56_194 = arith.constant 56 : index
    %c0_195 = arith.constant 0 : index
    %327 = vector.load %arg8[%c56_194, %c0_195] : memref<160x256xf32, #tpu.memory_space<vmem>>, vector<8x256xf32>
    %c96_196 = arith.constant 96 : index
    %c0_197 = arith.constant 0 : index
    %328 = vector.load %arg9[%c96_196, %c0_197] : memref<160x256xf32, #tpu.memory_space<vmem>>, vector<8x256xf32>
    %329 = arith.addf %327, %328 : vector<8x256xf32>
    %330 = arith.truncf %322 : vector<8x64xf32> to vector<8x64xbf16>
    %cst_198 = arith.constant dense<0.000000e+00> : vector<8x256xf32>
    %331 = tpu.matmul %330, %142, %cst_198 {dimension_numbers = #tpu.dot_dimension_numbers<[1], [0], [0], [1], [0, 0, 1, 1], [], []>} : vector<8x64xbf16>, vector<64x256xbf16>, vector<8x256xf32> -> vector<8x256xf32>
    %332 = arith.addf %329, %331 : vector<8x256xf32>
    %333 = vector.extract_strided_slice %332 {offsets = [0, 0], sizes = [8, 192], strides = [1, 1]} : vector<8x256xf32> to vector<8x192xf32>
    %334 = arith.negf %333 : vector<8x192xf32>
    %335 = math.exp %334 : vector<8x192xf32>
    %cst_199 = arith.constant 1.000000e+00 : f32
    %336 = vector.broadcast %cst_199 : f32 to vector<8x192xf32>
    %337 = arith.addf %336, %335 : vector<8x192xf32>
    %338 = arith.divf %336, %337 : vector<8x192xf32>
    %339 = vector.extract_strided_slice %332 {offsets = [0, 192], sizes = [8, 64], strides = [1, 1]} : vector<8x256xf32> to vector<8x64xf32>
    %340 = math.tanh %339 : vector<8x64xf32>
    %341 = vector.extract_strided_slice %338 {offsets = [0, 0], sizes = [8, 64], strides = [1, 1]} : vector<8x192xf32> to vector<8x64xf32>
    %342 = arith.mulf %341, %319 : vector<8x64xf32>
    %343 = vector.extract_strided_slice %338 {offsets = [0, 64], sizes = [8, 64], strides = [1, 1]} : vector<8x192xf32> to vector<8x64xf32>
    %344 = arith.mulf %343, %340 : vector<8x64xf32>
    %345 = arith.addf %342, %344 : vector<8x64xf32>
    %346 = vector.extract_strided_slice %338 {offsets = [0, 128], sizes = [8, 64], strides = [1, 1]} : vector<8x192xf32> to vector<8x64xf32>
    %347 = math.tanh %345 : vector<8x64xf32>
    %348 = arith.mulf %346, %347 : vector<8x64xf32>
    %349 = vector.extract_strided_slice %348 {offsets = [0, 0], sizes = [8, 32], strides = [1, 1]} : vector<8x64xf32> to vector<8x32xf32>
    %c56_200 = arith.constant 56 : index
    %c0_201 = arith.constant 0 : index
    %350 = vector.load %arg10[%c56_200, %c0_201] : memref<160x64xf32, #tpu.memory_space<vmem>>, vector<8x32xf32>
    tpu.vector_store %arg10[%c56_200, %c0_201], %349 {strides = array<i32>} : memref<160x64xf32, #tpu.memory_space<vmem>>, vector<8x32xf32>,
    %351 = vector.extract_strided_slice %348 {offsets = [0, 32], sizes = [8, 32], strides = [1, 1]} : vector<8x64xf32> to vector<8x32xf32>
    %c96_202 = arith.constant 96 : index
    %c32_203 = arith.constant 32 : index
    %352 = vector.load %arg10[%c96_202, %c32_203] : memref<160x64xf32, #tpu.memory_space<vmem>>, vector<8x32xf32>
    tpu.vector_store %arg10[%c96_202, %c32_203], %351 {strides = array<i32>} : memref<160x64xf32, #tpu.memory_space<vmem>>, vector<8x32xf32>,
    %c64_204 = arith.constant 64 : index
    %c0_205 = arith.constant 0 : index
    %353 = vector.load %arg8[%c64_204, %c0_205] : memref<160x256xf32, #tpu.memory_space<vmem>>, vector<8x256xf32>
    %c88_206 = arith.constant 88 : index
    %c0_207 = arith.constant 0 : index
    %354 = vector.load %arg9[%c88_206, %c0_207] : memref<160x256xf32, #tpu.memory_space<vmem>>, vector<8x256xf32>
    %355 = arith.addf %353, %354 : vector<8x256xf32>
    %356 = arith.truncf %348 : vector<8x64xf32> to vector<8x64xbf16>
    %cst_208 = arith.constant dense<0.000000e+00> : vector<8x256xf32>
    %357 = tpu.matmul %356, %142, %cst_208 {dimension_numbers = #tpu.dot_dimension_numbers<[1], [0], [0], [1], [0, 0, 1, 1], [], []>} : vector<8x64xbf16>, vector<64x256xbf16>, vector<8x256xf32> -> vector<8x256xf32>
    %358 = arith.addf %355, %357 : vector<8x256xf32>
    %359 = vector.extract_strided_slice %358 {offsets = [0, 0], sizes = [8, 192], strides = [1, 1]} : vector<8x256xf32> to vector<8x192xf32>
    %360 = arith.negf %359 : vector<8x192xf32>
    %361 = math.exp %360 : vector<8x192xf32>
    %cst_209 = arith.constant 1.000000e+00 : f32
    %362 = vector.broadcast %cst_209 : f32 to vector<8x192xf32>
    %363 = arith.addf %362, %361 : vector<8x192xf32>
    %364 = arith.divf %362, %363 : vector<8x192xf32>
    %365 = vector.extract_strided_slice %358 {offsets = [0, 192], sizes = [8, 64], strides = [1, 1]} : vector<8x256xf32> to vector<8x64xf32>
    %366 = math.tanh %365 : vector<8x64xf32>
    %367 = vector.extract_strided_slice %364 {offsets = [0, 0], sizes = [8, 64], strides = [1, 1]} : vector<8x192xf32> to vector<8x64xf32>
    %368 = arith.mulf %367, %345 : vector<8x64xf32>
    %369 = vector.extract_strided_slice %364 {offsets = [0, 64], sizes = [8, 64], strides = [1, 1]} : vector<8x192xf32> to vector<8x64xf32>
    %370 = arith.mulf %369, %366 : vector<8x64xf32>
    %371 = arith.addf %368, %370 : vector<8x64xf32>
    %372 = vector.extract_strided_slice %364 {offsets = [0, 128], sizes = [8, 64], strides = [1, 1]} : vector<8x192xf32> to vector<8x64xf32>
    %373 = math.tanh %371 : vector<8x64xf32>
    %374 = arith.mulf %372, %373 : vector<8x64xf32>
    %375 = vector.extract_strided_slice %374 {offsets = [0, 0], sizes = [8, 32], strides = [1, 1]} : vector<8x64xf32> to vector<8x32xf32>
    %c64_210 = arith.constant 64 : index
    %c0_211 = arith.constant 0 : index
    %376 = vector.load %arg10[%c64_210, %c0_211] : memref<160x64xf32, #tpu.memory_space<vmem>>, vector<8x32xf32>
    tpu.vector_store %arg10[%c64_210, %c0_211], %375 {strides = array<i32>} : memref<160x64xf32, #tpu.memory_space<vmem>>, vector<8x32xf32>,
    %377 = vector.extract_strided_slice %374 {offsets = [0, 32], sizes = [8, 32], strides = [1, 1]} : vector<8x64xf32> to vector<8x32xf32>
    %c88_212 = arith.constant 88 : index
    %c32_213 = arith.constant 32 : index
    %378 = vector.load %arg10[%c88_212, %c32_213] : memref<160x64xf32, #tpu.memory_space<vmem>>, vector<8x32xf32>
    tpu.vector_store %arg10[%c88_212, %c32_213], %377 {strides = array<i32>} : memref<160x64xf32, #tpu.memory_space<vmem>>, vector<8x32xf32>,
    %c72_214 = arith.constant 72 : index
    %c0_215 = arith.constant 0 : index
    %379 = vector.load %arg8[%c72_214, %c0_215] : memref<160x256xf32, #tpu.memory_space<vmem>>, vector<8x256xf32>
    %c80_216 = arith.constant 80 : index
    %c0_217 = arith.constant 0 : index
    %380 = vector.load %arg9[%c80_216, %c0_217] : memref<160x256xf32, #tpu.memory_space<vmem>>, vector<8x256xf32>
    %381 = arith.addf %379, %380 : vector<8x256xf32>
    %382 = arith.truncf %374 : vector<8x64xf32> to vector<8x64xbf16>
    %cst_218 = arith.constant dense<0.000000e+00> : vector<8x256xf32>
    %383 = tpu.matmul %382, %142, %cst_218 {dimension_numbers = #tpu.dot_dimension_numbers<[1], [0], [0], [1], [0, 0, 1, 1], [], []>} : vector<8x64xbf16>, vector<64x256xbf16>, vector<8x256xf32> -> vector<8x256xf32>
    %384 = arith.addf %381, %383 : vector<8x256xf32>
    %385 = vector.extract_strided_slice %384 {offsets = [0, 0], sizes = [8, 192], strides = [1, 1]} : vector<8x256xf32> to vector<8x192xf32>
    %386 = arith.negf %385 : vector<8x192xf32>
    %387 = math.exp %386 : vector<8x192xf32>
    %cst_219 = arith.constant 1.000000e+00 : f32
    %388 = vector.broadcast %cst_219 : f32 to vector<8x192xf32>
    %389 = arith.addf %388, %387 : vector<8x192xf32>
    %390 = arith.divf %388, %389 : vector<8x192xf32>
    %391 = vector.extract_strided_slice %384 {offsets = [0, 192], sizes = [8, 64], strides = [1, 1]} : vector<8x256xf32> to vector<8x64xf32>
    %392 = math.tanh %391 : vector<8x64xf32>
    %393 = vector.extract_strided_slice %390 {offsets = [0, 0], sizes = [8, 64], strides = [1, 1]} : vector<8x192xf32> to vector<8x64xf32>
    %394 = arith.mulf %393, %371 : vector<8x64xf32>
    %395 = vector.extract_strided_slice %390 {offsets = [0, 64], sizes = [8, 64], strides = [1, 1]} : vector<8x192xf32> to vector<8x64xf32>
    %396 = arith.mulf %395, %392 : vector<8x64xf32>
    %397 = arith.addf %394, %396 : vector<8x64xf32>
    %398 = vector.extract_strided_slice %390 {offsets = [0, 128], sizes = [8, 64], strides = [1, 1]} : vector<8x192xf32> to vector<8x64xf32>
    %399 = math.tanh %397 : vector<8x64xf32>
    %400 = arith.mulf %398, %399 : vector<8x64xf32>
    %401 = vector.extract_strided_slice %400 {offsets = [0, 0], sizes = [8, 32], strides = [1, 1]} : vector<8x64xf32> to vector<8x32xf32>
    %c72_220 = arith.constant 72 : index
    %c0_221 = arith.constant 0 : index
    %402 = vector.load %arg10[%c72_220, %c0_221] : memref<160x64xf32, #tpu.memory_space<vmem>>, vector<8x32xf32>
    tpu.vector_store %arg10[%c72_220, %c0_221], %401 {strides = array<i32>} : memref<160x64xf32, #tpu.memory_space<vmem>>, vector<8x32xf32>,
    %403 = vector.extract_strided_slice %400 {offsets = [0, 32], sizes = [8, 32], strides = [1, 1]} : vector<8x64xf32> to vector<8x32xf32>
    %c80_222 = arith.constant 80 : index
    %c32_223 = arith.constant 32 : index
    %404 = vector.load %arg10[%c80_222, %c32_223] : memref<160x64xf32, #tpu.memory_space<vmem>>, vector<8x32xf32>
    tpu.vector_store %arg10[%c80_222, %c32_223], %403 {strides = array<i32>} : memref<160x64xf32, #tpu.memory_space<vmem>>, vector<8x32xf32>,
    %c80_224 = arith.constant 80 : index
    %c0_225 = arith.constant 0 : index
    %405 = vector.load %arg8[%c80_224, %c0_225] : memref<160x256xf32, #tpu.memory_space<vmem>>, vector<8x256xf32>
    %c72_226 = arith.constant 72 : index
    %c0_227 = arith.constant 0 : index
    %406 = vector.load %arg9[%c72_226, %c0_227] : memref<160x256xf32, #tpu.memory_space<vmem>>, vector<8x256xf32>
    %407 = arith.addf %405, %406 : vector<8x256xf32>
    %408 = arith.truncf %400 : vector<8x64xf32> to vector<8x64xbf16>
    %cst_228 = arith.constant dense<0.000000e+00> : vector<8x256xf32>
    %409 = tpu.matmul %408, %142, %cst_228 {dimension_numbers = #tpu.dot_dimension_numbers<[1], [0], [0], [1], [0, 0, 1, 1], [], []>} : vector<8x64xbf16>, vector<64x256xbf16>, vector<8x256xf32> -> vector<8x256xf32>
    %410 = arith.addf %407, %409 : vector<8x256xf32>
    %411 = vector.extract_strided_slice %410 {offsets = [0, 0], sizes = [8, 192], strides = [1, 1]} : vector<8x256xf32> to vector<8x192xf32>
    %412 = arith.negf %411 : vector<8x192xf32>
    %413 = math.exp %412 : vector<8x192xf32>
    %cst_229 = arith.constant 1.000000e+00 : f32
    %414 = vector.broadcast %cst_229 : f32 to vector<8x192xf32>
    %415 = arith.addf %414, %413 : vector<8x192xf32>
    %416 = arith.divf %414, %415 : vector<8x192xf32>
    %417 = vector.extract_strided_slice %410 {offsets = [0, 192], sizes = [8, 64], strides = [1, 1]} : vector<8x256xf32> to vector<8x64xf32>
    %418 = math.tanh %417 : vector<8x64xf32>
    %419 = vector.extract_strided_slice %416 {offsets = [0, 0], sizes = [8, 64], strides = [1, 1]} : vector<8x192xf32> to vector<8x64xf32>
    %420 = arith.mulf %419, %397 : vector<8x64xf32>
    %421 = vector.extract_strided_slice %416 {offsets = [0, 64], sizes = [8, 64], strides = [1, 1]} : vector<8x192xf32> to vector<8x64xf32>
    %422 = arith.mulf %421, %418 : vector<8x64xf32>
    %423 = arith.addf %420, %422 : vector<8x64xf32>
    %424 = vector.extract_strided_slice %416 {offsets = [0, 128], sizes = [8, 64], strides = [1, 1]} : vector<8x192xf32> to vector<8x64xf32>
    %425 = math.tanh %423 : vector<8x64xf32>
    %426 = arith.mulf %424, %425 : vector<8x64xf32>
    %427 = vector.extract_strided_slice %426 {offsets = [0, 0], sizes = [8, 32], strides = [1, 1]} : vector<8x64xf32> to vector<8x32xf32>
    %c80_230 = arith.constant 80 : index
    %c0_231 = arith.constant 0 : index
    %428 = vector.load %arg10[%c80_230, %c0_231] : memref<160x64xf32, #tpu.memory_space<vmem>>, vector<8x32xf32>
    tpu.vector_store %arg10[%c80_230, %c0_231], %427 {strides = array<i32>} : memref<160x64xf32, #tpu.memory_space<vmem>>, vector<8x32xf32>,
    %429 = vector.extract_strided_slice %426 {offsets = [0, 32], sizes = [8, 32], strides = [1, 1]} : vector<8x64xf32> to vector<8x32xf32>
    %c72_232 = arith.constant 72 : index
    %c32_233 = arith.constant 32 : index
    %430 = vector.load %arg10[%c72_232, %c32_233] : memref<160x64xf32, #tpu.memory_space<vmem>>, vector<8x32xf32>
    tpu.vector_store %arg10[%c72_232, %c32_233], %429 {strides = array<i32>} : memref<160x64xf32, #tpu.memory_space<vmem>>, vector<8x32xf32>,
    %c88_234 = arith.constant 88 : index
    %c0_235 = arith.constant 0 : index
    %431 = vector.load %arg8[%c88_234, %c0_235] : memref<160x256xf32, #tpu.memory_space<vmem>>, vector<8x256xf32>
    %c64_236 = arith.constant 64 : index
    %c0_237 = arith.constant 0 : index
    %432 = vector.load %arg9[%c64_236, %c0_237] : memref<160x256xf32, #tpu.memory_space<vmem>>, vector<8x256xf32>
    %433 = arith.addf %431, %432 : vector<8x256xf32>
    %434 = arith.truncf %426 : vector<8x64xf32> to vector<8x64xbf16>
    %cst_238 = arith.constant dense<0.000000e+00> : vector<8x256xf32>
    %435 = tpu.matmul %434, %142, %cst_238 {dimension_numbers = #tpu.dot_dimension_numbers<[1], [0], [0], [1], [0, 0, 1, 1], [], []>} : vector<8x64xbf16>, vector<64x256xbf16>, vector<8x256xf32> -> vector<8x256xf32>
    %436 = arith.addf %433, %435 : vector<8x256xf32>
    %437 = vector.extract_strided_slice %436 {offsets = [0, 0], sizes = [8, 192], strides = [1, 1]} : vector<8x256xf32> to vector<8x192xf32>
    %438 = arith.negf %437 : vector<8x192xf32>
    %439 = math.exp %438 : vector<8x192xf32>
    %cst_239 = arith.constant 1.000000e+00 : f32
    %440 = vector.broadcast %cst_239 : f32 to vector<8x192xf32>
    %441 = arith.addf %440, %439 : vector<8x192xf32>
    %442 = arith.divf %440, %441 : vector<8x192xf32>
    %443 = vector.extract_strided_slice %436 {offsets = [0, 192], sizes = [8, 64], strides = [1, 1]} : vector<8x256xf32> to vector<8x64xf32>
    %444 = math.tanh %443 : vector<8x64xf32>
    %445 = vector.extract_strided_slice %442 {offsets = [0, 0], sizes = [8, 64], strides = [1, 1]} : vector<8x192xf32> to vector<8x64xf32>
    %446 = arith.mulf %445, %423 : vector<8x64xf32>
    %447 = vector.extract_strided_slice %442 {offsets = [0, 64], sizes = [8, 64], strides = [1, 1]} : vector<8x192xf32> to vector<8x64xf32>
    %448 = arith.mulf %447, %444 : vector<8x64xf32>
    %449 = arith.addf %446, %448 : vector<8x64xf32>
    %450 = vector.extract_strided_slice %442 {offsets = [0, 128], sizes = [8, 64], strides = [1, 1]} : vector<8x192xf32> to vector<8x64xf32>
    %451 = math.tanh %449 : vector<8x64xf32>
    %452 = arith.mulf %450, %451 : vector<8x64xf32>
    %453 = vector.extract_strided_slice %452 {offsets = [0, 0], sizes = [8, 32], strides = [1, 1]} : vector<8x64xf32> to vector<8x32xf32>
    %c88_240 = arith.constant 88 : index
    %c0_241 = arith.constant 0 : index
    %454 = vector.load %arg10[%c88_240, %c0_241] : memref<160x64xf32, #tpu.memory_space<vmem>>, vector<8x32xf32>
    tpu.vector_store %arg10[%c88_240, %c0_241], %453 {strides = array<i32>} : memref<160x64xf32, #tpu.memory_space<vmem>>, vector<8x32xf32>,
    %455 = vector.extract_strided_slice %452 {offsets = [0, 32], sizes = [8, 32], strides = [1, 1]} : vector<8x64xf32> to vector<8x32xf32>
    %c64_242 = arith.constant 64 : index
    %c32_243 = arith.constant 32 : index
    %456 = vector.load %arg10[%c64_242, %c32_243] : memref<160x64xf32, #tpu.memory_space<vmem>>, vector<8x32xf32>
    tpu.vector_store %arg10[%c64_242, %c32_243], %455 {strides = array<i32>} : memref<160x64xf32, #tpu.memory_space<vmem>>, vector<8x32xf32>,
    %c96_244 = arith.constant 96 : index
    %c0_245 = arith.constant 0 : index
    %457 = vector.load %arg8[%c96_244, %c0_245] : memref<160x256xf32, #tpu.memory_space<vmem>>, vector<8x256xf32>
    %c56_246 = arith.constant 56 : index
    %c0_247 = arith.constant 0 : index
    %458 = vector.load %arg9[%c56_246, %c0_247] : memref<160x256xf32, #tpu.memory_space<vmem>>, vector<8x256xf32>
    %459 = arith.addf %457, %458 : vector<8x256xf32>
    %460 = arith.truncf %452 : vector<8x64xf32> to vector<8x64xbf16>
    %cst_248 = arith.constant dense<0.000000e+00> : vector<8x256xf32>
    %461 = tpu.matmul %460, %142, %cst_248 {dimension_numbers = #tpu.dot_dimension_numbers<[1], [0], [0], [1], [0, 0, 1, 1], [], []>} : vector<8x64xbf16>, vector<64x256xbf16>, vector<8x256xf32> -> vector<8x256xf32>
    %462 = arith.addf %459, %461 : vector<8x256xf32>
    %463 = vector.extract_strided_slice %462 {offsets = [0, 0], sizes = [8, 192], strides = [1, 1]} : vector<8x256xf32> to vector<8x192xf32>
    %464 = arith.negf %463 : vector<8x192xf32>
    %465 = math.exp %464 : vector<8x192xf32>
    %cst_249 = arith.constant 1.000000e+00 : f32
    %466 = vector.broadcast %cst_249 : f32 to vector<8x192xf32>
    %467 = arith.addf %466, %465 : vector<8x192xf32>
    %468 = arith.divf %466, %467 : vector<8x192xf32>
    %469 = vector.extract_strided_slice %462 {offsets = [0, 192], sizes = [8, 64], strides = [1, 1]} : vector<8x256xf32> to vector<8x64xf32>
    %470 = math.tanh %469 : vector<8x64xf32>
    %471 = vector.extract_strided_slice %468 {offsets = [0, 0], sizes = [8, 64], strides = [1, 1]} : vector<8x192xf32> to vector<8x64xf32>
    %472 = arith.mulf %471, %449 : vector<8x64xf32>
    %473 = vector.extract_strided_slice %468 {offsets = [0, 64], sizes = [8, 64], strides = [1, 1]} : vector<8x192xf32> to vector<8x64xf32>
    %474 = arith.mulf %473, %470 : vector<8x64xf32>
    %475 = arith.addf %472, %474 : vector<8x64xf32>
    %476 = vector.extract_strided_slice %468 {offsets = [0, 128], sizes = [8, 64], strides = [1, 1]} : vector<8x192xf32> to vector<8x64xf32>
    %477 = math.tanh %475 : vector<8x64xf32>
    %478 = arith.mulf %476, %477 : vector<8x64xf32>
    %479 = vector.extract_strided_slice %478 {offsets = [0, 0], sizes = [8, 32], strides = [1, 1]} : vector<8x64xf32> to vector<8x32xf32>
    %c96_250 = arith.constant 96 : index
    %c0_251 = arith.constant 0 : index
    %480 = vector.load %arg10[%c96_250, %c0_251] : memref<160x64xf32, #tpu.memory_space<vmem>>, vector<8x32xf32>
    tpu.vector_store %arg10[%c96_250, %c0_251], %479 {strides = array<i32>} : memref<160x64xf32, #tpu.memory_space<vmem>>, vector<8x32xf32>,
    %481 = vector.extract_strided_slice %478 {offsets = [0, 32], sizes = [8, 32], strides = [1, 1]} : vector<8x64xf32> to vector<8x32xf32>
    %c56_252 = arith.constant 56 : index
    %c32_253 = arith.constant 32 : index
    %482 = vector.load %arg10[%c56_252, %c32_253] : memref<160x64xf32, #tpu.memory_space<vmem>>, vector<8x32xf32>
    tpu.vector_store %arg10[%c56_252, %c32_253], %481 {strides = array<i32>} : memref<160x64xf32, #tpu.memory_space<vmem>>, vector<8x32xf32>,
    %c104_254 = arith.constant 104 : index
    %c0_255 = arith.constant 0 : index
    %483 = vector.load %arg8[%c104_254, %c0_255] : memref<160x256xf32, #tpu.memory_space<vmem>>, vector<8x256xf32>
    %c48_256 = arith.constant 48 : index
    %c0_257 = arith.constant 0 : index
    %484 = vector.load %arg9[%c48_256, %c0_257] : memref<160x256xf32, #tpu.memory_space<vmem>>, vector<8x256xf32>
    %485 = arith.addf %483, %484 : vector<8x256xf32>
    %486 = arith.truncf %478 : vector<8x64xf32> to vector<8x64xbf16>
    %cst_258 = arith.constant dense<0.000000e+00> : vector<8x256xf32>
    %487 = tpu.matmul %486, %142, %cst_258 {dimension_numbers = #tpu.dot_dimension_numbers<[1], [0], [0], [1], [0, 0, 1, 1], [], []>} : vector<8x64xbf16>, vector<64x256xbf16>, vector<8x256xf32> -> vector<8x256xf32>
    %488 = arith.addf %485, %487 : vector<8x256xf32>
    %489 = vector.extract_strided_slice %488 {offsets = [0, 0], sizes = [8, 192], strides = [1, 1]} : vector<8x256xf32> to vector<8x192xf32>
    %490 = arith.negf %489 : vector<8x192xf32>
    %491 = math.exp %490 : vector<8x192xf32>
    %cst_259 = arith.constant 1.000000e+00 : f32
    %492 = vector.broadcast %cst_259 : f32 to vector<8x192xf32>
    %493 = arith.addf %492, %491 : vector<8x192xf32>
    %494 = arith.divf %492, %493 : vector<8x192xf32>
    %495 = vector.extract_strided_slice %488 {offsets = [0, 192], sizes = [8, 64], strides = [1, 1]} : vector<8x256xf32> to vector<8x64xf32>
    %496 = math.tanh %495 : vector<8x64xf32>
    %497 = vector.extract_strided_slice %494 {offsets = [0, 0], sizes = [8, 64], strides = [1, 1]} : vector<8x192xf32> to vector<8x64xf32>
    %498 = arith.mulf %497, %475 : vector<8x64xf32>
    %499 = vector.extract_strided_slice %494 {offsets = [0, 64], sizes = [8, 64], strides = [1, 1]} : vector<8x192xf32> to vector<8x64xf32>
    %500 = arith.mulf %499, %496 : vector<8x64xf32>
    %501 = arith.addf %498, %500 : vector<8x64xf32>
    %502 = vector.extract_strided_slice %494 {offsets = [0, 128], sizes = [8, 64], strides = [1, 1]} : vector<8x192xf32> to vector<8x64xf32>
    %503 = math.tanh %501 : vector<8x64xf32>
    %504 = arith.mulf %502, %503 : vector<8x64xf32>
    %505 = vector.extract_strided_slice %504 {offsets = [0, 0], sizes = [8, 32], strides = [1, 1]} : vector<8x64xf32> to vector<8x32xf32>
    %c104_260 = arith.constant 104 : index
    %c0_261 = arith.constant 0 : index
    %506 = vector.load %arg10[%c104_260, %c0_261] : memref<160x64xf32, #tpu.memory_space<vmem>>, vector<8x32xf32>
    tpu.vector_store %arg10[%c104_260, %c0_261], %505 {strides = array<i32>} : memref<160x64xf32, #tpu.memory_space<vmem>>, vector<8x32xf32>,
    %507 = vector.extract_strided_slice %504 {offsets = [0, 32], sizes = [8, 32], strides = [1, 1]} : vector<8x64xf32> to vector<8x32xf32>
    %c48_262 = arith.constant 48 : index
    %c32_263 = arith.constant 32 : index
    %508 = vector.load %arg10[%c48_262, %c32_263] : memref<160x64xf32, #tpu.memory_space<vmem>>, vector<8x32xf32>
    tpu.vector_store %arg10[%c48_262, %c32_263], %507 {strides = array<i32>} : memref<160x64xf32, #tpu.memory_space<vmem>>, vector<8x32xf32>,
    %c112_264 = arith.constant 112 : index
    %c0_265 = arith.constant 0 : index
    %509 = vector.load %arg8[%c112_264, %c0_265] : memref<160x256xf32, #tpu.memory_space<vmem>>, vector<8x256xf32>
    %c40_266 = arith.constant 40 : index
    %c0_267 = arith.constant 0 : index
    %510 = vector.load %arg9[%c40_266, %c0_267] : memref<160x256xf32, #tpu.memory_space<vmem>>, vector<8x256xf32>
    %511 = arith.addf %509, %510 : vector<8x256xf32>
    %512 = arith.truncf %504 : vector<8x64xf32> to vector<8x64xbf16>
    %cst_268 = arith.constant dense<0.000000e+00> : vector<8x256xf32>
    %513 = tpu.matmul %512, %142, %cst_268 {dimension_numbers = #tpu.dot_dimension_numbers<[1], [0], [0], [1], [0, 0, 1, 1], [], []>} : vector<8x64xbf16>, vector<64x256xbf16>, vector<8x256xf32> -> vector<8x256xf32>
    %514 = arith.addf %511, %513 : vector<8x256xf32>
    %515 = vector.extract_strided_slice %514 {offsets = [0, 0], sizes = [8, 192], strides = [1, 1]} : vector<8x256xf32> to vector<8x192xf32>
    %516 = arith.negf %515 : vector<8x192xf32>
    %517 = math.exp %516 : vector<8x192xf32>
    %cst_269 = arith.constant 1.000000e+00 : f32
    %518 = vector.broadcast %cst_269 : f32 to vector<8x192xf32>
    %519 = arith.addf %518, %517 : vector<8x192xf32>
    %520 = arith.divf %518, %519 : vector<8x192xf32>
    %521 = vector.extract_strided_slice %514 {offsets = [0, 192], sizes = [8, 64], strides = [1, 1]} : vector<8x256xf32> to vector<8x64xf32>
    %522 = math.tanh %521 : vector<8x64xf32>
    %523 = vector.extract_strided_slice %520 {offsets = [0, 0], sizes = [8, 64], strides = [1, 1]} : vector<8x192xf32> to vector<8x64xf32>
    %524 = arith.mulf %523, %501 : vector<8x64xf32>
    %525 = vector.extract_strided_slice %520 {offsets = [0, 64], sizes = [8, 64], strides = [1, 1]} : vector<8x192xf32> to vector<8x64xf32>
    %526 = arith.mulf %525, %522 : vector<8x64xf32>
    %527 = arith.addf %524, %526 : vector<8x64xf32>
    %528 = vector.extract_strided_slice %520 {offsets = [0, 128], sizes = [8, 64], strides = [1, 1]} : vector<8x192xf32> to vector<8x64xf32>
    %529 = math.tanh %527 : vector<8x64xf32>
    %530 = arith.mulf %528, %529 : vector<8x64xf32>
    %531 = vector.extract_strided_slice %530 {offsets = [0, 0], sizes = [8, 32], strides = [1, 1]} : vector<8x64xf32> to vector<8x32xf32>
    %c112_270 = arith.constant 112 : index
    %c0_271 = arith.constant 0 : index
    %532 = vector.load %arg10[%c112_270, %c0_271] : memref<160x64xf32, #tpu.memory_space<vmem>>, vector<8x32xf32>
    tpu.vector_store %arg10[%c112_270, %c0_271], %531 {strides = array<i32>} : memref<160x64xf32, #tpu.memory_space<vmem>>, vector<8x32xf32>,
    %533 = vector.extract_strided_slice %530 {offsets = [0, 32], sizes = [8, 32], strides = [1, 1]} : vector<8x64xf32> to vector<8x32xf32>
    %c40_272 = arith.constant 40 : index
    %c32_273 = arith.constant 32 : index
    %534 = vector.load %arg10[%c40_272, %c32_273] : memref<160x64xf32, #tpu.memory_space<vmem>>, vector<8x32xf32>
    tpu.vector_store %arg10[%c40_272, %c32_273], %533 {strides = array<i32>} : memref<160x64xf32, #tpu.memory_space<vmem>>, vector<8x32xf32>,
    %c120_274 = arith.constant 120 : index
    %c0_275 = arith.constant 0 : index
    %535 = vector.load %arg8[%c120_274, %c0_275] : memref<160x256xf32, #tpu.memory_space<vmem>>, vector<8x256xf32>
    %c32_276 = arith.constant 32 : index
    %c0_277 = arith.constant 0 : index
    %536 = vector.load %arg9[%c32_276, %c0_277] : memref<160x256xf32, #tpu.memory_space<vmem>>, vector<8x256xf32>
    %537 = arith.addf %535, %536 : vector<8x256xf32>
    %538 = arith.truncf %530 : vector<8x64xf32> to vector<8x64xbf16>
    %cst_278 = arith.constant dense<0.000000e+00> : vector<8x256xf32>
    %539 = tpu.matmul %538, %142, %cst_278 {dimension_numbers = #tpu.dot_dimension_numbers<[1], [0], [0], [1], [0, 0, 1, 1], [], []>} : vector<8x64xbf16>, vector<64x256xbf16>, vector<8x256xf32> -> vector<8x256xf32>
    %540 = arith.addf %537, %539 : vector<8x256xf32>
    %541 = vector.extract_strided_slice %540 {offsets = [0, 0], sizes = [8, 192], strides = [1, 1]} : vector<8x256xf32> to vector<8x192xf32>
    %542 = arith.negf %541 : vector<8x192xf32>
    %543 = math.exp %542 : vector<8x192xf32>
    %cst_279 = arith.constant 1.000000e+00 : f32
    %544 = vector.broadcast %cst_279 : f32 to vector<8x192xf32>
    %545 = arith.addf %544, %543 : vector<8x192xf32>
    %546 = arith.divf %544, %545 : vector<8x192xf32>
    %547 = vector.extract_strided_slice %540 {offsets = [0, 192], sizes = [8, 64], strides = [1, 1]} : vector<8x256xf32> to vector<8x64xf32>
    %548 = math.tanh %547 : vector<8x64xf32>
    %549 = vector.extract_strided_slice %546 {offsets = [0, 0], sizes = [8, 64], strides = [1, 1]} : vector<8x192xf32> to vector<8x64xf32>
    %550 = arith.mulf %549, %527 : vector<8x64xf32>
    %551 = vector.extract_strided_slice %546 {offsets = [0, 64], sizes = [8, 64], strides = [1, 1]} : vector<8x192xf32> to vector<8x64xf32>
    %552 = arith.mulf %551, %548 : vector<8x64xf32>
    %553 = arith.addf %550, %552 : vector<8x64xf32>
    %554 = vector.extract_strided_slice %546 {offsets = [0, 128], sizes = [8, 64], strides = [1, 1]} : vector<8x192xf32> to vector<8x64xf32>
    %555 = math.tanh %553 : vector<8x64xf32>
    %556 = arith.mulf %554, %555 : vector<8x64xf32>
    %557 = vector.extract_strided_slice %556 {offsets = [0, 0], sizes = [8, 32], strides = [1, 1]} : vector<8x64xf32> to vector<8x32xf32>
    %c120_280 = arith.constant 120 : index
    %c0_281 = arith.constant 0 : index
    %558 = vector.load %arg10[%c120_280, %c0_281] : memref<160x64xf32, #tpu.memory_space<vmem>>, vector<8x32xf32>
    tpu.vector_store %arg10[%c120_280, %c0_281], %557 {strides = array<i32>} : memref<160x64xf32, #tpu.memory_space<vmem>>, vector<8x32xf32>,
    %559 = vector.extract_strided_slice %556 {offsets = [0, 32], sizes = [8, 32], strides = [1, 1]} : vector<8x64xf32> to vector<8x32xf32>
    %c32_282 = arith.constant 32 : index
    %c32_283 = arith.constant 32 : index
    %560 = vector.load %arg10[%c32_282, %c32_283] : memref<160x64xf32, #tpu.memory_space<vmem>>, vector<8x32xf32>
    tpu.vector_store %arg10[%c32_282, %c32_283], %559 {strides = array<i32>} : memref<160x64xf32, #tpu.memory_space<vmem>>, vector<8x32xf32>,
    %c128_284 = arith.constant 128 : index
    %c0_285 = arith.constant 0 : index
    %561 = vector.load %arg8[%c128_284, %c0_285] : memref<160x256xf32, #tpu.memory_space<vmem>>, vector<8x256xf32>
    %c24_286 = arith.constant 24 : index
    %c0_287 = arith.constant 0 : index
    %562 = vector.load %arg9[%c24_286, %c0_287] : memref<160x256xf32, #tpu.memory_space<vmem>>, vector<8x256xf32>
    %563 = arith.addf %561, %562 : vector<8x256xf32>
    %564 = arith.truncf %556 : vector<8x64xf32> to vector<8x64xbf16>
    %cst_288 = arith.constant dense<0.000000e+00> : vector<8x256xf32>
    %565 = tpu.matmul %564, %142, %cst_288 {dimension_numbers = #tpu.dot_dimension_numbers<[1], [0], [0], [1], [0, 0, 1, 1], [], []>} : vector<8x64xbf16>, vector<64x256xbf16>, vector<8x256xf32> -> vector<8x256xf32>
    %566 = arith.addf %563, %565 : vector<8x256xf32>
    %567 = vector.extract_strided_slice %566 {offsets = [0, 0], sizes = [8, 192], strides = [1, 1]} : vector<8x256xf32> to vector<8x192xf32>
    %568 = arith.negf %567 : vector<8x192xf32>
    %569 = math.exp %568 : vector<8x192xf32>
    %cst_289 = arith.constant 1.000000e+00 : f32
    %570 = vector.broadcast %cst_289 : f32 to vector<8x192xf32>
    %571 = arith.addf %570, %569 : vector<8x192xf32>
    %572 = arith.divf %570, %571 : vector<8x192xf32>
    %573 = vector.extract_strided_slice %566 {offsets = [0, 192], sizes = [8, 64], strides = [1, 1]} : vector<8x256xf32> to vector<8x64xf32>
    %574 = math.tanh %573 : vector<8x64xf32>
    %575 = vector.extract_strided_slice %572 {offsets = [0, 0], sizes = [8, 64], strides = [1, 1]} : vector<8x192xf32> to vector<8x64xf32>
    %576 = arith.mulf %575, %553 : vector<8x64xf32>
    %577 = vector.extract_strided_slice %572 {offsets = [0, 64], sizes = [8, 64], strides = [1, 1]} : vector<8x192xf32> to vector<8x64xf32>
    %578 = arith.mulf %577, %574 : vector<8x64xf32>
    %579 = arith.addf %576, %578 : vector<8x64xf32>
    %580 = vector.extract_strided_slice %572 {offsets = [0, 128], sizes = [8, 64], strides = [1, 1]} : vector<8x192xf32> to vector<8x64xf32>
    %581 = math.tanh %579 : vector<8x64xf32>
    %582 = arith.mulf %580, %581 : vector<8x64xf32>
    %583 = vector.extract_strided_slice %582 {offsets = [0, 0], sizes = [8, 32], strides = [1, 1]} : vector<8x64xf32> to vector<8x32xf32>
    %c128_290 = arith.constant 128 : index
    %c0_291 = arith.constant 0 : index
    %584 = vector.load %arg10[%c128_290, %c0_291] : memref<160x64xf32, #tpu.memory_space<vmem>>, vector<8x32xf32>
    tpu.vector_store %arg10[%c128_290, %c0_291], %583 {strides = array<i32>} : memref<160x64xf32, #tpu.memory_space<vmem>>, vector<8x32xf32>,
    %585 = vector.extract_strided_slice %582 {offsets = [0, 32], sizes = [8, 32], strides = [1, 1]} : vector<8x64xf32> to vector<8x32xf32>
    %c24_292 = arith.constant 24 : index
    %c32_293 = arith.constant 32 : index
    %586 = vector.load %arg10[%c24_292, %c32_293] : memref<160x64xf32, #tpu.memory_space<vmem>>, vector<8x32xf32>
    tpu.vector_store %arg10[%c24_292, %c32_293], %585 {strides = array<i32>} : memref<160x64xf32, #tpu.memory_space<vmem>>, vector<8x32xf32>,
    %c136_294 = arith.constant 136 : index
    %c0_295 = arith.constant 0 : index
    %587 = vector.load %arg8[%c136_294, %c0_295] : memref<160x256xf32, #tpu.memory_space<vmem>>, vector<8x256xf32>
    %c16_296 = arith.constant 16 : index
    %c0_297 = arith.constant 0 : index
    %588 = vector.load %arg9[%c16_296, %c0_297] : memref<160x256xf32, #tpu.memory_space<vmem>>, vector<8x256xf32>
    %589 = arith.addf %587, %588 : vector<8x256xf32>
    %590 = arith.truncf %582 : vector<8x64xf32> to vector<8x64xbf16>
    %cst_298 = arith.constant dense<0.000000e+00> : vector<8x256xf32>
    %591 = tpu.matmul %590, %142, %cst_298 {dimension_numbers = #tpu.dot_dimension_numbers<[1], [0], [0], [1], [0, 0, 1, 1], [], []>} : vector<8x64xbf16>, vector<64x256xbf16>, vector<8x256xf32> -> vector<8x256xf32>
    %592 = arith.addf %589, %591 : vector<8x256xf32>
    %593 = vector.extract_strided_slice %592 {offsets = [0, 0], sizes = [8, 192], strides = [1, 1]} : vector<8x256xf32> to vector<8x192xf32>
    %594 = arith.negf %593 : vector<8x192xf32>
    %595 = math.exp %594 : vector<8x192xf32>
    %cst_299 = arith.constant 1.000000e+00 : f32
    %596 = vector.broadcast %cst_299 : f32 to vector<8x192xf32>
    %597 = arith.addf %596, %595 : vector<8x192xf32>
    %598 = arith.divf %596, %597 : vector<8x192xf32>
    %599 = vector.extract_strided_slice %592 {offsets = [0, 192], sizes = [8, 64], strides = [1, 1]} : vector<8x256xf32> to vector<8x64xf32>
    %600 = math.tanh %599 : vector<8x64xf32>
    %601 = vector.extract_strided_slice %598 {offsets = [0, 0], sizes = [8, 64], strides = [1, 1]} : vector<8x192xf32> to vector<8x64xf32>
    %602 = arith.mulf %601, %579 : vector<8x64xf32>
    %603 = vector.extract_strided_slice %598 {offsets = [0, 64], sizes = [8, 64], strides = [1, 1]} : vector<8x192xf32> to vector<8x64xf32>
    %604 = arith.mulf %603, %600 : vector<8x64xf32>
    %605 = arith.addf %602, %604 : vector<8x64xf32>
    %606 = vector.extract_strided_slice %598 {offsets = [0, 128], sizes = [8, 64], strides = [1, 1]} : vector<8x192xf32> to vector<8x64xf32>
    %607 = math.tanh %605 : vector<8x64xf32>
    %608 = arith.mulf %606, %607 : vector<8x64xf32>
    %609 = vector.extract_strided_slice %608 {offsets = [0, 0], sizes = [8, 32], strides = [1, 1]} : vector<8x64xf32> to vector<8x32xf32>
    %c136_300 = arith.constant 136 : index
    %c0_301 = arith.constant 0 : index
    %610 = vector.load %arg10[%c136_300, %c0_301] : memref<160x64xf32, #tpu.memory_space<vmem>>, vector<8x32xf32>
    tpu.vector_store %arg10[%c136_300, %c0_301], %609 {strides = array<i32>} : memref<160x64xf32, #tpu.memory_space<vmem>>, vector<8x32xf32>,
    %611 = vector.extract_strided_slice %608 {offsets = [0, 32], sizes = [8, 32], strides = [1, 1]} : vector<8x64xf32> to vector<8x32xf32>
    %c16_302 = arith.constant 16 : index
    %c32_303 = arith.constant 32 : index
    %612 = vector.load %arg10[%c16_302, %c32_303] : memref<160x64xf32, #tpu.memory_space<vmem>>, vector<8x32xf32>
    tpu.vector_store %arg10[%c16_302, %c32_303], %611 {strides = array<i32>} : memref<160x64xf32, #tpu.memory_space<vmem>>, vector<8x32xf32>,
    %c144_304 = arith.constant 144 : index
    %c0_305 = arith.constant 0 : index
    %613 = vector.load %arg8[%c144_304, %c0_305] : memref<160x256xf32, #tpu.memory_space<vmem>>, vector<8x256xf32>
    %c8_306 = arith.constant 8 : index
    %c0_307 = arith.constant 0 : index
    %614 = vector.load %arg9[%c8_306, %c0_307] : memref<160x256xf32, #tpu.memory_space<vmem>>, vector<8x256xf32>
    %615 = arith.addf %613, %614 : vector<8x256xf32>
    %616 = arith.truncf %608 : vector<8x64xf32> to vector<8x64xbf16>
    %cst_308 = arith.constant dense<0.000000e+00> : vector<8x256xf32>
    %617 = tpu.matmul %616, %142, %cst_308 {dimension_numbers = #tpu.dot_dimension_numbers<[1], [0], [0], [1], [0, 0, 1, 1], [], []>} : vector<8x64xbf16>, vector<64x256xbf16>, vector<8x256xf32> -> vector<8x256xf32>
    %618 = arith.addf %615, %617 : vector<8x256xf32>
    %619 = vector.extract_strided_slice %618 {offsets = [0, 0], sizes = [8, 192], strides = [1, 1]} : vector<8x256xf32> to vector<8x192xf32>
    %620 = arith.negf %619 : vector<8x192xf32>
    %621 = math.exp %620 : vector<8x192xf32>
    %cst_309 = arith.constant 1.000000e+00 : f32
    %622 = vector.broadcast %cst_309 : f32 to vector<8x192xf32>
    %623 = arith.addf %622, %621 : vector<8x192xf32>
    %624 = arith.divf %622, %623 : vector<8x192xf32>
    %625 = vector.extract_strided_slice %618 {offsets = [0, 192], sizes = [8, 64], strides = [1, 1]} : vector<8x256xf32> to vector<8x64xf32>
    %626 = math.tanh %625 : vector<8x64xf32>
    %627 = vector.extract_strided_slice %624 {offsets = [0, 0], sizes = [8, 64], strides = [1, 1]} : vector<8x192xf32> to vector<8x64xf32>
    %628 = arith.mulf %627, %605 : vector<8x64xf32>
    %629 = vector.extract_strided_slice %624 {offsets = [0, 64], sizes = [8, 64], strides = [1, 1]} : vector<8x192xf32> to vector<8x64xf32>
    %630 = arith.mulf %629, %626 : vector<8x64xf32>
    %631 = arith.addf %628, %630 : vector<8x64xf32>
    %632 = vector.extract_strided_slice %624 {offsets = [0, 128], sizes = [8, 64], strides = [1, 1]} : vector<8x192xf32> to vector<8x64xf32>
    %633 = math.tanh %631 : vector<8x64xf32>
    %634 = arith.mulf %632, %633 : vector<8x64xf32>
    %635 = vector.extract_strided_slice %634 {offsets = [0, 0], sizes = [8, 32], strides = [1, 1]} : vector<8x64xf32> to vector<8x32xf32>
    %c144_310 = arith.constant 144 : index
    %c0_311 = arith.constant 0 : index
    %636 = vector.load %arg10[%c144_310, %c0_311] : memref<160x64xf32, #tpu.memory_space<vmem>>, vector<8x32xf32>
    tpu.vector_store %arg10[%c144_310, %c0_311], %635 {strides = array<i32>} : memref<160x64xf32, #tpu.memory_space<vmem>>, vector<8x32xf32>,
    %637 = vector.extract_strided_slice %634 {offsets = [0, 32], sizes = [8, 32], strides = [1, 1]} : vector<8x64xf32> to vector<8x32xf32>
    %c8_312 = arith.constant 8 : index
    %c32_313 = arith.constant 32 : index
    %638 = vector.load %arg10[%c8_312, %c32_313] : memref<160x64xf32, #tpu.memory_space<vmem>>, vector<8x32xf32>
    tpu.vector_store %arg10[%c8_312, %c32_313], %637 {strides = array<i32>} : memref<160x64xf32, #tpu.memory_space<vmem>>, vector<8x32xf32>,
    %c152_314 = arith.constant 152 : index
    %c0_315 = arith.constant 0 : index
    %639 = vector.load %arg8[%c152_314, %c0_315] : memref<160x256xf32, #tpu.memory_space<vmem>>, vector<8x256xf32>
    %c0_316 = arith.constant 0 : index
    %c0_317 = arith.constant 0 : index
    %640 = vector.load %arg9[%c0_316, %c0_317] : memref<160x256xf32, #tpu.memory_space<vmem>>, vector<8x256xf32>
    %641 = arith.addf %639, %640 : vector<8x256xf32>
    %642 = arith.truncf %634 : vector<8x64xf32> to vector<8x64xbf16>
    %cst_318 = arith.constant dense<0.000000e+00> : vector<8x256xf32>
    %643 = tpu.matmul %642, %142, %cst_318 {dimension_numbers = #tpu.dot_dimension_numbers<[1], [0], [0], [1], [0, 0, 1, 1], [], []>} : vector<8x64xbf16>, vector<64x256xbf16>, vector<8x256xf32> -> vector<8x256xf32>
    %644 = arith.addf %641, %643 : vector<8x256xf32>
    %645 = vector.extract_strided_slice %644 {offsets = [0, 0], sizes = [8, 192], strides = [1, 1]} : vector<8x256xf32> to vector<8x192xf32>
    %646 = arith.negf %645 : vector<8x192xf32>
    %647 = math.exp %646 : vector<8x192xf32>
    %cst_319 = arith.constant 1.000000e+00 : f32
    %648 = vector.broadcast %cst_319 : f32 to vector<8x192xf32>
    %649 = arith.addf %648, %647 : vector<8x192xf32>
    %650 = arith.divf %648, %649 : vector<8x192xf32>
    %651 = vector.extract_strided_slice %644 {offsets = [0, 192], sizes = [8, 64], strides = [1, 1]} : vector<8x256xf32> to vector<8x64xf32>
    %652 = math.tanh %651 : vector<8x64xf32>
    %653 = vector.extract_strided_slice %650 {offsets = [0, 0], sizes = [8, 64], strides = [1, 1]} : vector<8x192xf32> to vector<8x64xf32>
    %654 = arith.mulf %653, %631 : vector<8x64xf32>
    %655 = vector.extract_strided_slice %650 {offsets = [0, 64], sizes = [8, 64], strides = [1, 1]} : vector<8x192xf32> to vector<8x64xf32>
    %656 = arith.mulf %655, %652 : vector<8x64xf32>
    %657 = arith.addf %654, %656 : vector<8x64xf32>
    %658 = vector.extract_strided_slice %650 {offsets = [0, 128], sizes = [8, 64], strides = [1, 1]} : vector<8x192xf32> to vector<8x64xf32>
    %659 = math.tanh %657 : vector<8x64xf32>
    %660 = arith.mulf %658, %659 : vector<8x64xf32>
    %661 = vector.extract_strided_slice %660 {offsets = [0, 0], sizes = [8, 32], strides = [1, 1]} : vector<8x64xf32> to vector<8x32xf32>
    %c152_320 = arith.constant 152 : index
    %c0_321 = arith.constant 0 : index
    %662 = vector.load %arg10[%c152_320, %c0_321] : memref<160x64xf32, #tpu.memory_space<vmem>>, vector<8x32xf32>
    tpu.vector_store %arg10[%c152_320, %c0_321], %661 {strides = array<i32>} : memref<160x64xf32, #tpu.memory_space<vmem>>, vector<8x32xf32>,
    %663 = vector.extract_strided_slice %660 {offsets = [0, 32], sizes = [8, 32], strides = [1, 1]} : vector<8x64xf32> to vector<8x32xf32>
    %c0_322 = arith.constant 0 : index
    %c32_323 = arith.constant 32 : index
    %664 = vector.load %arg10[%c0_322, %c32_323] : memref<160x64xf32, #tpu.memory_space<vmem>>, vector<8x32xf32>
    tpu.vector_store %arg10[%c0_322, %c32_323], %663 {strides = array<i32>} : memref<160x64xf32, #tpu.memory_space<vmem>>, vector<8x32xf32>,
    %c0_324 = arith.constant 0 : index
    %c0_325 = arith.constant 0 : index
    %665 = vector.load %arg10[%c0_324, %c0_325] : memref<160x64xf32, #tpu.memory_space<vmem>>, vector<160x64xf32>
    %666 = arith.truncf %665 : vector<160x64xf32> to vector<160x64xbf16>
    %c112_326 = arith.constant 112 : index
    %c0_327 = arith.constant 0 : index
    %667 = vector.load %arg4[%c112_326, %c0_327] : memref<320x256xbf16, #tpu.memory_space<vmem>>, vector<64x256xbf16>
    %c176 = arith.constant 176 : index
    %c0_328 = arith.constant 0 : index
    %668 = vector.load %arg4[%c176, %c0_328] : memref<320x256xbf16, #tpu.memory_space<vmem>>, vector<64x256xbf16>
    %c304 = arith.constant 304 : index
    %c0_329 = arith.constant 0 : index
    %669 = vector.load %arg4[%c304, %c0_329] : memref<320x256xbf16, #tpu.memory_space<vmem>>, vector<1x256xbf16>
    %670 = arith.extf %669 : vector<1x256xbf16> to vector<1x256xf32>
    %cst_330 = arith.constant dense<0.000000e+00> : vector<160x256xf32>
    %671 = tpu.matmul %666, %667, %cst_330 {dimension_numbers = #tpu.dot_dimension_numbers<[1], [0], [0], [1], [0, 0, 1, 1], [], []>} : vector<160x64xbf16>, vector<64x256xbf16>, vector<160x256xf32> -> vector<160x256xf32>
    %672 = vector.broadcast %670 : vector<1x256xf32> to vector<160x256xf32>
    %673 = arith.addf %671, %672 : vector<160x256xf32>
    %c0_331 = arith.constant 0 : index
    %c0_332 = arith.constant 0 : index
    %674 = vector.load %arg8[%c0_331, %c0_332] : memref<160x256xf32, #tpu.memory_space<vmem>>, vector<160x256xf32>
    tpu.vector_store %arg8[%c0_331, %c0_332], %673 {strides = array<i32>} : memref<160x256xf32, #tpu.memory_space<vmem>>, vector<160x256xf32>,
    %cst_333 = arith.constant dense<0.000000e+00> : vector<160x256xf32>
    %675 = tpu.matmul %666, %668, %cst_333 {dimension_numbers = #tpu.dot_dimension_numbers<[1], [0], [0], [1], [0, 0, 1, 1], [], []>} : vector<160x64xbf16>, vector<64x256xbf16>, vector<160x256xf32> -> vector<160x256xf32>
    %c0_334 = arith.constant 0 : index
    %c0_335 = arith.constant 0 : index
    %676 = vector.load %arg9[%c0_334, %c0_335] : memref<160x256xf32, #tpu.memory_space<vmem>>, vector<160x256xf32>
    tpu.vector_store %arg9[%c0_334, %c0_335], %675 {strides = array<i32>} : memref<160x256xf32, #tpu.memory_space<vmem>>, vector<160x256xf32>,
    %c240 = arith.constant 240 : index
    %c0_336 = arith.constant 0 : index
    %677 = vector.load %arg4[%c240, %c0_336] : memref<320x256xbf16, #tpu.memory_space<vmem>>, vector<64x256xbf16>
    %cst_337 = arith.constant 0.000000e+00 : f32
    %678 = vector.broadcast %cst_337 : f32 to vector<8x64xf32>
    %cst_338 = arith.constant 0.000000e+00 : f32
    %679 = vector.broadcast %cst_338 : f32 to vector<8x64xf32>
    %c0_339 = arith.constant 0 : index
    %c0_340 = arith.constant 0 : index
    %680 = vector.load %arg8[%c0_339, %c0_340] : memref<160x256xf32, #tpu.memory_space<vmem>>, vector<8x256xf32>
    %c152_341 = arith.constant 152 : index
    %c0_342 = arith.constant 0 : index
    %681 = vector.load %arg9[%c152_341, %c0_342] : memref<160x256xf32, #tpu.memory_space<vmem>>, vector<8x256xf32>
    %682 = arith.addf %680, %681 : vector<8x256xf32>
    %683 = arith.truncf %679 : vector<8x64xf32> to vector<8x64xbf16>
    %cst_343 = arith.constant dense<0.000000e+00> : vector<8x256xf32>
    %684 = tpu.matmul %683, %677, %cst_343 {dimension_numbers = #tpu.dot_dimension_numbers<[1], [0], [0], [1], [0, 0, 1, 1], [], []>} : vector<8x64xbf16>, vector<64x256xbf16>, vector<8x256xf32> -> vector<8x256xf32>
    %685 = arith.addf %682, %684 : vector<8x256xf32>
    %686 = vector.extract_strided_slice %685 {offsets = [0, 0], sizes = [8, 192], strides = [1, 1]} : vector<8x256xf32> to vector<8x192xf32>
    %687 = arith.negf %686 : vector<8x192xf32>
    %688 = math.exp %687 : vector<8x192xf32>
    %cst_344 = arith.constant 1.000000e+00 : f32
    %689 = vector.broadcast %cst_344 : f32 to vector<8x192xf32>
    %690 = arith.addf %689, %688 : vector<8x192xf32>
    %691 = arith.divf %689, %690 : vector<8x192xf32>
    %692 = vector.extract_strided_slice %685 {offsets = [0, 192], sizes = [8, 64], strides = [1, 1]} : vector<8x256xf32> to vector<8x64xf32>
    %693 = math.tanh %692 : vector<8x64xf32>
    %694 = vector.extract_strided_slice %691 {offsets = [0, 0], sizes = [8, 64], strides = [1, 1]} : vector<8x192xf32> to vector<8x64xf32>
    %695 = arith.mulf %694, %678 : vector<8x64xf32>
    %696 = vector.extract_strided_slice %691 {offsets = [0, 64], sizes = [8, 64], strides = [1, 1]} : vector<8x192xf32> to vector<8x64xf32>
    %697 = arith.mulf %696, %693 : vector<8x64xf32>
    %698 = arith.addf %695, %697 : vector<8x64xf32>
    %699 = vector.extract_strided_slice %691 {offsets = [0, 128], sizes = [8, 64], strides = [1, 1]} : vector<8x192xf32> to vector<8x64xf32>
    %700 = math.tanh %698 : vector<8x64xf32>
    %701 = arith.mulf %699, %700 : vector<8x64xf32>
    %702 = vector.extract_strided_slice %701 {offsets = [0, 0], sizes = [8, 32], strides = [1, 1]} : vector<8x64xf32> to vector<8x32xf32>
    %c0_345 = arith.constant 0 : index
    %c0_346 = arith.constant 0 : index
    %703 = vector.load %arg11[%c0_345, %c0_346] : memref<160x64xf32, #tpu.memory_space<vmem>>, vector<8x32xf32>
    tpu.vector_store %arg11[%c0_345, %c0_346], %702 {strides = array<i32>} : memref<160x64xf32, #tpu.memory_space<vmem>>, vector<8x32xf32>,
    %704 = vector.extract_strided_slice %701 {offsets = [0, 32], sizes = [8, 32], strides = [1, 1]} : vector<8x64xf32> to vector<8x32xf32>
    %c152_347 = arith.constant 152 : index
    %c32_348 = arith.constant 32 : index
    %705 = vector.load %arg11[%c152_347, %c32_348] : memref<160x64xf32, #tpu.memory_space<vmem>>, vector<8x32xf32>
    tpu.vector_store %arg11[%c152_347, %c32_348], %704 {strides = array<i32>} : memref<160x64xf32, #tpu.memory_space<vmem>>, vector<8x32xf32>,
    %c8_349 = arith.constant 8 : index
    %c0_350 = arith.constant 0 : index
    %706 = vector.load %arg8[%c8_349, %c0_350] : memref<160x256xf32, #tpu.memory_space<vmem>>, vector<8x256xf32>
    %c144_351 = arith.constant 144 : index
    %c0_352 = arith.constant 0 : index
    %707 = vector.load %arg9[%c144_351, %c0_352] : memref<160x256xf32, #tpu.memory_space<vmem>>, vector<8x256xf32>
    %708 = arith.addf %706, %707 : vector<8x256xf32>
    %709 = arith.truncf %701 : vector<8x64xf32> to vector<8x64xbf16>
    %cst_353 = arith.constant dense<0.000000e+00> : vector<8x256xf32>
    %710 = tpu.matmul %709, %677, %cst_353 {dimension_numbers = #tpu.dot_dimension_numbers<[1], [0], [0], [1], [0, 0, 1, 1], [], []>} : vector<8x64xbf16>, vector<64x256xbf16>, vector<8x256xf32> -> vector<8x256xf32>
    %711 = arith.addf %708, %710 : vector<8x256xf32>
    %712 = vector.extract_strided_slice %711 {offsets = [0, 0], sizes = [8, 192], strides = [1, 1]} : vector<8x256xf32> to vector<8x192xf32>
    %713 = arith.negf %712 : vector<8x192xf32>
    %714 = math.exp %713 : vector<8x192xf32>
    %cst_354 = arith.constant 1.000000e+00 : f32
    %715 = vector.broadcast %cst_354 : f32 to vector<8x192xf32>
    %716 = arith.addf %715, %714 : vector<8x192xf32>
    %717 = arith.divf %715, %716 : vector<8x192xf32>
    %718 = vector.extract_strided_slice %711 {offsets = [0, 192], sizes = [8, 64], strides = [1, 1]} : vector<8x256xf32> to vector<8x64xf32>
    %719 = math.tanh %718 : vector<8x64xf32>
    %720 = vector.extract_strided_slice %717 {offsets = [0, 0], sizes = [8, 64], strides = [1, 1]} : vector<8x192xf32> to vector<8x64xf32>
    %721 = arith.mulf %720, %698 : vector<8x64xf32>
    %722 = vector.extract_strided_slice %717 {offsets = [0, 64], sizes = [8, 64], strides = [1, 1]} : vector<8x192xf32> to vector<8x64xf32>
    %723 = arith.mulf %722, %719 : vector<8x64xf32>
    %724 = arith.addf %721, %723 : vector<8x64xf32>
    %725 = vector.extract_strided_slice %717 {offsets = [0, 128], sizes = [8, 64], strides = [1, 1]} : vector<8x192xf32> to vector<8x64xf32>
    %726 = math.tanh %724 : vector<8x64xf32>
    %727 = arith.mulf %725, %726 : vector<8x64xf32>
    %728 = vector.extract_strided_slice %727 {offsets = [0, 0], sizes = [8, 32], strides = [1, 1]} : vector<8x64xf32> to vector<8x32xf32>
    %c8_355 = arith.constant 8 : index
    %c0_356 = arith.constant 0 : index
    %729 = vector.load %arg11[%c8_355, %c0_356] : memref<160x64xf32, #tpu.memory_space<vmem>>, vector<8x32xf32>
    tpu.vector_store %arg11[%c8_355, %c0_356], %728 {strides = array<i32>} : memref<160x64xf32, #tpu.memory_space<vmem>>, vector<8x32xf32>,
    %730 = vector.extract_strided_slice %727 {offsets = [0, 32], sizes = [8, 32], strides = [1, 1]} : vector<8x64xf32> to vector<8x32xf32>
    %c144_357 = arith.constant 144 : index
    %c32_358 = arith.constant 32 : index
    %731 = vector.load %arg11[%c144_357, %c32_358] : memref<160x64xf32, #tpu.memory_space<vmem>>, vector<8x32xf32>
    tpu.vector_store %arg11[%c144_357, %c32_358], %730 {strides = array<i32>} : memref<160x64xf32, #tpu.memory_space<vmem>>, vector<8x32xf32>,
    %c16_359 = arith.constant 16 : index
    %c0_360 = arith.constant 0 : index
    %732 = vector.load %arg8[%c16_359, %c0_360] : memref<160x256xf32, #tpu.memory_space<vmem>>, vector<8x256xf32>
    %c136_361 = arith.constant 136 : index
    %c0_362 = arith.constant 0 : index
    %733 = vector.load %arg9[%c136_361, %c0_362] : memref<160x256xf32, #tpu.memory_space<vmem>>, vector<8x256xf32>
    %734 = arith.addf %732, %733 : vector<8x256xf32>
    %735 = arith.truncf %727 : vector<8x64xf32> to vector<8x64xbf16>
    %cst_363 = arith.constant dense<0.000000e+00> : vector<8x256xf32>
    %736 = tpu.matmul %735, %677, %cst_363 {dimension_numbers = #tpu.dot_dimension_numbers<[1], [0], [0], [1], [0, 0, 1, 1], [], []>} : vector<8x64xbf16>, vector<64x256xbf16>, vector<8x256xf32> -> vector<8x256xf32>
    %737 = arith.addf %734, %736 : vector<8x256xf32>
    %738 = vector.extract_strided_slice %737 {offsets = [0, 0], sizes = [8, 192], strides = [1, 1]} : vector<8x256xf32> to vector<8x192xf32>
    %739 = arith.negf %738 : vector<8x192xf32>
    %740 = math.exp %739 : vector<8x192xf32>
    %cst_364 = arith.constant 1.000000e+00 : f32
    %741 = vector.broadcast %cst_364 : f32 to vector<8x192xf32>
    %742 = arith.addf %741, %740 : vector<8x192xf32>
    %743 = arith.divf %741, %742 : vector<8x192xf32>
    %744 = vector.extract_strided_slice %737 {offsets = [0, 192], sizes = [8, 64], strides = [1, 1]} : vector<8x256xf32> to vector<8x64xf32>
    %745 = math.tanh %744 : vector<8x64xf32>
    %746 = vector.extract_strided_slice %743 {offsets = [0, 0], sizes = [8, 64], strides = [1, 1]} : vector<8x192xf32> to vector<8x64xf32>
    %747 = arith.mulf %746, %724 : vector<8x64xf32>
    %748 = vector.extract_strided_slice %743 {offsets = [0, 64], sizes = [8, 64], strides = [1, 1]} : vector<8x192xf32> to vector<8x64xf32>
    %749 = arith.mulf %748, %745 : vector<8x64xf32>
    %750 = arith.addf %747, %749 : vector<8x64xf32>
    %751 = vector.extract_strided_slice %743 {offsets = [0, 128], sizes = [8, 64], strides = [1, 1]} : vector<8x192xf32> to vector<8x64xf32>
    %752 = math.tanh %750 : vector<8x64xf32>
    %753 = arith.mulf %751, %752 : vector<8x64xf32>
    %754 = vector.extract_strided_slice %753 {offsets = [0, 0], sizes = [8, 32], strides = [1, 1]} : vector<8x64xf32> to vector<8x32xf32>
    %c16_365 = arith.constant 16 : index
    %c0_366 = arith.constant 0 : index
    %755 = vector.load %arg11[%c16_365, %c0_366] : memref<160x64xf32, #tpu.memory_space<vmem>>, vector<8x32xf32>
    tpu.vector_store %arg11[%c16_365, %c0_366], %754 {strides = array<i32>} : memref<160x64xf32, #tpu.memory_space<vmem>>, vector<8x32xf32>,
    %756 = vector.extract_strided_slice %753 {offsets = [0, 32], sizes = [8, 32], strides = [1, 1]} : vector<8x64xf32> to vector<8x32xf32>
    %c136_367 = arith.constant 136 : index
    %c32_368 = arith.constant 32 : index
    %757 = vector.load %arg11[%c136_367, %c32_368] : memref<160x64xf32, #tpu.memory_space<vmem>>, vector<8x32xf32>
    tpu.vector_store %arg11[%c136_367, %c32_368], %756 {strides = array<i32>} : memref<160x64xf32, #tpu.memory_space<vmem>>, vector<8x32xf32>,
    %c24_369 = arith.constant 24 : index
    %c0_370 = arith.constant 0 : index
    %758 = vector.load %arg8[%c24_369, %c0_370] : memref<160x256xf32, #tpu.memory_space<vmem>>, vector<8x256xf32>
    %c128_371 = arith.constant 128 : index
    %c0_372 = arith.constant 0 : index
    %759 = vector.load %arg9[%c128_371, %c0_372] : memref<160x256xf32, #tpu.memory_space<vmem>>, vector<8x256xf32>
    %760 = arith.addf %758, %759 : vector<8x256xf32>
    %761 = arith.truncf %753 : vector<8x64xf32> to vector<8x64xbf16>
    %cst_373 = arith.constant dense<0.000000e+00> : vector<8x256xf32>
    %762 = tpu.matmul %761, %677, %cst_373 {dimension_numbers = #tpu.dot_dimension_numbers<[1], [0], [0], [1], [0, 0, 1, 1], [], []>} : vector<8x64xbf16>, vector<64x256xbf16>, vector<8x256xf32> -> vector<8x256xf32>
    %763 = arith.addf %760, %762 : vector<8x256xf32>
    %764 = vector.extract_strided_slice %763 {offsets = [0, 0], sizes = [8, 192], strides = [1, 1]} : vector<8x256xf32> to vector<8x192xf32>
    %765 = arith.negf %764 : vector<8x192xf32>
    %766 = math.exp %765 : vector<8x192xf32>
    %cst_374 = arith.constant 1.000000e+00 : f32
    %767 = vector.broadcast %cst_374 : f32 to vector<8x192xf32>
    %768 = arith.addf %767, %766 : vector<8x192xf32>
    %769 = arith.divf %767, %768 : vector<8x192xf32>
    %770 = vector.extract_strided_slice %763 {offsets = [0, 192], sizes = [8, 64], strides = [1, 1]} : vector<8x256xf32> to vector<8x64xf32>
    %771 = math.tanh %770 : vector<8x64xf32>
    %772 = vector.extract_strided_slice %769 {offsets = [0, 0], sizes = [8, 64], strides = [1, 1]} : vector<8x192xf32> to vector<8x64xf32>
    %773 = arith.mulf %772, %750 : vector<8x64xf32>
    %774 = vector.extract_strided_slice %769 {offsets = [0, 64], sizes = [8, 64], strides = [1, 1]} : vector<8x192xf32> to vector<8x64xf32>
    %775 = arith.mulf %774, %771 : vector<8x64xf32>
    %776 = arith.addf %773, %775 : vector<8x64xf32>
    %777 = vector.extract_strided_slice %769 {offsets = [0, 128], sizes = [8, 64], strides = [1, 1]} : vector<8x192xf32> to vector<8x64xf32>
    %778 = math.tanh %776 : vector<8x64xf32>
    %779 = arith.mulf %777, %778 : vector<8x64xf32>
    %780 = vector.extract_strided_slice %779 {offsets = [0, 0], sizes = [8, 32], strides = [1, 1]} : vector<8x64xf32> to vector<8x32xf32>
    %c24_375 = arith.constant 24 : index
    %c0_376 = arith.constant 0 : index
    %781 = vector.load %arg11[%c24_375, %c0_376] : memref<160x64xf32, #tpu.memory_space<vmem>>, vector<8x32xf32>
    tpu.vector_store %arg11[%c24_375, %c0_376], %780 {strides = array<i32>} : memref<160x64xf32, #tpu.memory_space<vmem>>, vector<8x32xf32>,
    %782 = vector.extract_strided_slice %779 {offsets = [0, 32], sizes = [8, 32], strides = [1, 1]} : vector<8x64xf32> to vector<8x32xf32>
    %c128_377 = arith.constant 128 : index
    %c32_378 = arith.constant 32 : index
    %783 = vector.load %arg11[%c128_377, %c32_378] : memref<160x64xf32, #tpu.memory_space<vmem>>, vector<8x32xf32>
    tpu.vector_store %arg11[%c128_377, %c32_378], %782 {strides = array<i32>} : memref<160x64xf32, #tpu.memory_space<vmem>>, vector<8x32xf32>,
    %c32_379 = arith.constant 32 : index
    %c0_380 = arith.constant 0 : index
    %784 = vector.load %arg8[%c32_379, %c0_380] : memref<160x256xf32, #tpu.memory_space<vmem>>, vector<8x256xf32>
    %c120_381 = arith.constant 120 : index
    %c0_382 = arith.constant 0 : index
    %785 = vector.load %arg9[%c120_381, %c0_382] : memref<160x256xf32, #tpu.memory_space<vmem>>, vector<8x256xf32>
    %786 = arith.addf %784, %785 : vector<8x256xf32>
    %787 = arith.truncf %779 : vector<8x64xf32> to vector<8x64xbf16>
    %cst_383 = arith.constant dense<0.000000e+00> : vector<8x256xf32>
    %788 = tpu.matmul %787, %677, %cst_383 {dimension_numbers = #tpu.dot_dimension_numbers<[1], [0], [0], [1], [0, 0, 1, 1], [], []>} : vector<8x64xbf16>, vector<64x256xbf16>, vector<8x256xf32> -> vector<8x256xf32>
    %789 = arith.addf %786, %788 : vector<8x256xf32>
    %790 = vector.extract_strided_slice %789 {offsets = [0, 0], sizes = [8, 192], strides = [1, 1]} : vector<8x256xf32> to vector<8x192xf32>
    %791 = arith.negf %790 : vector<8x192xf32>
    %792 = math.exp %791 : vector<8x192xf32>
    %cst_384 = arith.constant 1.000000e+00 : f32
    %793 = vector.broadcast %cst_384 : f32 to vector<8x192xf32>
    %794 = arith.addf %793, %792 : vector<8x192xf32>
    %795 = arith.divf %793, %794 : vector<8x192xf32>
    %796 = vector.extract_strided_slice %789 {offsets = [0, 192], sizes = [8, 64], strides = [1, 1]} : vector<8x256xf32> to vector<8x64xf32>
    %797 = math.tanh %796 : vector<8x64xf32>
    %798 = vector.extract_strided_slice %795 {offsets = [0, 0], sizes = [8, 64], strides = [1, 1]} : vector<8x192xf32> to vector<8x64xf32>
    %799 = arith.mulf %798, %776 : vector<8x64xf32>
    %800 = vector.extract_strided_slice %795 {offsets = [0, 64], sizes = [8, 64], strides = [1, 1]} : vector<8x192xf32> to vector<8x64xf32>
    %801 = arith.mulf %800, %797 : vector<8x64xf32>
    %802 = arith.addf %799, %801 : vector<8x64xf32>
    %803 = vector.extract_strided_slice %795 {offsets = [0, 128], sizes = [8, 64], strides = [1, 1]} : vector<8x192xf32> to vector<8x64xf32>
    %804 = math.tanh %802 : vector<8x64xf32>
    %805 = arith.mulf %803, %804 : vector<8x64xf32>
    %806 = vector.extract_strided_slice %805 {offsets = [0, 0], sizes = [8, 32], strides = [1, 1]} : vector<8x64xf32> to vector<8x32xf32>
    %c32_385 = arith.constant 32 : index
    %c0_386 = arith.constant 0 : index
    %807 = vector.load %arg11[%c32_385, %c0_386] : memref<160x64xf32, #tpu.memory_space<vmem>>, vector<8x32xf32>
    tpu.vector_store %arg11[%c32_385, %c0_386], %806 {strides = array<i32>} : memref<160x64xf32, #tpu.memory_space<vmem>>, vector<8x32xf32>,
    %808 = vector.extract_strided_slice %805 {offsets = [0, 32], sizes = [8, 32], strides = [1, 1]} : vector<8x64xf32> to vector<8x32xf32>
    %c120_387 = arith.constant 120 : index
    %c32_388 = arith.constant 32 : index
    %809 = vector.load %arg11[%c120_387, %c32_388] : memref<160x64xf32, #tpu.memory_space<vmem>>, vector<8x32xf32>
    tpu.vector_store %arg11[%c120_387, %c32_388], %808 {strides = array<i32>} : memref<160x64xf32, #tpu.memory_space<vmem>>, vector<8x32xf32>,
    %c40_389 = arith.constant 40 : index
    %c0_390 = arith.constant 0 : index
    %810 = vector.load %arg8[%c40_389, %c0_390] : memref<160x256xf32, #tpu.memory_space<vmem>>, vector<8x256xf32>
    %c112_391 = arith.constant 112 : index
    %c0_392 = arith.constant 0 : index
    %811 = vector.load %arg9[%c112_391, %c0_392] : memref<160x256xf32, #tpu.memory_space<vmem>>, vector<8x256xf32>
    %812 = arith.addf %810, %811 : vector<8x256xf32>
    %813 = arith.truncf %805 : vector<8x64xf32> to vector<8x64xbf16>
    %cst_393 = arith.constant dense<0.000000e+00> : vector<8x256xf32>
    %814 = tpu.matmul %813, %677, %cst_393 {dimension_numbers = #tpu.dot_dimension_numbers<[1], [0], [0], [1], [0, 0, 1, 1], [], []>} : vector<8x64xbf16>, vector<64x256xbf16>, vector<8x256xf32> -> vector<8x256xf32>
    %815 = arith.addf %812, %814 : vector<8x256xf32>
    %816 = vector.extract_strided_slice %815 {offsets = [0, 0], sizes = [8, 192], strides = [1, 1]} : vector<8x256xf32> to vector<8x192xf32>
    %817 = arith.negf %816 : vector<8x192xf32>
    %818 = math.exp %817 : vector<8x192xf32>
    %cst_394 = arith.constant 1.000000e+00 : f32
    %819 = vector.broadcast %cst_394 : f32 to vector<8x192xf32>
    %820 = arith.addf %819, %818 : vector<8x192xf32>
    %821 = arith.divf %819, %820 : vector<8x192xf32>
    %822 = vector.extract_strided_slice %815 {offsets = [0, 192], sizes = [8, 64], strides = [1, 1]} : vector<8x256xf32> to vector<8x64xf32>
    %823 = math.tanh %822 : vector<8x64xf32>
    %824 = vector.extract_strided_slice %821 {offsets = [0, 0], sizes = [8, 64], strides = [1, 1]} : vector<8x192xf32> to vector<8x64xf32>
    %825 = arith.mulf %824, %802 : vector<8x64xf32>
    %826 = vector.extract_strided_slice %821 {offsets = [0, 64], sizes = [8, 64], strides = [1, 1]} : vector<8x192xf32> to vector<8x64xf32>
    %827 = arith.mulf %826, %823 : vector<8x64xf32>
    %828 = arith.addf %825, %827 : vector<8x64xf32>
    %829 = vector.extract_strided_slice %821 {offsets = [0, 128], sizes = [8, 64], strides = [1, 1]} : vector<8x192xf32> to vector<8x64xf32>
    %830 = math.tanh %828 : vector<8x64xf32>
    %831 = arith.mulf %829, %830 : vector<8x64xf32>
    %832 = vector.extract_strided_slice %831 {offsets = [0, 0], sizes = [8, 32], strides = [1, 1]} : vector<8x64xf32> to vector<8x32xf32>
    %c40_395 = arith.constant 40 : index
    %c0_396 = arith.constant 0 : index
    %833 = vector.load %arg11[%c40_395, %c0_396] : memref<160x64xf32, #tpu.memory_space<vmem>>, vector<8x32xf32>
    tpu.vector_store %arg11[%c40_395, %c0_396], %832 {strides = array<i32>} : memref<160x64xf32, #tpu.memory_space<vmem>>, vector<8x32xf32>,
    %834 = vector.extract_strided_slice %831 {offsets = [0, 32], sizes = [8, 32], strides = [1, 1]} : vector<8x64xf32> to vector<8x32xf32>
    %c112_397 = arith.constant 112 : index
    %c32_398 = arith.constant 32 : index
    %835 = vector.load %arg11[%c112_397, %c32_398] : memref<160x64xf32, #tpu.memory_space<vmem>>, vector<8x32xf32>
    tpu.vector_store %arg11[%c112_397, %c32_398], %834 {strides = array<i32>} : memref<160x64xf32, #tpu.memory_space<vmem>>, vector<8x32xf32>,
    %c48_399 = arith.constant 48 : index
    %c0_400 = arith.constant 0 : index
    %836 = vector.load %arg8[%c48_399, %c0_400] : memref<160x256xf32, #tpu.memory_space<vmem>>, vector<8x256xf32>
    %c104_401 = arith.constant 104 : index
    %c0_402 = arith.constant 0 : index
    %837 = vector.load %arg9[%c104_401, %c0_402] : memref<160x256xf32, #tpu.memory_space<vmem>>, vector<8x256xf32>
    %838 = arith.addf %836, %837 : vector<8x256xf32>
    %839 = arith.truncf %831 : vector<8x64xf32> to vector<8x64xbf16>
    %cst_403 = arith.constant dense<0.000000e+00> : vector<8x256xf32>
    %840 = tpu.matmul %839, %677, %cst_403 {dimension_numbers = #tpu.dot_dimension_numbers<[1], [0], [0], [1], [0, 0, 1, 1], [], []>} : vector<8x64xbf16>, vector<64x256xbf16>, vector<8x256xf32> -> vector<8x256xf32>
    %841 = arith.addf %838, %840 : vector<8x256xf32>
    %842 = vector.extract_strided_slice %841 {offsets = [0, 0], sizes = [8, 192], strides = [1, 1]} : vector<8x256xf32> to vector<8x192xf32>
    %843 = arith.negf %842 : vector<8x192xf32>
    %844 = math.exp %843 : vector<8x192xf32>
    %cst_404 = arith.constant 1.000000e+00 : f32
    %845 = vector.broadcast %cst_404 : f32 to vector<8x192xf32>
    %846 = arith.addf %845, %844 : vector<8x192xf32>
    %847 = arith.divf %845, %846 : vector<8x192xf32>
    %848 = vector.extract_strided_slice %841 {offsets = [0, 192], sizes = [8, 64], strides = [1, 1]} : vector<8x256xf32> to vector<8x64xf32>
    %849 = math.tanh %848 : vector<8x64xf32>
    %850 = vector.extract_strided_slice %847 {offsets = [0, 0], sizes = [8, 64], strides = [1, 1]} : vector<8x192xf32> to vector<8x64xf32>
    %851 = arith.mulf %850, %828 : vector<8x64xf32>
    %852 = vector.extract_strided_slice %847 {offsets = [0, 64], sizes = [8, 64], strides = [1, 1]} : vector<8x192xf32> to vector<8x64xf32>
    %853 = arith.mulf %852, %849 : vector<8x64xf32>
    %854 = arith.addf %851, %853 : vector<8x64xf32>
    %855 = vector.extract_strided_slice %847 {offsets = [0, 128], sizes = [8, 64], strides = [1, 1]} : vector<8x192xf32> to vector<8x64xf32>
    %856 = math.tanh %854 : vector<8x64xf32>
    %857 = arith.mulf %855, %856 : vector<8x64xf32>
    %858 = vector.extract_strided_slice %857 {offsets = [0, 0], sizes = [8, 32], strides = [1, 1]} : vector<8x64xf32> to vector<8x32xf32>
    %c48_405 = arith.constant 48 : index
    %c0_406 = arith.constant 0 : index
    %859 = vector.load %arg11[%c48_405, %c0_406] : memref<160x64xf32, #tpu.memory_space<vmem>>, vector<8x32xf32>
    tpu.vector_store %arg11[%c48_405, %c0_406], %858 {strides = array<i32>} : memref<160x64xf32, #tpu.memory_space<vmem>>, vector<8x32xf32>,
    %860 = vector.extract_strided_slice %857 {offsets = [0, 32], sizes = [8, 32], strides = [1, 1]} : vector<8x64xf32> to vector<8x32xf32>
    %c104_407 = arith.constant 104 : index
    %c32_408 = arith.constant 32 : index
    %861 = vector.load %arg11[%c104_407, %c32_408] : memref<160x64xf32, #tpu.memory_space<vmem>>, vector<8x32xf32>
    tpu.vector_store %arg11[%c104_407, %c32_408], %860 {strides = array<i32>} : memref<160x64xf32, #tpu.memory_space<vmem>>, vector<8x32xf32>,
    %c56_409 = arith.constant 56 : index
    %c0_410 = arith.constant 0 : index
    %862 = vector.load %arg8[%c56_409, %c0_410] : memref<160x256xf32, #tpu.memory_space<vmem>>, vector<8x256xf32>
    %c96_411 = arith.constant 96 : index
    %c0_412 = arith.constant 0 : index
    %863 = vector.load %arg9[%c96_411, %c0_412] : memref<160x256xf32, #tpu.memory_space<vmem>>, vector<8x256xf32>
    %864 = arith.addf %862, %863 : vector<8x256xf32>
    %865 = arith.truncf %857 : vector<8x64xf32> to vector<8x64xbf16>
    %cst_413 = arith.constant dense<0.000000e+00> : vector<8x256xf32>
    %866 = tpu.matmul %865, %677, %cst_413 {dimension_numbers = #tpu.dot_dimension_numbers<[1], [0], [0], [1], [0, 0, 1, 1], [], []>} : vector<8x64xbf16>, vector<64x256xbf16>, vector<8x256xf32> -> vector<8x256xf32>
    %867 = arith.addf %864, %866 : vector<8x256xf32>
    %868 = vector.extract_strided_slice %867 {offsets = [0, 0], sizes = [8, 192], strides = [1, 1]} : vector<8x256xf32> to vector<8x192xf32>
    %869 = arith.negf %868 : vector<8x192xf32>
    %870 = math.exp %869 : vector<8x192xf32>
    %cst_414 = arith.constant 1.000000e+00 : f32
    %871 = vector.broadcast %cst_414 : f32 to vector<8x192xf32>
    %872 = arith.addf %871, %870 : vector<8x192xf32>
    %873 = arith.divf %871, %872 : vector<8x192xf32>
    %874 = vector.extract_strided_slice %867 {offsets = [0, 192], sizes = [8, 64], strides = [1, 1]} : vector<8x256xf32> to vector<8x64xf32>
    %875 = math.tanh %874 : vector<8x64xf32>
    %876 = vector.extract_strided_slice %873 {offsets = [0, 0], sizes = [8, 64], strides = [1, 1]} : vector<8x192xf32> to vector<8x64xf32>
    %877 = arith.mulf %876, %854 : vector<8x64xf32>
    %878 = vector.extract_strided_slice %873 {offsets = [0, 64], sizes = [8, 64], strides = [1, 1]} : vector<8x192xf32> to vector<8x64xf32>
    %879 = arith.mulf %878, %875 : vector<8x64xf32>
    %880 = arith.addf %877, %879 : vector<8x64xf32>
    %881 = vector.extract_strided_slice %873 {offsets = [0, 128], sizes = [8, 64], strides = [1, 1]} : vector<8x192xf32> to vector<8x64xf32>
    %882 = math.tanh %880 : vector<8x64xf32>
    %883 = arith.mulf %881, %882 : vector<8x64xf32>
    %884 = vector.extract_strided_slice %883 {offsets = [0, 0], sizes = [8, 32], strides = [1, 1]} : vector<8x64xf32> to vector<8x32xf32>
    %c56_415 = arith.constant 56 : index
    %c0_416 = arith.constant 0 : index
    %885 = vector.load %arg11[%c56_415, %c0_416] : memref<160x64xf32, #tpu.memory_space<vmem>>, vector<8x32xf32>
    tpu.vector_store %arg11[%c56_415, %c0_416], %884 {strides = array<i32>} : memref<160x64xf32, #tpu.memory_space<vmem>>, vector<8x32xf32>,
    %886 = vector.extract_strided_slice %883 {offsets = [0, 32], sizes = [8, 32], strides = [1, 1]} : vector<8x64xf32> to vector<8x32xf32>
    %c96_417 = arith.constant 96 : index
    %c32_418 = arith.constant 32 : index
    %887 = vector.load %arg11[%c96_417, %c32_418] : memref<160x64xf32, #tpu.memory_space<vmem>>, vector<8x32xf32>
    tpu.vector_store %arg11[%c96_417, %c32_418], %886 {strides = array<i32>} : memref<160x64xf32, #tpu.memory_space<vmem>>, vector<8x32xf32>,
    %c64_419 = arith.constant 64 : index
    %c0_420 = arith.constant 0 : index
    %888 = vector.load %arg8[%c64_419, %c0_420] : memref<160x256xf32, #tpu.memory_space<vmem>>, vector<8x256xf32>
    %c88_421 = arith.constant 88 : index
    %c0_422 = arith.constant 0 : index
    %889 = vector.load %arg9[%c88_421, %c0_422] : memref<160x256xf32, #tpu.memory_space<vmem>>, vector<8x256xf32>
    %890 = arith.addf %888, %889 : vector<8x256xf32>
    %891 = arith.truncf %883 : vector<8x64xf32> to vector<8x64xbf16>
    %cst_423 = arith.constant dense<0.000000e+00> : vector<8x256xf32>
    %892 = tpu.matmul %891, %677, %cst_423 {dimension_numbers = #tpu.dot_dimension_numbers<[1], [0], [0], [1], [0, 0, 1, 1], [], []>} : vector<8x64xbf16>, vector<64x256xbf16>, vector<8x256xf32> -> vector<8x256xf32>
    %893 = arith.addf %890, %892 : vector<8x256xf32>
    %894 = vector.extract_strided_slice %893 {offsets = [0, 0], sizes = [8, 192], strides = [1, 1]} : vector<8x256xf32> to vector<8x192xf32>
    %895 = arith.negf %894 : vector<8x192xf32>
    %896 = math.exp %895 : vector<8x192xf32>
    %cst_424 = arith.constant 1.000000e+00 : f32
    %897 = vector.broadcast %cst_424 : f32 to vector<8x192xf32>
    %898 = arith.addf %897, %896 : vector<8x192xf32>
    %899 = arith.divf %897, %898 : vector<8x192xf32>
    %900 = vector.extract_strided_slice %893 {offsets = [0, 192], sizes = [8, 64], strides = [1, 1]} : vector<8x256xf32> to vector<8x64xf32>
    %901 = math.tanh %900 : vector<8x64xf32>
    %902 = vector.extract_strided_slice %899 {offsets = [0, 0], sizes = [8, 64], strides = [1, 1]} : vector<8x192xf32> to vector<8x64xf32>
    %903 = arith.mulf %902, %880 : vector<8x64xf32>
    %904 = vector.extract_strided_slice %899 {offsets = [0, 64], sizes = [8, 64], strides = [1, 1]} : vector<8x192xf32> to vector<8x64xf32>
    %905 = arith.mulf %904, %901 : vector<8x64xf32>
    %906 = arith.addf %903, %905 : vector<8x64xf32>
    %907 = vector.extract_strided_slice %899 {offsets = [0, 128], sizes = [8, 64], strides = [1, 1]} : vector<8x192xf32> to vector<8x64xf32>
    %908 = math.tanh %906 : vector<8x64xf32>
    %909 = arith.mulf %907, %908 : vector<8x64xf32>
    %910 = vector.extract_strided_slice %909 {offsets = [0, 0], sizes = [8, 32], strides = [1, 1]} : vector<8x64xf32> to vector<8x32xf32>
    %c64_425 = arith.constant 64 : index
    %c0_426 = arith.constant 0 : index
    %911 = vector.load %arg11[%c64_425, %c0_426] : memref<160x64xf32, #tpu.memory_space<vmem>>, vector<8x32xf32>
    tpu.vector_store %arg11[%c64_425, %c0_426], %910 {strides = array<i32>} : memref<160x64xf32, #tpu.memory_space<vmem>>, vector<8x32xf32>,
    %912 = vector.extract_strided_slice %909 {offsets = [0, 32], sizes = [8, 32], strides = [1, 1]} : vector<8x64xf32> to vector<8x32xf32>
    %c88_427 = arith.constant 88 : index
    %c32_428 = arith.constant 32 : index
    %913 = vector.load %arg11[%c88_427, %c32_428] : memref<160x64xf32, #tpu.memory_space<vmem>>, vector<8x32xf32>
    tpu.vector_store %arg11[%c88_427, %c32_428], %912 {strides = array<i32>} : memref<160x64xf32, #tpu.memory_space<vmem>>, vector<8x32xf32>,
    %c72_429 = arith.constant 72 : index
    %c0_430 = arith.constant 0 : index
    %914 = vector.load %arg8[%c72_429, %c0_430] : memref<160x256xf32, #tpu.memory_space<vmem>>, vector<8x256xf32>
    %c80_431 = arith.constant 80 : index
    %c0_432 = arith.constant 0 : index
    %915 = vector.load %arg9[%c80_431, %c0_432] : memref<160x256xf32, #tpu.memory_space<vmem>>, vector<8x256xf32>
    %916 = arith.addf %914, %915 : vector<8x256xf32>
    %917 = arith.truncf %909 : vector<8x64xf32> to vector<8x64xbf16>
    %cst_433 = arith.constant dense<0.000000e+00> : vector<8x256xf32>
    %918 = tpu.matmul %917, %677, %cst_433 {dimension_numbers = #tpu.dot_dimension_numbers<[1], [0], [0], [1], [0, 0, 1, 1], [], []>} : vector<8x64xbf16>, vector<64x256xbf16>, vector<8x256xf32> -> vector<8x256xf32>
    %919 = arith.addf %916, %918 : vector<8x256xf32>
    %920 = vector.extract_strided_slice %919 {offsets = [0, 0], sizes = [8, 192], strides = [1, 1]} : vector<8x256xf32> to vector<8x192xf32>
    %921 = arith.negf %920 : vector<8x192xf32>
    %922 = math.exp %921 : vector<8x192xf32>
    %cst_434 = arith.constant 1.000000e+00 : f32
    %923 = vector.broadcast %cst_434 : f32 to vector<8x192xf32>
    %924 = arith.addf %923, %922 : vector<8x192xf32>
    %925 = arith.divf %923, %924 : vector<8x192xf32>
    %926 = vector.extract_strided_slice %919 {offsets = [0, 192], sizes = [8, 64], strides = [1, 1]} : vector<8x256xf32> to vector<8x64xf32>
    %927 = math.tanh %926 : vector<8x64xf32>
    %928 = vector.extract_strided_slice %925 {offsets = [0, 0], sizes = [8, 64], strides = [1, 1]} : vector<8x192xf32> to vector<8x64xf32>
    %929 = arith.mulf %928, %906 : vector<8x64xf32>
    %930 = vector.extract_strided_slice %925 {offsets = [0, 64], sizes = [8, 64], strides = [1, 1]} : vector<8x192xf32> to vector<8x64xf32>
    %931 = arith.mulf %930, %927 : vector<8x64xf32>
    %932 = arith.addf %929, %931 : vector<8x64xf32>
    %933 = vector.extract_strided_slice %925 {offsets = [0, 128], sizes = [8, 64], strides = [1, 1]} : vector<8x192xf32> to vector<8x64xf32>
    %934 = math.tanh %932 : vector<8x64xf32>
    %935 = arith.mulf %933, %934 : vector<8x64xf32>
    %936 = vector.extract_strided_slice %935 {offsets = [0, 0], sizes = [8, 32], strides = [1, 1]} : vector<8x64xf32> to vector<8x32xf32>
    %c72_435 = arith.constant 72 : index
    %c0_436 = arith.constant 0 : index
    %937 = vector.load %arg11[%c72_435, %c0_436] : memref<160x64xf32, #tpu.memory_space<vmem>>, vector<8x32xf32>
    tpu.vector_store %arg11[%c72_435, %c0_436], %936 {strides = array<i32>} : memref<160x64xf32, #tpu.memory_space<vmem>>, vector<8x32xf32>,
    %938 = vector.extract_strided_slice %935 {offsets = [0, 32], sizes = [8, 32], strides = [1, 1]} : vector<8x64xf32> to vector<8x32xf32>
    %c80_437 = arith.constant 80 : index
    %c32_438 = arith.constant 32 : index
    %939 = vector.load %arg11[%c80_437, %c32_438] : memref<160x64xf32, #tpu.memory_space<vmem>>, vector<8x32xf32>
    tpu.vector_store %arg11[%c80_437, %c32_438], %938 {strides = array<i32>} : memref<160x64xf32, #tpu.memory_space<vmem>>, vector<8x32xf32>,
    %c80_439 = arith.constant 80 : index
    %c0_440 = arith.constant 0 : index
    %940 = vector.load %arg8[%c80_439, %c0_440] : memref<160x256xf32, #tpu.memory_space<vmem>>, vector<8x256xf32>
    %c72_441 = arith.constant 72 : index
    %c0_442 = arith.constant 0 : index
    %941 = vector.load %arg9[%c72_441, %c0_442] : memref<160x256xf32, #tpu.memory_space<vmem>>, vector<8x256xf32>
    %942 = arith.addf %940, %941 : vector<8x256xf32>
    %943 = arith.truncf %935 : vector<8x64xf32> to vector<8x64xbf16>
    %cst_443 = arith.constant dense<0.000000e+00> : vector<8x256xf32>
    %944 = tpu.matmul %943, %677, %cst_443 {dimension_numbers = #tpu.dot_dimension_numbers<[1], [0], [0], [1], [0, 0, 1, 1], [], []>} : vector<8x64xbf16>, vector<64x256xbf16>, vector<8x256xf32> -> vector<8x256xf32>
    %945 = arith.addf %942, %944 : vector<8x256xf32>
    %946 = vector.extract_strided_slice %945 {offsets = [0, 0], sizes = [8, 192], strides = [1, 1]} : vector<8x256xf32> to vector<8x192xf32>
    %947 = arith.negf %946 : vector<8x192xf32>
    %948 = math.exp %947 : vector<8x192xf32>
    %cst_444 = arith.constant 1.000000e+00 : f32
    %949 = vector.broadcast %cst_444 : f32 to vector<8x192xf32>
    %950 = arith.addf %949, %948 : vector<8x192xf32>
    %951 = arith.divf %949, %950 : vector<8x192xf32>
    %952 = vector.extract_strided_slice %945 {offsets = [0, 192], sizes = [8, 64], strides = [1, 1]} : vector<8x256xf32> to vector<8x64xf32>
    %953 = math.tanh %952 : vector<8x64xf32>
    %954 = vector.extract_strided_slice %951 {offsets = [0, 0], sizes = [8, 64], strides = [1, 1]} : vector<8x192xf32> to vector<8x64xf32>
    %955 = arith.mulf %954, %932 : vector<8x64xf32>
    %956 = vector.extract_strided_slice %951 {offsets = [0, 64], sizes = [8, 64], strides = [1, 1]} : vector<8x192xf32> to vector<8x64xf32>
    %957 = arith.mulf %956, %953 : vector<8x64xf32>
    %958 = arith.addf %955, %957 : vector<8x64xf32>
    %959 = vector.extract_strided_slice %951 {offsets = [0, 128], sizes = [8, 64], strides = [1, 1]} : vector<8x192xf32> to vector<8x64xf32>
    %960 = math.tanh %958 : vector<8x64xf32>
    %961 = arith.mulf %959, %960 : vector<8x64xf32>
    %962 = vector.extract_strided_slice %961 {offsets = [0, 0], sizes = [8, 32], strides = [1, 1]} : vector<8x64xf32> to vector<8x32xf32>
    %c80_445 = arith.constant 80 : index
    %c0_446 = arith.constant 0 : index
    %963 = vector.load %arg11[%c80_445, %c0_446] : memref<160x64xf32, #tpu.memory_space<vmem>>, vector<8x32xf32>
    tpu.vector_store %arg11[%c80_445, %c0_446], %962 {strides = array<i32>} : memref<160x64xf32, #tpu.memory_space<vmem>>, vector<8x32xf32>,
    %964 = vector.extract_strided_slice %961 {offsets = [0, 32], sizes = [8, 32], strides = [1, 1]} : vector<8x64xf32> to vector<8x32xf32>
    %c72_447 = arith.constant 72 : index
    %c32_448 = arith.constant 32 : index
    %965 = vector.load %arg11[%c72_447, %c32_448] : memref<160x64xf32, #tpu.memory_space<vmem>>, vector<8x32xf32>
    tpu.vector_store %arg11[%c72_447, %c32_448], %964 {strides = array<i32>} : memref<160x64xf32, #tpu.memory_space<vmem>>, vector<8x32xf32>,
    %c88_449 = arith.constant 88 : index
    %c0_450 = arith.constant 0 : index
    %966 = vector.load %arg8[%c88_449, %c0_450] : memref<160x256xf32, #tpu.memory_space<vmem>>, vector<8x256xf32>
    %c64_451 = arith.constant 64 : index
    %c0_452 = arith.constant 0 : index
    %967 = vector.load %arg9[%c64_451, %c0_452] : memref<160x256xf32, #tpu.memory_space<vmem>>, vector<8x256xf32>
    %968 = arith.addf %966, %967 : vector<8x256xf32>
    %969 = arith.truncf %961 : vector<8x64xf32> to vector<8x64xbf16>
    %cst_453 = arith.constant dense<0.000000e+00> : vector<8x256xf32>
    %970 = tpu.matmul %969, %677, %cst_453 {dimension_numbers = #tpu.dot_dimension_numbers<[1], [0], [0], [1], [0, 0, 1, 1], [], []>} : vector<8x64xbf16>, vector<64x256xbf16>, vector<8x256xf32> -> vector<8x256xf32>
    %971 = arith.addf %968, %970 : vector<8x256xf32>
    %972 = vector.extract_strided_slice %971 {offsets = [0, 0], sizes = [8, 192], strides = [1, 1]} : vector<8x256xf32> to vector<8x192xf32>
    %973 = arith.negf %972 : vector<8x192xf32>
    %974 = math.exp %973 : vector<8x192xf32>
    %cst_454 = arith.constant 1.000000e+00 : f32
    %975 = vector.broadcast %cst_454 : f32 to vector<8x192xf32>
    %976 = arith.addf %975, %974 : vector<8x192xf32>
    %977 = arith.divf %975, %976 : vector<8x192xf32>
    %978 = vector.extract_strided_slice %971 {offsets = [0, 192], sizes = [8, 64], strides = [1, 1]} : vector<8x256xf32> to vector<8x64xf32>
    %979 = math.tanh %978 : vector<8x64xf32>
    %980 = vector.extract_strided_slice %977 {offsets = [0, 0], sizes = [8, 64], strides = [1, 1]} : vector<8x192xf32> to vector<8x64xf32>
    %981 = arith.mulf %980, %958 : vector<8x64xf32>
    %982 = vector.extract_strided_slice %977 {offsets = [0, 64], sizes = [8, 64], strides = [1, 1]} : vector<8x192xf32> to vector<8x64xf32>
    %983 = arith.mulf %982, %979 : vector<8x64xf32>
    %984 = arith.addf %981, %983 : vector<8x64xf32>
    %985 = vector.extract_strided_slice %977 {offsets = [0, 128], sizes = [8, 64], strides = [1, 1]} : vector<8x192xf32> to vector<8x64xf32>
    %986 = math.tanh %984 : vector<8x64xf32>
    %987 = arith.mulf %985, %986 : vector<8x64xf32>
    %988 = vector.extract_strided_slice %987 {offsets = [0, 0], sizes = [8, 32], strides = [1, 1]} : vector<8x64xf32> to vector<8x32xf32>
    %c88_455 = arith.constant 88 : index
    %c0_456 = arith.constant 0 : index
    %989 = vector.load %arg11[%c88_455, %c0_456] : memref<160x64xf32, #tpu.memory_space<vmem>>, vector<8x32xf32>
    tpu.vector_store %arg11[%c88_455, %c0_456], %988 {strides = array<i32>} : memref<160x64xf32, #tpu.memory_space<vmem>>, vector<8x32xf32>,
    %990 = vector.extract_strided_slice %987 {offsets = [0, 32], sizes = [8, 32], strides = [1, 1]} : vector<8x64xf32> to vector<8x32xf32>
    %c64_457 = arith.constant 64 : index
    %c32_458 = arith.constant 32 : index
    %991 = vector.load %arg11[%c64_457, %c32_458] : memref<160x64xf32, #tpu.memory_space<vmem>>, vector<8x32xf32>
    tpu.vector_store %arg11[%c64_457, %c32_458], %990 {strides = array<i32>} : memref<160x64xf32, #tpu.memory_space<vmem>>, vector<8x32xf32>,
    %c96_459 = arith.constant 96 : index
    %c0_460 = arith.constant 0 : index
    %992 = vector.load %arg8[%c96_459, %c0_460] : memref<160x256xf32, #tpu.memory_space<vmem>>, vector<8x256xf32>
    %c56_461 = arith.constant 56 : index
    %c0_462 = arith.constant 0 : index
    %993 = vector.load %arg9[%c56_461, %c0_462] : memref<160x256xf32, #tpu.memory_space<vmem>>, vector<8x256xf32>
    %994 = arith.addf %992, %993 : vector<8x256xf32>
    %995 = arith.truncf %987 : vector<8x64xf32> to vector<8x64xbf16>
    %cst_463 = arith.constant dense<0.000000e+00> : vector<8x256xf32>
    %996 = tpu.matmul %995, %677, %cst_463 {dimension_numbers = #tpu.dot_dimension_numbers<[1], [0], [0], [1], [0, 0, 1, 1], [], []>} : vector<8x64xbf16>, vector<64x256xbf16>, vector<8x256xf32> -> vector<8x256xf32>
    %997 = arith.addf %994, %996 : vector<8x256xf32>
    %998 = vector.extract_strided_slice %997 {offsets = [0, 0], sizes = [8, 192], strides = [1, 1]} : vector<8x256xf32> to vector<8x192xf32>
    %999 = arith.negf %998 : vector<8x192xf32>
    %1000 = math.exp %999 : vector<8x192xf32>
    %cst_464 = arith.constant 1.000000e+00 : f32
    %1001 = vector.broadcast %cst_464 : f32 to vector<8x192xf32>
    %1002 = arith.addf %1001, %1000 : vector<8x192xf32>
    %1003 = arith.divf %1001, %1002 : vector<8x192xf32>
    %1004 = vector.extract_strided_slice %997 {offsets = [0, 192], sizes = [8, 64], strides = [1, 1]} : vector<8x256xf32> to vector<8x64xf32>
    %1005 = math.tanh %1004 : vector<8x64xf32>
    %1006 = vector.extract_strided_slice %1003 {offsets = [0, 0], sizes = [8, 64], strides = [1, 1]} : vector<8x192xf32> to vector<8x64xf32>
    %1007 = arith.mulf %1006, %984 : vector<8x64xf32>
    %1008 = vector.extract_strided_slice %1003 {offsets = [0, 64], sizes = [8, 64], strides = [1, 1]} : vector<8x192xf32> to vector<8x64xf32>
    %1009 = arith.mulf %1008, %1005 : vector<8x64xf32>
    %1010 = arith.addf %1007, %1009 : vector<8x64xf32>
    %1011 = vector.extract_strided_slice %1003 {offsets = [0, 128], sizes = [8, 64], strides = [1, 1]} : vector<8x192xf32> to vector<8x64xf32>
    %1012 = math.tanh %1010 : vector<8x64xf32>
    %1013 = arith.mulf %1011, %1012 : vector<8x64xf32>
    %1014 = vector.extract_strided_slice %1013 {offsets = [0, 0], sizes = [8, 32], strides = [1, 1]} : vector<8x64xf32> to vector<8x32xf32>
    %c96_465 = arith.constant 96 : index
    %c0_466 = arith.constant 0 : index
    %1015 = vector.load %arg11[%c96_465, %c0_466] : memref<160x64xf32, #tpu.memory_space<vmem>>, vector<8x32xf32>
    tpu.vector_store %arg11[%c96_465, %c0_466], %1014 {strides = array<i32>} : memref<160x64xf32, #tpu.memory_space<vmem>>, vector<8x32xf32>,
    %1016 = vector.extract_strided_slice %1013 {offsets = [0, 32], sizes = [8, 32], strides = [1, 1]} : vector<8x64xf32> to vector<8x32xf32>
    %c56_467 = arith.constant 56 : index
    %c32_468 = arith.constant 32 : index
    %1017 = vector.load %arg11[%c56_467, %c32_468] : memref<160x64xf32, #tpu.memory_space<vmem>>, vector<8x32xf32>
    tpu.vector_store %arg11[%c56_467, %c32_468], %1016 {strides = array<i32>} : memref<160x64xf32, #tpu.memory_space<vmem>>, vector<8x32xf32>,
    %c104_469 = arith.constant 104 : index
    %c0_470 = arith.constant 0 : index
    %1018 = vector.load %arg8[%c104_469, %c0_470] : memref<160x256xf32, #tpu.memory_space<vmem>>, vector<8x256xf32>
    %c48_471 = arith.constant 48 : index
    %c0_472 = arith.constant 0 : index
    %1019 = vector.load %arg9[%c48_471, %c0_472] : memref<160x256xf32, #tpu.memory_space<vmem>>, vector<8x256xf32>
    %1020 = arith.addf %1018, %1019 : vector<8x256xf32>
    %1021 = arith.truncf %1013 : vector<8x64xf32> to vector<8x64xbf16>
    %cst_473 = arith.constant dense<0.000000e+00> : vector<8x256xf32>
    %1022 = tpu.matmul %1021, %677, %cst_473 {dimension_numbers = #tpu.dot_dimension_numbers<[1], [0], [0], [1], [0, 0, 1, 1], [], []>} : vector<8x64xbf16>, vector<64x256xbf16>, vector<8x256xf32> -> vector<8x256xf32>
    %1023 = arith.addf %1020, %1022 : vector<8x256xf32>
    %1024 = vector.extract_strided_slice %1023 {offsets = [0, 0], sizes = [8, 192], strides = [1, 1]} : vector<8x256xf32> to vector<8x192xf32>
    %1025 = arith.negf %1024 : vector<8x192xf32>
    %1026 = math.exp %1025 : vector<8x192xf32>
    %cst_474 = arith.constant 1.000000e+00 : f32
    %1027 = vector.broadcast %cst_474 : f32 to vector<8x192xf32>
    %1028 = arith.addf %1027, %1026 : vector<8x192xf32>
    %1029 = arith.divf %1027, %1028 : vector<8x192xf32>
    %1030 = vector.extract_strided_slice %1023 {offsets = [0, 192], sizes = [8, 64], strides = [1, 1]} : vector<8x256xf32> to vector<8x64xf32>
    %1031 = math.tanh %1030 : vector<8x64xf32>
    %1032 = vector.extract_strided_slice %1029 {offsets = [0, 0], sizes = [8, 64], strides = [1, 1]} : vector<8x192xf32> to vector<8x64xf32>
    %1033 = arith.mulf %1032, %1010 : vector<8x64xf32>
    %1034 = vector.extract_strided_slice %1029 {offsets = [0, 64], sizes = [8, 64], strides = [1, 1]} : vector<8x192xf32> to vector<8x64xf32>
    %1035 = arith.mulf %1034, %1031 : vector<8x64xf32>
    %1036 = arith.addf %1033, %1035 : vector<8x64xf32>
    %1037 = vector.extract_strided_slice %1029 {offsets = [0, 128], sizes = [8, 64], strides = [1, 1]} : vector<8x192xf32> to vector<8x64xf32>
    %1038 = math.tanh %1036 : vector<8x64xf32>
    %1039 = arith.mulf %1037, %1038 : vector<8x64xf32>
    %1040 = vector.extract_strided_slice %1039 {offsets = [0, 0], sizes = [8, 32], strides = [1, 1]} : vector<8x64xf32> to vector<8x32xf32>
    %c104_475 = arith.constant 104 : index
    %c0_476 = arith.constant 0 : index
    %1041 = vector.load %arg11[%c104_475, %c0_476] : memref<160x64xf32, #tpu.memory_space<vmem>>, vector<8x32xf32>
    tpu.vector_store %arg11[%c104_475, %c0_476], %1040 {strides = array<i32>} : memref<160x64xf32, #tpu.memory_space<vmem>>, vector<8x32xf32>,
    %1042 = vector.extract_strided_slice %1039 {offsets = [0, 32], sizes = [8, 32], strides = [1, 1]} : vector<8x64xf32> to vector<8x32xf32>
    %c48_477 = arith.constant 48 : index
    %c32_478 = arith.constant 32 : index
    %1043 = vector.load %arg11[%c48_477, %c32_478] : memref<160x64xf32, #tpu.memory_space<vmem>>, vector<8x32xf32>
    tpu.vector_store %arg11[%c48_477, %c32_478], %1042 {strides = array<i32>} : memref<160x64xf32, #tpu.memory_space<vmem>>, vector<8x32xf32>,
    %c112_479 = arith.constant 112 : index
    %c0_480 = arith.constant 0 : index
    %1044 = vector.load %arg8[%c112_479, %c0_480] : memref<160x256xf32, #tpu.memory_space<vmem>>, vector<8x256xf32>
    %c40_481 = arith.constant 40 : index
    %c0_482 = arith.constant 0 : index
    %1045 = vector.load %arg9[%c40_481, %c0_482] : memref<160x256xf32, #tpu.memory_space<vmem>>, vector<8x256xf32>
    %1046 = arith.addf %1044, %1045 : vector<8x256xf32>
    %1047 = arith.truncf %1039 : vector<8x64xf32> to vector<8x64xbf16>
    %cst_483 = arith.constant dense<0.000000e+00> : vector<8x256xf32>
    %1048 = tpu.matmul %1047, %677, %cst_483 {dimension_numbers = #tpu.dot_dimension_numbers<[1], [0], [0], [1], [0, 0, 1, 1], [], []>} : vector<8x64xbf16>, vector<64x256xbf16>, vector<8x256xf32> -> vector<8x256xf32>
    %1049 = arith.addf %1046, %1048 : vector<8x256xf32>
    %1050 = vector.extract_strided_slice %1049 {offsets = [0, 0], sizes = [8, 192], strides = [1, 1]} : vector<8x256xf32> to vector<8x192xf32>
    %1051 = arith.negf %1050 : vector<8x192xf32>
    %1052 = math.exp %1051 : vector<8x192xf32>
    %cst_484 = arith.constant 1.000000e+00 : f32
    %1053 = vector.broadcast %cst_484 : f32 to vector<8x192xf32>
    %1054 = arith.addf %1053, %1052 : vector<8x192xf32>
    %1055 = arith.divf %1053, %1054 : vector<8x192xf32>
    %1056 = vector.extract_strided_slice %1049 {offsets = [0, 192], sizes = [8, 64], strides = [1, 1]} : vector<8x256xf32> to vector<8x64xf32>
    %1057 = math.tanh %1056 : vector<8x64xf32>
    %1058 = vector.extract_strided_slice %1055 {offsets = [0, 0], sizes = [8, 64], strides = [1, 1]} : vector<8x192xf32> to vector<8x64xf32>
    %1059 = arith.mulf %1058, %1036 : vector<8x64xf32>
    %1060 = vector.extract_strided_slice %1055 {offsets = [0, 64], sizes = [8, 64], strides = [1, 1]} : vector<8x192xf32> to vector<8x64xf32>
    %1061 = arith.mulf %1060, %1057 : vector<8x64xf32>
    %1062 = arith.addf %1059, %1061 : vector<8x64xf32>
    %1063 = vector.extract_strided_slice %1055 {offsets = [0, 128], sizes = [8, 64], strides = [1, 1]} : vector<8x192xf32> to vector<8x64xf32>
    %1064 = math.tanh %1062 : vector<8x64xf32>
    %1065 = arith.mulf %1063, %1064 : vector<8x64xf32>
    %1066 = vector.extract_strided_slice %1065 {offsets = [0, 0], sizes = [8, 32], strides = [1, 1]} : vector<8x64xf32> to vector<8x32xf32>
    %c112_485 = arith.constant 112 : index
    %c0_486 = arith.constant 0 : index
    %1067 = vector.load %arg11[%c112_485, %c0_486] : memref<160x64xf32, #tpu.memory_space<vmem>>, vector<8x32xf32>
    tpu.vector_store %arg11[%c112_485, %c0_486], %1066 {strides = array<i32>} : memref<160x64xf32, #tpu.memory_space<vmem>>, vector<8x32xf32>,
    %1068 = vector.extract_strided_slice %1065 {offsets = [0, 32], sizes = [8, 32], strides = [1, 1]} : vector<8x64xf32> to vector<8x32xf32>
    %c40_487 = arith.constant 40 : index
    %c32_488 = arith.constant 32 : index
    %1069 = vector.load %arg11[%c40_487, %c32_488] : memref<160x64xf32, #tpu.memory_space<vmem>>, vector<8x32xf32>
    tpu.vector_store %arg11[%c40_487, %c32_488], %1068 {strides = array<i32>} : memref<160x64xf32, #tpu.memory_space<vmem>>, vector<8x32xf32>,
    %c120_489 = arith.constant 120 : index
    %c0_490 = arith.constant 0 : index
    %1070 = vector.load %arg8[%c120_489, %c0_490] : memref<160x256xf32, #tpu.memory_space<vmem>>, vector<8x256xf32>
    %c32_491 = arith.constant 32 : index
    %c0_492 = arith.constant 0 : index
    %1071 = vector.load %arg9[%c32_491, %c0_492] : memref<160x256xf32, #tpu.memory_space<vmem>>, vector<8x256xf32>
    %1072 = arith.addf %1070, %1071 : vector<8x256xf32>
    %1073 = arith.truncf %1065 : vector<8x64xf32> to vector<8x64xbf16>
    %cst_493 = arith.constant dense<0.000000e+00> : vector<8x256xf32>
    %1074 = tpu.matmul %1073, %677, %cst_493 {dimension_numbers = #tpu.dot_dimension_numbers<[1], [0], [0], [1], [0, 0, 1, 1], [], []>} : vector<8x64xbf16>, vector<64x256xbf16>, vector<8x256xf32> -> vector<8x256xf32>
    %1075 = arith.addf %1072, %1074 : vector<8x256xf32>
    %1076 = vector.extract_strided_slice %1075 {offsets = [0, 0], sizes = [8, 192], strides = [1, 1]} : vector<8x256xf32> to vector<8x192xf32>
    %1077 = arith.negf %1076 : vector<8x192xf32>
    %1078 = math.exp %1077 : vector<8x192xf32>
    %cst_494 = arith.constant 1.000000e+00 : f32
    %1079 = vector.broadcast %cst_494 : f32 to vector<8x192xf32>
    %1080 = arith.addf %1079, %1078 : vector<8x192xf32>
    %1081 = arith.divf %1079, %1080 : vector<8x192xf32>
    %1082 = vector.extract_strided_slice %1075 {offsets = [0, 192], sizes = [8, 64], strides = [1, 1]} : vector<8x256xf32> to vector<8x64xf32>
    %1083 = math.tanh %1082 : vector<8x64xf32>
    %1084 = vector.extract_strided_slice %1081 {offsets = [0, 0], sizes = [8, 64], strides = [1, 1]} : vector<8x192xf32> to vector<8x64xf32>
    %1085 = arith.mulf %1084, %1062 : vector<8x64xf32>
    %1086 = vector.extract_strided_slice %1081 {offsets = [0, 64], sizes = [8, 64], strides = [1, 1]} : vector<8x192xf32> to vector<8x64xf32>
    %1087 = arith.mulf %1086, %1083 : vector<8x64xf32>
    %1088 = arith.addf %1085, %1087 : vector<8x64xf32>
    %1089 = vector.extract_strided_slice %1081 {offsets = [0, 128], sizes = [8, 64], strides = [1, 1]} : vector<8x192xf32> to vector<8x64xf32>
    %1090 = math.tanh %1088 : vector<8x64xf32>
    %1091 = arith.mulf %1089, %1090 : vector<8x64xf32>
    %1092 = vector.extract_strided_slice %1091 {offsets = [0, 0], sizes = [8, 32], strides = [1, 1]} : vector<8x64xf32> to vector<8x32xf32>
    %c120_495 = arith.constant 120 : index
    %c0_496 = arith.constant 0 : index
    %1093 = vector.load %arg11[%c120_495, %c0_496] : memref<160x64xf32, #tpu.memory_space<vmem>>, vector<8x32xf32>
    tpu.vector_store %arg11[%c120_495, %c0_496], %1092 {strides = array<i32>} : memref<160x64xf32, #tpu.memory_space<vmem>>, vector<8x32xf32>,
    %1094 = vector.extract_strided_slice %1091 {offsets = [0, 32], sizes = [8, 32], strides = [1, 1]} : vector<8x64xf32> to vector<8x32xf32>
    %c32_497 = arith.constant 32 : index
    %c32_498 = arith.constant 32 : index
    %1095 = vector.load %arg11[%c32_497, %c32_498] : memref<160x64xf32, #tpu.memory_space<vmem>>, vector<8x32xf32>
    tpu.vector_store %arg11[%c32_497, %c32_498], %1094 {strides = array<i32>} : memref<160x64xf32, #tpu.memory_space<vmem>>, vector<8x32xf32>,
    %c128_499 = arith.constant 128 : index
    %c0_500 = arith.constant 0 : index
    %1096 = vector.load %arg8[%c128_499, %c0_500] : memref<160x256xf32, #tpu.memory_space<vmem>>, vector<8x256xf32>
    %c24_501 = arith.constant 24 : index
    %c0_502 = arith.constant 0 : index
    %1097 = vector.load %arg9[%c24_501, %c0_502] : memref<160x256xf32, #tpu.memory_space<vmem>>, vector<8x256xf32>
    %1098 = arith.addf %1096, %1097 : vector<8x256xf32>
    %1099 = arith.truncf %1091 : vector<8x64xf32> to vector<8x64xbf16>
    %cst_503 = arith.constant dense<0.000000e+00> : vector<8x256xf32>
    %1100 = tpu.matmul %1099, %677, %cst_503 {dimension_numbers = #tpu.dot_dimension_numbers<[1], [0], [0], [1], [0, 0, 1, 1], [], []>} : vector<8x64xbf16>, vector<64x256xbf16>, vector<8x256xf32> -> vector<8x256xf32>
    %1101 = arith.addf %1098, %1100 : vector<8x256xf32>
    %1102 = vector.extract_strided_slice %1101 {offsets = [0, 0], sizes = [8, 192], strides = [1, 1]} : vector<8x256xf32> to vector<8x192xf32>
    %1103 = arith.negf %1102 : vector<8x192xf32>
    %1104 = math.exp %1103 : vector<8x192xf32>
    %cst_504 = arith.constant 1.000000e+00 : f32
    %1105 = vector.broadcast %cst_504 : f32 to vector<8x192xf32>
    %1106 = arith.addf %1105, %1104 : vector<8x192xf32>
    %1107 = arith.divf %1105, %1106 : vector<8x192xf32>
    %1108 = vector.extract_strided_slice %1101 {offsets = [0, 192], sizes = [8, 64], strides = [1, 1]} : vector<8x256xf32> to vector<8x64xf32>
    %1109 = math.tanh %1108 : vector<8x64xf32>
    %1110 = vector.extract_strided_slice %1107 {offsets = [0, 0], sizes = [8, 64], strides = [1, 1]} : vector<8x192xf32> to vector<8x64xf32>
    %1111 = arith.mulf %1110, %1088 : vector<8x64xf32>
    %1112 = vector.extract_strided_slice %1107 {offsets = [0, 64], sizes = [8, 64], strides = [1, 1]} : vector<8x192xf32> to vector<8x64xf32>
    %1113 = arith.mulf %1112, %1109 : vector<8x64xf32>
    %1114 = arith.addf %1111, %1113 : vector<8x64xf32>
    %1115 = vector.extract_strided_slice %1107 {offsets = [0, 128], sizes = [8, 64], strides = [1, 1]} : vector<8x192xf32> to vector<8x64xf32>
    %1116 = math.tanh %1114 : vector<8x64xf32>
    %1117 = arith.mulf %1115, %1116 : vector<8x64xf32>
    %1118 = vector.extract_strided_slice %1117 {offsets = [0, 0], sizes = [8, 32], strides = [1, 1]} : vector<8x64xf32> to vector<8x32xf32>
    %c128_505 = arith.constant 128 : index
    %c0_506 = arith.constant 0 : index
    %1119 = vector.load %arg11[%c128_505, %c0_506] : memref<160x64xf32, #tpu.memory_space<vmem>>, vector<8x32xf32>
    tpu.vector_store %arg11[%c128_505, %c0_506], %1118 {strides = array<i32>} : memref<160x64xf32, #tpu.memory_space<vmem>>, vector<8x32xf32>,
    %1120 = vector.extract_strided_slice %1117 {offsets = [0, 32], sizes = [8, 32], strides = [1, 1]} : vector<8x64xf32> to vector<8x32xf32>
    %c24_507 = arith.constant 24 : index
    %c32_508 = arith.constant 32 : index
    %1121 = vector.load %arg11[%c24_507, %c32_508] : memref<160x64xf32, #tpu.memory_space<vmem>>, vector<8x32xf32>
    tpu.vector_store %arg11[%c24_507, %c32_508], %1120 {strides = array<i32>} : memref<160x64xf32, #tpu.memory_space<vmem>>, vector<8x32xf32>,
    %c136_509 = arith.constant 136 : index
    %c0_510 = arith.constant 0 : index
    %1122 = vector.load %arg8[%c136_509, %c0_510] : memref<160x256xf32, #tpu.memory_space<vmem>>, vector<8x256xf32>
    %c16_511 = arith.constant 16 : index
    %c0_512 = arith.constant 0 : index
    %1123 = vector.load %arg9[%c16_511, %c0_512] : memref<160x256xf32, #tpu.memory_space<vmem>>, vector<8x256xf32>
    %1124 = arith.addf %1122, %1123 : vector<8x256xf32>
    %1125 = arith.truncf %1117 : vector<8x64xf32> to vector<8x64xbf16>
    %cst_513 = arith.constant dense<0.000000e+00> : vector<8x256xf32>
    %1126 = tpu.matmul %1125, %677, %cst_513 {dimension_numbers = #tpu.dot_dimension_numbers<[1], [0], [0], [1], [0, 0, 1, 1], [], []>} : vector<8x64xbf16>, vector<64x256xbf16>, vector<8x256xf32> -> vector<8x256xf32>
    %1127 = arith.addf %1124, %1126 : vector<8x256xf32>
    %1128 = vector.extract_strided_slice %1127 {offsets = [0, 0], sizes = [8, 192], strides = [1, 1]} : vector<8x256xf32> to vector<8x192xf32>
    %1129 = arith.negf %1128 : vector<8x192xf32>
    %1130 = math.exp %1129 : vector<8x192xf32>
    %cst_514 = arith.constant 1.000000e+00 : f32
    %1131 = vector.broadcast %cst_514 : f32 to vector<8x192xf32>
    %1132 = arith.addf %1131, %1130 : vector<8x192xf32>
    %1133 = arith.divf %1131, %1132 : vector<8x192xf32>
    %1134 = vector.extract_strided_slice %1127 {offsets = [0, 192], sizes = [8, 64], strides = [1, 1]} : vector<8x256xf32> to vector<8x64xf32>
    %1135 = math.tanh %1134 : vector<8x64xf32>
    %1136 = vector.extract_strided_slice %1133 {offsets = [0, 0], sizes = [8, 64], strides = [1, 1]} : vector<8x192xf32> to vector<8x64xf32>
    %1137 = arith.mulf %1136, %1114 : vector<8x64xf32>
    %1138 = vector.extract_strided_slice %1133 {offsets = [0, 64], sizes = [8, 64], strides = [1, 1]} : vector<8x192xf32> to vector<8x64xf32>
    %1139 = arith.mulf %1138, %1135 : vector<8x64xf32>
    %1140 = arith.addf %1137, %1139 : vector<8x64xf32>
    %1141 = vector.extract_strided_slice %1133 {offsets = [0, 128], sizes = [8, 64], strides = [1, 1]} : vector<8x192xf32> to vector<8x64xf32>
    %1142 = math.tanh %1140 : vector<8x64xf32>
    %1143 = arith.mulf %1141, %1142 : vector<8x64xf32>
    %1144 = vector.extract_strided_slice %1143 {offsets = [0, 0], sizes = [8, 32], strides = [1, 1]} : vector<8x64xf32> to vector<8x32xf32>
    %c136_515 = arith.constant 136 : index
    %c0_516 = arith.constant 0 : index
    %1145 = vector.load %arg11[%c136_515, %c0_516] : memref<160x64xf32, #tpu.memory_space<vmem>>, vector<8x32xf32>
    tpu.vector_store %arg11[%c136_515, %c0_516], %1144 {strides = array<i32>} : memref<160x64xf32, #tpu.memory_space<vmem>>, vector<8x32xf32>,
    %1146 = vector.extract_strided_slice %1143 {offsets = [0, 32], sizes = [8, 32], strides = [1, 1]} : vector<8x64xf32> to vector<8x32xf32>
    %c16_517 = arith.constant 16 : index
    %c32_518 = arith.constant 32 : index
    %1147 = vector.load %arg11[%c16_517, %c32_518] : memref<160x64xf32, #tpu.memory_space<vmem>>, vector<8x32xf32>
    tpu.vector_store %arg11[%c16_517, %c32_518], %1146 {strides = array<i32>} : memref<160x64xf32, #tpu.memory_space<vmem>>, vector<8x32xf32>,
    %c144_519 = arith.constant 144 : index
    %c0_520 = arith.constant 0 : index
    %1148 = vector.load %arg8[%c144_519, %c0_520] : memref<160x256xf32, #tpu.memory_space<vmem>>, vector<8x256xf32>
    %c8_521 = arith.constant 8 : index
    %c0_522 = arith.constant 0 : index
    %1149 = vector.load %arg9[%c8_521, %c0_522] : memref<160x256xf32, #tpu.memory_space<vmem>>, vector<8x256xf32>
    %1150 = arith.addf %1148, %1149 : vector<8x256xf32>
    %1151 = arith.truncf %1143 : vector<8x64xf32> to vector<8x64xbf16>
    %cst_523 = arith.constant dense<0.000000e+00> : vector<8x256xf32>
    %1152 = tpu.matmul %1151, %677, %cst_523 {dimension_numbers = #tpu.dot_dimension_numbers<[1], [0], [0], [1], [0, 0, 1, 1], [], []>} : vector<8x64xbf16>, vector<64x256xbf16>, vector<8x256xf32> -> vector<8x256xf32>
    %1153 = arith.addf %1150, %1152 : vector<8x256xf32>
    %1154 = vector.extract_strided_slice %1153 {offsets = [0, 0], sizes = [8, 192], strides = [1, 1]} : vector<8x256xf32> to vector<8x192xf32>
    %1155 = arith.negf %1154 : vector<8x192xf32>
    %1156 = math.exp %1155 : vector<8x192xf32>
    %cst_524 = arith.constant 1.000000e+00 : f32
    %1157 = vector.broadcast %cst_524 : f32 to vector<8x192xf32>
    %1158 = arith.addf %1157, %1156 : vector<8x192xf32>
    %1159 = arith.divf %1157, %1158 : vector<8x192xf32>
    %1160 = vector.extract_strided_slice %1153 {offsets = [0, 192], sizes = [8, 64], strides = [1, 1]} : vector<8x256xf32> to vector<8x64xf32>
    %1161 = math.tanh %1160 : vector<8x64xf32>
    %1162 = vector.extract_strided_slice %1159 {offsets = [0, 0], sizes = [8, 64], strides = [1, 1]} : vector<8x192xf32> to vector<8x64xf32>
    %1163 = arith.mulf %1162, %1140 : vector<8x64xf32>
    %1164 = vector.extract_strided_slice %1159 {offsets = [0, 64], sizes = [8, 64], strides = [1, 1]} : vector<8x192xf32> to vector<8x64xf32>
    %1165 = arith.mulf %1164, %1161 : vector<8x64xf32>
    %1166 = arith.addf %1163, %1165 : vector<8x64xf32>
    %1167 = vector.extract_strided_slice %1159 {offsets = [0, 128], sizes = [8, 64], strides = [1, 1]} : vector<8x192xf32> to vector<8x64xf32>
    %1168 = math.tanh %1166 : vector<8x64xf32>
    %1169 = arith.mulf %1167, %1168 : vector<8x64xf32>
    %1170 = vector.extract_strided_slice %1169 {offsets = [0, 0], sizes = [8, 32], strides = [1, 1]} : vector<8x64xf32> to vector<8x32xf32>
    %c144_525 = arith.constant 144 : index
    %c0_526 = arith.constant 0 : index
    %1171 = vector.load %arg11[%c144_525, %c0_526] : memref<160x64xf32, #tpu.memory_space<vmem>>, vector<8x32xf32>
    tpu.vector_store %arg11[%c144_525, %c0_526], %1170 {strides = array<i32>} : memref<160x64xf32, #tpu.memory_space<vmem>>, vector<8x32xf32>,
    %1172 = vector.extract_strided_slice %1169 {offsets = [0, 32], sizes = [8, 32], strides = [1, 1]} : vector<8x64xf32> to vector<8x32xf32>
    %c8_527 = arith.constant 8 : index
    %c32_528 = arith.constant 32 : index
    %1173 = vector.load %arg11[%c8_527, %c32_528] : memref<160x64xf32, #tpu.memory_space<vmem>>, vector<8x32xf32>
    tpu.vector_store %arg11[%c8_527, %c32_528], %1172 {strides = array<i32>} : memref<160x64xf32, #tpu.memory_space<vmem>>, vector<8x32xf32>,
    %c152_529 = arith.constant 152 : index
    %c0_530 = arith.constant 0 : index
    %1174 = vector.load %arg8[%c152_529, %c0_530] : memref<160x256xf32, #tpu.memory_space<vmem>>, vector<8x256xf32>
    %c0_531 = arith.constant 0 : index
    %c0_532 = arith.constant 0 : index
    %1175 = vector.load %arg9[%c0_531, %c0_532] : memref<160x256xf32, #tpu.memory_space<vmem>>, vector<8x256xf32>
    %1176 = arith.addf %1174, %1175 : vector<8x256xf32>
    %1177 = arith.truncf %1169 : vector<8x64xf32> to vector<8x64xbf16>
    %cst_533 = arith.constant dense<0.000000e+00> : vector<8x256xf32>
    %1178 = tpu.matmul %1177, %677, %cst_533 {dimension_numbers = #tpu.dot_dimension_numbers<[1], [0], [0], [1], [0, 0, 1, 1], [], []>} : vector<8x64xbf16>, vector<64x256xbf16>, vector<8x256xf32> -> vector<8x256xf32>
    %1179 = arith.addf %1176, %1178 : vector<8x256xf32>
    %1180 = vector.extract_strided_slice %1179 {offsets = [0, 0], sizes = [8, 192], strides = [1, 1]} : vector<8x256xf32> to vector<8x192xf32>
    %1181 = arith.negf %1180 : vector<8x192xf32>
    %1182 = math.exp %1181 : vector<8x192xf32>
    %cst_534 = arith.constant 1.000000e+00 : f32
    %1183 = vector.broadcast %cst_534 : f32 to vector<8x192xf32>
    %1184 = arith.addf %1183, %1182 : vector<8x192xf32>
    %1185 = arith.divf %1183, %1184 : vector<8x192xf32>
    %1186 = vector.extract_strided_slice %1179 {offsets = [0, 192], sizes = [8, 64], strides = [1, 1]} : vector<8x256xf32> to vector<8x64xf32>
    %1187 = math.tanh %1186 : vector<8x64xf32>
    %1188 = vector.extract_strided_slice %1185 {offsets = [0, 0], sizes = [8, 64], strides = [1, 1]} : vector<8x192xf32> to vector<8x64xf32>
    %1189 = arith.mulf %1188, %1166 : vector<8x64xf32>
    %1190 = vector.extract_strided_slice %1185 {offsets = [0, 64], sizes = [8, 64], strides = [1, 1]} : vector<8x192xf32> to vector<8x64xf32>
    %1191 = arith.mulf %1190, %1187 : vector<8x64xf32>
    %1192 = arith.addf %1189, %1191 : vector<8x64xf32>
    %1193 = vector.extract_strided_slice %1185 {offsets = [0, 128], sizes = [8, 64], strides = [1, 1]} : vector<8x192xf32> to vector<8x64xf32>
    %1194 = math.tanh %1192 : vector<8x64xf32>
    %1195 = arith.mulf %1193, %1194 : vector<8x64xf32>
    %1196 = vector.extract_strided_slice %1195 {offsets = [0, 0], sizes = [8, 32], strides = [1, 1]} : vector<8x64xf32> to vector<8x32xf32>
    %c152_535 = arith.constant 152 : index
    %c0_536 = arith.constant 0 : index
    %1197 = vector.load %arg11[%c152_535, %c0_536] : memref<160x64xf32, #tpu.memory_space<vmem>>, vector<8x32xf32>
    tpu.vector_store %arg11[%c152_535, %c0_536], %1196 {strides = array<i32>} : memref<160x64xf32, #tpu.memory_space<vmem>>, vector<8x32xf32>,
    %1198 = vector.extract_strided_slice %1195 {offsets = [0, 32], sizes = [8, 32], strides = [1, 1]} : vector<8x64xf32> to vector<8x32xf32>
    %c0_537 = arith.constant 0 : index
    %c32_538 = arith.constant 32 : index
    %1199 = vector.load %arg11[%c0_537, %c32_538] : memref<160x64xf32, #tpu.memory_space<vmem>>, vector<8x32xf32>
    tpu.vector_store %arg11[%c0_537, %c32_538], %1198 {strides = array<i32>} : memref<160x64xf32, #tpu.memory_space<vmem>>, vector<8x32xf32>,
    %c0_539 = arith.constant 0 : index
    %c0_540 = arith.constant 0 : index
    %1200 = vector.load %arg11[%c0_539, %c0_540] : memref<160x64xf32, #tpu.memory_space<vmem>>, vector<160x64xf32>
    %c16_541 = arith.constant 16 : index
    %c0_542 = arith.constant 0 : index
    %1201 = vector.load %arg5[%c16_541, %c0_542] : memref<464x128xf32, #tpu.memory_space<vmem>>, vector<64x64xf32>
    %c9 = arith.constant 9 : index
    %c0_543 = arith.constant 0 : index
    %1202 = vector.load %arg5[%c9, %c0_543] : memref<464x128xf32, #tpu.memory_space<vmem>>, vector<1x64xf32>
    %cst_544 = arith.constant dense<0.000000e+00> : vector<160x64xf32>
    %1203 = tpu.matmul %1200, %1201, %cst_544 {dimension_numbers = #tpu.dot_dimension_numbers<[1], [0], [0], [1], [0, 0, 1, 1], [], []>} : vector<160x64xf32>, vector<64x64xf32>, vector<160x64xf32> -> vector<160x64xf32>
    %1204 = vector.broadcast %1202 : vector<1x64xf32> to vector<160x64xf32>
    %1205 = arith.addf %1203, %1204 : vector<160x64xf32>
    %1206 = math.tanh %1205 : vector<160x64xf32>
    %c80_545 = arith.constant 80 : index
    %c0_546 = arith.constant 0 : index
    %1207 = vector.load %arg5[%c80_545, %c0_546] : memref<464x128xf32, #tpu.memory_space<vmem>>, vector<64x1xf32>
    %cst_547 = arith.constant dense<0.000000e+00> : vector<160x1xf32>
    %1208 = tpu.matmul %1206, %1207, %cst_547 {dimension_numbers = #tpu.dot_dimension_numbers<[1], [0], [0], [1], [0, 0, 1, 1], [], []>} : vector<160x64xf32>, vector<64x1xf32>, vector<160x1xf32> -> vector<160x1xf32>
    %1209 = vector.extract_strided_slice %1208 {offsets = [0, 0], sizes = [8, 1], strides = [1, 1]} : vector<160x1xf32> to vector<8x1xf32>
    %1210 = vector.extract_strided_slice %1208 {offsets = [8, 0], sizes = [8, 1], strides = [1, 1]} : vector<160x1xf32> to vector<8x1xf32>
    %1211 = arith.maximumf %1209, %1210 : vector<8x1xf32>
    %1212 = vector.extract_strided_slice %1208 {offsets = [16, 0], sizes = [8, 1], strides = [1, 1]} : vector<160x1xf32> to vector<8x1xf32>
    %1213 = arith.maximumf %1211, %1212 : vector<8x1xf32>
    %1214 = vector.extract_strided_slice %1208 {offsets = [24, 0], sizes = [8, 1], strides = [1, 1]} : vector<160x1xf32> to vector<8x1xf32>
    %1215 = arith.maximumf %1213, %1214 : vector<8x1xf32>
    %1216 = vector.extract_strided_slice %1208 {offsets = [32, 0], sizes = [8, 1], strides = [1, 1]} : vector<160x1xf32> to vector<8x1xf32>
    %1217 = arith.maximumf %1215, %1216 : vector<8x1xf32>
    %1218 = vector.extract_strided_slice %1208 {offsets = [40, 0], sizes = [8, 1], strides = [1, 1]} : vector<160x1xf32> to vector<8x1xf32>
    %1219 = arith.maximumf %1217, %1218 : vector<8x1xf32>
    %1220 = vector.extract_strided_slice %1208 {offsets = [48, 0], sizes = [8, 1], strides = [1, 1]} : vector<160x1xf32> to vector<8x1xf32>
    %1221 = arith.maximumf %1219, %1220 : vector<8x1xf32>
    %1222 = vector.extract_strided_slice %1208 {offsets = [56, 0], sizes = [8, 1], strides = [1, 1]} : vector<160x1xf32> to vector<8x1xf32>
    %1223 = arith.maximumf %1221, %1222 : vector<8x1xf32>
    %1224 = vector.extract_strided_slice %1208 {offsets = [64, 0], sizes = [8, 1], strides = [1, 1]} : vector<160x1xf32> to vector<8x1xf32>
    %1225 = arith.maximumf %1223, %1224 : vector<8x1xf32>
    %1226 = vector.extract_strided_slice %1208 {offsets = [72, 0], sizes = [8, 1], strides = [1, 1]} : vector<160x1xf32> to vector<8x1xf32>
    %1227 = arith.maximumf %1225, %1226 : vector<8x1xf32>
    %1228 = vector.extract_strided_slice %1208 {offsets = [80, 0], sizes = [8, 1], strides = [1, 1]} : vector<160x1xf32> to vector<8x1xf32>
    %1229 = arith.maximumf %1227, %1228 : vector<8x1xf32>
    %1230 = vector.extract_strided_slice %1208 {offsets = [88, 0], sizes = [8, 1], strides = [1, 1]} : vector<160x1xf32> to vector<8x1xf32>
    %1231 = arith.maximumf %1229, %1230 : vector<8x1xf32>
    %1232 = vector.extract_strided_slice %1208 {offsets = [96, 0], sizes = [8, 1], strides = [1, 1]} : vector<160x1xf32> to vector<8x1xf32>
    %1233 = arith.maximumf %1231, %1232 : vector<8x1xf32>
    %1234 = vector.extract_strided_slice %1208 {offsets = [104, 0], sizes = [8, 1], strides = [1, 1]} : vector<160x1xf32> to vector<8x1xf32>
    %1235 = arith.maximumf %1233, %1234 : vector<8x1xf32>
    %1236 = vector.extract_strided_slice %1208 {offsets = [112, 0], sizes = [8, 1], strides = [1, 1]} : vector<160x1xf32> to vector<8x1xf32>
    %1237 = arith.maximumf %1235, %1236 : vector<8x1xf32>
    %1238 = vector.extract_strided_slice %1208 {offsets = [120, 0], sizes = [8, 1], strides = [1, 1]} : vector<160x1xf32> to vector<8x1xf32>
    %1239 = arith.maximumf %1237, %1238 : vector<8x1xf32>
    %1240 = vector.extract_strided_slice %1208 {offsets = [128, 0], sizes = [8, 1], strides = [1, 1]} : vector<160x1xf32> to vector<8x1xf32>
    %1241 = arith.maximumf %1239, %1240 : vector<8x1xf32>
    %1242 = vector.extract_strided_slice %1208 {offsets = [136, 0], sizes = [8, 1], strides = [1, 1]} : vector<160x1xf32> to vector<8x1xf32>
    %1243 = arith.maximumf %1241, %1242 : vector<8x1xf32>
    %1244 = vector.extract_strided_slice %1208 {offsets = [144, 0], sizes = [8, 1], strides = [1, 1]} : vector<160x1xf32> to vector<8x1xf32>
    %1245 = arith.maximumf %1243, %1244 : vector<8x1xf32>
    %1246 = vector.extract_strided_slice %1208 {offsets = [152, 0], sizes = [8, 1], strides = [1, 1]} : vector<160x1xf32> to vector<8x1xf32>
    %1247 = arith.maximumf %1245, %1246 : vector<8x1xf32>
    %c0_548 = arith.constant 0 : index
    %c0_549 = arith.constant 0 : index
    %1248 = vector.load %arg3[%c0_548, %c0_549] : memref<160x1xf32, #tpu.memory_space<vmem>>, vector<160x1xf32>
    %cst_550 = arith.constant 0.000000e+00 : f32
    %1249 = vector.broadcast %cst_550 : f32 to vector<8x1xf32>
    %cst_551 = arith.constant 0.000000e+00 : f32
    %1250 = vector.broadcast %cst_551 : f32 to vector<8x64xf32>
    %cst_552 = arith.constant 0.000000e+00 : f32
    %1251 = vector.broadcast %cst_552 : f32 to vector<8x64xf32>
    %c0_553 = arith.constant 0 : index
    %c0_554 = arith.constant 0 : index
    %1252 = vector.load %arg11[%c0_553, %c0_554] : memref<160x64xf32, #tpu.memory_space<vmem>>, vector<8x64xf32>
    %1253 = vector.extract_strided_slice %1208 {offsets = [0, 0], sizes = [8, 1], strides = [1, 1]} : vector<160x1xf32> to vector<8x1xf32>
    %1254 = arith.subf %1253, %1247 : vector<8x1xf32>
    %1255 = math.exp %1254 : vector<8x1xf32>
    %1256 = arith.addf %1249, %1255 : vector<8x1xf32>
    %1257 = vector.broadcast %1255 : vector<8x1xf32> to vector<8x64xf32>
    %1258 = arith.mulf %1257, %1252 : vector<8x64xf32>
    %1259 = arith.addf %1250, %1258 : vector<8x64xf32>
    %1260 = vector.extract_strided_slice %1248 {offsets = [0, 0], sizes = [8, 1], strides = [1, 1]} : vector<160x1xf32> to vector<8x1xf32>
    %1261 = vector.broadcast %1260 : vector<8x1xf32> to vector<8x64xf32>
    %1262 = arith.mulf %1261, %1252 : vector<8x64xf32>
    %1263 = arith.addf %1251, %1262 : vector<8x64xf32>
    %c8_555 = arith.constant 8 : index
    %c0_556 = arith.constant 0 : index
    %1264 = vector.load %arg11[%c8_555, %c0_556] : memref<160x64xf32, #tpu.memory_space<vmem>>, vector<8x64xf32>
    %1265 = vector.extract_strided_slice %1208 {offsets = [8, 0], sizes = [8, 1], strides = [1, 1]} : vector<160x1xf32> to vector<8x1xf32>
    %1266 = arith.subf %1265, %1247 : vector<8x1xf32>
    %1267 = math.exp %1266 : vector<8x1xf32>
    %1268 = arith.addf %1256, %1267 : vector<8x1xf32>
    %1269 = vector.broadcast %1267 : vector<8x1xf32> to vector<8x64xf32>
    %1270 = arith.mulf %1269, %1264 : vector<8x64xf32>
    %1271 = arith.addf %1259, %1270 : vector<8x64xf32>
    %1272 = vector.extract_strided_slice %1248 {offsets = [8, 0], sizes = [8, 1], strides = [1, 1]} : vector<160x1xf32> to vector<8x1xf32>
    %1273 = vector.broadcast %1272 : vector<8x1xf32> to vector<8x64xf32>
    %1274 = arith.mulf %1273, %1264 : vector<8x64xf32>
    %1275 = arith.addf %1263, %1274 : vector<8x64xf32>
    %c16_557 = arith.constant 16 : index
    %c0_558 = arith.constant 0 : index
    %1276 = vector.load %arg11[%c16_557, %c0_558] : memref<160x64xf32, #tpu.memory_space<vmem>>, vector<8x64xf32>
    %1277 = vector.extract_strided_slice %1208 {offsets = [16, 0], sizes = [8, 1], strides = [1, 1]} : vector<160x1xf32> to vector<8x1xf32>
    %1278 = arith.subf %1277, %1247 : vector<8x1xf32>
    %1279 = math.exp %1278 : vector<8x1xf32>
    %1280 = arith.addf %1268, %1279 : vector<8x1xf32>
    %1281 = vector.broadcast %1279 : vector<8x1xf32> to vector<8x64xf32>
    %1282 = arith.mulf %1281, %1276 : vector<8x64xf32>
    %1283 = arith.addf %1271, %1282 : vector<8x64xf32>
    %1284 = vector.extract_strided_slice %1248 {offsets = [16, 0], sizes = [8, 1], strides = [1, 1]} : vector<160x1xf32> to vector<8x1xf32>
    %1285 = vector.broadcast %1284 : vector<8x1xf32> to vector<8x64xf32>
    %1286 = arith.mulf %1285, %1276 : vector<8x64xf32>
    %1287 = arith.addf %1275, %1286 : vector<8x64xf32>
    %c24_559 = arith.constant 24 : index
    %c0_560 = arith.constant 0 : index
    %1288 = vector.load %arg11[%c24_559, %c0_560] : memref<160x64xf32, #tpu.memory_space<vmem>>, vector<8x64xf32>
    %1289 = vector.extract_strided_slice %1208 {offsets = [24, 0], sizes = [8, 1], strides = [1, 1]} : vector<160x1xf32> to vector<8x1xf32>
    %1290 = arith.subf %1289, %1247 : vector<8x1xf32>
    %1291 = math.exp %1290 : vector<8x1xf32>
    %1292 = arith.addf %1280, %1291 : vector<8x1xf32>
    %1293 = vector.broadcast %1291 : vector<8x1xf32> to vector<8x64xf32>
    %1294 = arith.mulf %1293, %1288 : vector<8x64xf32>
    %1295 = arith.addf %1283, %1294 : vector<8x64xf32>
    %1296 = vector.extract_strided_slice %1248 {offsets = [24, 0], sizes = [8, 1], strides = [1, 1]} : vector<160x1xf32> to vector<8x1xf32>
    %1297 = vector.broadcast %1296 : vector<8x1xf32> to vector<8x64xf32>
    %1298 = arith.mulf %1297, %1288 : vector<8x64xf32>
    %1299 = arith.addf %1287, %1298 : vector<8x64xf32>
    %c32_561 = arith.constant 32 : index
    %c0_562 = arith.constant 0 : index
    %1300 = vector.load %arg11[%c32_561, %c0_562] : memref<160x64xf32, #tpu.memory_space<vmem>>, vector<8x64xf32>
    %1301 = vector.extract_strided_slice %1208 {offsets = [32, 0], sizes = [8, 1], strides = [1, 1]} : vector<160x1xf32> to vector<8x1xf32>
    %1302 = arith.subf %1301, %1247 : vector<8x1xf32>
    %1303 = math.exp %1302 : vector<8x1xf32>
    %1304 = arith.addf %1292, %1303 : vector<8x1xf32>
    %1305 = vector.broadcast %1303 : vector<8x1xf32> to vector<8x64xf32>
    %1306 = arith.mulf %1305, %1300 : vector<8x64xf32>
    %1307 = arith.addf %1295, %1306 : vector<8x64xf32>
    %1308 = vector.extract_strided_slice %1248 {offsets = [32, 0], sizes = [8, 1], strides = [1, 1]} : vector<160x1xf32> to vector<8x1xf32>
    %1309 = vector.broadcast %1308 : vector<8x1xf32> to vector<8x64xf32>
    %1310 = arith.mulf %1309, %1300 : vector<8x64xf32>
    %1311 = arith.addf %1299, %1310 : vector<8x64xf32>
    %c40_563 = arith.constant 40 : index
    %c0_564 = arith.constant 0 : index
    %1312 = vector.load %arg11[%c40_563, %c0_564] : memref<160x64xf32, #tpu.memory_space<vmem>>, vector<8x64xf32>
    %1313 = vector.extract_strided_slice %1208 {offsets = [40, 0], sizes = [8, 1], strides = [1, 1]} : vector<160x1xf32> to vector<8x1xf32>
    %1314 = arith.subf %1313, %1247 : vector<8x1xf32>
    %1315 = math.exp %1314 : vector<8x1xf32>
    %1316 = arith.addf %1304, %1315 : vector<8x1xf32>
    %1317 = vector.broadcast %1315 : vector<8x1xf32> to vector<8x64xf32>
    %1318 = arith.mulf %1317, %1312 : vector<8x64xf32>
    %1319 = arith.addf %1307, %1318 : vector<8x64xf32>
    %1320 = vector.extract_strided_slice %1248 {offsets = [40, 0], sizes = [8, 1], strides = [1, 1]} : vector<160x1xf32> to vector<8x1xf32>
    %1321 = vector.broadcast %1320 : vector<8x1xf32> to vector<8x64xf32>
    %1322 = arith.mulf %1321, %1312 : vector<8x64xf32>
    %1323 = arith.addf %1311, %1322 : vector<8x64xf32>
    %c48_565 = arith.constant 48 : index
    %c0_566 = arith.constant 0 : index
    %1324 = vector.load %arg11[%c48_565, %c0_566] : memref<160x64xf32, #tpu.memory_space<vmem>>, vector<8x64xf32>
    %1325 = vector.extract_strided_slice %1208 {offsets = [48, 0], sizes = [8, 1], strides = [1, 1]} : vector<160x1xf32> to vector<8x1xf32>
    %1326 = arith.subf %1325, %1247 : vector<8x1xf32>
    %1327 = math.exp %1326 : vector<8x1xf32>
    %1328 = arith.addf %1316, %1327 : vector<8x1xf32>
    %1329 = vector.broadcast %1327 : vector<8x1xf32> to vector<8x64xf32>
    %1330 = arith.mulf %1329, %1324 : vector<8x64xf32>
    %1331 = arith.addf %1319, %1330 : vector<8x64xf32>
    %1332 = vector.extract_strided_slice %1248 {offsets = [48, 0], sizes = [8, 1], strides = [1, 1]} : vector<160x1xf32> to vector<8x1xf32>
    %1333 = vector.broadcast %1332 : vector<8x1xf32> to vector<8x64xf32>
    %1334 = arith.mulf %1333, %1324 : vector<8x64xf32>
    %1335 = arith.addf %1323, %1334 : vector<8x64xf32>
    %c56_567 = arith.constant 56 : index
    %c0_568 = arith.constant 0 : index
    %1336 = vector.load %arg11[%c56_567, %c0_568] : memref<160x64xf32, #tpu.memory_space<vmem>>, vector<8x64xf32>
    %1337 = vector.extract_strided_slice %1208 {offsets = [56, 0], sizes = [8, 1], strides = [1, 1]} : vector<160x1xf32> to vector<8x1xf32>
    %1338 = arith.subf %1337, %1247 : vector<8x1xf32>
    %1339 = math.exp %1338 : vector<8x1xf32>
    %1340 = arith.addf %1328, %1339 : vector<8x1xf32>
    %1341 = vector.broadcast %1339 : vector<8x1xf32> to vector<8x64xf32>
    %1342 = arith.mulf %1341, %1336 : vector<8x64xf32>
    %1343 = arith.addf %1331, %1342 : vector<8x64xf32>
    %1344 = vector.extract_strided_slice %1248 {offsets = [56, 0], sizes = [8, 1], strides = [1, 1]} : vector<160x1xf32> to vector<8x1xf32>
    %1345 = vector.broadcast %1344 : vector<8x1xf32> to vector<8x64xf32>
    %1346 = arith.mulf %1345, %1336 : vector<8x64xf32>
    %1347 = arith.addf %1335, %1346 : vector<8x64xf32>
    %c64_569 = arith.constant 64 : index
    %c0_570 = arith.constant 0 : index
    %1348 = vector.load %arg11[%c64_569, %c0_570] : memref<160x64xf32, #tpu.memory_space<vmem>>, vector<8x64xf32>
    %1349 = vector.extract_strided_slice %1208 {offsets = [64, 0], sizes = [8, 1], strides = [1, 1]} : vector<160x1xf32> to vector<8x1xf32>
    %1350 = arith.subf %1349, %1247 : vector<8x1xf32>
    %1351 = math.exp %1350 : vector<8x1xf32>
    %1352 = arith.addf %1340, %1351 : vector<8x1xf32>
    %1353 = vector.broadcast %1351 : vector<8x1xf32> to vector<8x64xf32>
    %1354 = arith.mulf %1353, %1348 : vector<8x64xf32>
    %1355 = arith.addf %1343, %1354 : vector<8x64xf32>
    %1356 = vector.extract_strided_slice %1248 {offsets = [64, 0], sizes = [8, 1], strides = [1, 1]} : vector<160x1xf32> to vector<8x1xf32>
    %1357 = vector.broadcast %1356 : vector<8x1xf32> to vector<8x64xf32>
    %1358 = arith.mulf %1357, %1348 : vector<8x64xf32>
    %1359 = arith.addf %1347, %1358 : vector<8x64xf32>
    %c72_571 = arith.constant 72 : index
    %c0_572 = arith.constant 0 : index
    %1360 = vector.load %arg11[%c72_571, %c0_572] : memref<160x64xf32, #tpu.memory_space<vmem>>, vector<8x64xf32>
    %1361 = vector.extract_strided_slice %1208 {offsets = [72, 0], sizes = [8, 1], strides = [1, 1]} : vector<160x1xf32> to vector<8x1xf32>
    %1362 = arith.subf %1361, %1247 : vector<8x1xf32>
    %1363 = math.exp %1362 : vector<8x1xf32>
    %1364 = arith.addf %1352, %1363 : vector<8x1xf32>
    %1365 = vector.broadcast %1363 : vector<8x1xf32> to vector<8x64xf32>
    %1366 = arith.mulf %1365, %1360 : vector<8x64xf32>
    %1367 = arith.addf %1355, %1366 : vector<8x64xf32>
    %1368 = vector.extract_strided_slice %1248 {offsets = [72, 0], sizes = [8, 1], strides = [1, 1]} : vector<160x1xf32> to vector<8x1xf32>
    %1369 = vector.broadcast %1368 : vector<8x1xf32> to vector<8x64xf32>
    %1370 = arith.mulf %1369, %1360 : vector<8x64xf32>
    %1371 = arith.addf %1359, %1370 : vector<8x64xf32>
    %c80_573 = arith.constant 80 : index
    %c0_574 = arith.constant 0 : index
    %1372 = vector.load %arg11[%c80_573, %c0_574] : memref<160x64xf32, #tpu.memory_space<vmem>>, vector<8x64xf32>
    %1373 = vector.extract_strided_slice %1208 {offsets = [80, 0], sizes = [8, 1], strides = [1, 1]} : vector<160x1xf32> to vector<8x1xf32>
    %1374 = arith.subf %1373, %1247 : vector<8x1xf32>
    %1375 = math.exp %1374 : vector<8x1xf32>
    %1376 = arith.addf %1364, %1375 : vector<8x1xf32>
    %1377 = vector.broadcast %1375 : vector<8x1xf32> to vector<8x64xf32>
    %1378 = arith.mulf %1377, %1372 : vector<8x64xf32>
    %1379 = arith.addf %1367, %1378 : vector<8x64xf32>
    %1380 = vector.extract_strided_slice %1248 {offsets = [80, 0], sizes = [8, 1], strides = [1, 1]} : vector<160x1xf32> to vector<8x1xf32>
    %1381 = vector.broadcast %1380 : vector<8x1xf32> to vector<8x64xf32>
    %1382 = arith.mulf %1381, %1372 : vector<8x64xf32>
    %1383 = arith.addf %1371, %1382 : vector<8x64xf32>
    %c88_575 = arith.constant 88 : index
    %c0_576 = arith.constant 0 : index
    %1384 = vector.load %arg11[%c88_575, %c0_576] : memref<160x64xf32, #tpu.memory_space<vmem>>, vector<8x64xf32>
    %1385 = vector.extract_strided_slice %1208 {offsets = [88, 0], sizes = [8, 1], strides = [1, 1]} : vector<160x1xf32> to vector<8x1xf32>
    %1386 = arith.subf %1385, %1247 : vector<8x1xf32>
    %1387 = math.exp %1386 : vector<8x1xf32>
    %1388 = arith.addf %1376, %1387 : vector<8x1xf32>
    %1389 = vector.broadcast %1387 : vector<8x1xf32> to vector<8x64xf32>
    %1390 = arith.mulf %1389, %1384 : vector<8x64xf32>
    %1391 = arith.addf %1379, %1390 : vector<8x64xf32>
    %1392 = vector.extract_strided_slice %1248 {offsets = [88, 0], sizes = [8, 1], strides = [1, 1]} : vector<160x1xf32> to vector<8x1xf32>
    %1393 = vector.broadcast %1392 : vector<8x1xf32> to vector<8x64xf32>
    %1394 = arith.mulf %1393, %1384 : vector<8x64xf32>
    %1395 = arith.addf %1383, %1394 : vector<8x64xf32>
    %c96_577 = arith.constant 96 : index
    %c0_578 = arith.constant 0 : index
    %1396 = vector.load %arg11[%c96_577, %c0_578] : memref<160x64xf32, #tpu.memory_space<vmem>>, vector<8x64xf32>
    %1397 = vector.extract_strided_slice %1208 {offsets = [96, 0], sizes = [8, 1], strides = [1, 1]} : vector<160x1xf32> to vector<8x1xf32>
    %1398 = arith.subf %1397, %1247 : vector<8x1xf32>
    %1399 = math.exp %1398 : vector<8x1xf32>
    %1400 = arith.addf %1388, %1399 : vector<8x1xf32>
    %1401 = vector.broadcast %1399 : vector<8x1xf32> to vector<8x64xf32>
    %1402 = arith.mulf %1401, %1396 : vector<8x64xf32>
    %1403 = arith.addf %1391, %1402 : vector<8x64xf32>
    %1404 = vector.extract_strided_slice %1248 {offsets = [96, 0], sizes = [8, 1], strides = [1, 1]} : vector<160x1xf32> to vector<8x1xf32>
    %1405 = vector.broadcast %1404 : vector<8x1xf32> to vector<8x64xf32>
    %1406 = arith.mulf %1405, %1396 : vector<8x64xf32>
    %1407 = arith.addf %1395, %1406 : vector<8x64xf32>
    %c104_579 = arith.constant 104 : index
    %c0_580 = arith.constant 0 : index
    %1408 = vector.load %arg11[%c104_579, %c0_580] : memref<160x64xf32, #tpu.memory_space<vmem>>, vector<8x64xf32>
    %1409 = vector.extract_strided_slice %1208 {offsets = [104, 0], sizes = [8, 1], strides = [1, 1]} : vector<160x1xf32> to vector<8x1xf32>
    %1410 = arith.subf %1409, %1247 : vector<8x1xf32>
    %1411 = math.exp %1410 : vector<8x1xf32>
    %1412 = arith.addf %1400, %1411 : vector<8x1xf32>
    %1413 = vector.broadcast %1411 : vector<8x1xf32> to vector<8x64xf32>
    %1414 = arith.mulf %1413, %1408 : vector<8x64xf32>
    %1415 = arith.addf %1403, %1414 : vector<8x64xf32>
    %1416 = vector.extract_strided_slice %1248 {offsets = [104, 0], sizes = [8, 1], strides = [1, 1]} : vector<160x1xf32> to vector<8x1xf32>
    %1417 = vector.broadcast %1416 : vector<8x1xf32> to vector<8x64xf32>
    %1418 = arith.mulf %1417, %1408 : vector<8x64xf32>
    %1419 = arith.addf %1407, %1418 : vector<8x64xf32>
    %c112_581 = arith.constant 112 : index
    %c0_582 = arith.constant 0 : index
    %1420 = vector.load %arg11[%c112_581, %c0_582] : memref<160x64xf32, #tpu.memory_space<vmem>>, vector<8x64xf32>
    %1421 = vector.extract_strided_slice %1208 {offsets = [112, 0], sizes = [8, 1], strides = [1, 1]} : vector<160x1xf32> to vector<8x1xf32>
    %1422 = arith.subf %1421, %1247 : vector<8x1xf32>
    %1423 = math.exp %1422 : vector<8x1xf32>
    %1424 = arith.addf %1412, %1423 : vector<8x1xf32>
    %1425 = vector.broadcast %1423 : vector<8x1xf32> to vector<8x64xf32>
    %1426 = arith.mulf %1425, %1420 : vector<8x64xf32>
    %1427 = arith.addf %1415, %1426 : vector<8x64xf32>
    %1428 = vector.extract_strided_slice %1248 {offsets = [112, 0], sizes = [8, 1], strides = [1, 1]} : vector<160x1xf32> to vector<8x1xf32>
    %1429 = vector.broadcast %1428 : vector<8x1xf32> to vector<8x64xf32>
    %1430 = arith.mulf %1429, %1420 : vector<8x64xf32>
    %1431 = arith.addf %1419, %1430 : vector<8x64xf32>
    %c120_583 = arith.constant 120 : index
    %c0_584 = arith.constant 0 : index
    %1432 = vector.load %arg11[%c120_583, %c0_584] : memref<160x64xf32, #tpu.memory_space<vmem>>, vector<8x64xf32>
    %1433 = vector.extract_strided_slice %1208 {offsets = [120, 0], sizes = [8, 1], strides = [1, 1]} : vector<160x1xf32> to vector<8x1xf32>
    %1434 = arith.subf %1433, %1247 : vector<8x1xf32>
    %1435 = math.exp %1434 : vector<8x1xf32>
    %1436 = arith.addf %1424, %1435 : vector<8x1xf32>
    %1437 = vector.broadcast %1435 : vector<8x1xf32> to vector<8x64xf32>
    %1438 = arith.mulf %1437, %1432 : vector<8x64xf32>
    %1439 = arith.addf %1427, %1438 : vector<8x64xf32>
    %1440 = vector.extract_strided_slice %1248 {offsets = [120, 0], sizes = [8, 1], strides = [1, 1]} : vector<160x1xf32> to vector<8x1xf32>
    %1441 = vector.broadcast %1440 : vector<8x1xf32> to vector<8x64xf32>
    %1442 = arith.mulf %1441, %1432 : vector<8x64xf32>
    %1443 = arith.addf %1431, %1442 : vector<8x64xf32>
    %c128_585 = arith.constant 128 : index
    %c0_586 = arith.constant 0 : index
    %1444 = vector.load %arg11[%c128_585, %c0_586] : memref<160x64xf32, #tpu.memory_space<vmem>>, vector<8x64xf32>
    %1445 = vector.extract_strided_slice %1208 {offsets = [128, 0], sizes = [8, 1], strides = [1, 1]} : vector<160x1xf32> to vector<8x1xf32>
    %1446 = arith.subf %1445, %1247 : vector<8x1xf32>
    %1447 = math.exp %1446 : vector<8x1xf32>
    %1448 = arith.addf %1436, %1447 : vector<8x1xf32>
    %1449 = vector.broadcast %1447 : vector<8x1xf32> to vector<8x64xf32>
    %1450 = arith.mulf %1449, %1444 : vector<8x64xf32>
    %1451 = arith.addf %1439, %1450 : vector<8x64xf32>
    %1452 = vector.extract_strided_slice %1248 {offsets = [128, 0], sizes = [8, 1], strides = [1, 1]} : vector<160x1xf32> to vector<8x1xf32>
    %1453 = vector.broadcast %1452 : vector<8x1xf32> to vector<8x64xf32>
    %1454 = arith.mulf %1453, %1444 : vector<8x64xf32>
    %1455 = arith.addf %1443, %1454 : vector<8x64xf32>
    %c136_587 = arith.constant 136 : index
    %c0_588 = arith.constant 0 : index
    %1456 = vector.load %arg11[%c136_587, %c0_588] : memref<160x64xf32, #tpu.memory_space<vmem>>, vector<8x64xf32>
    %1457 = vector.extract_strided_slice %1208 {offsets = [136, 0], sizes = [8, 1], strides = [1, 1]} : vector<160x1xf32> to vector<8x1xf32>
    %1458 = arith.subf %1457, %1247 : vector<8x1xf32>
    %1459 = math.exp %1458 : vector<8x1xf32>
    %1460 = arith.addf %1448, %1459 : vector<8x1xf32>
    %1461 = vector.broadcast %1459 : vector<8x1xf32> to vector<8x64xf32>
    %1462 = arith.mulf %1461, %1456 : vector<8x64xf32>
    %1463 = arith.addf %1451, %1462 : vector<8x64xf32>
    %1464 = vector.extract_strided_slice %1248 {offsets = [136, 0], sizes = [8, 1], strides = [1, 1]} : vector<160x1xf32> to vector<8x1xf32>
    %1465 = vector.broadcast %1464 : vector<8x1xf32> to vector<8x64xf32>
    %1466 = arith.mulf %1465, %1456 : vector<8x64xf32>
    %1467 = arith.addf %1455, %1466 : vector<8x64xf32>
    %c144_589 = arith.constant 144 : index
    %c0_590 = arith.constant 0 : index
    %1468 = vector.load %arg11[%c144_589, %c0_590] : memref<160x64xf32, #tpu.memory_space<vmem>>, vector<8x64xf32>
    %1469 = vector.extract_strided_slice %1208 {offsets = [144, 0], sizes = [8, 1], strides = [1, 1]} : vector<160x1xf32> to vector<8x1xf32>
    %1470 = arith.subf %1469, %1247 : vector<8x1xf32>
    %1471 = math.exp %1470 : vector<8x1xf32>
    %1472 = arith.addf %1460, %1471 : vector<8x1xf32>
    %1473 = vector.broadcast %1471 : vector<8x1xf32> to vector<8x64xf32>
    %1474 = arith.mulf %1473, %1468 : vector<8x64xf32>
    %1475 = arith.addf %1463, %1474 : vector<8x64xf32>
    %1476 = vector.extract_strided_slice %1248 {offsets = [144, 0], sizes = [8, 1], strides = [1, 1]} : vector<160x1xf32> to vector<8x1xf32>
    %1477 = vector.broadcast %1476 : vector<8x1xf32> to vector<8x64xf32>
    %1478 = arith.mulf %1477, %1468 : vector<8x64xf32>
    %1479 = arith.addf %1467, %1478 : vector<8x64xf32>
    %c152_591 = arith.constant 152 : index
    %c0_592 = arith.constant 0 : index
    %1480 = vector.load %arg11[%c152_591, %c0_592] : memref<160x64xf32, #tpu.memory_space<vmem>>, vector<8x64xf32>
    %1481 = vector.extract_strided_slice %1208 {offsets = [152, 0], sizes = [8, 1], strides = [1, 1]} : vector<160x1xf32> to vector<8x1xf32>
    %1482 = arith.subf %1481, %1247 : vector<8x1xf32>
    %1483 = math.exp %1482 : vector<8x1xf32>
    %1484 = arith.addf %1472, %1483 : vector<8x1xf32>
    %1485 = vector.broadcast %1483 : vector<8x1xf32> to vector<8x64xf32>
    %1486 = arith.mulf %1485, %1480 : vector<8x64xf32>
    %1487 = arith.addf %1475, %1486 : vector<8x64xf32>
    %1488 = vector.extract_strided_slice %1248 {offsets = [152, 0], sizes = [8, 1], strides = [1, 1]} : vector<160x1xf32> to vector<8x1xf32>
    %1489 = vector.broadcast %1488 : vector<8x1xf32> to vector<8x64xf32>
    %1490 = arith.mulf %1489, %1480 : vector<8x64xf32>
    %1491 = arith.addf %1479, %1490 : vector<8x64xf32>
    %1492 = vector.broadcast %1484 : vector<8x1xf32> to vector<8x64xf32>
    %1493 = arith.divf %1487, %1492 : vector<8x64xf32>
    %c10 = arith.constant 10 : index
    %c0_593 = arith.constant 0 : index
    %1494 = vector.load %arg5[%c10, %c0_593] : memref<464x128xf32, #tpu.memory_space<vmem>>, vector<1x64xf32>
    %1495 = vector.broadcast %1494 : vector<1x64xf32> to vector<8x64xf32>
    %1496 = arith.addf %1491, %1495 : vector<8x64xf32>
    %1497 = arith.negf %1496 : vector<8x64xf32>
    %1498 = math.exp %1497 : vector<8x64xf32>
    %cst_594 = arith.constant 1.000000e+00 : f32
    %1499 = vector.broadcast %cst_594 : f32 to vector<8x64xf32>
    %1500 = arith.addf %1499, %1498 : vector<8x64xf32>
    %1501 = arith.divf %1499, %1500 : vector<8x64xf32>
    %c144_595 = arith.constant 144 : index
    %c0_596 = arith.constant 0 : index
    %1502 = vector.load %arg5[%c144_595, %c0_596] : memref<464x128xf32, #tpu.memory_space<vmem>>, vector<64x64xf32>
    %c11 = arith.constant 11 : index
    %c0_597 = arith.constant 0 : index
    %1503 = vector.load %arg5[%c11, %c0_597] : memref<464x128xf32, #tpu.memory_space<vmem>>, vector<1x64xf32>
    %cst_598 = arith.constant dense<0.000000e+00> : vector<8x64xf32>
    %1504 = tpu.matmul %1501, %1502, %cst_598 {dimension_numbers = #tpu.dot_dimension_numbers<[1], [0], [0], [1], [0, 0, 1, 1], [], []>} : vector<8x64xf32>, vector<64x64xf32>, vector<8x64xf32> -> vector<8x64xf32>
    %1505 = vector.broadcast %1503 : vector<1x64xf32> to vector<8x64xf32>
    %1506 = arith.addf %1504, %1505 : vector<8x64xf32>
    %c208 = arith.constant 208 : index
    %c0_599 = arith.constant 0 : index
    %1507 = vector.load %arg5[%c208, %c0_599] : memref<464x128xf32, #tpu.memory_space<vmem>>, vector<64x128xf32>
    %c272 = arith.constant 272 : index
    %c0_600 = arith.constant 0 : index
    %1508 = vector.load %arg5[%c272, %c0_600] : memref<464x128xf32, #tpu.memory_space<vmem>>, vector<64x128xf32>
    %c12 = arith.constant 12 : index
    %c0_601 = arith.constant 0 : index
    %1509 = vector.load %arg5[%c12, %c0_601] : memref<464x128xf32, #tpu.memory_space<vmem>>, vector<1x128xf32>
    %cst_602 = arith.constant dense<0.000000e+00> : vector<8x128xf32>
    %1510 = tpu.matmul %1493, %1507, %cst_602 {dimension_numbers = #tpu.dot_dimension_numbers<[1], [0], [0], [1], [0, 0, 1, 1], [], []>} : vector<8x64xf32>, vector<64x128xf32>, vector<8x128xf32> -> vector<8x128xf32>
    %cst_603 = arith.constant dense<0.000000e+00> : vector<8x128xf32>
    %1511 = tpu.matmul %1506, %1508, %cst_603 {dimension_numbers = #tpu.dot_dimension_numbers<[1], [0], [0], [1], [0, 0, 1, 1], [], []>} : vector<8x64xf32>, vector<64x128xf32>, vector<8x128xf32> -> vector<8x128xf32>
    %1512 = arith.addf %1510, %1511 : vector<8x128xf32>
    %1513 = vector.broadcast %1509 : vector<1x128xf32> to vector<8x128xf32>
    %1514 = arith.addf %1512, %1513 : vector<8x128xf32>
    %cst_604 = arith.constant 0.000000e+00 : f32
    %1515 = vector.broadcast %cst_604 : f32 to vector<8x128xf32>
    %1516 = arith.maximumf %1514, %1515 : vector<8x128xf32>
    %c336 = arith.constant 336 : index
    %c0_605 = arith.constant 0 : index
    %1517 = vector.load %arg5[%c336, %c0_605] : memref<464x128xf32, #tpu.memory_space<vmem>>, vector<128x2xf32>
    %c13 = arith.constant 13 : index
    %c0_606 = arith.constant 0 : index
    %1518 = vector.load %arg5[%c13, %c0_606] : memref<464x128xf32, #tpu.memory_space<vmem>>, vector<1x2xf32>
    %cst_607 = arith.constant dense<0.000000e+00> : vector<8x2xf32>
    %1519 = tpu.matmul %1516, %1517, %cst_607 {dimension_numbers = #tpu.dot_dimension_numbers<[1], [0], [0], [1], [0, 0, 1, 1], [], []>} : vector<8x128xf32>, vector<128x2xf32>, vector<8x2xf32> -> vector<8x2xf32>
    %1520 = vector.broadcast %1518 : vector<1x2xf32> to vector<8x2xf32>
    %1521 = arith.addf %1519, %1520 : vector<8x2xf32>
    %1522 = vector.extract_strided_slice %1521 {offsets = [0, 0], sizes = [8, 1], strides = [1, 1]} : vector<8x2xf32> to vector<8x1xf32>
    %1523 = vector.extract_strided_slice %1521 {offsets = [0, 1], sizes = [8, 1], strides = [1, 1]} : vector<8x2xf32> to vector<8x1xf32>
    %c0_608 = arith.constant 0 : index
    %c0_609 = arith.constant 0 : index
    %1524 = vector.load %arg2[%c0_608, %c0_609] : memref<8x1xf32, #tpu.memory_space<vmem>>, vector<8x1xf32>
    %cst_610 = arith.constant 1.000000e-01 : f32
    %1525 = vector.broadcast %cst_610 : f32 to vector<8x1xf32>
    %1526 = arith.mulf %1525, %1524 : vector<8x1xf32>
    %cst_611 = arith.constant 5.000000e-01 : f32
    %1527 = vector.broadcast %cst_611 : f32 to vector<8x1xf32>
    %1528 = arith.mulf %1527, %1523 : vector<8x1xf32>
    %1529 = math.exp %1528 : vector<8x1xf32>
    %1530 = arith.mulf %1526, %1529 : vector<8x1xf32>
    %1531 = arith.addf %1522, %1530 : vector<8x1xf32>
    %c0_612 = arith.constant 0 : index
    %c0_613 = arith.constant 0 : index
    %1532 = vector.load %arg6[%c0_612, %c0_613] : memref<8x1xf32, #tpu.memory_space<vmem>>, vector<8x1xf32>
    tpu.vector_store %arg6[%c0_612, %c0_613], %1531 {strides = array<i32>} : memref<8x1xf32, #tpu.memory_space<vmem>>, vector<8x1xf32>,
    return
  }
  func.func @transform_0(%arg0: i32) -> (i32, i32) {
    %c0_i32 = arith.constant 0 : i32
    %c0_i32_0 = arith.constant 0 : i32
    %c0_i32_1 = arith.constant 0 : i32
    return %c0_i32, %c0_i32_0 : i32, i32
  }
  func.func @transform_1(%arg0: i32) -> (i32, i32) {
    %c0_i32 = arith.constant 0 : i32
    %c0_i32_0 = arith.constant 0 : i32
    %c0_i32_1 = arith.constant 0 : i32
    return %c0_i32, %c0_i32_0 : i32, i32
  }
  func.func @transform_2(%arg0: i32) -> (i32, i32) {
    %c0_i32 = arith.constant 0 : i32
    %c0_i32_0 = arith.constant 0 : i32
    %c0_i32_1 = arith.constant 0 : i32
    return %c0_i32, %c0_i32_0 : i32, i32
  }
  func.func @transform_3(%arg0: i32) -> (i32, i32) {
    %c0_i32 = arith.constant 0 : i32
    %c0_i32_0 = arith.constant 0 : i32
    %c0_i32_1 = arith.constant 0 : i32
    return %c0_i32, %c0_i32_0 : i32, i32
  }
  func.func @transform_4(%arg0: i32) -> (i32, i32) {
    %c0_i32 = arith.constant 0 : i32
    %c0_i32_0 = arith.constant 0 : i32
    %c0_i32_1 = arith.constant 0 : i32
    return %c0_i32, %c0_i32_0 : i32, i32
  }
  func.func @transform_5(%arg0: i32) -> (i32, i32) {
    %c0_i32 = arith.constant 0 : i32
    %c0_i32_0 = arith.constant 0 : i32
    %c0_i32_1 = arith.constant 0 : i32
    return %c0_i32, %c0_i32_0 : i32, i32
  }
}

</mosaic_0001>

<bundles_post_ra>
// kernel: emodel_feature_weight1_forward.1
= control target key start
LH: loop header
LB: loop body
LE: loop exit
PB: predicated region body
PF: predicated region fallthrough
CT: control target
= control target key end

     0   :  { %10 = vsyncpa [#allocation8], 0  ;;  %s6815_s21 = smov [#allocation7]   ;;  %s6816_s23 = smov 128   ;;  %s8872_s0 = inlined_call_operand.vmem [shape: f32[160,8], index: 0, kind: input, shape index: {}]   ;;  %s8873_s1 = inlined_call_operand.vmem [shape: f32[8,1], index: 1, kind: input, shape index: {}]   ;;  %s8874_s2 = inlined_call_operand.vmem [shape: f32[160,1], index: 2, kind: input, shape index: {}]   ;;  %s8875_s3 = inlined_call_operand.vmem [shape: bf16[320,256], index: 3, kind: input, shape index: {}]   ;;  %s8876_s4 = inlined_call_operand.hbm [shape: f32[464,128], index: 4, kind: input, shape index: {}]   ;;  %s8877_s5 = inlined_call_operand.vmem [shape: f32[8,1], index: 5, kind: output, shape index: {}]  }
   0x1   :  { %s23_s20 = sshll.u32 %s8876_s4, 4  ;;  %s25_s22 = sshll.u32 %s6815_s21, 4  ;;  %s24_s20 = int_to_ptr.hbm [resolvable:$true] %s23_s20  ;;  %s26_s22 = int_to_ptr.vmem [resolvable:$true] %s25_s22 }
   0x2   :  { %s6817_s24 = smov 8  }
   0x3   :  { %31 = dma.hbm_to_vmem [thread:$0]  %s24_s20, 7424, %s26_s22, [#allocation8], %s6816_s23, %s6816_s23, %s6817_s24  }
   0x4   :  { %6813 = dma.done.wait [#allocation8], 7424  }
   0x5   :  { %6814 = vsyncadd [#allocation8], 4294959872  ;;  %v77_v0 = vld [vmem:[#allocation7] sm:$0xff]  ;;  %v6857_v1 = vld [vmem:[%s8872_s0] sm:$0xff]  ;;  %vm80_vm0 = vcmask 64512   ;;  %vm315_vm1 = vcmask 1043456  }
   0x6   :  { %v6862_v2 = vld [vmem:[%s8872_s0 + $0x8] sm:$0xff]  ;;  %99 = vmatpush.msra.mxu0 %v77_v0  ;;  %v6869_v4 = vld [vmem:[%s8872_s0 + $0x10] sm:$0xff]  ;;  %v6874_v5 = vld [vmem:[%s8872_s0 + $0x18] sm:$0xff]  ;;  %vm125_vm6 = vcmask 60416   ;;  %s6819_s23 = smov 64   ;;  %vm783_vm15 = vcmask 261120  }
   0x7   :  { %v39_v3 = vadd.f32 %v6862_v2, %v6857_v1  ;;  %v6880_v7 = vld [vmem:[%s8872_s0 + $0x20] sm:$0xff]  ;;  %v6886_v9 = vld [vmem:[%s8872_s0 + $0x28] sm:$0xff]  ;;  %v6892_v11 = vld [vmem:[%s8872_s0 + $0x30] sm:$0xff] }
   0x8   :  { %v6898_v13 = vld [vmem:[%s8872_s0 + $0x38] sm:$0xff]  ;;  %v6904_v15 = vld [vmem:[%s8872_s0 + $0x40] sm:$0xff]  ;;  %v6910_v17 = vld [vmem:[%s8872_s0 + $0x48] sm:$0xff] }
   0x9   :  { %v41_v6 = vadd.f32 %v6869_v4, %v39_v3  ;;  %v6916_v19 = vld [vmem:[%s8872_s0 + $0x50] sm:$0xff]  ;;  %v6922_v21 = vld [vmem:[%s8872_s0 + $0x58] sm:$0xff]  ;;  %v6928_v23 = vld [vmem:[%s8872_s0 + $0x60] sm:$0xff] }
   0xa   :  { %v6934_v25 = vld [vmem:[%s8872_s0 + $0x68] sm:$0xff]  ;;  %v6940_v27 = vld [vmem:[%s8872_s0 + $0x70] sm:$0xff]  ;;  %v6946_v29 = vld [vmem:[%s8872_s0 + $0x78] sm:$0xff] }
   0xb   :  { %v43_v8 = vadd.f32 %v6874_v5, %v41_v6  ;;  %v6952_v31 = vld [vmem:[%s8872_s0 + $0x80] sm:$0xff]  ;;  %v6958_v33 = vld [vmem:[%s8872_s0 + $0x88] sm:$0xff]  ;;  %v6964_v35 = vld [vmem:[%s8872_s0 + $0x90] sm:$0xff] }
   0xc   :  { %v6970_v37 = vld [vmem:[%s8872_s0 + $0x98] sm:$0xff]  ;;  %v223_v42 = vld [vmem:[%s8875_s3] sm:$0xff]  ;;  %v224_v43 = vld [vmem:[%s8875_s3 + $0x10] sm:$0xff] }
   0xd   :  { %v45_v10 = vadd.f32 %v6880_v7, %v43_v8  ;;  %v6204_v41 = vld [vmem:[#allocation7 + $0x8] ss:$0 sm:$0xff]  ;;  %v281_v44 = vunpack.c.l.b16 %v223_v42  ;;  %v282_v45 = vunpack.c.h.b16 %v223_v42  ;;  %v481_v46 = vunpack.c.l.b16 %v224_v43  ;;  %v5795_v61 = vld [vmem:[%s8875_s3 + $0x50] sm:$0xf] }
   0xe   :  { %v482_v47 = vunpack.c.h.b16 %v224_v43  ;;  %v6154_v62 = vld [vmem:[%s8875_s3 + $0x54] sm:$0xf0] }
   0xf   :  { %v47_v12 = vadd.f32 %v6886_v9, %v45_v10  ;;  %v283_v50 = vpack.c.b16 %v281_v44, %v281_v44  ;;  %v284_v51 = vpack.c.b16 %v282_v45, %v282_v45  ;;  %v483_v52 = vpack.c.b16 %v481_v46, %v481_v46 }
  0x10   :  { %v484_v53 = vpack.c.b16 %v482_v47, %v482_v47  ;;  %v6987_v63 = vor.u32 %v6154_v62, %v5795_v61 }
  0x11   :  { %v49_v14 = vadd.f32 %v6892_v11, %v47_v12  ;;  %v317_v55 = vsel %vm315_vm1, %v283_v50, 0  ;;  %v320_v56 = vsel %vm315_vm1, %v284_v51, 0  ;;  %v486_v57 = vsel %vm315_vm1, %v483_v52, 0 }
  0x12   :  { %329 = vmatpush.bf16.msra.mxu1 %v317_v55  ;;  %388 = vmatpush.bf16.msra.mxu2 %v320_v56  ;;  %v489_v58 = vsel %vm315_vm1, %v484_v53, 0  ;;  %vm703_vm1 = vcmask 523264  }
  0x13   :  { %v51_v16 = vadd.f32 %v6898_v13, %v49_v14  ;;  %498 = vmatpush.bf16.msra.mxu3 %v486_v57  ;;  %557 = vmatpush.bf16.msrb.mxu0 %v489_v58  ;;  %v6151_v58 = vld [vmem:[%s8875_s3 + $0x44] sm:$0xf] }
  0x15   :  { %v53_v18 = vadd.f32 %v6904_v15, %v51_v16 }
  0x16   :  { %889 = vmatpush.bf16.msrb.mxu1 %v6987_v63 }
  0x17   :  { %v55_v20 = vadd.f32 %v6910_v17, %v53_v18  ;;  %711 = vmatpush.bf16.msrb.mxu3 %v6987_v63 }
  0x19   :  { %v57_v22 = vadd.f32 %v6916_v19, %v55_v20 }
  0x1b   :  { %v59_v24 = vadd.f32 %v6922_v21, %v57_v22  ;;  %v6153_v22 = vld [vmem:[%s8875_s3 + $0x54] sm:$0xf] }
  0x1d   :  { %v61_v26 = vadd.f32 %v6928_v23, %v59_v24  ;;  %v5797_v24 = vld [vmem:[%s8875_s3 + $0x58] sm:$0xf0] }
  0x1f   :  { %v63_v28 = vadd.f32 %v6934_v25, %v61_v26 }
  0x21   :  { %v65_v30 = vadd.f32 %v6940_v27, %v63_v28 }
  0x23   :  { %v67_v32 = vadd.f32 %v6946_v29, %v65_v30 }
  0x25   :  { %v69_v34 = vadd.f32 %v6952_v31, %v67_v32 }
  0x27   :  { %v71_v36 = vadd.f32 %v6958_v33, %v69_v34  ;;  %v7001_v34 = vor.u32 %v6153_v22, %v5797_v24 }
  0x29   :  { %v73_v38 = vadd.f32 %v6964_v35, %v71_v36  ;;  %724 = vmatpush.bf16.msrb.mxu2 %v7001_v34 }
  0x2b   :  { %v75_v39 = vadd.f32 %v6970_v37, %v73_v38 }
  0x2d   :  { %v76_v40 = vmul.f32 0.05, %v75_v39 }
  0x2f   :  { %5687 = vmatmul.msk.f32.vlgmr.msra.gmra.mxu0 %vm80_vm0, %v76_v40 }
  0x30   :  { %814 = vmatpush.bf16.msra.mxu0 %v7001_v34 }
  0xac   :  { %v101_v48 = vpop.f32.mrf.mxu0 }
  0xad   :  { %v102_v49 = vadd.f32 %v6204_v41, %v101_v48 }
  0xaf   :  { %v5688_v54 = vmul.f32 -1.442695, %v102_v49 }
  0xb1   :  { %6210 = vpow2.f32 %v5688_v54 }
  0xb7   :  { %v6211_v59 = vpop.eup %6210 }
  0xb8   :  { %v107_v60 = vadd.f32 1.0, %v6211_v59  ;;  %v5789_v59 = vld [vmem:[%s8875_s3 + $0x48] sm:$0xf0] }
  0xba   :  { %6212 = vrcp.f32 %v107_v60  ;;  %v119_v8 = vand.u32 2147483648, %v107_v60  ;;  %v117_v12 = vand.u32 2147483647, %v107_v60  ;;  %vm113_vm3 = vweird.f32 %v107_v60 }
  0xbc   :  { %v120_v16 = vor.u32 1.1754944e-38, %v119_v8  ;;  %vm118_vm5 = vcmp.eq.f32.partialorder %v117_v12, 8.507059e+37  ;;  %v5781_v12 = vld [vmem:[%s8875_s3 + $0x38] sm:$0xf0] }
  0xc0   :  { %v6213_v0 = vpop.eup %6212 }
  0xc1   :  { %v109_v3 = vmul.f32 %v6213_v0, %v107_v60  ;;  %vm114_vm2 = vweird.f32 %v6213_v0  ;;  %v7065_v60 = vor.u32 %v6151_v58, %v5789_v59 }
  0xc2   :  { %vm115_vm4 = vmor %vm113_vm3, %vm114_vm2 }
  0xc3   :  { %v110_v6 = vsub.f32 1.0, %v109_v3  ;;  %725 = vmatpush.bf16.msrb.mxu2 %v7065_v60  ;;  %815 = vmatpush.bf16.msra.mxu0 %v7065_v60  ;;  %v6150_v3 = vld [vmem:[%s8875_s3 + $0x34] sm:$0xf0] }
  0xc5   :  { %v111_v10 = vmul.f32 %v6213_v0, %v110_v6 }
  0xc7   :  { %v112_v14 = vadd.f32 %v6213_v0, %v111_v10  ;;  %v6149_v10 = vld [vmem:[%s8875_s3 + $0x34] sm:$0xf] }
  0xc9   :  { %v116_v18 = vsel %vm115_vm4, %v6213_v0, %v112_v14  ;;  %v5779_v0 = vld [vmem:[%s8875_s3 + $0x30] sm:$0xf]  ;;  %v7097_v14 = vor.u32 %v6149_v10, %v5781_v12 }
  0xca   :  { %v121_v20 = vsel %vm118_vm5, %v120_v16, %v116_v18  ;;  %v7083_v6 = vor.u32 %v6150_v3, %v5779_v0  ;;  %v5771_v18 = vld [vmem:[%s8875_s3 + $0x20] sm:$0xf] }
  0xcb   :  { %v123_v26 = vmul.f32 %v121_v20, %v6857_v1  ;;  %v128_v28 = vmul.f32 %v121_v20, %v6862_v2  ;;  %v132_v30 = vmul.f32 %v121_v20, %v6869_v4  ;;  %v136_v32 = vmul.f32 %v121_v20, %v6874_v5  ;;  %726 = vmatpush.bf16.msrb.mxu2 %v7097_v14 }
  0xcc   :  { %v140_v36 = vmul.f32 %v121_v20, %v6880_v7  ;;  %v144_v38 = vmul.f32 %v121_v20, %v6886_v9  ;;  %v148_v42 = vmul.f32 %v121_v20, %v6892_v11  ;;  %v152_v1 = vmul.f32 %v121_v20, %v6898_v13  ;;  %816 = vmatpush.bf16.msra.mxu0 %v7097_v14 }
  0xcd   :  { %v124_v39 = vpack.c.bf16 %v123_v26, %v123_v26  ;;  %v129_v40 = vpack.c.bf16 %v128_v28, %v128_v28  ;;  %v133_v41 = vpack.c.bf16 %v132_v30, %v132_v30  ;;  %v137_v43 = vpack.c.bf16 %v136_v32, %v136_v32  ;;  %v6147_v28 = vld [vmem:[%s8875_s3 + $0x24] sm:$0xf]  ;;  %v5773_v30 = vld [vmem:[%s8875_s3 + $0x28] sm:$0xf0] }
  0xce   :  { %v141_v2 = vpack.c.bf16 %v140_v36, %v140_v36  ;;  %v156_v4 = vmul.f32 %v121_v20, %v6904_v15  ;;  %v145_v5 = vpack.c.bf16 %v144_v38, %v144_v38  ;;  %v160_v7 = vmul.f32 %v121_v20, %v6910_v17 }
  0xcf   :  { %126 = vst.msk [vmem:[#allocation2] sm:$0xf] %vm125_vm6, %v124_v39  ;;  %v149_v9 = vpack.c.bf16 %v148_v42, %v148_v42  ;;  %v164_v11 = vmul.f32 %v121_v20, %v6916_v19  ;;  %v153_v44 = vpack.c.bf16 %v152_v1, %v152_v1  ;;  %v168_v13 = vmul.f32 %v121_v20, %v6922_v21 }
  0xd0   :  { %130 = vst.msk [vmem:[#allocation2 + $0x4] sm:$0xf] %vm125_vm6, %v129_v40  ;;  %v157_v45 = vpack.c.bf16 %v156_v4, %v156_v4  ;;  %v172_v15 = vmul.f32 %v121_v20, %v6928_v23  ;;  %v161_v46 = vpack.c.bf16 %v160_v7, %v160_v7  ;;  %v176_v17 = vmul.f32 %v121_v20, %v6934_v25 }
  0xd1   :  { %134 = vst.msk [vmem:[#allocation2 + $0x8] sm:$0xf] %vm125_vm6, %v133_v41  ;;  %v165_v19 = vpack.c.bf16 %v164_v11, %v164_v11  ;;  %v180_v47 = vmul.f32 %v121_v20, %v6940_v27  ;;  %v169_v21 = vpack.c.bf16 %v168_v13, %v168_v13  ;;  %v184_v48 = vmul.f32 %v121_v20, %v6946_v29 }
  0xd2   :  { %138 = vst.msk [vmem:[#allocation2 + $0xc] sm:$0xf] %vm125_vm6, %v137_v43  ;;  %v173_v23 = vpack.c.bf16 %v172_v15, %v172_v15  ;;  %v188_v50 = vmul.f32 %v121_v20, %v6952_v31  ;;  %v177_v25 = vpack.c.bf16 %v176_v17, %v176_v17  ;;  %v192_v51 = vmul.f32 %v121_v20, %v6958_v33  ;;  %v5787_v31 = vld [vmem:[%s8875_s3 + $0x40] sm:$0xf]  ;;  %v6152_v33 = vld [vmem:[%s8875_s3 + $0x44] sm:$0xf0] }
  0xd3   :  { %142 = vst.msk [vmem:[#allocation2 + $0x10] sm:$0xf] %vm125_vm6, %v141_v2  ;;  %v181_v27 = vpack.c.bf16 %v180_v47, %v180_v47  ;;  %v196_v29 = vmul.f32 %v121_v20, %v6964_v35  ;;  %v185_v52 = vpack.c.bf16 %v184_v48, %v184_v48  ;;  %v200_v53 = vmul.f32 %v121_v20, %v6970_v37  ;;  %v6148_v20 = vld [vmem:[%s8875_s3 + $0x24] sm:$0xf0] }
  0xd4   :  { %146 = vst.msk [vmem:[#allocation2 + $0x14] sm:$0xf] %vm125_vm6, %v145_v5  ;;  %v7043_v54 = vor.u32 %v6152_v33, %v5787_v31  ;;  %v189_v35 = vpack.c.bf16 %v188_v50, %v188_v50  ;;  %v193_v55 = vpack.c.bf16 %v192_v51, %v192_v51  ;;  %v7111_v22 = vor.u32 %v6148_v20, %v5771_v18 }
  0xd5   :  { %150 = vst.msk [vmem:[#allocation2 + $0x18] sm:$0xf] %vm125_vm6, %v149_v9  ;;  %v197_v56 = vpack.c.bf16 %v196_v29, %v196_v29  ;;  %v201_v57 = vpack.c.bf16 %v200_v53, %v200_v53  ;;  %v7133_v32 = vor.u32 %v6147_v28, %v5773_v30  ;;  %v8878_v39 = vmov 0  }
  0xd6   :  { %154 = vst.msk [vmem:[#allocation2 + $0x1c] sm:$0xf] %vm125_vm6, %v153_v44  ;;  %712 = vmatpush.bf16.msrb.mxu3 %v7043_v54  ;;  %890 = vmatpush.bf16.msrb.mxu1 %v7043_v54 }
  0xd7   :  { %v6137_v49 = vld [vmem:[#allocation2] sm:$0xff]  ;;  %158 = vst.msk [vmem:[#allocation2 + $0x20] sm:$0xf] %vm125_vm6, %v157_v45  ;;  %727 = vmatpush.bf16.msrb.mxu2 %v7133_v32  ;;  %817 = vmatpush.bf16.msra.mxu0 %v7133_v32 }
  0xd8   :  { %162 = vst.msk [vmem:[#allocation2 + $0x24] sm:$0xf] %vm125_vm6, %v161_v46  ;;  %5729 = vmatmul.msk.bf16.vlgmr.msra.gmra.mxu1 %vm80_vm0, %v6137_v49  ;;  %5739 = vmatmul.msk.bf16.vlgmr.msra.gmra.mxu2 %vm80_vm0, %v6137_v49 }
  0xd9   :  { %166 = vst.msk [vmem:[#allocation2 + $0x28] sm:$0xf] %vm125_vm6, %v165_v19  ;;  %5749 = vmatmul.msk.bf16.vlgmr.msra.gmra.mxu3 %vm80_vm0, %v6137_v49  ;;  %5759 = vmatmul.msk.bf16.vlgmr.msrb.gmra.mxu0 %vm80_vm0, %v6137_v49  ;;  %v6138_v37 = vld [vmem:[#allocation2 + $0x8] sm:$0xff] }
  0xda   :  { %170 = vst.msk [vmem:[#allocation2 + $0x2c] sm:$0xf] %vm125_vm6, %v169_v21  ;;  %713 = vmatpush.bf16.msrb.mxu3 %v7083_v6  ;;  %891 = vmatpush.bf16.msrb.mxu1 %v7083_v6 }
  0xdb   :  { %174 = vst.msk [vmem:[#allocation2 + $0x30] sm:$0xf] %vm125_vm6, %v173_v23  ;;  %v6139_v61 = vld [vmem:[#allocation2 + $0x10] sm:$0xff]  ;;  %902 = vmatpush.bf16.msra.mxu2 %v7001_v34  ;;  %990 = vmatpush.bf16.msrb.mxu0 %v7001_v34 }
  0xdc   :  { %178 = vst.msk [vmem:[#allocation2 + $0x34] sm:$0xf] %vm125_vm6, %v177_v25  ;;  %6201 = vset.pattern.permute.xlu1 %v8878_v39  ;;  %6202 = vset.pattern.permute.xlu2 %v8878_v39 }
  0xdd   :  { %182 = vst.msk [vmem:[#allocation2 + $0x38] sm:$0xf] %vm125_vm6, %v181_v27  ;;  %v6140_v62 = vld [vmem:[#allocation2 + $0x18] sm:$0xff]  ;;  %6203 = vset.pattern.permute.xlu0 %v8878_v39 }
  0xde   :  { %186 = vst.msk [vmem:[#allocation2 + $0x3c] sm:$0xf] %vm125_vm6, %v185_v52  ;;  %714 = vmatpush.bf16.msrb.mxu3 %v7111_v22  ;;  %892 = vmatpush.bf16.msrb.mxu1 %v7111_v22 }
  0xdf   :  { %190 = vst.msk [vmem:[#allocation2 + $0x40] sm:$0xf] %vm125_vm6, %v189_v35  ;;  %v6141_v8 = vld [vmem:[#allocation2 + $0x20] sm:$0xff]  ;;  %903 = vmatpush.bf16.msra.mxu2 %v7065_v60  ;;  %991 = vmatpush.bf16.msrb.mxu0 %v7065_v60 }
  0xe0   :  { %194 = vst.msk [vmem:[#allocation2 + $0x44] sm:$0xf] %vm125_vm6, %v193_v55 }
  0xe1   :  { %198 = vst.msk [vmem:[#allocation2 + $0x48] sm:$0xf] %vm125_vm6, %v197_v56  ;;  %v6142_v16 = vld [vmem:[#allocation2 + $0x28] sm:$0xff] }
  0xe2   :  { %202 = vst.msk [vmem:[#allocation2 + $0x4c] sm:$0xf] %vm125_vm6, %v201_v57  ;;  %801 = vmatpush.bf16.msra.mxu3 %v6987_v63  ;;  %1065 = vmatpush.bf16.msra.mxu1 %v6987_v63 }
  0xe3   :  { %v6143_v24 = vld [vmem:[#allocation2 + $0x30] sm:$0xff]  ;;  %904 = vmatpush.bf16.msra.mxu2 %v7097_v14  ;;  %992 = vmatpush.bf16.msrb.mxu0 %v7097_v14 }
  0xe5   :  { %v6144_v26 = vld [vmem:[#allocation2 + $0x38] sm:$0xff] }
  0xe6   :  { %802 = vmatpush.bf16.msra.mxu3 %v7043_v54  ;;  %1066 = vmatpush.bf16.msra.mxu1 %v7043_v54 }
  0xe7   :  { %v6145_v38 = vld [vmem:[#allocation2 + $0x40] sm:$0xff]  ;;  %905 = vmatpush.bf16.msra.mxu2 %v7133_v32  ;;  %993 = vmatpush.bf16.msrb.mxu0 %v7133_v32 }
  0xe8   :  { %5730 = vmatmul.msk.bf16.gmra.mxu1 %vm80_vm0, %v6138_v37  ;;  %5740 = vmatmul.msk.bf16.gmra.mxu2 %vm80_vm0, %v6138_v37 }
  0xe9   :  { %5750 = vmatmul.msk.bf16.gmra.mxu3 %vm80_vm0, %v6138_v37  ;;  %5760 = vmatmul.msk.bf16.gmra.mxu0 %vm80_vm0, %v6138_v37  ;;  %v6146_v4 = vld [vmem:[#allocation2 + $0x48] sm:$0xff] }
  0xea   :  { %803 = vmatpush.bf16.msra.mxu3 %v7083_v6  ;;  %1067 = vmatpush.bf16.msra.mxu1 %v7083_v6 }
  0xee   :  { %804 = vmatpush.bf16.msra.mxu3 %v7111_v22  ;;  %1068 = vmatpush.bf16.msra.mxu1 %v7111_v22 }
  0xf8   :  { %5731 = vmatmul.msk.bf16.gmra.mxu1 %vm80_vm0, %v6139_v61  ;;  %5741 = vmatmul.msk.bf16.gmra.mxu2 %vm80_vm0, %v6139_v61 }
  0xf9   :  { %5751 = vmatmul.msk.bf16.gmra.mxu3 %vm80_vm0, %v6139_v61  ;;  %5761 = vmatmul.msk.bf16.gmra.mxu0 %vm80_vm0, %v6139_v61 }
 0x108   :  { %5732 = vmatmul.msk.bf16.gmra.mxu1 %vm80_vm0, %v6140_v62  ;;  %5742 = vmatmul.msk.bf16.gmra.mxu2 %vm80_vm0, %v6140_v62 }
 0x109   :  { %5752 = vmatmul.msk.bf16.gmra.mxu3 %vm80_vm0, %v6140_v62  ;;  %5762 = vmatmul.msk.bf16.gmra.mxu0 %vm80_vm0, %v6140_v62 }
 0x118   :  { %5733 = vmatmul.msk.bf16.gmra.mxu1 %vm80_vm0, %v6141_v8  ;;  %5743 = vmatmul.msk.bf16.gmra.mxu2 %vm80_vm0, %v6141_v8 }
 0x119   :  { %5753 = vmatmul.msk.bf16.gmra.mxu3 %vm80_vm0, %v6141_v8  ;;  %5763 = vmatmul.msk.bf16.gmra.mxu0 %vm80_vm0, %v6141_v8 }
 0x128   :  { %5734 = vmatmul.msk.bf16.gmra.mxu1 %vm80_vm0, %v6142_v16  ;;  %5744 = vmatmul.msk.bf16.gmra.mxu2 %vm80_vm0, %v6142_v16 }
 0x129   :  { %5754 = vmatmul.msk.bf16.gmra.mxu3 %vm80_vm0, %v6142_v16  ;;  %5764 = vmatmul.msk.bf16.gmra.mxu0 %vm80_vm0, %v6142_v16 }
 0x138   :  { %5735 = vmatmul.msk.bf16.gmra.mxu1 %vm80_vm0, %v6143_v24  ;;  %5745 = vmatmul.msk.bf16.gmra.mxu2 %vm80_vm0, %v6143_v24 }
 0x139   :  { %5755 = vmatmul.msk.bf16.gmra.mxu3 %vm80_vm0, %v6143_v24  ;;  %5765 = vmatmul.msk.bf16.gmra.mxu0 %vm80_vm0, %v6143_v24 }
 0x148   :  { %5736 = vmatmul.msk.bf16.gmra.mxu1 %vm80_vm0, %v6144_v26  ;;  %5746 = vmatmul.msk.bf16.gmra.mxu2 %vm80_vm0, %v6144_v26 }
 0x149   :  { %5756 = vmatmul.msk.bf16.gmra.mxu3 %vm80_vm0, %v6144_v26  ;;  %5766 = vmatmul.msk.bf16.gmra.mxu0 %vm80_vm0, %v6144_v26 }
 0x156   :  { %v7147_v36 = vpop.f32.mrf.mxu0 }
 0x157   :  { %8880 = vst [vmem:[#allocation10_spill] sm:$0xff] %v7147_v36 }
 0x158   :  { %5737 = vmatmul.msk.bf16.gmra.mxu1 %vm80_vm0, %v6145_v38  ;;  %5747 = vmatmul.msk.bf16.gmra.mxu2 %vm80_vm0, %v6145_v38 }
 0x159   :  { %5757 = vmatmul.msk.bf16.gmra.mxu3 %vm80_vm0, %v6145_v38  ;;  %5767 = vmatmul.msk.bf16.gmra.mxu0 %vm80_vm0, %v6145_v38 }
 0x15b   :  { %v7157_v40 = vpop.f32.mrf.mxu2 }
 0x15c   :  { %v7160_v41 = vpop.f32.mrf.mxu3 }
 0x15d   :  { %8881 = vst [vmem:[#allocation11_spill] sm:$0xff] %v7160_v41 }
 0x15e   :  { %v7162_v42 = vpop.f32.mrf.mxu0 }
 0x15f   :  { %8882 = vst [vmem:[#allocation12_spill] sm:$0xff] %v7162_v42 }
 0x163   :  { %v7164_v43 = vpop.f32.mrf.mxu2 }
 0x164   :  { %v7166_v1 = vpop.f32.mrf.mxu3 }
 0x165   :  { %8883 = vst [vmem:[#allocation13_spill] sm:$0xff] %v7166_v1 }
 0x166   :  { %v7168_v2 = vpop.f32.mrf.mxu0 }
 0x167   :  { %8884 = vst [vmem:[#allocation14_spill] sm:$0xff] %v7168_v2  ;;  %v331_v2 = vpop.f32.mrf.mxu1 }
 0x168   :  { %5738 = vmatmul.msk.bf16.gmra.mxu1 %vm80_vm0, %v6146_v4  ;;  %5748 = vmatmul.msk.bf16.gmra.mxu2 %vm80_vm0, %v6146_v4 }
 0x169   :  { %5758 = vmatmul.msk.bf16.gmra.mxu3 %vm80_vm0, %v6146_v4  ;;  %5768 = vmatmul.msk.bf16.gmra.mxu0 %vm80_vm0, %v6146_v4  ;;  %vm785_vm0 = vcmask 523520  }
 0x16b   :  { %v7174_v5 = vpop.f32.mrf.mxu2 }
 0x16c   :  { %v7176_v7 = vpop.f32.mrf.mxu3 }
 0x16d   :  { %8885 = vst [vmem:[#allocation15_spill] sm:$0xff] %v7176_v7 }
 0x16e   :  { %v7178_v9 = vpop.f32.mrf.mxu0 }
 0x16f   :  { %8886 = vst [vmem:[#allocation16_spill] sm:$0xff] %v7178_v9 }
 0x173   :  { %v7180_v11 = vpop.f32.mrf.mxu2 }
 0x174   :  { %v7182_v44 = vpop.f32.mrf.mxu3 }
 0x175   :  { %8887 = vst [vmem:[#allocation17_spill] sm:$0xff] %v7182_v44 }
 0x176   :  { %v7184_v13 = vpop.f32.mrf.mxu0 }
 0x177   :  { %8888 = vst [vmem:[#allocation18_spill] sm:$0xff] %v7184_v13 }
 0x178   :  { %728 = vmatmul.bf16.vlgmr.msrb.gmra.mxu2 %v8878_v39 }
 0x179   :  { %715 = vmatmul.bf16.vlgmr.msrb.gmra.mxu3 %v8878_v39  ;;  %1078 = vmatpush.bf16.msrb.mxu2 %v7001_v34  ;;  %v225_v39 = vld [vmem:[%s8875_s3 + $0x60] sm:$0x11] }
 0x17a   :  { %977 = vmatpush.bf16.msrb.mxu3 %v6987_v63  ;;  %v226_v36 = vunpack.c.l.bf16 %v225_v39 }
 0x17b   :  { %v7190_v45 = vpop.f32.mrf.mxu2 }
 0x17c   :  { %v7192_v15 = vpop.f32.mrf.mxu3  ;;  %v7285_v1 = vperm.slane %v226_v36, 0 }
 0x17d   :  { %8889 = vst [vmem:[#allocation19_spill] sm:$0xff] %v7192_v15  ;;  %1079 = vmatpush.bf16.msrb.mxu2 %v7065_v60 }
 0x17e   :  { %978 = vmatpush.bf16.msrb.mxu3 %v7043_v54  ;;  %v7196_v46 = vpop.f32.mrf.mxu0  ;;  %v332_v7 = vadd.f32 %v331_v2, %v7285_v1 }
 0x17f   :  { %8890 = vst [vmem:[#allocation20_spill] sm:$0xff] %v7196_v46  ;;  %v227_v46 = vunpack.c.h.bf16 %v225_v39 }
 0x181   :  { %1080 = vmatpush.bf16.msrb.mxu2 %v7097_v14 }
 0x182   :  { %979 = vmatpush.bf16.msrb.mxu3 %v7083_v6 }
 0x183   :  { %v7200_v17 = vpop.f32.mrf.mxu2 }
 0x184   :  { %v7202_v19 = vpop.f32.mrf.mxu3 }
 0x185   :  { %8891 = vst [vmem:[#allocation21_spill] sm:$0xff] %v7202_v19  ;;  %1081 = vmatpush.bf16.msrb.mxu2 %v7133_v32  ;;  %v7292_v19 = vperm.slane %v227_v46, 0 }
 0x186   :  { %980 = vmatpush.bf16.msrb.mxu3 %v7111_v22  ;;  %v7206_v47 = vpop.f32.mrf.mxu0 }
 0x187   :  { %8892 = vst [vmem:[#allocation22_spill] sm:$0xff] %v7206_v47  ;;  %v391_v2 = vadd.f32 %v7157_v40, %v7292_v19 }
 0x18b   :  { %v7208_v21 = vpop.f32.mrf.mxu2 }
 0x18c   :  { %v7210_v48 = vpop.f32.mrf.mxu3 }
 0x18d   :  { %8893 = vst [vmem:[#allocation23_spill] sm:$0xff] %v7210_v48 }
 0x18e   :  { %v7212_v49 = vpop.f32.mrf.mxu0 }
 0x18f   :  { %8894 = vst [vmem:[#allocation24_spill] sm:$0xff] %v7212_v49 }
 0x193   :  { %v7214_v23 = vpop.f32.mrf.mxu2 }
 0x194   :  { %v7216_v50 = vpop.f32.mrf.mxu3 }
 0x195   :  { %8895 = vst [vmem:[#allocation25_spill] sm:$0xff] %v7216_v50 }
 0x196   :  { %v7222_v27 = vpop.f32.mrf.mxu0 }
 0x197   :  { %8896 = vst [vmem:[#allocation26_spill] sm:$0xff] %v7222_v27 }
 0x19b   :  { %v7218_v25 = vpop.f32.mrf.mxu2 }
 0x19c   :  { %v7220_v51 = vpop.f32.mrf.mxu3 }
 0x19e   :  { %v7228_v33 = vpop.f32.mrf.mxu0 }
 0x1a3   :  { %v7224_v29 = vpop.f32.mrf.mxu2 }
 0x1a4   :  { %v7226_v31 = vpop.f32.mrf.mxu3 }
 0x1a6   :  { %v7234_v35 = vpop.f32.mrf.mxu0 }
 0x1ab   :  { %v7230_v52 = vpop.f32.mrf.mxu2 }
 0x1ac   :  { %v7232_v53 = vpop.f32.mrf.mxu3 }
 0x1ae   :  { %v7240_v57 = vpop.f32.mrf.mxu0 }
 0x1b3   :  { %v7236_v55 = vpop.f32.mrf.mxu2 }
 0x1b4   :  { %8897 = vst [vmem:[#allocation27_spill] sm:$0xff] %v7236_v55  ;;  %v7238_v56 = vpop.f32.mrf.mxu3 }
 0x1b6   :  { %v7250_v62 = vpop.f32.mrf.mxu0 }
 0x1bb   :  { %v7242_v37 = vpop.f32.mrf.mxu2 }
 0x1bc   :  { %8898 = vst [vmem:[#allocation28_spill] sm:$0xff] %v7242_v37  ;;  %v7244_v58 = vpop.f32.mrf.mxu3 }
 0x1be   :  { %v7256_v8 = vpop.f32.mrf.mxu0 }
 0x1c3   :  { %v7246_v59 = vpop.f32.mrf.mxu2 }
 0x1c4   :  { %8899 = vst [vmem:[#allocation29_spill] sm:$0xff] %v7246_v59  ;;  %v7248_v61 = vpop.f32.mrf.mxu3 }
 0x1c6   :  { %v7262_v16 = vpop.f32.mrf.mxu0 }
 0x1cb   :  { %v7252_v0 = vpop.f32.mrf.mxu2 }
 0x1cc   :  { %8900 = vst [vmem:[#allocation30_spill] sm:$0xff] %v7252_v0  ;;  %v7254_v3 = vpop.f32.mrf.mxu3 }
 0x1ce   :  { %v7268_v24 = vpop.f32.mrf.mxu0 }
 0x1d3   :  { %v7258_v10 = vpop.f32.mrf.mxu2 }
 0x1d4   :  { %8901 = vst [vmem:[#allocation31_spill] sm:$0xff] %v7258_v10  ;;  %v7260_v12 = vpop.f32.mrf.mxu3 }
 0x1d6   :  { %v7278_v4 = vpop.f32.mrf.mxu0 }
 0x1db   :  { %v7264_v18 = vpop.f32.mrf.mxu2 }
 0x1dc   :  { %8902 = vst [vmem:[#allocation32_spill] sm:$0xff] %v7264_v18  ;;  %v7266_v20 = vpop.f32.mrf.mxu3 }
 0x1e3   :  { %v7270_v26 = vpop.f32.mrf.mxu2 }
 0x1e4   :  { %8903 = vst [vmem:[#allocation33_spill] sm:$0xff] %v7270_v26  ;;  %v7272_v28 = vpop.f32.mrf.mxu3  ;;  %v7287_v26 = vpop.f32.mrf.mxu0 }
 0x1eb   :  { %v7274_v30 = vpop.f32.mrf.mxu2 }
 0x1ec   :  { %8904 = vst [vmem:[#allocation34_spill] sm:$0xff] %v7274_v30  ;;  %v7276_v38 = vpop.f32.mrf.mxu3  ;;  %v7290_v10 = vpop.f32.mrf.mxu0 }
 0x1f3   :  { %v7283_v41 = vpop.f32.mrf.mxu2 }
 0x1f4   :  { %8905 = vst [vmem:[#allocation35_spill] sm:$0xff] %v7283_v41  ;;  %v547_v42 = vpop.f32.mrf.mxu3  ;;  %v606_v47 = vpop.f32.mrf.mxu0 }
 0x1f5   :  { %v661_v30 = vadd.f32 %v547_v42, %v332_v7  ;;  %v662_v42 = vadd.f32 %v606_v47, %v391_v2 }
 0x1fb   :  { %v729_v9 = vpop.f32.mrf.mxu2 }
 0x1fc   :  { %v716_v18 = vpop.f32.mrf.mxu3  ;;  %v734_v59 = vadd.f32 %v729_v9, %v662_v42 }
 0x1fd   :  { %v733_v44 = vadd.f32 %v716_v18, %v661_v30 }
 0x1fe   :  { %v5802_v40 = vmul.f32 -1.442695, %v734_v59 }
 0x1ff   :  { %v5801_v13 = vmul.f32 -1.442695, %v733_v44 }
 0x201   :  { %6214 = vpow2.f32 %v5801_v13 }
 0x203   :  { %v731_v15 = vpop.f32.mrf.mxu2 }
 0x204   :  { %v718_v0 = vpop.f32.mrf.mxu3 }
 0x207   :  { %v6215_v41 = vpop.eup %6214 }
 0x208   :  { %v741_v36 = vadd.f32 1.0, %v6215_v41 }
 0x20a   :  { %6216 = vrcp.f32 %v741_v36  ;;  %v754_v30 = vand.u32 2147483648, %v741_v36  ;;  %v752_v39 = vand.u32 2147483647, %v741_v36  ;;  %vm748_vm8 = vweird.f32 %v741_v36 }
 0x20b   :  { %6218 = vtanh.f32 %v734_v59 }
 0x20c   :  { %v755_v46 = vor.u32 1.1754944e-38, %v754_v30  ;;  %vm753_vm10 = vcmp.eq.f32.partialorder %v752_v39, 8.507059e+37  ;;  %6220 = vpow2.f32 %v5802_v40  ;;  %v333_v40 = vpop.f32.mrf.mxu1 }
 0x210   :  { %v6217_v7 = vpop.eup %6216 }
 0x211   :  { %v744_v18 = vmul.f32 %v6217_v7, %v741_v36  ;;  %vm749_vm7 = vweird.f32 %v6217_v7  ;;  %v6219_v0 = vpop.eup %6218 }
 0x212   :  { %vm750_vm9 = vmor %vm748_vm8, %vm749_vm7  ;;  %v6221_v9 = vpop.eup %6220 }
 0x213   :  { %v745_v44 = vsub.f32 1.0, %v744_v18  ;;  %v742_v47 = vadd.f32 1.0, %v6221_v9 }
 0x215   :  { %v746_v13 = vmul.f32 %v6217_v7, %v745_v44  ;;  %6222 = vrcp.f32 %v742_v47  ;;  %v769_v39 = vand.u32 2147483648, %v742_v47  ;;  %vm763_vm12 = vweird.f32 %v742_v47 }
 0x217   :  { %v747_v15 = vadd.f32 %v6217_v7, %v746_v13 }
 0x219   :  { %v751_v41 = vsel %vm750_vm9, %v6217_v7, %v747_v15  ;;  %v770_v15 = vor.u32 1.1754944e-38, %v769_v39 }
 0x21a   :  { %v756_v48 = vsel %vm753_vm10, %v755_v46, %v751_v41 }
 0x21b   :  { %v775_v49 = vmul.f32 %v6219_v0, %v756_v48  ;;  %v6223_v2 = vpop.eup %6222  ;;  %v774_v36 = vmul.f32 0.0, %v756_v48 }
 0x21c   :  { %v759_v42 = vmul.f32 %v6223_v2, %v742_v47  ;;  %vm764_vm11 = vweird.f32 %v6223_v2 }
 0x21d   :  { %777 = vrot.lane.b32.xlu0 %v775_v49, %s6819_s23  ;;  %v767_v49 = vand.u32 2147483647, %v742_v47  ;;  %vm765_vm13 = vmor %vm763_vm12, %vm764_vm11  ;;  %v334_v47 = vadd.f32 %v333_v40, %v7285_v1 }
 0x21e   :  { %v760_v18 = vsub.f32 1.0, %v759_v42 }
 0x21f   :  { %vm768_vm14 = vcmp.eq.f32.partialorder %v767_v49, 8.507059e+37  ;;  %v393_v49 = vadd.f32 %v7164_v43, %v7292_v19 }
 0x220   :  { %v761_v44 = vmul.f32 %v6223_v2, %v760_v18 }
 0x222   :  { %v762_v7 = vadd.f32 %v6223_v2, %v761_v44 }
 0x224   :  { %v766_v59 = vsel %vm765_vm13, %v6223_v2, %v762_v7  ;;  %v791_v2 = vadd.f32 %v7276_v38, %v334_v47 }
 0x225   :  { %v771_v41 = vsel %vm768_vm14, %v770_v15, %v766_v59  ;;  %v792_v59 = vadd.f32 %v7290_v10, %v393_v49  ;;  %v336_v10 = vpop.f32.mrf.mxu1 }
 0x28f   :  { %v778_v13 = vpop.permute.xlu0 %777 }
 0x290   :  { %v7297_v30 = vadd.f32 %v778_v13, %v774_v36 }
 0x292   :  { %6224 = vtanh.f32 %v7297_v30 }
 0x298   :  { %v6225_v46 = vpop.eup %6224 }
 0x299   :  { %v782_v0 = vmul.f32 %v6225_v46, %v771_v41 }
 0x29b   :  { %784 = vst.msk [vmem:[#allocation5] sm:$0xff] %vm783_vm15, %v782_v0  ;;  %v793_v48 = vpack.c.bf16 %v782_v0, %v782_v0 }
 0x29c   :  { %786 = vst.msk [vmem:[#allocation5 + $0x98] sm:$0xff] %vm785_vm0, %v782_v0 }
 0x29d   :  { %5803 = vmatmul.msk.bf16.vlgmr.msra.gmra.mxu3 %vm703_vm1, %v793_v48  ;;  %5804 = vmatmul.msk.bf16.vlgmr.msra.gmra.mxu0 %vm703_vm1, %v793_v48 }
 0x29e   :  { %1153 = vmatpush.bf16.msra.mxu3 %v6987_v63  ;;  %1166 = vmatpush.bf16.msra.mxu0 %v7001_v34 }
 0x2a2   :  { %1154 = vmatpush.bf16.msra.mxu3 %v7043_v54  ;;  %1167 = vmatpush.bf16.msra.mxu0 %v7065_v60 }
 0x2a6   :  { %1155 = vmatpush.bf16.msra.mxu3 %v7083_v6  ;;  %1168 = vmatpush.bf16.msra.mxu0 %v7097_v14 }
 0x2aa   :  { %1156 = vmatpush.bf16.msra.mxu3 %v7111_v22  ;;  %1169 = vmatpush.bf16.msra.mxu0 %v7133_v32 }
 0x31a   :  { %v819_v9 = vpop.f32.mrf.mxu0 }
 0x31b   :  { %v824_v46 = vadd.f32 %v819_v9, %v792_v59 }
 0x31d   :  { %v5806_v9 = vmul.f32 -1.442695, %v824_v46 }
 0x320   :  { %v806_v42 = vpop.f32.mrf.mxu3 }
 0x321   :  { %v823_v18 = vadd.f32 %v806_v42, %v791_v2 }
 0x322   :  { %v821_v44 = vpop.f32.mrf.mxu0 }
 0x323   :  { %v5805_v36 = vmul.f32 -1.442695, %v823_v18 }
 0x325   :  { %6226 = vpow2.f32 %v5805_v36  ;;  %v7318_v36 = vpop.f32.mrf.mxu1 }
 0x328   :  { %v808_v13 = vpop.f32.mrf.mxu3 }
 0x32b   :  { %v6227_v7 = vpop.eup %6226 }
 0x32c   :  { %v831_v39 = vadd.f32 1.0, %v6227_v7 }
 0x32d   :  { %v7320_v49 = vpop.f32.mrf.mxu1 }
 0x32e   :  { %6228 = vrcp.f32 %v831_v39  ;;  %v844_v38 = vand.u32 2147483648, %v831_v39  ;;  %v842_v40 = vand.u32 2147483647, %v831_v39  ;;  %vm838_vm3 = vweird.f32 %v831_v39 }
 0x32f   :  { %6230 = vtanh.f32 %v824_v46 }
 0x330   :  { %v845_v2 = vor.u32 1.1754944e-38, %v844_v38  ;;  %vm843_vm5 = vcmp.eq.f32.partialorder %v842_v40, 8.507059e+37  ;;  %6232 = vpow2.f32 %v5806_v9 }
 0x334   :  { %v6229_v15 = vpop.eup %6228 }
 0x335   :  { %v834_v41 = vmul.f32 %v6229_v15, %v831_v39  ;;  %vm839_vm2 = vweird.f32 %v6229_v15  ;;  %v6231_v18 = vpop.eup %6230 }
 0x336   :  { %vm840_vm4 = vmor %vm838_vm3, %vm839_vm2  ;;  %v6233_v13 = vpop.eup %6232 }
 0x337   :  { %v835_v0 = vsub.f32 1.0, %v834_v41  ;;  %v832_v7 = vadd.f32 1.0, %v6233_v13  ;;  %v7322_v41 = vpop.f32.mrf.mxu1 }
 0x339   :  { %v836_v48 = vmul.f32 %v6229_v15, %v835_v0  ;;  %6234 = vrcp.f32 %v832_v7  ;;  %vm853_vm7 = vweird.f32 %v832_v7 }
 0x33b   :  { %v837_v47 = vadd.f32 %v6229_v15, %v836_v48 }
 0x33d   :  { %v841_v42 = vsel %vm840_vm4, %v6229_v15, %v837_v47 }
 0x33e   :  { %v846_v44 = vsel %vm843_vm5, %v845_v2, %v841_v42  ;;  %v859_v2 = vand.u32 2147483648, %v832_v7  ;;  %v857_v42 = vand.u32 2147483647, %v832_v7 }
 0x33f   :  { %v865_v43 = vmul.f32 %v6231_v18, %v846_v44  ;;  %v6235_v39 = vpop.eup %6234  ;;  %v864_v38 = vmul.f32 %v846_v44, %v7297_v30  ;;  %v7325_v40 = vpop.f32.mrf.mxu1 }
 0x340   :  { %v849_v59 = vmul.f32 %v6235_v39, %v832_v7  ;;  %vm854_vm6 = vweird.f32 %v6235_v39  ;;  %vm858_vm9 = vcmp.eq.f32.partialorder %v857_v42, 8.507059e+37 }
 0x341   :  { %867 = vrot.lane.b32.xlu0 %v865_v43, %s6819_s23  ;;  %vm855_vm8 = vmor %vm853_vm7, %vm854_vm6  ;;  %v860_v43 = vor.u32 1.1754944e-38, %v859_v2 }
 0x342   :  { %v850_v15 = vsub.f32 1.0, %v849_v59 }
 0x344   :  { %v851_v0 = vmul.f32 %v6235_v39, %v850_v15 }
 0x346   :  { %v852_v47 = vadd.f32 %v6235_v39, %v851_v0 }
 0x347   :  { %v7330_v30 = vpop.f32.mrf.mxu1 }
 0x348   :  { %v856_v18 = vsel %vm855_vm8, %v6235_v39, %v852_v47 }
 0x349   :  { %v861_v13 = vsel %vm858_vm9, %v860_v43, %v856_v18 }
 0x34f   :  { %v7340_v7 = vpop.f32.mrf.mxu1 }
 0x357   :  { %v7346_v39 = vpop.f32.mrf.mxu1 }
 0x35f   :  { %v7348_v15 = vpop.f32.mrf.mxu1 }
 0x367   :  { %v7350_v0 = vpop.f32.mrf.mxu1 }
 0x3b3   :  { %v868_v48 = vpop.permute.xlu0 %867 }
 0x3b4   :  { %v7327_v46 = vadd.f32 %v868_v48, %v864_v38  ;;  %v7352_v38 = vpop.f32.mrf.mxu1 }
 0x3b5   :  { %8906 = vst [vmem:[#allocation36_spill] sm:$0xff] %v7352_v38 }
 0x3b6   :  { %6236 = vtanh.f32 %v7327_v46 }
 0x3bc   :  { %v6237_v9 = vpop.eup %6236  ;;  %v7354_v48 = vpop.f32.mrf.mxu1 }
 0x3bd   :  { %v872_v59 = vmul.f32 %v6237_v9, %v861_v13  ;;  %8907 = vst [vmem:[#allocation37_spill] sm:$0xff] %v7354_v48  ;;  %v337_v13 = vadd.f32 %v336_v10, %v7285_v1 }
 0x3bf   :  { %873 = vst.msk [vmem:[#allocation5 + $0x8] sm:$0xff] %vm783_vm15, %v872_v59  ;;  %v881_v44 = vpack.c.bf16 %v872_v59, %v872_v59 }
 0x3c0   :  { %874 = vst.msk [vmem:[#allocation5 + $0x90] sm:$0xff] %vm785_vm0, %v872_v59  ;;  %v879_v59 = vadd.f32 %v7272_v28, %v337_v13 }
 0x3c1   :  { %5807 = vmatmul.msk.bf16.vlgmr.msrb.gmra.mxu1 %vm703_vm1, %v881_v44  ;;  %5808 = vmatmul.msk.bf16.vlgmr.msra.gmra.mxu2 %vm703_vm1, %v881_v44 }
 0x3c2   :  { %1241 = vmatpush.bf16.msrb.mxu1 %v6987_v63  ;;  %1254 = vmatpush.bf16.msra.mxu2 %v7001_v34 }
 0x3c4   :  { %v7356_v47 = vpop.f32.mrf.mxu1 }
 0x3c5   :  { %8908 = vst [vmem:[#allocation38_spill] sm:$0xff] %v7356_v47 }
 0x3c6   :  { %1242 = vmatpush.bf16.msrb.mxu1 %v7043_v54  ;;  %1255 = vmatpush.bf16.msra.mxu2 %v7065_v60 }
 0x3ca   :  { %1243 = vmatpush.bf16.msrb.mxu1 %v7083_v6  ;;  %1256 = vmatpush.bf16.msra.mxu2 %v7097_v14 }
 0x3cc   :  { %v7358_v2 = vpop.f32.mrf.mxu1 }
 0x3cd   :  { %8909 = vst [vmem:[#allocation39_spill] sm:$0xff] %v7358_v2 }
 0x3ce   :  { %1244 = vmatpush.bf16.msrb.mxu1 %v7111_v22  ;;  %1257 = vmatpush.bf16.msra.mxu2 %v7133_v32 }
 0x3d4   :  { %v7360_v42 = vpop.f32.mrf.mxu1 }
 0x3d5   :  { %8910 = vst [vmem:[#allocation40_spill] sm:$0xff] %v7360_v42 }
 0x3dc   :  { %v7362_v18 = vpop.f32.mrf.mxu1 }
 0x3dd   :  { %8911 = vst [vmem:[#allocation41_spill] sm:$0xff] %v7362_v18  ;;  %v396_v18 = vadd.f32 %v7174_v5, %v7292_v19 }
 0x3e4   :  { %v7364_v43 = vpop.f32.mrf.mxu1 }
 0x3e5   :  { %8912 = vst [vmem:[#allocation42_spill] sm:$0xff] %v7364_v43  ;;  %v880_v43 = vadd.f32 %v7287_v26, %v396_v18 }
 0x3ec   :  { %v7366_v9 = vpop.f32.mrf.mxu1 }
 0x3ed   :  { %8913 = vst [vmem:[#allocation43_spill] sm:$0xff] %v7366_v9 }
 0x43e   :  { %v894_v44 = vpop.f32.mrf.mxu1 }
 0x43f   :  { %v911_v37 = vadd.f32 %v894_v44, %v879_v59 }
 0x441   :  { %v5809_v50 = vmul.f32 -1.442695, %v911_v37 }
 0x443   :  { %6238 = vpow2.f32 %v5809_v50 }
 0x444   :  { %v907_v48 = vpop.f32.mrf.mxu2 }
 0x445   :  { %v912_v27 = vadd.f32 %v907_v48, %v880_v43 }
 0x446   :  { %v896_v47 = vpop.f32.mrf.mxu1 }
 0x447   :  { %v5810_v26 = vmul.f32 -1.442695, %v912_v27 }
 0x449   :  { %v6239_v38 = vpop.eup %6238 }
 0x44a   :  { %v919_v2 = vadd.f32 1.0, %v6239_v38 }
 0x44c   :  { %6240 = vrcp.f32 %v919_v2  ;;  %v909_v42 = vpop.f32.mrf.mxu2  ;;  %v932_v28 = vand.u32 2147483648, %v919_v2  ;;  %v930_v50 = vand.u32 2147483647, %v919_v2  ;;  %vm926_vm11 = vweird.f32 %v919_v2 }
 0x44d   :  { %6242 = vtanh.f32 %v912_v27 }
 0x44e   :  { %v933_v38 = vor.u32 1.1754944e-38, %v932_v28  ;;  %vm931_vm13 = vcmp.eq.f32.partialorder %v930_v50, 8.507059e+37  ;;  %6244 = vpow2.f32 %v5810_v26  ;;  %v339_v26 = vadd.f32 %v7318_v36, %v7285_v1 }
 0x452   :  { %v6241_v9 = vpop.eup %6240 }
 0x453   :  { %v922_v10 = vmul.f32 %v6241_v9, %v919_v2  ;;  %vm927_vm10 = vweird.f32 %v6241_v9  ;;  %v6243_v42 = vpop.eup %6242 }
 0x454   :  { %vm928_vm12 = vmor %vm926_vm11, %vm927_vm10  ;;  %v6245_v48 = vpop.eup %6244 }
 0x455   :  { %v923_v55 = vsub.f32 1.0, %v922_v10  ;;  %v920_v18 = vadd.f32 1.0, %v6245_v48  ;;  %v967_v48 = vadd.f32 %v7266_v20, %v339_v26 }
 0x457   :  { %v924_v13 = vmul.f32 %v6241_v9, %v923_v55  ;;  %6246 = vrcp.f32 %v920_v18  ;;  %v947_v50 = vand.u32 2147483648, %v920_v18  ;;  %vm941_vm2 = vweird.f32 %v920_v18 }
 0x458   :  { %v945_v27 = vand.u32 2147483647, %v920_v18 }
 0x459   :  { %v925_v37 = vadd.f32 %v6241_v9, %v924_v13 }
 0x45a   :  { %vm946_vm4 = vcmp.eq.f32.partialorder %v945_v27, 8.507059e+37 }
 0x45b   :  { %v929_v47 = vsel %vm928_vm12, %v6241_v9, %v925_v37 }
 0x45c   :  { %v934_v59 = vsel %vm931_vm13, %v933_v38, %v929_v47  ;;  %v948_v38 = vor.u32 1.1754944e-38, %v947_v50 }
 0x45d   :  { %v953_v5 = vmul.f32 %v6243_v42, %v934_v59  ;;  %v6247_v43 = vpop.eup %6246  ;;  %v952_v2 = vmul.f32 %v934_v59, %v7327_v46 }
 0x45e   :  { %v937_v55 = vmul.f32 %v6247_v43, %v920_v18  ;;  %vm942_vm14 = vweird.f32 %v6247_v43 }
 0x45f   :  { %955 = vrot.lane.b32.xlu1 %v953_v5, %s6819_s23  ;;  %vm943_vm3 = vmor %vm941_vm2, %vm942_vm14 }
 0x460   :  { %v938_v44 = vsub.f32 1.0, %v937_v55 }
 0x462   :  { %v939_v10 = vmul.f32 %v6247_v43, %v938_v44 }
 0x464   :  { %v940_v9 = vadd.f32 %v6247_v43, %v939_v10 }
 0x466   :  { %v944_v37 = vsel %vm943_vm3, %v6247_v43, %v940_v9  ;;  %v398_v9 = vadd.f32 %v7180_v11, %v7292_v19 }
 0x467   :  { %v949_v42 = vsel %vm946_vm4, %v948_v38, %v944_v37 }
 0x468   :  { %v968_v50 = vadd.f32 %v7278_v4, %v398_v9 }
 0x4d1   :  { %v956_v13 = vpop.permute.xlu1 %955 }
 0x4d2   :  { %v7375_v28 = vadd.f32 %v956_v13, %v952_v2 }
 0x4d4   :  { %6248 = vtanh.f32 %v7375_v28 }
 0x4da   :  { %v6249_v47 = vpop.eup %6248 }
 0x4db   :  { %v960_v5 = vmul.f32 %v6249_v47, %v949_v42 }
 0x4dd   :  { %961 = vst.msk [vmem:[#allocation5 + $0x10] sm:$0xff] %vm783_vm15, %v960_v5  ;;  %v969_v46 = vpack.c.bf16 %v960_v5, %v960_v5 }
 0x4de   :  { %962 = vst.msk [vmem:[#allocation5 + $0x88] sm:$0xff] %vm785_vm0, %v960_v5 }
 0x4df   :  { %5811 = vmatmul.msk.bf16.vlgmr.msrb.gmra.mxu3 %vm703_vm1, %v969_v46  ;;  %5812 = vmatmul.msk.bf16.vlgmr.msrb.gmra.mxu0 %vm703_vm1, %v969_v46 }
 0x4e0   :  { %1329 = vmatpush.bf16.msrb.mxu3 %v6987_v63  ;;  %1342 = vmatpush.bf16.msrb.mxu0 %v7001_v34 }
 0x4e4   :  { %1330 = vmatpush.bf16.msrb.mxu3 %v7043_v54  ;;  %1343 = vmatpush.bf16.msrb.mxu0 %v7065_v60 }
 0x4e8   :  { %1331 = vmatpush.bf16.msrb.mxu3 %v7083_v6  ;;  %1344 = vmatpush.bf16.msrb.mxu0 %v7097_v14 }
 0x4ec   :  { %1332 = vmatpush.bf16.msrb.mxu3 %v7111_v22  ;;  %1345 = vmatpush.bf16.msrb.mxu0 %v7133_v32 }
 0x55c   :  { %v995_v59 = vpop.f32.mrf.mxu0 }
 0x55d   :  { %v1000_v37 = vadd.f32 %v995_v59, %v968_v50 }
 0x55f   :  { %v5814_v4 = vmul.f32 -1.442695, %v1000_v37 }
 0x562   :  { %v982_v18 = vpop.f32.mrf.mxu3 }
 0x563   :  { %v999_v43 = vadd.f32 %v982_v18, %v967_v48 }
 0x564   :  { %v997_v55 = vpop.f32.mrf.mxu0 }
 0x565   :  { %v5813_v44 = vmul.f32 -1.442695, %v999_v43 }
 0x567   :  { %6250 = vpow2.f32 %v5813_v44 }
 0x56a   :  { %v984_v10 = vpop.f32.mrf.mxu3 }
 0x56d   :  { %v6251_v2 = vpop.eup %6250 }
 0x56e   :  { %v1007_v13 = vadd.f32 1.0, %v6251_v2 }
 0x570   :  { %6252 = vrcp.f32 %v1007_v13  ;;  %v1020_v20 = vand.u32 2147483648, %v1007_v13  ;;  %v1018_v42 = vand.u32 2147483647, %v1007_v13  ;;  %vm1014_vm6 = vweird.f32 %v1007_v13 }
 0x571   :  { %6254 = vtanh.f32 %v1000_v37 }
 0x572   :  { %v1021_v46 = vor.u32 1.1754944e-38, %v1020_v20  ;;  %vm1019_vm8 = vcmp.eq.f32.partialorder %v1018_v42, 8.507059e+37  ;;  %6256 = vpow2.f32 %v5814_v4 }
 0x576   :  { %v6253_v27 = vpop.eup %6252 }
 0x577   :  { %v1010_v38 = vmul.f32 %v6253_v27, %v1007_v13  ;;  %vm1015_vm5 = vweird.f32 %v6253_v27  ;;  %v6255_v48 = vpop.eup %6254 }
 0x578   :  { %vm1016_vm7 = vmor %vm1014_vm6, %vm1015_vm5  ;;  %v6257_v59 = vpop.eup %6256 }
 0x579   :  { %v1011_v36 = vsub.f32 1.0, %v1010_v38  ;;  %v1008_v43 = vadd.f32 1.0, %v6257_v59 }
 0x57b   :  { %v1012_v47 = vmul.f32 %v6253_v27, %v1011_v36  ;;  %6258 = vrcp.f32 %v1008_v43  ;;  %v1035_v38 = vand.u32 2147483648, %v1008_v43  ;;  %vm1029_vm10 = vweird.f32 %v1008_v43 }
 0x57c   :  { %v1033_v37 = vand.u32 2147483647, %v1008_v43 }
 0x57d   :  { %v1013_v5 = vadd.f32 %v6253_v27, %v1012_v47  ;;  %v1036_v20 = vor.u32 1.1754944e-38, %v1035_v38 }
 0x57e   :  { %vm1034_vm12 = vcmp.eq.f32.partialorder %v1033_v37, 8.507059e+37 }
 0x57f   :  { %v1017_v26 = vsel %vm1016_vm7, %v6253_v27, %v1013_v5 }
 0x580   :  { %v1022_v18 = vsel %vm1019_vm8, %v1021_v46, %v1017_v26  ;;  %v342_v46 = vadd.f32 %v7320_v49, %v7285_v1 }
 0x581   :  { %v1041_v11 = vmul.f32 %v6255_v48, %v1022_v18  ;;  %v6259_v55 = vpop.eup %6258  ;;  %v1040_v13 = vmul.f32 %v1022_v18, %v7375_v28 }
 0x582   :  { %v1025_v44 = vmul.f32 %v6259_v55, %v1008_v43  ;;  %vm1030_vm9 = vweird.f32 %v6259_v55  ;;  %v1055_v26 = vadd.f32 %v7260_v12, %v342_v46 }
 0x583   :  { %1043 = vrot.lane.b32.xlu1 %v1041_v11, %s6819_s23  ;;  %vm1031_vm11 = vmor %vm1029_vm10, %vm1030_vm9 }
 0x584   :  { %v1026_v10 = vsub.f32 1.0, %v1025_v44 }
 0x586   :  { %v1027_v2 = vmul.f32 %v6259_v55, %v1026_v10  ;;  %v401_v10 = vadd.f32 %v7190_v45, %v7292_v19 }
 0x588   :  { %v1028_v27 = vadd.f32 %v6259_v55, %v1027_v2  ;;  %v1056_v2 = vadd.f32 %v7268_v24, %v401_v10 }
 0x58a   :  { %v1032_v36 = vsel %vm1031_vm11, %v6259_v55, %v1028_v27 }
 0x58b   :  { %v1037_v42 = vsel %vm1034_vm12, %v1036_v20, %v1032_v36 }
 0x5f5   :  { %v1044_v9 = vpop.permute.xlu1 %1043 }
 0x5f6   :  { %v7398_v50 = vadd.f32 %v1044_v9, %v1040_v13 }
 0x5f8   :  { %6260 = vtanh.f32 %v7398_v50 }
 0x5fe   :  { %v6261_v47 = vpop.eup %6260 }
 0x5ff   :  { %v1048_v5 = vmul.f32 %v6261_v47, %v1037_v42 }
 0x601   :  { %1049 = vst.msk [vmem:[#allocation5 + $0x18] sm:$0xff] %vm783_vm15, %v1048_v5  ;;  %v1057_v28 = vpack.c.bf16 %v1048_v5, %v1048_v5 }
 0x602   :  { %1050 = vst.msk [vmem:[#allocation5 + $0x80] sm:$0xff] %vm785_vm0, %v1048_v5 }
 0x603   :  { %5815 = vmatmul.msk.bf16.vlgmr.msra.gmra.mxu1 %vm703_vm1, %v1057_v28  ;;  %5816 = vmatmul.msk.bf16.vlgmr.msrb.gmra.mxu2 %vm703_vm1, %v1057_v28 }
 0x604   :  { %1417 = vmatpush.bf16.msra.mxu1 %v6987_v63  ;;  %1430 = vmatpush.bf16.msrb.mxu2 %v7001_v34 }
 0x608   :  { %1418 = vmatpush.bf16.msra.mxu1 %v7043_v54  ;;  %1431 = vmatpush.bf16.msrb.mxu2 %v7065_v60 }
 0x60c   :  { %1419 = vmatpush.bf16.msra.mxu1 %v7083_v6  ;;  %1432 = vmatpush.bf16.msrb.mxu2 %v7097_v14 }
 0x610   :  { %1420 = vmatpush.bf16.msra.mxu1 %v7111_v22  ;;  %1433 = vmatpush.bf16.msrb.mxu2 %v7133_v32 }
 0x680   :  { %v1070_v48 = vpop.f32.mrf.mxu1 }
 0x681   :  { %v1087_v18 = vadd.f32 %v1070_v48, %v1055_v26 }
 0x683   :  { %v5817_v11 = vmul.f32 -1.442695, %v1087_v18 }
 0x685   :  { %6262 = vpow2.f32 %v5817_v11 }
 0x686   :  { %v1083_v4 = vpop.f32.mrf.mxu2 }
 0x687   :  { %v1088_v9 = vadd.f32 %v1083_v4, %v1056_v2 }
 0x688   :  { %v1072_v59 = vpop.f32.mrf.mxu1 }
 0x689   :  { %v5818_v24 = vmul.f32 -1.442695, %v1088_v9 }
 0x68b   :  { %v6263_v43 = vpop.eup %6262 }
 0x68c   :  { %v1095_v55 = vadd.f32 1.0, %v6263_v43 }
 0x68e   :  { %6264 = vrcp.f32 %v1095_v55  ;;  %v1085_v44 = vpop.f32.mrf.mxu2  ;;  %v1108_v12 = vand.u32 2147483648, %v1095_v55  ;;  %v1106_v37 = vand.u32 2147483647, %v1095_v55  ;;  %vm1102_vm14 = vweird.f32 %v1095_v55 }
 0x68f   :  { %6266 = vtanh.f32 %v1088_v9 }
 0x690   :  { %v1109_v20 = vor.u32 1.1754944e-38, %v1108_v12  ;;  %vm1107_vm3 = vcmp.eq.f32.partialorder %v1106_v37, 8.507059e+37  ;;  %6268 = vpow2.f32 %v5818_v24 }
 0x694   :  { %v6265_v13 = vpop.eup %6264 }
 0x695   :  { %v1098_v49 = vmul.f32 %v6265_v13, %v1095_v55  ;;  %vm1103_vm13 = vweird.f32 %v6265_v13  ;;  %v6267_v42 = vpop.eup %6266 }
 0x696   :  { %vm1104_vm2 = vmor %vm1102_vm14, %vm1103_vm13  ;;  %v6269_v28 = vpop.eup %6268 }
 0x697   :  { %v1099_v27 = vsub.f32 1.0, %v1098_v49  ;;  %v1096_v46 = vadd.f32 1.0, %v6269_v28  ;;  %v403_v28 = vadd.f32 %v7200_v17, %v7292_v19 }
 0x699   :  { %v1100_v38 = vmul.f32 %v6265_v13, %v1099_v27  ;;  %6270 = vrcp.f32 %v1096_v46  ;;  %v1123_v44 = vand.u32 2147483648, %v1096_v46  ;;  %vm1117_vm5 = vweird.f32 %v1096_v46 }
 0x69a   :  { %v1121_v10 = vand.u32 2147483647, %v1096_v46 }
 0x69b   :  { %v1101_v36 = vadd.f32 %v6265_v13, %v1100_v38  ;;  %v344_v38 = vadd.f32 %v7322_v41, %v7285_v1 }
 0x69c   :  { %vm1122_vm7 = vcmp.eq.f32.partialorder %v1121_v10, 8.507059e+37 }
 0x69d   :  { %v1105_v47 = vsel %vm1104_vm2, %v6265_v13, %v1101_v36  ;;  %v1124_v13 = vor.u32 1.1754944e-38, %v1123_v44  ;;  %v1143_v37 = vadd.f32 %v7254_v3, %v344_v38 }
 0x69e   :  { %v1110_v5 = vsel %vm1107_vm3, %v1109_v20, %v1105_v47 }
 0x69f   :  { %v1129_v45 = vmul.f32 %v6267_v42, %v1110_v5  ;;  %v6271_v26 = vpop.eup %6270  ;;  %v1128_v4 = vmul.f32 %v1110_v5, %v7398_v50 }
 0x6a0   :  { %v1113_v48 = vmul.f32 %v6271_v26, %v1096_v46  ;;  %vm1118_vm4 = vweird.f32 %v6271_v26  ;;  %v1144_v46 = vadd.f32 %v7262_v16, %v403_v28 }
 0x6a1   :  { %1131 = vrot.lane.b32.xlu2 %v1129_v45, %s6819_s23  ;;  %vm1119_vm6 = vmor %vm1117_vm5, %vm1118_vm4 }
 0x6a2   :  { %v1114_v18 = vsub.f32 1.0, %v1113_v48 }
 0x6a4   :  { %v1115_v11 = vmul.f32 %v6271_v26, %v1114_v18 }
 0x6a6   :  { %v1116_v55 = vadd.f32 %v6271_v26, %v1115_v11 }
 0x6a8   :  { %v1120_v2 = vsel %vm1119_vm6, %v6271_v26, %v1116_v55 }
 0x6a9   :  { %v1125_v49 = vsel %vm1122_vm7, %v1124_v13, %v1120_v2 }
 0x6fb   :  { %v1132_v59 = vpop.permute.xlu2 %1131 }
 0x6fc   :  { %v7421_v43 = vadd.f32 %v1132_v59, %v1128_v4 }
 0x6fe   :  { %6272 = vtanh.f32 %v7421_v43 }
 0x704   :  { %v6273_v9 = vpop.eup %6272 }
 0x705   :  { %v1136_v27 = vmul.f32 %v6273_v9, %v1125_v49 }
 0x707   :  { %1137 = vst.msk [vmem:[#allocation5 + $0x20] sm:$0xff] %vm783_vm15, %v1136_v27  ;;  %v1145_v50 = vpack.c.bf16 %v1136_v27, %v1136_v27 }
 0x708   :  { %1138 = vst.msk [vmem:[#allocation5 + $0x78] sm:$0xff] %vm785_vm0, %v1136_v27 }
 0x709   :  { %5819 = vmatmul.msk.bf16.vlgmr.msra.gmra.mxu3 %vm703_vm1, %v1145_v50  ;;  %5820 = vmatmul.msk.bf16.vlgmr.msra.gmra.mxu0 %vm703_vm1, %v1145_v50 }
 0x70a   :  { %1505 = vmatpush.bf16.msra.mxu3 %v6987_v63  ;;  %1518 = vmatpush.bf16.msra.mxu0 %v7001_v34 }
 0x70e   :  { %1506 = vmatpush.bf16.msra.mxu3 %v7043_v54  ;;  %1519 = vmatpush.bf16.msra.mxu0 %v7065_v60 }
 0x712   :  { %1507 = vmatpush.bf16.msra.mxu3 %v7083_v6  ;;  %1520 = vmatpush.bf16.msra.mxu0 %v7097_v14 }
 0x716   :  { %1508 = vmatpush.bf16.msra.mxu3 %v7111_v22  ;;  %1521 = vmatpush.bf16.msra.mxu0 %v7133_v32 }
 0x786   :  { %v1171_v12 = vpop.f32.mrf.mxu0 }
 0x787   :  { %v1176_v48 = vadd.f32 %v1171_v12, %v1144_v46 }
 0x789   :  { %v5822_v16 = vmul.f32 -1.442695, %v1176_v48 }
 0x78c   :  { %v1158_v36 = vpop.f32.mrf.mxu3 }
 0x78d   :  { %v1175_v20 = vadd.f32 %v1158_v36, %v1143_v37 }
 0x78e   :  { %v1173_v47 = vpop.f32.mrf.mxu0 }
 0x78f   :  { %v5821_v42 = vmul.f32 -1.442695, %v1175_v20 }
 0x791   :  { %6274 = vpow2.f32 %v5821_v42 }
 0x794   :  { %v1160_v5 = vpop.f32.mrf.mxu3 }
 0x797   :  { %v6275_v45 = vpop.eup %6274 }
 0x798   :  { %v1183_v24 = vadd.f32 1.0, %v6275_v45 }
 0x79a   :  { %6276 = vrcp.f32 %v1183_v24  ;;  %v1196_v3 = vand.u32 2147483648, %v1183_v24  ;;  %v1194_v4 = vand.u32 2147483647, %v1183_v24  ;;  %vm1190_vm9 = vweird.f32 %v1183_v24 }
 0x79b   :  { %6278 = vtanh.f32 %v1176_v48 }
 0x79c   :  { %v1197_v55 = vor.u32 1.1754944e-38, %v1196_v3  ;;  %vm1195_vm11 = vcmp.eq.f32.partialorder %v1194_v4, 8.507059e+37  ;;  %6280 = vpow2.f32 %v5822_v16 }
 0x7a0   :  { %v6277_v26 = vpop.eup %6276 }
 0x7a1   :  { %v1186_v18 = vmul.f32 %v6277_v26, %v1183_v24  ;;  %vm1191_vm8 = vweird.f32 %v6277_v26  ;;  %v6279_v10 = vpop.eup %6278 }
 0x7a2   :  { %vm1192_vm10 = vmor %vm1190_vm9, %vm1191_vm8  ;;  %v6281_v13 = vpop.eup %6280 }
 0x7a3   :  { %v1187_v41 = vsub.f32 1.0, %v1186_v18  ;;  %v1184_v9 = vadd.f32 1.0, %v6281_v13 }
 0x7a5   :  { %v1188_v11 = vmul.f32 %v6277_v26, %v1187_v41  ;;  %6282 = vrcp.f32 %v1184_v9  ;;  %v1211_v47 = vand.u32 2147483648, %v1184_v9  ;;  %vm1205_vm13 = vweird.f32 %v1184_v9 }
 0x7a6   :  { %v1209_v42 = vand.u32 2147483647, %v1184_v9 }
 0x7a7   :  { %v1189_v59 = vadd.f32 %v6277_v26, %v1188_v11  ;;  %v1212_v45 = vor.u32 1.1754944e-38, %v1211_v47 }
 0x7a8   :  { %vm1210_vm2 = vcmp.eq.f32.partialorder %v1209_v42, 8.507059e+37 }
 0x7a9   :  { %v1193_v44 = vsel %vm1192_vm10, %v6277_v26, %v1189_v59  ;;  %v347_v26 = vadd.f32 %v7325_v40, %v7285_v1 }
 0x7aa   :  { %v1198_v2 = vsel %vm1195_vm11, %v1197_v55, %v1193_v44 }
 0x7ab   :  { %v1217_v17 = vmul.f32 %v6279_v10, %v1198_v2  ;;  %v6283_v49 = vpop.eup %6282  ;;  %v1216_v38 = vmul.f32 %v1198_v2, %v7421_v43  ;;  %v1231_v48 = vadd.f32 %v7248_v61, %v347_v26  ;;  %v406_v10 = vadd.f32 %v7208_v21, %v7292_v19 }
 0x7ac   :  { %v1201_v27 = vmul.f32 %v6283_v49, %v1184_v9  ;;  %vm1206_vm12 = vweird.f32 %v6283_v49 }
 0x7ad   :  { %1219 = vrot.lane.b32.xlu2 %v1217_v17, %s6819_s23  ;;  %vm1207_vm14 = vmor %vm1205_vm13, %vm1206_vm12  ;;  %v1232_v2 = vadd.f32 %v7256_v8, %v406_v10 }
 0x7ae   :  { %v1202_v50 = vsub.f32 1.0, %v1201_v27 }
 0x7b0   :  { %v1203_v12 = vmul.f32 %v6283_v49, %v1202_v50 }
 0x7b2   :  { %v1204_v20 = vadd.f32 %v6283_v49, %v1203_v12 }
 0x7b4   :  { %v1208_v5 = vsel %vm1207_vm14, %v6283_v49, %v1204_v20 }
 0x7b5   :  { %v1213_v28 = vsel %vm1210_vm2, %v1212_v45, %v1208_v5 }
 0x807   :  { %v1220_v37 = vpop.permute.xlu2 %1219 }
 0x808   :  { %v7444_v36 = vadd.f32 %v1220_v37, %v1216_v38 }
 0x80a   :  { %6284 = vtanh.f32 %v7444_v36 }
 0x810   :  { %v6285_v24 = vpop.eup %6284 }
 0x811   :  { %v1224_v46 = vmul.f32 %v6285_v24, %v1213_v28 }
 0x813   :  { %1225 = vst.msk [vmem:[#allocation5 + $0x28] sm:$0xff] %vm783_vm15, %v1224_v46  ;;  %v1233_v43 = vpack.c.bf16 %v1224_v46, %v1224_v46 }
 0x814   :  { %1226 = vst.msk [vmem:[#allocation5 + $0x70] sm:$0xff] %vm785_vm0, %v1224_v46 }
 0x815   :  { %5823 = vmatmul.msk.bf16.vlgmr.msrb.gmra.mxu1 %vm703_vm1, %v1233_v43  ;;  %5824 = vmatmul.msk.bf16.vlgmr.msra.gmra.mxu2 %vm703_vm1, %v1233_v43 }
 0x816   :  { %1593 = vmatpush.bf16.msrb.mxu1 %v6987_v63  ;;  %1606 = vmatpush.bf16.msra.mxu2 %v7001_v34 }
 0x81a   :  { %1594 = vmatpush.bf16.msrb.mxu1 %v7043_v54  ;;  %1607 = vmatpush.bf16.msra.mxu2 %v7065_v60 }
 0x81e   :  { %1595 = vmatpush.bf16.msrb.mxu1 %v7083_v6  ;;  %1608 = vmatpush.bf16.msra.mxu2 %v7097_v14 }
 0x822   :  { %1596 = vmatpush.bf16.msrb.mxu1 %v7111_v22  ;;  %1609 = vmatpush.bf16.msra.mxu2 %v7133_v32 }
 0x892   :  { %v1246_v18 = vpop.f32.mrf.mxu1 }
 0x893   :  { %v1263_v41 = vadd.f32 %v1246_v18, %v1231_v48 }
 0x895   :  { %v5825_v3 = vmul.f32 -1.442695, %v1263_v41 }
 0x897   :  { %6286 = vpow2.f32 %v5825_v3 }
 0x898   :  { %v1259_v11 = vpop.f32.mrf.mxu2 }
 0x899   :  { %v1264_v16 = vadd.f32 %v1259_v11, %v1232_v2 }
 0x89a   :  { %v1248_v4 = vpop.f32.mrf.mxu1 }
 0x89b   :  { %v5826_v8 = vmul.f32 -1.442695, %v1264_v16 }
 0x89d   :  { %v6287_v59 = vpop.eup %6286 }
 0x89e   :  { %v1271_v55 = vadd.f32 1.0, %v6287_v59 }
 0x8a0   :  { %6288 = vrcp.f32 %v1271_v55  ;;  %v1261_v44 = vpop.f32.mrf.mxu2  ;;  %v1284_v61 = vand.u32 2147483648, %v1271_v55  ;;  %v1282_v49 = vand.u32 2147483647, %v1271_v55  ;;  %vm1278_vm4 = vweird.f32 %v1271_v55 }
 0x8a1   :  { %6290 = vtanh.f32 %v1264_v16  ;;  %v349_v44 = vadd.f32 %v7330_v30, %v7285_v1 }
 0x8a2   :  { %v1285_v50 = vor.u32 1.1754944e-38, %v1284_v61  ;;  %vm1283_vm6 = vcmp.eq.f32.partialorder %v1282_v49, 8.507059e+37  ;;  %6292 = vpow2.f32 %v5826_v8  ;;  %v408_v49 = vadd.f32 %v7214_v23, %v7292_v19 }
 0x8a3   :  { %v1319_v10 = vadd.f32 %v7244_v58, %v349_v44 }
 0x8a6   :  { %v6289_v17 = vpop.eup %6288 }
 0x8a7   :  { %v1274_v40 = vmul.f32 %v6289_v17, %v1271_v55  ;;  %vm1279_vm3 = vweird.f32 %v6289_v17  ;;  %v6291_v38 = vpop.eup %6290 }
 0x8a8   :  { %vm1280_vm5 = vmor %vm1278_vm4, %vm1279_vm3  ;;  %v6293_v20 = vpop.eup %6292 }
 0x8a9   :  { %v1275_v13 = vsub.f32 1.0, %v1274_v40  ;;  %v1272_v47 = vadd.f32 1.0, %v6293_v20 }
 0x8ab   :  { %v1276_v9 = vmul.f32 %v6289_v17, %v1275_v13  ;;  %6294 = vrcp.f32 %v1272_v47  ;;  %v1299_v48 = vand.u32 2147483648, %v1272_v47  ;;  %vm1293_vm8 = vweird.f32 %v1272_v47 }
 0x8ac   :  { %v1297_v18 = vand.u32 2147483647, %v1272_v47 }
 0x8ad   :  { %v1277_v27 = vadd.f32 %v6289_v17, %v1276_v9  ;;  %v1300_v3 = vor.u32 1.1754944e-38, %v1299_v48 }
 0x8ae   :  { %vm1298_vm10 = vcmp.eq.f32.partialorder %v1297_v18, 8.507059e+37 }
 0x8af   :  { %v1281_v12 = vsel %vm1280_vm5, %v6289_v17, %v1277_v27  ;;  %v1320_v27 = vadd.f32 %v7250_v62, %v408_v49 }
 0x8b0   :  { %v1286_v37 = vsel %vm1283_vm6, %v1285_v50, %v1281_v12 }
 0x8b1   :  { %v1305_v21 = vmul.f32 %v6291_v38, %v1286_v37  ;;  %v6295_v42 = vpop.eup %6294  ;;  %v1304_v28 = vmul.f32 %v1286_v37, %v7444_v36 }
 0x8b2   :  { %v1289_v5 = vmul.f32 %v6295_v42, %v1272_v47  ;;  %vm1294_vm7 = vweird.f32 %v6295_v42 }
 0x8b3   :  { %1307 = vrot.lane.b32.xlu0 %v1305_v21, %s6819_s23  ;;  %vm1295_vm9 = vmor %vm1293_vm8, %vm1294_vm7 }
 0x8b4   :  { %v1290_v45 = vsub.f32 1.0, %v1289_v5 }
 0x8b6   :  { %v1291_v24 = vmul.f32 %v6295_v42, %v1290_v45 }
 0x8b8   :  { %v1292_v26 = vadd.f32 %v6295_v42, %v1291_v24 }
 0x8ba   :  { %v1296_v41 = vsel %vm1295_vm9, %v6295_v42, %v1292_v26 }
 0x8bb   :  { %v1301_v4 = vsel %vm1298_vm10, %v1300_v3, %v1296_v41 }
 0x925   :  { %v1308_v46 = vpop.permute.xlu0 %1307 }
 0x926   :  { %v7467_v43 = vadd.f32 %v1308_v46, %v1304_v28 }
 0x928   :  { %6296 = vtanh.f32 %v7467_v43 }
 0x92e   :  { %v6297_v11 = vpop.eup %6296 }
 0x92f   :  { %v1312_v59 = vmul.f32 %v6297_v11, %v1301_v4 }
 0x931   :  { %1313 = vst.msk [vmem:[#allocation5 + $0x30] sm:$0xff] %vm783_vm15, %v1312_v59  ;;  %v1321_v36 = vpack.c.bf16 %v1312_v59, %v1312_v59 }
 0x932   :  { %1314 = vst.msk [vmem:[#allocation5 + $0x68] sm:$0xff] %vm785_vm0, %v1312_v59 }
 0x933   :  { %5827 = vmatmul.msk.bf16.vlgmr.msrb.gmra.mxu3 %vm703_vm1, %v1321_v36  ;;  %5828 = vmatmul.msk.bf16.vlgmr.msrb.gmra.mxu0 %vm703_vm1, %v1321_v36 }
 0x934   :  { %1681 = vmatpush.bf16.msrb.mxu3 %v6987_v63  ;;  %1694 = vmatpush.bf16.msrb.mxu0 %v7001_v34 }
 0x938   :  { %1682 = vmatpush.bf16.msrb.mxu3 %v7043_v54  ;;  %1695 = vmatpush.bf16.msrb.mxu0 %v7065_v60 }
 0x93c   :  { %1683 = vmatpush.bf16.msrb.mxu3 %v7083_v6  ;;  %1696 = vmatpush.bf16.msrb.mxu0 %v7097_v14 }
 0x940   :  { %1684 = vmatpush.bf16.msrb.mxu3 %v7111_v22  ;;  %1697 = vmatpush.bf16.msrb.mxu0 %v7133_v32 }
 0x9b0   :  { %v1347_v55 = vpop.f32.mrf.mxu0 }
 0x9b1   :  { %v1352_v12 = vadd.f32 %v1347_v55, %v1320_v27 }
 0x9b3   :  { %v5830_v62 = vmul.f32 -1.442695, %v1352_v12 }
 0x9b6   :  { %v1334_v2 = vpop.f32.mrf.mxu3 }
 0x9b7   :  { %v1351_v17 = vadd.f32 %v1334_v2, %v1319_v10 }
 0x9b8   :  { %v1349_v16 = vpop.f32.mrf.mxu0 }
 0x9b9   :  { %v5829_v40 = vmul.f32 -1.442695, %v1351_v17  ;;  %v352_v17 = vadd.f32 %v7340_v7, %v7285_v1 }
 0x9bb   :  { %6298 = vpow2.f32 %v5829_v40  ;;  %v1407_v16 = vadd.f32 %v7238_v56, %v352_v17 }
 0x9be   :  { %v1336_v13 = vpop.f32.mrf.mxu3 }
 0x9c1   :  { %v6299_v61 = vpop.eup %6298 }
 0x9c2   :  { %v1359_v9 = vadd.f32 1.0, %v6299_v61 }
 0x9c4   :  { %6300 = vrcp.f32 %v1359_v9  ;;  %v1372_v58 = vand.u32 2147483648, %v1359_v9  ;;  %v1370_v21 = vand.u32 2147483647, %v1359_v9  ;;  %vm1366_vm12 = vweird.f32 %v1359_v9 }
 0x9c5   :  { %6302 = vtanh.f32 %v1352_v12 }
 0x9c6   :  { %v1373_v20 = vor.u32 1.1754944e-38, %v1372_v58  ;;  %vm1371_vm14 = vcmp.eq.f32.partialorder %v1370_v21, 8.507059e+37  ;;  %6304 = vpow2.f32 %v5830_v62 }
 0x9ca   :  { %v6301_v50 = vpop.eup %6300 }
 0x9cb   :  { %v1362_v38 = vmul.f32 %v6301_v50, %v1359_v9  ;;  %vm1367_vm11 = vweird.f32 %v6301_v50  ;;  %v6303_v42 = vpop.eup %6302 }
 0x9cc   :  { %vm1368_vm13 = vmor %vm1366_vm12, %vm1367_vm11  ;;  %v6305_v45 = vpop.eup %6304 }
 0x9cd   :  { %v1363_v30 = vsub.f32 1.0, %v1362_v38  ;;  %v1360_v24 = vadd.f32 1.0, %v6305_v45  ;;  %v411_v38 = vadd.f32 %v7218_v25, %v7292_v19 }
 0x9cf   :  { %v1364_v37 = vmul.f32 %v6301_v50, %v1363_v30  ;;  %6306 = vrcp.f32 %v1360_v24  ;;  %v1387_v4 = vand.u32 2147483648, %v1360_v24  ;;  %vm1381_vm3 = vweird.f32 %v1360_v24 }
 0x9d0   :  { %v1385_v59 = vand.u32 2147483647, %v1360_v24  ;;  %v1408_v30 = vadd.f32 %v7240_v57, %v411_v38  ;;  %v413_v38 = vadd.f32 %v7224_v29, %v7292_v19 }
 0x9d1   :  { %v1365_v8 = vadd.f32 %v6301_v50, %v1364_v37  ;;  %v1388_v55 = vor.u32 1.1754944e-38, %v1387_v4 }
 0x9d2   :  { %vm1386_vm5 = vcmp.eq.f32.partialorder %v1385_v59, 8.507059e+37 }
 0x9d3   :  { %v1369_v47 = vsel %vm1368_vm13, %v6301_v50, %v1365_v8 }
 0x9d4   :  { %v1374_v5 = vsel %vm1371_vm14, %v1373_v20, %v1369_v47 }
 0x9d5   :  { %v1393_v23 = vmul.f32 %v6303_v42, %v1374_v5  ;;  %v6307_v28 = vpop.eup %6306  ;;  %v1392_v18 = vmul.f32 %v1374_v5, %v7467_v43 }
 0x9d6   :  { %v1377_v46 = vmul.f32 %v6307_v28, %v1360_v24  ;;  %vm1382_vm2 = vweird.f32 %v6307_v28 }
 0x9d7   :  { %1395 = vrot.lane.b32.xlu1 %v1393_v23, %s6819_s23  ;;  %vm1383_vm4 = vmor %vm1381_vm3, %vm1382_vm2 }
 0x9d8   :  { %v1378_v26 = vsub.f32 1.0, %v1377_v46 }
 0x9da   :  { %v1379_v48 = vmul.f32 %v6307_v28, %v1378_v26 }
 0x9dc   :  { %v1380_v11 = vadd.f32 %v6307_v28, %v1379_v48 }
 0x9de   :  { %v1384_v36 = vsel %vm1383_vm4, %v6307_v28, %v1380_v11 }
 0x9df   :  { %v1389_v10 = vsel %vm1386_vm5, %v1388_v55, %v1384_v36 }
 0xa49   :  { %v1396_v41 = vpop.permute.xlu1 %1395 }
 0xa4a   :  { %v7490_v3 = vadd.f32 %v1396_v41, %v1392_v18 }
 0xa4c   :  { %6308 = vtanh.f32 %v7490_v3 }
 0xa52   :  { %v6309_v44 = vpop.eup %6308 }
 0xa53   :  { %v1400_v2 = vmul.f32 %v6309_v44, %v1389_v10 }
 0xa55   :  { %1401 = vst.msk [vmem:[#allocation5 + $0x38] sm:$0xff] %vm783_vm15, %v1400_v2  ;;  %v1409_v43 = vpack.c.bf16 %v1400_v2, %v1400_v2 }
 0xa56   :  { %1402 = vst.msk [vmem:[#allocation5 + $0x60] sm:$0xff] %vm785_vm0, %v1400_v2 }
 0xa57   :  { %5831 = vmatmul.msk.bf16.vlgmr.msra.gmra.mxu1 %vm703_vm1, %v1409_v43  ;;  %5832 = vmatmul.msk.bf16.vlgmr.msrb.gmra.mxu2 %vm703_vm1, %v1409_v43 }
 0xa58   :  { %1769 = vmatpush.bf16.msra.mxu1 %v6987_v63  ;;  %1782 = vmatpush.bf16.msrb.mxu2 %v7001_v34 }
 0xa5c   :  { %1770 = vmatpush.bf16.msra.mxu1 %v7043_v54  ;;  %1783 = vmatpush.bf16.msrb.mxu2 %v7065_v60 }
 0xa60   :  { %1771 = vmatpush.bf16.msra.mxu1 %v7083_v6  ;;  %1784 = vmatpush.bf16.msrb.mxu2 %v7097_v14 }
 0xa64   :  { %1772 = vmatpush.bf16.msra.mxu1 %v7111_v22  ;;  %1785 = vmatpush.bf16.msrb.mxu2 %v7133_v32 }
 0xad4   :  { %v1422_v40 = vpop.f32.mrf.mxu1 }
 0xad5   :  { %v1439_v13 = vadd.f32 %v1422_v40, %v1407_v16  ;;  %v354_v16 = vadd.f32 %v7346_v39, %v7285_v1 }
 0xad7   :  { %v5833_v61 = vmul.f32 -1.442695, %v1439_v13  ;;  %v1495_v40 = vadd.f32 %v7232_v53, %v354_v16 }
 0xad9   :  { %6310 = vpow2.f32 %v5833_v61 }
 0xada   :  { %v1435_v9 = vpop.f32.mrf.mxu2 }
 0xadb   :  { %v1440_v37 = vadd.f32 %v1435_v9, %v1408_v30  ;;  %v1496_v30 = vadd.f32 %v7234_v35, %v413_v38 }
 0xadc   :  { %v1424_v49 = vpop.f32.mrf.mxu1 }
 0xadd   :  { %v5834_v57 = vmul.f32 -1.442695, %v1440_v37 }
 0xadf   :  { %v6311_v27 = vpop.eup %6310 }
 0xae0   :  { %v1447_v50 = vadd.f32 1.0, %v6311_v27 }
 0xae2   :  { %6312 = vrcp.f32 %v1447_v50  ;;  %v1437_v12 = vpop.f32.mrf.mxu2  ;;  %v1460_v56 = vand.u32 2147483648, %v1447_v50  ;;  %v1458_v20 = vand.u32 2147483647, %v1447_v50  ;;  %vm1454_vm7 = vweird.f32 %v1447_v50 }
 0xae3   :  { %6314 = vtanh.f32 %v1440_v37 }
 0xae4   :  { %v1461_v42 = vor.u32 1.1754944e-38, %v1460_v56  ;;  %vm1459_vm9 = vcmp.eq.f32.partialorder %v1458_v20, 8.507059e+37  ;;  %6316 = vpow2.f32 %v5834_v57 }
 0xae8   :  { %v6313_v58 = vpop.eup %6312 }
 0xae9   :  { %v1450_v7 = vmul.f32 %v6313_v58, %v1447_v50  ;;  %vm1455_vm6 = vweird.f32 %v6313_v58  ;;  %v6315_v23 = vpop.eup %6314 }
 0xaea   :  { %vm1456_vm8 = vmor %vm1454_vm7, %vm1455_vm6  ;;  %v6317_v45 = vpop.eup %6316 }
 0xaeb   :  { %v1451_v21 = vsub.f32 1.0, %v1450_v7  ;;  %v1448_v24 = vadd.f32 1.0, %v6317_v45 }
 0xaed   :  { %v1452_v8 = vmul.f32 %v6313_v58, %v1451_v21  ;;  %6318 = vrcp.f32 %v1448_v24  ;;  %v1475_v59 = vand.u32 2147483648, %v1448_v24  ;;  %vm1469_vm11 = vweird.f32 %v1448_v24 }
 0xaee   :  { %v1473_v36 = vand.u32 2147483647, %v1448_v24 }
 0xaef   :  { %v1453_v47 = vadd.f32 %v6313_v58, %v1452_v8  ;;  %v1476_v44 = vor.u32 1.1754944e-38, %v1475_v59 }
 0xaf0   :  { %vm1474_vm13 = vcmp.eq.f32.partialorder %v1473_v36, 8.507059e+37 }
 0xaf1   :  { %v1457_v5 = vsel %vm1456_vm8, %v6313_v58, %v1453_v47 }
 0xaf2   :  { %v1462_v62 = vsel %vm1459_vm9, %v1461_v42, %v1457_v5 }
 0xaf3   :  { %v1481_v25 = vmul.f32 %v6315_v23, %v1462_v62  ;;  %v6319_v28 = vpop.eup %6318  ;;  %v1480_v18 = vmul.f32 %v1462_v62, %v7490_v3 }
 0xaf4   :  { %v1465_v46 = vmul.f32 %v6319_v28, %v1448_v24  ;;  %vm1470_vm10 = vweird.f32 %v6319_v28 }
 0xaf5   :  { %1483 = vrot.lane.b32.xlu2 %v1481_v25, %s6819_s23  ;;  %vm1471_vm12 = vmor %vm1469_vm11, %vm1470_vm10 }
 0xaf6   :  { %v1466_v26 = vsub.f32 1.0, %v1465_v46 }
 0xaf8   :  { %v1467_v48 = vmul.f32 %v6319_v28, %v1466_v26 }
 0xafa   :  { %v1468_v4 = vadd.f32 %v6319_v28, %v1467_v48 }
 0xafc   :  { %v1472_v55 = vsel %vm1471_vm12, %v6319_v28, %v1468_v4 }
 0xafd   :  { %v1477_v2 = vsel %vm1474_vm13, %v1476_v44, %v1472_v55 }
 0xb4f   :  { %v1484_v41 = vpop.permute.xlu2 %1483 }
 0xb50   :  { %v7513_v11 = vadd.f32 %v1484_v41, %v1480_v18 }
 0xb52   :  { %6320 = vtanh.f32 %v7513_v11 }
 0xb58   :  { %v6321_v10 = vpop.eup %6320 }
 0xb59   :  { %v1488_v43 = vmul.f32 %v6321_v10, %v1477_v2  ;;  %v357_v10 = vadd.f32 %v7348_v15, %v7285_v1 }
 0xb5b   :  { %1489 = vst.msk [vmem:[#allocation5 + $0x40] sm:$0xff] %vm783_vm15, %v1488_v43  ;;  %v1497_v3 = vpack.c.bf16 %v1488_v43, %v1488_v43  ;;  %v1583_v2 = vadd.f32 %v7226_v31, %v357_v10 }
 0xb5c   :  { %1490 = vst.msk [vmem:[#allocation5 + $0x58] sm:$0xff] %vm785_vm0, %v1488_v43 }
 0xb5d   :  { %5835 = vmatmul.msk.bf16.vlgmr.msra.gmra.mxu3 %vm703_vm1, %v1497_v3  ;;  %5836 = vmatmul.msk.bf16.vlgmr.msra.gmra.mxu0 %vm703_vm1, %v1497_v3 }
 0xb5e   :  { %1857 = vmatpush.bf16.msra.mxu3 %v6987_v63  ;;  %1870 = vmatpush.bf16.msra.mxu0 %v7001_v34 }
 0xb62   :  { %1858 = vmatpush.bf16.msra.mxu3 %v7043_v54  ;;  %1871 = vmatpush.bf16.msra.mxu0 %v7065_v60 }
 0xb66   :  { %1859 = vmatpush.bf16.msra.mxu3 %v7083_v6  ;;  %1872 = vmatpush.bf16.msra.mxu0 %v7097_v14 }
 0xb6a   :  { %1860 = vmatpush.bf16.msra.mxu3 %v7111_v22  ;;  %1873 = vmatpush.bf16.msra.mxu0 %v7133_v32 }
 0xbda   :  { %v1523_v17 = vpop.f32.mrf.mxu0 }
 0xbdb   :  { %v1528_v37 = vadd.f32 %v1523_v17, %v1496_v30 }
 0xbdd   :  { %v5838_v35 = vmul.f32 -1.442695, %v1528_v37 }
 0xbe0   :  { %v1510_v13 = vpop.f32.mrf.mxu3 }
 0xbe1   :  { %v1527_v61 = vadd.f32 %v1510_v13, %v1495_v40 }
 0xbe2   :  { %v1525_v9 = vpop.f32.mrf.mxu0 }
 0xbe3   :  { %v5837_v49 = vmul.f32 -1.442695, %v1527_v61  ;;  %v416_v9 = vadd.f32 %v7230_v52, %v7292_v19 }
 0xbe5   :  { %6322 = vpow2.f32 %v5837_v49 }
 0xbe8   :  { %v1512_v27 = vpop.f32.mrf.mxu3 }
 0xbe9   :  { %v1584_v27 = vadd.f32 %v7228_v33, %v416_v9 }
 0xbeb   :  { %v6323_v50 = vpop.eup %6322 }
 0xbec   :  { %v1535_v12 = vadd.f32 1.0, %v6323_v50 }
 0xbee   :  { %6324 = vrcp.f32 %v1535_v12  ;;  %v1548_v53 = vand.u32 2147483648, %v1535_v12  ;;  %v1546_v56 = vand.u32 2147483647, %v1535_v12  ;;  %vm1542_vm2 = vweird.f32 %v1535_v12 }
 0xbef   :  { %6326 = vtanh.f32 %v1528_v37 }
 0xbf0   :  { %v1549_v20 = vor.u32 1.1754944e-38, %v1548_v53  ;;  %vm1547_vm4 = vcmp.eq.f32.partialorder %v1546_v56, 8.507059e+37  ;;  %6328 = vpow2.f32 %v5838_v35 }
 0xbf4   :  { %v6325_v58 = vpop.eup %6324 }
 0xbf5   :  { %v1538_v7 = vmul.f32 %v6325_v58, %v1535_v12  ;;  %vm1543_vm14 = vweird.f32 %v6325_v58  ;;  %v6327_v42 = vpop.eup %6326 }
 0xbf6   :  { %vm1544_vm3 = vmor %vm1542_vm2, %vm1543_vm14  ;;  %v6329_v23 = vpop.eup %6328 }
 0xbf7   :  { %v1539_v39 = vsub.f32 1.0, %v1538_v7  ;;  %v1536_v62 = vadd.f32 1.0, %v6329_v23 }
 0xbf9   :  { %v1540_v21 = vmul.f32 %v6325_v58, %v1539_v39  ;;  %6330 = vrcp.f32 %v1536_v62  ;;  %v1563_v18 = vand.u32 2147483648, %v1536_v62  ;;  %vm1557_vm6 = vweird.f32 %v1536_v62 }
 0xbfa   :  { %v1561_v41 = vand.u32 2147483647, %v1536_v62 }
 0xbfb   :  { %v1541_v8 = vadd.f32 %v6325_v58, %v1540_v21  ;;  %v1564_v59 = vor.u32 1.1754944e-38, %v1563_v18 }
 0xbfc   :  { %vm1562_vm8 = vcmp.eq.f32.partialorder %v1561_v41, 8.507059e+37  ;;  %v359_v41 = vadd.f32 %v7350_v0, %v7285_v1 }
 0xbfd   :  { %v1545_v47 = vsel %vm1544_vm3, %v6325_v58, %v1541_v8 }
 0xbfe   :  { %v1550_v29 = vsel %vm1547_vm4, %v1549_v20, %v1545_v47 }
 0xbff   :  { %v1569_v5 = vmul.f32 %v6327_v42, %v1550_v29  ;;  %v6331_v25 = vpop.eup %6330  ;;  %v1568_v28 = vmul.f32 %v1550_v29, %v7513_v11 }
 0xc00   :  { %v1553_v57 = vmul.f32 %v6331_v25, %v1536_v62  ;;  %vm1558_vm5 = vweird.f32 %v6331_v25 }
 0xc01   :  { %1571 = vrot.lane.b32.xlu0 %v1569_v5, %s6819_s23  ;;  %vm1559_vm7 = vmor %vm1557_vm6, %vm1558_vm5 }
 0xc02   :  { %v1554_v45 = vsub.f32 1.0, %v1553_v57 }
 0xc04   :  { %v1555_v24 = vmul.f32 %v6331_v25, %v1554_v45 }
 0xc06   :  { %v1556_v48 = vadd.f32 %v6331_v25, %v1555_v24 }
 0xc08   :  { %v1560_v4 = vsel %vm1559_vm7, %v6331_v25, %v1556_v48 }
 0xc09   :  { %v1565_v55 = vsel %vm1562_vm8, %v1564_v59, %v1560_v4  ;;  %v1671_v4 = vadd.f32 %v7220_v51, %v359_v41 }
 0xc73   :  { %v1572_v46 = vpop.permute.xlu0 %1571 }
 0xc74   :  { %v7536_v26 = vadd.f32 %v1572_v46, %v1568_v28 }
 0xc76   :  { %6332 = vtanh.f32 %v7536_v26 }
 0xc7c   :  { %v6333_v36 = vpop.eup %6332 }
 0xc7d   :  { %v1576_v44 = vmul.f32 %v6333_v36, %v1565_v55 }
 0xc7f   :  { %1577 = vst.msk [vmem:[#allocation5 + $0x48] sm:$0xff] %vm783_vm15, %v1576_v44  ;;  %v1585_v11 = vpack.c.bf16 %v1576_v44, %v1576_v44 }
 0xc80   :  { %1578 = vst.msk [vmem:[#allocation5 + $0x50] sm:$0xff] %vm785_vm0, %v1576_v44 }
 0xc81   :  { %5839 = vmatmul.msk.bf16.vlgmr.msrb.gmra.mxu1 %vm703_vm1, %v1585_v11  ;;  %5840 = vmatmul.msk.bf16.vlgmr.msra.gmra.mxu2 %vm703_vm1, %v1585_v11 }
 0xc82   :  { %1945 = vmatpush.bf16.msrb.mxu1 %v6987_v63  ;;  %1958 = vmatpush.bf16.msra.mxu2 %v7001_v34 }
 0xc86   :  { %1946 = vmatpush.bf16.msrb.mxu1 %v7043_v54  ;;  %1959 = vmatpush.bf16.msra.mxu2 %v7065_v60 }
 0xc8a   :  { %1947 = vmatpush.bf16.msrb.mxu1 %v7083_v6  ;;  %1960 = vmatpush.bf16.msra.mxu2 %v7097_v14 }
 0xc8e   :  { %1948 = vmatpush.bf16.msrb.mxu1 %v7111_v22  ;;  %1961 = vmatpush.bf16.msra.mxu2 %v7133_v32 }
 0xcfe   :  { %v1598_v43 = vpop.f32.mrf.mxu1 }
 0xcff   :  { %v1615_v3 = vadd.f32 %v1598_v43, %v1583_v2  ;;  %v8914_v43 = vld [vmem:[#allocation27_spill] sm:$0xff] }
 0xd01   :  { %v5841_v17 = vmul.f32 -1.442695, %v1615_v3  ;;  %v418_v3 = vadd.f32 %v8914_v43, %v7292_v19 }
 0xd03   :  { %6334 = vpow2.f32 %v5841_v17  ;;  %v8915_v17 = vld [vmem:[#allocation26_spill] sm:$0xff] }
 0xd04   :  { %v1611_v16 = vpop.f32.mrf.mxu2 }
 0xd05   :  { %v1616_v12 = vadd.f32 %v1611_v16, %v1584_v27  ;;  %v1672_v16 = vadd.f32 %v8915_v17, %v418_v3 }
 0xd06   :  { %v1600_v40 = vpop.f32.mrf.mxu1 }
 0xd07   :  { %v5842_v33 = vmul.f32 -1.442695, %v1616_v12 }
 0xd09   :  { %v6335_v13 = vpop.eup %6334 }
 0xd0a   :  { %v1623_v61 = vadd.f32 1.0, %v6335_v13 }
 0xd0c   :  { %6336 = vrcp.f32 %v1623_v61  ;;  %v1613_v49 = vpop.f32.mrf.mxu2  ;;  %v1636_v31 = vand.u32 2147483648, %v1623_v61  ;;  %v1634_v58 = vand.u32 2147483647, %v1623_v61  ;;  %vm1630_vm10 = vweird.f32 %v1623_v61 }
 0xd0d   :  { %6338 = vtanh.f32 %v1616_v12 }
 0xd0e   :  { %v1637_v7 = vor.u32 1.1754944e-38, %v1636_v31  ;;  %vm1635_vm12 = vcmp.eq.f32.partialorder %v1634_v58, 8.507059e+37  ;;  %6340 = vpow2.f32 %v5842_v33 }
 0xd12   :  { %v6337_v50 = vpop.eup %6336 }
 0xd13   :  { %v1626_v15 = vmul.f32 %v6337_v50, %v1623_v61  ;;  %vm1631_vm9 = vweird.f32 %v6337_v50  ;;  %v6339_v52 = vpop.eup %6338 }
 0xd14   :  { %vm1632_vm11 = vmor %vm1630_vm10, %vm1631_vm9  ;;  %v6341_v56 = vpop.eup %6340 }
 0xd15   :  { %v1627_v38 = vsub.f32 1.0, %v1626_v15  ;;  %v1624_v8 = vadd.f32 1.0, %v6341_v56 }
 0xd17   :  { %v1628_v30 = vmul.f32 %v6337_v50, %v1627_v38  ;;  %6342 = vrcp.f32 %v1624_v8  ;;  %v1651_v25 = vand.u32 2147483648, %v1624_v8  ;;  %vm1645_vm14 = vweird.f32 %v1624_v8 }
 0xd18   :  { %v1649_v57 = vand.u32 2147483647, %v1624_v8 }
 0xd19   :  { %v1629_v37 = vadd.f32 %v6337_v50, %v1628_v30  ;;  %v1652_v24 = vor.u32 1.1754944e-38, %v1651_v25  ;;  %v8916_v25 = vld [vmem:[#allocation36_spill] sm:$0xff] }
 0xd1a   :  { %vm1650_vm3 = vcmp.eq.f32.partialorder %v1649_v57, 8.507059e+37  ;;  %v362_v57 = vadd.f32 %v8916_v25, %v7285_v1 }
 0xd1b   :  { %v1633_v39 = vsel %vm1632_vm11, %v6337_v50, %v1629_v37 }
 0xd1c   :  { %v1638_v53 = vsel %vm1635_vm12, %v1637_v7, %v1633_v39 }
 0xd1d   :  { %v1657_v21 = vmul.f32 %v6339_v52, %v1638_v53  ;;  %v6343_v20 = vpop.eup %6342  ;;  %v1656_v5 = vmul.f32 %v1638_v53, %v7536_v26 }
 0xd1e   :  { %v1641_v47 = vmul.f32 %v6343_v20, %v1624_v8  ;;  %vm1646_vm13 = vweird.f32 %v6343_v20 }
 0xd1f   :  { %1659 = vrot.lane.b32.xlu1 %v1657_v21, %s6819_s23  ;;  %vm1647_vm2 = vmor %vm1645_vm14, %vm1646_vm13 }
 0xd20   :  { %v1642_v42 = vsub.f32 1.0, %v1641_v47 }
 0xd22   :  { %v1643_v29 = vmul.f32 %v6343_v20, %v1642_v42 }
 0xd24   :  { %v1644_v62 = vadd.f32 %v6343_v20, %v1643_v29 }
 0xd26   :  { %v1648_v45 = vsel %vm1647_vm2, %v6343_v20, %v1644_v62 }
 0xd27   :  { %v1653_v46 = vsel %vm1650_vm3, %v1652_v24, %v1648_v45  ;;  %v8917_v45 = vld [vmem:[#allocation25_spill] sm:$0xff] }
 0xd28   :  { %v1759_v24 = vadd.f32 %v8917_v45, %v362_v57 }
 0xd91   :  { %v1660_v35 = vpop.permute.xlu1 %1659 }
 0xd92   :  { %v7559_v23 = vadd.f32 %v1660_v35, %v1656_v5 }
 0xd94   :  { %6344 = vtanh.f32 %v7559_v23 }
 0xd9a   :  { %v6345_v28 = vpop.eup %6344 }
 0xd9b   :  { %v1664_v48 = vmul.f32 %v6345_v28, %v1653_v46 }
 0xd9d   :  { %1665 = vst.msk [vmem:[#allocation5 + $0x50] sm:$0xff] %vm783_vm15, %v1664_v48  ;;  %v1673_v26 = vpack.c.bf16 %v1664_v48, %v1664_v48 }
 0xd9e   :  { %1666 = vst.msk [vmem:[#allocation5 + $0x48] sm:$0xff] %vm785_vm0, %v1664_v48 }
 0xd9f   :  { %5843 = vmatmul.msk.bf16.vlgmr.msrb.gmra.mxu3 %vm703_vm1, %v1673_v26  ;;  %5844 = vmatmul.msk.bf16.vlgmr.msrb.gmra.mxu0 %vm703_vm1, %v1673_v26 }
 0xda0   :  { %2033 = vmatpush.bf16.msrb.mxu3 %v6987_v63  ;;  %2046 = vmatpush.bf16.msrb.mxu0 %v7001_v34 }
 0xda4   :  { %2034 = vmatpush.bf16.msrb.mxu3 %v7043_v54  ;;  %2047 = vmatpush.bf16.msrb.mxu0 %v7065_v60 }
 0xda8   :  { %2035 = vmatpush.bf16.msrb.mxu3 %v7083_v6  ;;  %2048 = vmatpush.bf16.msrb.mxu0 %v7097_v14 }
 0xdac   :  { %2036 = vmatpush.bf16.msrb.mxu3 %v7111_v22  ;;  %2049 = vmatpush.bf16.msrb.mxu0 %v7133_v32 }
 0xe1c   :  { %v1699_v18 = vpop.f32.mrf.mxu0 }
 0xe1d   :  { %v1704_v13 = vadd.f32 %v1699_v18, %v1672_v16 }
 0xe1f   :  { %v5846_v30 = vmul.f32 -1.442695, %v1704_v13 }
 0xe22   :  { %v1686_v59 = vpop.f32.mrf.mxu3 }
 0xe23   :  { %v1703_v36 = vadd.f32 %v1686_v59, %v1671_v4  ;;  %v8918_v59 = vld [vmem:[#allocation28_spill] sm:$0xff] }
 0xe24   :  { %v1701_v55 = vpop.f32.mrf.mxu0 }
 0xe25   :  { %v5845_v44 = vmul.f32 -1.442695, %v1703_v36  ;;  %v421_v36 = vadd.f32 %v8918_v59, %v7292_v19 }
 0xe27   :  { %6346 = vpow2.f32 %v5845_v44  ;;  %v8919_v44 = vld [vmem:[#allocation24_spill] sm:$0xff] }
 0xe2a   :  { %v1688_v11 = vpop.f32.mrf.mxu3 }
 0xe2b   :  { %v1760_v11 = vadd.f32 %v8919_v44, %v421_v36 }
 0xe2d   :  { %v6347_v10 = vpop.eup %6346 }
 0xe2e   :  { %v1711_v2 = vadd.f32 1.0, %v6347_v10 }
 0xe30   :  { %6348 = vrcp.f32 %v1711_v2  ;;  %v1724_v51 = vand.u32 2147483648, %v1711_v2  ;;  %v1722_v49 = vand.u32 2147483647, %v1711_v2  ;;  %vm1718_vm5 = vweird.f32 %v1711_v2 }
 0xe31   :  { %6350 = vtanh.f32 %v1704_v13 }
 0xe32   :  { %v1725_v50 = vor.u32 1.1754944e-38, %v1724_v51  ;;  %vm1723_vm7 = vcmp.eq.f32.partialorder %v1722_v49, 8.507059e+37  ;;  %6352 = vpow2.f32 %v5846_v30 }
 0xe36   :  { %v6349_v40 = vpop.eup %6348 }
 0xe37   :  { %v1714_v61 = vmul.f32 %v6349_v40, %v1711_v2  ;;  %vm1719_vm4 = vweird.f32 %v6349_v40  ;;  %v6351_v15 = vpop.eup %6350 }
 0xe38   :  { %vm1720_vm6 = vmor %vm1718_vm5, %vm1719_vm4  ;;  %v6353_v58 = vpop.eup %6352 }
 0xe39   :  { %v1715_v0 = vsub.f32 1.0, %v1714_v61  ;;  %v1712_v37 = vadd.f32 1.0, %v6353_v58 }
 0xe3b   :  { %v1716_v9 = vmul.f32 %v6349_v40, %v1715_v0  ;;  %6354 = vrcp.f32 %v1712_v37  ;;  %v1739_v20 = vand.u32 2147483648, %v1712_v37  ;;  %vm1733_vm9 = vweird.f32 %v1712_v37 }
 0xe3c   :  { %v1737_v47 = vand.u32 2147483647, %v1712_v37 }
 0xe3d   :  { %v1717_v27 = vadd.f32 %v6349_v40, %v1716_v9  ;;  %v1740_v29 = vor.u32 1.1754944e-38, %v1739_v20 }
 0xe3e   :  { %vm1738_vm11 = vcmp.eq.f32.partialorder %v1737_v47, 8.507059e+37 }
 0xe3f   :  { %v1721_v12 = vsel %vm1720_vm6, %v6349_v40, %v1717_v27 }
 0xe40   :  { %v1726_v38 = vsel %vm1723_vm7, %v1725_v50, %v1721_v12 }
 0xe41   :  { %v1745_v31 = vmul.f32 %v6351_v15, %v1726_v38  ;;  %v6355_v7 = vpop.eup %6354  ;;  %v1744_v21 = vmul.f32 %v1726_v38, %v7559_v23 }
 0xe42   :  { %v1729_v39 = vmul.f32 %v6355_v7, %v1712_v37  ;;  %vm1734_vm8 = vweird.f32 %v6355_v7 }
 0xe43   :  { %1747 = vrot.lane.b32.xlu2 %v1745_v31, %s6819_s23  ;;  %vm1735_vm10 = vmor %vm1733_vm9, %vm1734_vm8 }
 0xe44   :  { %v1730_v52 = vsub.f32 1.0, %v1729_v39 }
 0xe46   :  { %v1731_v53 = vmul.f32 %v6355_v7, %v1730_v52 }
 0xe48   :  { %v1732_v8 = vadd.f32 %v6355_v7, %v1731_v53 }
 0xe4a   :  { %v1736_v42 = vsel %vm1735_vm10, %v6355_v7, %v1732_v8 }
 0xe4b   :  { %v1741_v35 = vsel %vm1738_vm11, %v1740_v29, %v1736_v42  ;;  %v8920_v29 = vld [vmem:[#allocation37_spill] sm:$0xff] }
 0xe9d   :  { %v1748_v33 = vpop.permute.xlu2 %1747 }
 0xe9e   :  { %v7582_v56 = vadd.f32 %v1748_v33, %v1744_v21 }
 0xea0   :  { %6356 = vtanh.f32 %v7582_v56 }
 0xea6   :  { %v6357_v5 = vpop.eup %6356 }
 0xea7   :  { %v1752_v62 = vmul.f32 %v6357_v5, %v1741_v35  ;;  %v364_v5 = vadd.f32 %v8920_v29, %v7285_v1  ;;  %v8921_v35 = vld [vmem:[#allocation23_spill] sm:$0xff] }
 0xea9   :  { %1753 = vst.msk [vmem:[#allocation5 + $0x58] sm:$0xff] %vm783_vm15, %v1752_v62  ;;  %v1761_v23 = vpack.c.bf16 %v1752_v62, %v1752_v62 }
 0xeaa   :  { %1754 = vst.msk [vmem:[#allocation5 + $0x40] sm:$0xff] %vm785_vm0, %v1752_v62  ;;  %v1847_v62 = vadd.f32 %v8921_v35, %v364_v5 }
 0xeab   :  { %5847 = vmatmul.msk.bf16.vlgmr.msra.gmra.mxu1 %vm703_vm1, %v1761_v23  ;;  %5848 = vmatmul.msk.bf16.vlgmr.msrb.gmra.mxu2 %vm703_vm1, %v1761_v23 }
 0xeac   :  { %2121 = vmatpush.bf16.msra.mxu1 %v6987_v63  ;;  %2134 = vmatpush.bf16.msrb.mxu2 %v7001_v34 }
 0xeb0   :  { %2122 = vmatpush.bf16.msra.mxu1 %v7043_v54  ;;  %2135 = vmatpush.bf16.msrb.mxu2 %v7065_v60 }
 0xeb4   :  { %2123 = vmatpush.bf16.msra.mxu1 %v7083_v6  ;;  %2136 = vmatpush.bf16.msrb.mxu2 %v7097_v14 }
 0xeb8   :  { %2124 = vmatpush.bf16.msra.mxu1 %v7111_v22  ;;  %2137 = vmatpush.bf16.msrb.mxu2 %v7133_v32 }
 0xf28   :  { %v1774_v28 = vpop.f32.mrf.mxu1 }
 0xf29   :  { %v1791_v46 = vadd.f32 %v1774_v28, %v1759_v24 }
 0xf2b   :  { %v5849_v48 = vmul.f32 -1.442695, %v1791_v46 }
 0xf2d   :  { %6358 = vpow2.f32 %v5849_v48  ;;  %v8922_v48 = vld [vmem:[#allocation29_spill] sm:$0xff] }
 0xf2e   :  { %v1787_v26 = vpop.f32.mrf.mxu2 }
 0xf2f   :  { %v1792_v2 = vadd.f32 %v1787_v26, %v1760_v11  ;;  %v423_v26 = vadd.f32 %v8922_v48, %v7292_v19 }
 0xf30   :  { %v1776_v18 = vpop.f32.mrf.mxu1 }
 0xf31   :  { %v5850_v27 = vmul.f32 -1.442695, %v1792_v2  ;;  %v8923_v18 = vld [vmem:[#allocation22_spill] sm:$0xff] }
 0xf33   :  { %v6359_v41 = vpop.eup %6358 }
 0xf34   :  { %v1799_v4 = vadd.f32 1.0, %v6359_v41  ;;  %v1848_v41 = vadd.f32 %v8923_v18, %v423_v26 }
 0xf36   :  { %6360 = vrcp.f32 %v1799_v4  ;;  %v1789_v55 = vpop.f32.mrf.mxu2  ;;  %v1812_v17 = vand.u32 2147483648, %v1799_v4  ;;  %v1810_v40 = vand.u32 2147483647, %v1799_v4  ;;  %vm1806_vm13 = vweird.f32 %v1799_v4 }
 0xf37   :  { %6362 = vtanh.f32 %v1792_v2 }
 0xf38   :  { %v1813_v61 = vor.u32 1.1754944e-38, %v1812_v17  ;;  %vm1811_vm2 = vcmp.eq.f32.partialorder %v1810_v40, 8.507059e+37  ;;  %6364 = vpow2.f32 %v5850_v27 }
 0xf3c   :  { %v6361_v10 = vpop.eup %6360 }
 0xf3d   :  { %v1802_v43 = vmul.f32 %v6361_v10, %v1799_v4  ;;  %vm1807_vm12 = vweird.f32 %v6361_v10  ;;  %v6363_v51 = vpop.eup %6362 }
 0xf3e   :  { %vm1808_vm14 = vmor %vm1806_vm13, %vm1807_vm12  ;;  %v6365_v50 = vpop.eup %6364 }
 0xf3f   :  { %v1803_v3 = vsub.f32 1.0, %v1802_v43  ;;  %v1800_v12 = vadd.f32 1.0, %v6365_v50 }
 0xf41   :  { %v1804_v16 = vmul.f32 %v6361_v10, %v1803_v3  ;;  %6366 = vrcp.f32 %v1800_v12  ;;  %v1827_v52 = vand.u32 2147483648, %v1800_v12  ;;  %vm1821_vm4 = vweird.f32 %v1800_v12 }
 0xf42   :  { %v1825_v53 = vand.u32 2147483647, %v1800_v12 }
 0xf43   :  { %v1805_v13 = vadd.f32 %v6361_v10, %v1804_v16  ;;  %v1828_v33 = vor.u32 1.1754944e-38, %v1827_v52 }
 0xf44   :  { %vm1826_vm6 = vcmp.eq.f32.partialorder %v1825_v53, 8.507059e+37 }
 0xf45   :  { %v1809_v0 = vsel %vm1808_vm14, %v6361_v10, %v1805_v13 }
 0xf46   :  { %v1814_v9 = vsel %vm1811_vm2, %v1813_v61, %v1809_v0 }
 0xf47   :  { %v1833_v49 = vmul.f32 %v6363_v51, %v1814_v9  ;;  %v6367_v15 = vpop.eup %6366  ;;  %v1832_v58 = vmul.f32 %v1814_v9, %v7582_v56 }
 0xf48   :  { %v1817_v38 = vmul.f32 %v6367_v15, %v1800_v12  ;;  %vm1822_vm3 = vweird.f32 %v6367_v15 }
 0xf49   :  { %1835 = vrot.lane.b32.xlu0 %v1833_v49, %s6819_s23  ;;  %vm1823_vm5 = vmor %vm1821_vm4, %vm1822_vm3 }
 0xf4a   :  { %v1818_v31 = vsub.f32 1.0, %v1817_v38 }
 0xf4c   :  { %v1819_v30 = vmul.f32 %v6367_v15, %v1818_v31 }
 0xf4e   :  { %v1820_v39 = vadd.f32 %v6367_v15, %v1819_v30 }
 0xf50   :  { %v1824_v21 = vsel %vm1823_vm5, %v6367_v15, %v1820_v39 }
 0xf51   :  { %v1829_v20 = vsel %vm1826_vm6, %v1828_v33, %v1824_v21  ;;  %v8924_v21 = vld [vmem:[#allocation38_spill] sm:$0xff] }
 0xf52   :  { %v367_v33 = vadd.f32 %v8924_v21, %v7285_v1 }
 0xfbb   :  { %v1836_v37 = vpop.permute.xlu0 %1835 }
 0xfbc   :  { %v7605_v7 = vadd.f32 %v1836_v37, %v1832_v58 }
 0xfbe   :  { %6368 = vtanh.f32 %v7605_v7 }
 0xfc4   :  { %v6369_v8 = vpop.eup %6368 }
 0xfc5   :  { %v1840_v47 = vmul.f32 %v6369_v8, %v1829_v20  ;;  %v8925_v8 = vld [vmem:[#allocation21_spill] sm:$0xff] }
 0xfc6   :  { %v1935_v20 = vadd.f32 %v8925_v8, %v367_v33 }
 0xfc7   :  { %1841 = vst.msk [vmem:[#allocation5 + $0x60] sm:$0xff] %vm783_vm15, %v1840_v47  ;;  %v1849_v56 = vpack.c.bf16 %v1840_v47, %v1840_v47 }
 0xfc8   :  { %1842 = vst.msk [vmem:[#allocation5 + $0x38] sm:$0xff] %vm785_vm0, %v1840_v47 }
 0xfc9   :  { %5851 = vmatmul.msk.bf16.vlgmr.msra.gmra.mxu3 %vm703_vm1, %v1849_v56  ;;  %5852 = vmatmul.msk.bf16.vlgmr.msra.gmra.mxu0 %vm703_vm1, %v1849_v56 }
 0xfca   :  { %2209 = vmatpush.bf16.msra.mxu3 %v6987_v63  ;;  %2222 = vmatpush.bf16.msra.mxu0 %v7001_v34 }
 0xfce   :  { %2210 = vmatpush.bf16.msra.mxu3 %v7043_v54  ;;  %2223 = vmatpush.bf16.msra.mxu0 %v7065_v60 }
 0xfd2   :  { %2211 = vmatpush.bf16.msra.mxu3 %v7083_v6  ;;  %2224 = vmatpush.bf16.msra.mxu0 %v7097_v14 }
 0xfd6   :  { %2212 = vmatpush.bf16.msra.mxu3 %v7111_v22  ;;  %2225 = vmatpush.bf16.msra.mxu0 %v7133_v32 }
0x1046   :  { %v1875_v42 = vpop.f32.mrf.mxu0 }
0x1047   :  { %v1880_v59 = vadd.f32 %v1875_v42, %v1848_v41 }
0x1049   :  { %v5854_v13 = vmul.f32 -1.442695, %v1880_v59 }
0x104c   :  { %v1862_v23 = vpop.f32.mrf.mxu3 }
0x104d   :  { %v1879_v25 = vadd.f32 %v1862_v23, %v1847_v62  ;;  %v8926_v23 = vld [vmem:[#allocation30_spill] sm:$0xff] }
0x104e   :  { %v1877_v57 = vpop.f32.mrf.mxu0 }
0x104f   :  { %v5853_v45 = vmul.f32 -1.442695, %v1879_v25  ;;  %v426_v25 = vadd.f32 %v8926_v23, %v7292_v19 }
0x1051   :  { %6370 = vpow2.f32 %v5853_v45  ;;  %v8927_v45 = vld [vmem:[#allocation20_spill] sm:$0xff] }
0x1054   :  { %v1864_v24 = vpop.f32.mrf.mxu3 }
0x1055   :  { %v1936_v24 = vadd.f32 %v8927_v45, %v426_v25 }
0x1057   :  { %v6371_v28 = vpop.eup %6370 }
0x1058   :  { %v1887_v46 = vadd.f32 1.0, %v6371_v28 }
0x105a   :  { %6372 = vrcp.f32 %v1887_v46  ;;  %v1900_v44 = vand.u32 2147483648, %v1887_v46  ;;  %v1898_v10 = vand.u32 2147483647, %v1887_v46  ;;  %vm1894_vm8 = vweird.f32 %v1887_v46 }
0x105b   :  { %6374 = vtanh.f32 %v1880_v59 }
0x105c   :  { %v1901_v43 = vor.u32 1.1754944e-38, %v1900_v44  ;;  %vm1899_vm10 = vcmp.eq.f32.partialorder %v1898_v10, 8.507059e+37  ;;  %6376 = vpow2.f32 %v5854_v13 }
0x1060   :  { %v6373_v4 = vpop.eup %6372 }
0x1061   :  { %v1890_v36 = vmul.f32 %v6373_v4, %v1887_v46  ;;  %vm1895_vm7 = vweird.f32 %v6373_v4  ;;  %v6375_v17 = vpop.eup %6374 }
0x1062   :  { %vm1896_vm9 = vmor %vm1894_vm8, %vm1895_vm7  ;;  %v6377_v61 = vpop.eup %6376 }
0x1063   :  { %v1891_v55 = vsub.f32 1.0, %v1890_v36  ;;  %v1888_v0 = vadd.f32 1.0, %v6377_v61 }
0x1065   :  { %v1892_v11 = vmul.f32 %v6373_v4, %v1891_v55  ;;  %6378 = vrcp.f32 %v1888_v0  ;;  %v1915_v31 = vand.u32 2147483648, %v1888_v0  ;;  %vm1909_vm12 = vweird.f32 %v1888_v0 }
0x1066   :  { %v1913_v30 = vand.u32 2147483647, %v1888_v0 }
0x1067   :  { %v1893_v2 = vadd.f32 %v6373_v4, %v1892_v11  ;;  %v1916_v37 = vor.u32 1.1754944e-38, %v1915_v31 }
0x1068   :  { %vm1914_vm14 = vcmp.eq.f32.partialorder %v1913_v30, 8.507059e+37 }
0x1069   :  { %v1897_v3 = vsel %vm1896_vm9, %v6373_v4, %v1893_v2 }
0x106a   :  { %v1902_v16 = vsel %vm1899_vm10, %v1901_v43, %v1897_v3 }
0x106b   :  { %v1921_v40 = vmul.f32 %v6375_v17, %v1902_v16  ;;  %v6379_v51 = vpop.eup %6378  ;;  %v1920_v50 = vmul.f32 %v1902_v16, %v7605_v7 }
0x106c   :  { %v1905_v9 = vmul.f32 %v6379_v51, %v1888_v0  ;;  %vm1910_vm11 = vweird.f32 %v6379_v51 }
0x106d   :  { %1923 = vrot.lane.b32.xlu1 %v1921_v40, %s6819_s23  ;;  %vm1911_vm13 = vmor %vm1909_vm12, %vm1910_vm11 }
0x106e   :  { %v1906_v49 = vsub.f32 1.0, %v1905_v9 }
0x1070   :  { %v1907_v27 = vmul.f32 %v6379_v51, %v1906_v49 }
0x1072   :  { %v1908_v38 = vadd.f32 %v6379_v51, %v1907_v27 }
0x1074   :  { %v1912_v58 = vsel %vm1911_vm13, %v6379_v51, %v1908_v38 }
0x1075   :  { %v1917_v52 = vsel %vm1914_vm14, %v1916_v37, %v1912_v58  ;;  %v8928_v37 = vld [vmem:[#allocation39_spill] sm:$0xff] }
0x10df   :  { %v1924_v12 = vpop.permute.xlu1 %1923 }
0x10e0   :  { %v7628_v15 = vadd.f32 %v1924_v12, %v1920_v50 }
0x10e2   :  { %6380 = vtanh.f32 %v7628_v15 }
0x10e8   :  { %v6381_v39 = vpop.eup %6380 }
0x10e9   :  { %v1928_v53 = vmul.f32 %v6381_v39, %v1917_v52  ;;  %v369_v39 = vadd.f32 %v8928_v37, %v7285_v1  ;;  %v8929_v52 = vld [vmem:[#allocation19_spill] sm:$0xff] }
0x10eb   :  { %1929 = vst.msk [vmem:[#allocation5 + $0x68] sm:$0xff] %vm783_vm15, %v1928_v53  ;;  %v1937_v7 = vpack.c.bf16 %v1928_v53, %v1928_v53 }
0x10ec   :  { %1930 = vst.msk [vmem:[#allocation5 + $0x30] sm:$0xff] %vm785_vm0, %v1928_v53 }
0x10ed   :  { %5855 = vmatmul.msk.bf16.vlgmr.msrb.gmra.mxu1 %vm703_vm1, %v1937_v7  ;;  %5856 = vmatmul.msk.bf16.vlgmr.msra.gmra.mxu2 %vm703_vm1, %v1937_v7 }
0x10ee   :  { %2297 = vmatpush.bf16.msrb.mxu1 %v6987_v63  ;;  %2310 = vmatpush.bf16.msra.mxu2 %v7001_v34 }
0x10f2   :  { %2298 = vmatpush.bf16.msrb.mxu1 %v7043_v54  ;;  %2311 = vmatpush.bf16.msra.mxu2 %v7065_v60 }
0x10f6   :  { %2299 = vmatpush.bf16.msrb.mxu1 %v7083_v6  ;;  %2312 = vmatpush.bf16.msra.mxu2 %v7097_v14 }
0x10fa   :  { %2300 = vmatpush.bf16.msrb.mxu1 %v7111_v22  ;;  %2313 = vmatpush.bf16.msra.mxu2 %v7133_v32 }
0x116a   :  { %v1950_v47 = vpop.f32.mrf.mxu1 }
0x116b   :  { %v1967_v56 = vadd.f32 %v1950_v47, %v1935_v20 }
0x116d   :  { %v5857_v42 = vmul.f32 -1.442695, %v1967_v56 }
0x116f   :  { %6382 = vpow2.f32 %v5857_v42 }
0x1170   :  { %v1963_v29 = vpop.f32.mrf.mxu2 }
0x1171   :  { %v1968_v46 = vadd.f32 %v1963_v29, %v1936_v24 }
0x1172   :  { %v1952_v5 = vpop.f32.mrf.mxu1 }
0x1173   :  { %v5858_v2 = vmul.f32 -1.442695, %v1968_v46 }
0x1175   :  { %v6383_v35 = vpop.eup %6382 }
0x1176   :  { %v1975_v62 = vadd.f32 1.0, %v6383_v35 }
0x1178   :  { %6384 = vrcp.f32 %v1975_v62  ;;  %v1965_v57 = vpop.f32.mrf.mxu2  ;;  %v1988_v18 = vand.u32 2147483648, %v1975_v62  ;;  %v1986_v4 = vand.u32 2147483647, %v1975_v62  ;;  %vm1982_vm3 = vweird.f32 %v1975_v62 }
0x1179   :  { %6386 = vtanh.f32 %v1968_v46 }
0x117a   :  { %v1989_v36 = vor.u32 1.1754944e-38, %v1988_v18  ;;  %vm1987_vm5 = vcmp.eq.f32.partialorder %v1986_v4, 8.507059e+37  ;;  %6388 = vpow2.f32 %v5858_v2 }
0x117e   :  { %v6385_v28 = vpop.eup %6384 }
0x117f   :  { %v1978_v48 = vmul.f32 %v6385_v28, %v1975_v62  ;;  %vm1983_vm2 = vweird.f32 %v6385_v28  ;;  %v6387_v44 = vpop.eup %6386 }
0x1180   :  { %vm1984_vm4 = vmor %vm1982_vm3, %vm1983_vm2  ;;  %v6389_v43 = vpop.eup %6388 }
0x1181   :  { %v1979_v26 = vsub.f32 1.0, %v1978_v48  ;;  %v1976_v3 = vadd.f32 1.0, %v6389_v43 }
0x1183   :  { %v1980_v41 = vmul.f32 %v6385_v28, %v1979_v26  ;;  %6390 = vrcp.f32 %v1976_v3  ;;  %v2003_v49 = vand.u32 2147483648, %v1976_v3  ;;  %vm1997_vm7 = vweird.f32 %v1976_v3 }
0x1184   :  { %v2001_v27 = vand.u32 2147483647, %v1976_v3 }
0x1185   :  { %v1981_v59 = vadd.f32 %v6385_v28, %v1980_v41  ;;  %v2004_v12 = vor.u32 1.1754944e-38, %v2003_v49 }
0x1186   :  { %vm2002_vm9 = vcmp.eq.f32.partialorder %v2001_v27, 8.507059e+37 }
0x1187   :  { %v1985_v55 = vsel %vm1984_vm4, %v6385_v28, %v1981_v59 }
0x1188   :  { %v1990_v11 = vsel %vm1987_vm5, %v1989_v36, %v1985_v55 }
0x1189   :  { %v2009_v10 = vmul.f32 %v6387_v44, %v1990_v11  ;;  %v6391_v17 = vpop.eup %6390  ;;  %v2008_v61 = vmul.f32 %v1990_v11, %v7628_v15 }
0x118a   :  { %v1993_v16 = vmul.f32 %v6391_v17, %v1976_v3  ;;  %vm1998_vm6 = vweird.f32 %v6391_v17 }
0x118b   :  { %2011 = vrot.lane.b32.xlu2 %v2009_v10, %s6819_s23  ;;  %vm1999_vm8 = vmor %vm1997_vm7, %vm1998_vm6 }
0x118c   :  { %v1994_v40 = vsub.f32 1.0, %v1993_v16 }
0x118e   :  { %v1995_v13 = vmul.f32 %v6391_v17, %v1994_v40  ;;  %v8932_v40 = vld [vmem:[#allocation40_spill] sm:$0xff] }
0x1190   :  { %v1996_v9 = vadd.f32 %v6391_v17, %v1995_v13  ;;  %v372_v13 = vadd.f32 %v8932_v40, %v7285_v1  ;;  %v8939_v40 = vld [vmem:[#allocation14_spill] sm:$0xff] }
0x1192   :  { %v2000_v50 = vsel %vm1999_vm8, %v6391_v17, %v1996_v9 }
0x1193   :  { %v2005_v31 = vsel %vm2002_vm9, %v2004_v12, %v2000_v50 }
0x11e5   :  { %v2012_v0 = vpop.permute.xlu2 %2011 }
0x11e6   :  { %v7651_v51 = vadd.f32 %v2012_v0, %v2008_v61  ;;  %v8933_v61 = vld [vmem:[#allocation17_spill] sm:$0xff] }
0x11e7   :  { %v2111_v0 = vadd.f32 %v8933_v61, %v372_v13 }
0x11e8   :  { %6392 = vtanh.f32 %v7651_v51 }
0x11ee   :  { %v6393_v38 = vpop.eup %6392 }
0x11ef   :  { %v2016_v30 = vmul.f32 %v6393_v38, %v2005_v31  ;;  %v8934_v31 = vld [vmem:[#allocation32_spill] sm:$0xff] }
0x11f1   :  { %2017 = vst.msk [vmem:[#allocation5 + $0x70] sm:$0xff] %vm783_vm15, %v2016_v30  ;;  %v2025_v15 = vpack.c.bf16 %v2016_v30, %v2016_v30 }
0x11f2   :  { %2018 = vst.msk [vmem:[#allocation5 + $0x28] sm:$0xff] %vm785_vm0, %v2016_v30  ;;  %v431_v30 = vadd.f32 %v8934_v31, %v7292_v19 }
0x11f3   :  { %5859 = vmatmul.msk.bf16.vlgmr.msrb.gmra.mxu3 %vm703_vm1, %v2025_v15  ;;  %5860 = vmatmul.msk.bf16.vlgmr.msrb.gmra.mxu0 %vm703_vm1, %v2025_v15 }
0x11f4   :  { %2385 = vmatpush.bf16.msrb.mxu3 %v6987_v63  ;;  %2398 = vmatpush.bf16.msrb.mxu0 %v7001_v34  ;;  %v2023_v63 = vadd.f32 %v8929_v52, %v369_v39 }
0x11f8   :  { %2386 = vmatpush.bf16.msrb.mxu3 %v7043_v54  ;;  %2399 = vmatpush.bf16.msrb.mxu0 %v7065_v60 }
0x11fc   :  { %2387 = vmatpush.bf16.msrb.mxu3 %v7083_v6  ;;  %2400 = vmatpush.bf16.msrb.mxu0 %v7097_v14  ;;  %v8930_v14 = vld [vmem:[#allocation31_spill] sm:$0xff] }
0x11fd   :  { %v428_v33 = vadd.f32 %v8930_v14, %v7292_v19 }
0x1200   :  { %2388 = vmatpush.bf16.msrb.mxu3 %v7111_v22  ;;  %2401 = vmatpush.bf16.msrb.mxu0 %v7133_v32  ;;  %v8931_v22 = vld [vmem:[#allocation18_spill] sm:$0xff] }
0x1201   :  { %v2024_v32 = vadd.f32 %v8931_v22, %v428_v33 }
0x1270   :  { %v2051_v58 = vpop.f32.mrf.mxu0 }
0x1271   :  { %v2056_v20 = vadd.f32 %v2051_v58, %v2024_v32  ;;  %v8935_v58 = vld [vmem:[#allocation16_spill] sm:$0xff] }
0x1272   :  { %v2112_v37 = vadd.f32 %v8935_v58, %v431_v30 }
0x1273   :  { %v5862_v24 = vmul.f32 -1.442695, %v2056_v20 }
0x1276   :  { %v2038_v53 = vpop.f32.mrf.mxu3 }
0x1277   :  { %v2055_v34 = vadd.f32 %v2038_v53, %v2023_v63 }
0x1278   :  { %v2053_v7 = vpop.f32.mrf.mxu0 }
0x1279   :  { %v5861_v54 = vmul.f32 -1.442695, %v2055_v34 }
0x127b   :  { %6394 = vpow2.f32 %v5861_v54 }
0x127e   :  { %v2040_v60 = vpop.f32.mrf.mxu3 }
0x1281   :  { %v6395_v21 = vpop.eup %6394 }
0x1282   :  { %v2063_v6 = vadd.f32 1.0, %v6395_v21 }
0x1284   :  { %6396 = vrcp.f32 %v2063_v6  ;;  %v2076_v42 = vand.u32 2147483648, %v2063_v6  ;;  %v2074_v5 = vand.u32 2147483647, %v2063_v6  ;;  %vm2070_vm11 = vweird.f32 %v2063_v6 }
0x1285   :  { %6398 = vtanh.f32 %v2056_v20 }
0x1286   :  { %v2077_v62 = vor.u32 1.1754944e-38, %v2076_v42  ;;  %vm2075_vm13 = vcmp.eq.f32.partialorder %v2074_v5, 8.507059e+37  ;;  %6400 = vpow2.f32 %v5862_v24 }
0x128a   :  { %v6397_v8 = vpop.eup %6396 }
0x128b   :  { %v2066_v47 = vmul.f32 %v6397_v8, %v2063_v6  ;;  %vm2071_vm10 = vweird.f32 %v6397_v8  ;;  %v6399_v25 = vpop.eup %6398 }
0x128c   :  { %vm2072_vm12 = vmor %vm2070_vm11, %vm2071_vm10  ;;  %v6401_v28 = vpop.eup %6400 }
0x128d   :  { %v2067_v56 = vsub.f32 1.0, %v2066_v47  ;;  %v2064_v46 = vadd.f32 1.0, %v6401_v28 }
0x128f   :  { %v2068_v29 = vmul.f32 %v6397_v8, %v2067_v56  ;;  %6402 = vrcp.f32 %v2064_v46  ;;  %v2091_v44 = vand.u32 2147483648, %v2064_v46  ;;  %vm2085_vm2 = vweird.f32 %v2064_v46 }
0x1290   :  { %v2089_v11 = vand.u32 2147483647, %v2064_v46 }
0x1291   :  { %v2069_v35 = vadd.f32 %v6397_v8, %v2068_v29  ;;  %v2092_v2 = vor.u32 1.1754944e-38, %v2091_v44 }
0x1292   :  { %vm2090_vm4 = vcmp.eq.f32.partialorder %v2089_v11, 8.507059e+37 }
0x1293   :  { %v2073_v23 = vsel %vm2072_vm12, %v6397_v8, %v2069_v35 }
0x1294   :  { %v2078_v57 = vsel %vm2075_vm13, %v2077_v62, %v2073_v23 }
0x1295   :  { %v2097_v45 = vmul.f32 %v6399_v25, %v2078_v57  ;;  %v6403_v48 = vpop.eup %6402  ;;  %v2096_v4 = vmul.f32 %v2078_v57, %v7651_v51 }
0x1296   :  { %v2081_v26 = vmul.f32 %v6403_v48, %v2064_v46  ;;  %vm2086_vm14 = vweird.f32 %v6403_v48 }
0x1297   :  { %2099 = vrot.lane.b32.xlu0 %v2097_v45, %s6819_s23  ;;  %vm2087_vm3 = vmor %vm2085_vm2, %vm2086_vm14 }
0x1298   :  { %v2082_v18 = vsub.f32 1.0, %v2081_v26 }
0x129a   :  { %v2083_v41 = vmul.f32 %v6403_v48, %v2082_v18 }
0x129c   :  { %v2084_v55 = vadd.f32 %v6403_v48, %v2083_v41  ;;  %v8936_v41 = vld [vmem:[#allocation41_spill] sm:$0xff] }
0x129e   :  { %v2088_v10 = vsel %vm2087_vm3, %v6403_v48, %v2084_v55 }
0x129f   :  { %v2093_v3 = vsel %vm2090_vm4, %v2092_v2, %v2088_v10 }
0x1309   :  { %v2100_v59 = vpop.permute.xlu0 %2099 }
0x130a   :  { %v2102_v36 = vadd.f32 %v2100_v59, %v2096_v4  ;;  %v374_v4 = vadd.f32 %v8936_v41, %v7285_v1  ;;  %v8937_v59 = vld [vmem:[#allocation15_spill] sm:$0xff] }
0x130c   :  { %6404 = vtanh.f32 %v2102_v36 }
0x1312   :  { %v6405_v43 = vpop.eup %6404 }
0x1313   :  { %v2104_v17 = vmul.f32 %v6405_v43, %v2093_v3 }
0x1315   :  { %2105 = vst.msk [vmem:[#allocation5 + $0x78] sm:$0xff] %vm783_vm15, %v2104_v17  ;;  %v2113_v16 = vpack.c.bf16 %v2104_v17, %v2104_v17 }
0x1316   :  { %2106 = vst.msk [vmem:[#allocation5 + $0x20] sm:$0xff] %vm785_vm0, %v2104_v17  ;;  %v8938_v17 = vld [vmem:[#allocation33_spill] sm:$0xff] }
0x1317   :  { %5863 = vmatmul.msk.bf16.vlgmr.msra.gmra.mxu1 %vm703_vm1, %v2113_v16  ;;  %5864 = vmatmul.msk.bf16.vlgmr.msrb.gmra.mxu2 %vm703_vm1, %v2113_v16  ;;  %v433_v16 = vadd.f32 %v8938_v17, %v7292_v19 }
0x1319   :  { %v2200_v13 = vadd.f32 %v8939_v40, %v433_v16 }
0x1394   :  { %v2126_v51 = vpop.f32.mrf.mxu1 }
0x1395   :  { %v2143_v9 = vadd.f32 %v2126_v51, %v2111_v0 }
0x1397   :  { %v5865_v49 = vmul.f32 -1.442695, %v2143_v9 }
0x1399   :  { %6406 = vpow2.f32 %v5865_v49 }
0x139a   :  { %v2139_v27 = vpop.f32.mrf.mxu2 }
0x139b   :  { %v2144_v52 = vadd.f32 %v2139_v27, %v2112_v37 }
0x139c   :  { %v2128_v50 = vpop.f32.mrf.mxu1 }
0x139d   :  { %v5866_v32 = vmul.f32 -1.442695, %v2144_v52 }
0x139f   :  { %v6407_v12 = vpop.eup %6406 }
0x13a0   :  { %v2151_v38 = vadd.f32 1.0, %v6407_v12 }
0x13a2   :  { %6408 = vrcp.f32 %v2151_v38  ;;  %v2141_v15 = vpop.f32.mrf.mxu2  ;;  %v2164_v34 = vand.u32 2147483648, %v2151_v38  ;;  %v2162_v54 = vand.u32 2147483647, %v2151_v38  ;;  %vm2158_vm6 = vweird.f32 %v2151_v38 }
0x13a3   :  { %6410 = vtanh.f32 %v2144_v52 }
0x13a4   :  { %v2165_v21 = vor.u32 1.1754944e-38, %v2164_v34  ;;  %vm2163_vm8 = vcmp.eq.f32.partialorder %v2162_v54, 8.507059e+37  ;;  %6412 = vpow2.f32 %v5866_v32 }
0x13a8   :  { %v6409_v39 = vpop.eup %6408 }
0x13a9   :  { %v2154_v63 = vmul.f32 %v6409_v39, %v2151_v38  ;;  %vm2159_vm5 = vweird.f32 %v6409_v39  ;;  %v6411_v14 = vpop.eup %6410 }
0x13aa   :  { %vm2160_vm7 = vmor %vm2158_vm6, %vm2159_vm5  ;;  %v6413_v8 = vpop.eup %6412 }
0x13ab   :  { %v2155_v53 = vsub.f32 1.0, %v2154_v63  ;;  %v2152_v20 = vadd.f32 1.0, %v6413_v8 }
0x13ad   :  { %v2156_v7 = vmul.f32 %v6409_v39, %v2155_v53  ;;  %6414 = vrcp.f32 %v2152_v20  ;;  %v2179_v25 = vand.u32 2147483648, %v2152_v20  ;;  %vm2173_vm10 = vweird.f32 %v2152_v20 }
0x13ae   :  { %v2177_v57 = vand.u32 2147483647, %v2152_v20 }
0x13af   :  { %v2157_v60 = vadd.f32 %v6409_v39, %v2156_v7  ;;  %v2180_v24 = vor.u32 1.1754944e-38, %v2179_v25 }
0x13b0   :  { %vm2178_vm12 = vcmp.eq.f32.partialorder %v2177_v57, 8.507059e+37 }
0x13b1   :  { %v2161_v6 = vsel %vm2160_vm7, %v6409_v39, %v2157_v60 }
0x13b2   :  { %v2166_v33 = vsel %vm2163_vm8, %v2165_v21, %v2161_v6 }
0x13b3   :  { %v2185_v22 = vmul.f32 %v6411_v14, %v2166_v33  ;;  %v6415_v47 = vpop.eup %6414  ;;  %v2184_v5 = vmul.f32 %v2166_v33, %v2102_v36  ;;  %v2199_v36 = vadd.f32 %v8937_v59, %v374_v4 }
0x13b4   :  { %v2169_v56 = vmul.f32 %v6415_v47, %v2152_v20  ;;  %vm2174_vm9 = vweird.f32 %v6415_v47 }
0x13b5   :  { %2187 = vrot.lane.b32.xlu1 %v2185_v22, %s6819_s23  ;;  %vm2175_vm11 = vmor %vm2173_vm10, %vm2174_vm9 }
0x13b6   :  { %v2170_v42 = vsub.f32 1.0, %v2169_v56 }
0x13b8   :  { %v2171_v29 = vmul.f32 %v6415_v47, %v2170_v42  ;;  %v8940_v42 = vld [vmem:[#allocation42_spill] sm:$0xff] }
0x13ba   :  { %v2172_v23 = vadd.f32 %v6415_v47, %v2171_v29  ;;  %v377_v29 = vadd.f32 %v8940_v42, %v7285_v1  ;;  %v8947_v42 = vld [vmem:[#allocation10_spill] sm:$0xff] }
0x13bc   :  { %v2176_v45 = vsel %vm2175_vm11, %v6415_v47, %v2172_v23 }
0x13bd   :  { %v2181_v46 = vsel %vm2178_vm12, %v2180_v24, %v2176_v45 }
0x1427   :  { %v2188_v35 = vpop.permute.xlu1 %2187 }
0x1428   :  { %v2190_v62 = vadd.f32 %v2188_v35, %v2184_v5  ;;  %v8941_v5 = vld [vmem:[#allocation13_spill] sm:$0xff] }
0x1429   :  { %v2287_v35 = vadd.f32 %v8941_v5, %v377_v29 }
0x142a   :  { %6416 = vtanh.f32 %v2190_v62 }
0x1430   :  { %v6417_v28 = vpop.eup %6416 }
0x1431   :  { %v2192_v48 = vmul.f32 %v6417_v28, %v2181_v46  ;;  %v8942_v46 = vld [vmem:[#allocation34_spill] sm:$0xff] }
0x1433   :  { %2193 = vst.msk [vmem:[#allocation5 + $0x80] sm:$0xff] %vm783_vm15, %v2192_v48  ;;  %v2201_v26 = vpack.c.bf16 %v2192_v48, %v2192_v48 }
0x1434   :  { %2194 = vst.msk [vmem:[#allocation5 + $0x18] sm:$0xff] %vm785_vm0, %v2192_v48  ;;  %v436_v48 = vadd.f32 %v8942_v46, %v7292_v19 }
0x1435   :  { %5867 = vmatmul.msk.bf16.vlgmr.msra.gmra.mxu3 %vm703_vm1, %v2201_v26  ;;  %5868 = vmatmul.msk.bf16.vlgmr.msra.gmra.mxu0 %vm703_vm1, %v2201_v26 }
0x14b2   :  { %v2227_v18 = vpop.f32.mrf.mxu0 }
0x14b3   :  { %v2232_v0 = vadd.f32 %v2227_v18, %v2200_v13  ;;  %v8943_v18 = vld [vmem:[#allocation12_spill] sm:$0xff] }
0x14b4   :  { %v2288_v41 = vadd.f32 %v8943_v18, %v436_v48 }
0x14b5   :  { %v5870_v37 = vmul.f32 -1.442695, %v2232_v0 }
0x14b8   :  { %v2214_v55 = vpop.f32.mrf.mxu3 }
0x14b9   :  { %v2231_v44 = vadd.f32 %v2214_v55, %v2199_v36 }
0x14ba   :  { %v2229_v11 = vpop.f32.mrf.mxu0 }
0x14bb   :  { %v5869_v10 = vmul.f32 -1.442695, %v2231_v44 }
0x14bd   :  { %6418 = vpow2.f32 %v5869_v10 }
0x14c0   :  { %v2216_v2 = vpop.f32.mrf.mxu3 }
0x14c3   :  { %v6419_v43 = vpop.eup %6418 }
0x14c4   :  { %v2239_v3 = vadd.f32 1.0, %v6419_v43 }
0x14c6   :  { %6420 = vrcp.f32 %v2239_v3  ;;  %v2252_v49 = vand.u32 2147483648, %v2239_v3  ;;  %v2250_v50 = vand.u32 2147483647, %v2239_v3  ;;  %vm2246_vm14 = vweird.f32 %v2239_v3 }
0x14c7   :  { %6422 = vtanh.f32 %v2232_v0 }
0x14c8   :  { %v2253_v38 = vor.u32 1.1754944e-38, %v2252_v49  ;;  %vm2251_vm3 = vcmp.eq.f32.partialorder %v2250_v50, 8.507059e+37  ;;  %6424 = vpow2.f32 %v5870_v37 }
0x14cc   :  { %v6421_v61 = vpop.eup %6420 }
0x14cd   :  { %v2242_v51 = vmul.f32 %v6421_v61, %v2239_v3  ;;  %vm2247_vm13 = vweird.f32 %v6421_v61  ;;  %v6423_v30 = vpop.eup %6422 }
0x14ce   :  { %vm2248_vm2 = vmor %vm2246_vm14, %vm2247_vm13  ;;  %v6425_v39 = vpop.eup %6424 }
0x14cf   :  { %v2243_v9 = vsub.f32 1.0, %v2242_v51  ;;  %v2240_v52 = vadd.f32 1.0, %v6425_v39 }
0x14d1   :  { %v2244_v27 = vmul.f32 %v6421_v61, %v2243_v9  ;;  %6426 = vrcp.f32 %v2240_v52  ;;  %v2267_v14 = vand.u32 2147483648, %v2240_v52  ;;  %vm2261_vm5 = vweird.f32 %v2240_v52 }
0x14d2   :  { %v2265_v33 = vand.u32 2147483647, %v2240_v52 }
0x14d3   :  { %v2245_v12 = vadd.f32 %v6421_v61, %v2244_v27  ;;  %v2268_v32 = vor.u32 1.1754944e-38, %v2267_v14 }
0x14d4   :  { %vm2266_vm7 = vcmp.eq.f32.partialorder %v2265_v33, 8.507059e+37 }
0x14d5   :  { %v2249_v31 = vsel %vm2248_vm2, %v6421_v61, %v2245_v12 }
0x14d6   :  { %v2254_v15 = vsel %vm2251_vm3, %v2253_v38, %v2249_v31 }
0x14d7   :  { %v2273_v58 = vmul.f32 %v6423_v30, %v2254_v15  ;;  %v6427_v63 = vpop.eup %6426  ;;  %v2272_v54 = vmul.f32 %v2254_v15, %v2190_v62 }
0x14d8   :  { %v2257_v53 = vmul.f32 %v6427_v63, %v2240_v52  ;;  %vm2262_vm4 = vweird.f32 %v6427_v63 }
0x14d9   :  { %2275 = vrot.lane.b32.xlu2 %v2273_v58, %s6819_s23  ;;  %vm2263_vm6 = vmor %vm2261_vm5, %vm2262_vm4 }
0x14da   :  { %v2258_v34 = vsub.f32 1.0, %v2257_v53 }
0x14dc   :  { %v2259_v7 = vmul.f32 %v6427_v63, %v2258_v34 }
0x14de   :  { %v2260_v6 = vadd.f32 %v6427_v63, %v2259_v7  ;;  %v8944_v7 = vld [vmem:[#allocation43_spill] sm:$0xff] }
0x14e0   :  { %v2264_v22 = vsel %vm2263_vm6, %v6427_v63, %v2260_v6 }
0x14e1   :  { %v2269_v20 = vsel %vm2266_vm7, %v2268_v32, %v2264_v22 }
0x1533   :  { %v2276_v60 = vpop.permute.xlu2 %2275 }
0x1534   :  { %v2278_v21 = vadd.f32 %v2276_v60, %v2272_v54  ;;  %v379_v54 = vadd.f32 %v8944_v7, %v7285_v1  ;;  %v8945_v60 = vld [vmem:[#allocation11_spill] sm:$0xff]  ;;  %v6165_v7 = vld [vmem:[%s8875_s3 + $0xc4] sm:$0xf] }
0x1536   :  { %6428 = vtanh.f32 %v2278_v21 }
0x153c   :  { %v6429_v8 = vpop.eup %6428 }
0x153d   :  { %v2280_v47 = vmul.f32 %v6429_v8, %v2269_v20 }
0x153f   :  { %2281 = vst.msk [vmem:[#allocation5 + $0x88] sm:$0xff] %vm783_vm15, %v2280_v47  ;;  %v2289_v56 = vpack.c.bf16 %v2280_v47, %v2280_v47 }
0x1540   :  { %2282 = vst.msk [vmem:[#allocation5 + $0x10] sm:$0xff] %vm785_vm0, %v2280_v47  ;;  %v8946_v47 = vld [vmem:[#allocation35_spill] sm:$0xff] }
0x1541   :  { %5871 = vmatmul.msk.bf16.vlgmr.msrb.gmra.mxu1 %vm703_vm1, %v2289_v56  ;;  %5872 = vmatmul.msk.bf16.vlgmr.msra.gmra.mxu2 %vm703_vm1, %v2289_v56  ;;  %v438_v56 = vadd.f32 %v8946_v47, %v7292_v19  ;;  %v5883_v47 = vld [vmem:[%s8875_s3 + $0x78] sm:$0xf0] }
0x1543   :  { %v2376_v29 = vadd.f32 %v8947_v42, %v438_v56  ;;  %v6163_v56 = vld [vmem:[%s8875_s3 + $0xb4] sm:$0xf]  ;;  %v5935_v42 = vld [vmem:[%s8875_s3 + $0xb8] sm:$0xf0] }
0x15be   :  { %v2302_v62 = vpop.f32.mrf.mxu1 }
0x15bf   :  { %v2319_v23 = vadd.f32 %v2302_v62, %v2287_v35 }
0x15c1   :  { %v5873_v25 = vmul.f32 -1.442695, %v2319_v23 }
0x15c3   :  { %6430 = vpow2.f32 %v5873_v25 }
0x15c4   :  { %v2315_v57 = vpop.f32.mrf.mxu2 }
0x15c5   :  { %v2320_v59 = vadd.f32 %v2315_v57, %v2288_v41 }
0x15c6   :  { %v2304_v45 = vpop.f32.mrf.mxu1 }
0x15c7   :  { %v5874_v13 = vmul.f32 -1.442695, %v2320_v59 }
0x15c9   :  { %v6431_v24 = vpop.eup %6430 }
0x15ca   :  { %v2327_v28 = vadd.f32 1.0, %v6431_v24 }
0x15cc   :  { %6432 = vrcp.f32 %v2327_v28  ;;  %v2317_v26 = vpop.f32.mrf.mxu2  ;;  %v2340_v44 = vand.u32 2147483648, %v2327_v28  ;;  %v2338_v10 = vand.u32 2147483647, %v2327_v28  ;;  %vm2334_vm9 = vweird.f32 %v2327_v28 }
0x15cd   :  { %6434 = vtanh.f32 %v2320_v59  ;;  %v6162_v59 = vld [vmem:[%s8875_s3 + $0xa4] sm:$0xf0] }
0x15ce   :  { %v2341_v43 = vor.u32 1.1754944e-38, %v2340_v44  ;;  %vm2339_vm11 = vcmp.eq.f32.partialorder %v2338_v10, 8.507059e+37  ;;  %6436 = vpow2.f32 %v5874_v13  ;;  %v6170_v44 = vld [vmem:[%s8875_s3 + $0xe4] sm:$0xf0]  ;;  %v5907_v10 = vld [vmem:[%s8875_s3 + $0xa8] sm:$0xf0] }
0x15cf   :  { %v6160_v13 = vld [vmem:[%s8875_s3 + $0x94] sm:$0xf0] }
0x15d2   :  { %v6433_v4 = vpop.eup %6432 }
0x15d3   :  { %v2330_v36 = vmul.f32 %v6433_v4, %v2327_v28  ;;  %vm2335_vm8 = vweird.f32 %v6433_v4  ;;  %v6435_v17 = vpop.eup %6434 }
0x15d4   :  { %vm2336_vm10 = vmor %vm2334_vm9, %vm2335_vm8  ;;  %v6437_v61 = vpop.eup %6436 }
0x15d5   :  { %v2331_v55 = vsub.f32 1.0, %v2330_v36  ;;  %v2328_v0 = vadd.f32 1.0, %v6437_v61  ;;  %v5957_v36 = vld [vmem:[%s8875_s3 + $0xe0] sm:$0xf]  ;;  %v5949_v61 = vld [vmem:[%s8875_s3 + $0xd0] sm:$0xf] }
0x15d7   :  { %v2332_v11 = vmul.f32 %v6433_v4, %v2331_v55  ;;  %6438 = vrcp.f32 %v2328_v0  ;;  %v2355_v30 = vand.u32 2147483648, %v2328_v0  ;;  %vm2349_vm13 = vweird.f32 %v2328_v0 }
0x15d8   :  { %v2353_v15 = vand.u32 2147483647, %v2328_v0 }
0x15d9   :  { %v2333_v2 = vadd.f32 %v6433_v4, %v2332_v11  ;;  %v2356_v37 = vor.u32 1.1754944e-38, %v2355_v30  ;;  %v6161_v11 = vld [vmem:[%s8875_s3 + $0xa4] sm:$0xf]  ;;  %v5889_v30 = vld [vmem:[%s8875_s3 + $0x80] sm:$0xf] }
0x15da   :  { %vm2354_vm2 = vcmp.eq.f32.partialorder %v2353_v15, 8.507059e+37  ;;  %v6158_v15 = vld [vmem:[%s8875_s3 + $0x84] sm:$0xf0] }
0x15db   :  { %v2337_v3 = vsel %vm2336_vm10, %v6433_v4, %v2333_v2  ;;  %v5905_v4 = vld [vmem:[%s8875_s3 + $0xa0] sm:$0xf]  ;;  %v5958_v2 = vor.u32 %v6170_v44, %v5957_v36 }
0x15dc   :  { %v2342_v16 = vsel %vm2339_vm11, %v2341_v43, %v2337_v3  ;;  %v5906_v55 = vor.u32 %v6162_v59, %v5905_v4  ;;  %v5910_v43 = vor.u32 %v6161_v11, %v5907_v10  ;;  %v6169_v3 = vld [vmem:[%s8875_s3 + $0xe4] sm:$0xf] }
0x15dd   :  { %v2361_v40 = vmul.f32 %v6435_v17, %v2342_v16  ;;  %v6439_v51 = vpop.eup %6438  ;;  %v2360_v50 = vmul.f32 %v2342_v16, %v2278_v21  ;;  %v2375_v21 = vadd.f32 %v8945_v60, %v379_v54  ;;  %v5959_v17 = vld [vmem:[%s8875_s3 + $0xe8] sm:$0xf0]  ;;  %v5897_v16 = vld [vmem:[%s8875_s3 + $0x90] sm:$0xf]  ;;  %2782 = vmatpush.bf16.msra.mxu3 %v5958_v2 }
0x15de   :  { %v2345_v9 = vmul.f32 %v6439_v51, %v2328_v0  ;;  %vm2350_vm12 = vweird.f32 %v6439_v51  ;;  %2584 = vmatpush.bf16.msra.mxu1 %v5906_v55  ;;  %v6168_v0 = vld [vmem:[%s8875_s3 + $0xd4] sm:$0xf0]  ;;  %2643 = vmatpush.bf16.msrb.mxu2 %v5910_v43  ;;  %v5943_v54 = vld [vmem:[%s8875_s3 + $0xc8] sm:$0xf0] }
0x15df   :  { %2363 = vrot.lane.b32.xlu0 %v2361_v40, %s6819_s23  ;;  %vm2351_vm14 = vmor %vm2349_vm13, %vm2350_vm12  ;;  %v5962_v40 = vor.u32 %v6169_v3, %v5959_v17  ;;  %v6176_v3 = vld [vmem:[%s8875_s3 + $0x114] sm:$0xf0] }
0x15e0   :  { %v2346_v49 = vsub.f32 1.0, %v2345_v9  ;;  %v5950_v9 = vor.u32 %v6168_v0, %v5949_v61  ;;  %v6175_v61 = vld [vmem:[%s8875_s3 + $0x114] sm:$0xf]  ;;  %v6003_v0 = vld [vmem:[%s8875_s3 + $0x118] sm:$0xf0] }
0x15e1   :  { %2841 = vmatpush.bf16.msra.mxu0 %v5962_v40  ;;  %v2462_v40 = vld [vmem:[#allocation5 + $0x18] sm:$0xff] }
0x15e2   :  { %v2347_v27 = vmul.f32 %v6439_v51, %v2346_v49  ;;  %v6159_v49 = vld [vmem:[%s8875_s3 + $0x94] sm:$0xf]  ;;  %2783 = vmatpush.bf16.msra.mxu3 %v5950_v9 }
0x15e3   :  { %v2463_v9 = vld [vmem:[#allocation5 + $0x20] sm:$0xff] }
0x15e4   :  { %v2348_v31 = vadd.f32 %v6439_v51, %v2347_v27  ;;  %v5899_v27 = vld [vmem:[%s8875_s3 + $0x98] sm:$0xf0] }
0x15e6   :  { %v2352_v58 = vsel %vm2351_vm14, %v6439_v51, %v2348_v31  ;;  %v5898_v51 = vor.u32 %v6160_v13, %v5897_v16  ;;  %v5951_v31 = vld [vmem:[%s8875_s3 + $0xd8] sm:$0xf0]  ;;  %v2461_v16 = vld [vmem:[#allocation5 + $0x10] sm:$0xff] }
0x15e7   :  { %v2357_v52 = vsel %vm2354_vm2, %v2356_v37, %v2352_v58  ;;  %v2480_v13 = vpack.c.bf16 %v2462_v40, %v2461_v16 }
0x15e8   :  { %2585 = vmatpush.bf16.msra.mxu1 %v5898_v51  ;;  %v7882_v51 = vor.u32 %v6175_v61, %v6003_v0 }
0x1651   :  { %v2364_v12 = vpop.permute.xlu0 %2363 }
0x1652   :  { %v7707_v38 = vadd.f32 %v2364_v12, %v2360_v50  ;;  %v6167_v50 = vld [vmem:[%s8875_s3 + $0xd4] sm:$0xf]  ;;  %v5902_v12 = vor.u32 %v6159_v49, %v5899_v27  ;;  %v2464_v49 = vld [vmem:[#allocation5 + $0x28] sm:$0xff] }
0x1653   :  { %v5954_v37 = vor.u32 %v6167_v50, %v5951_v31  ;;  %v2481_v27 = vpack.c.bf16 %v2464_v49, %v2463_v9  ;;  %v2465_v50 = vld [vmem:[#allocation5 + $0x30] sm:$0xff] }
0x1654   :  { %6440 = vtanh.f32 %v7707_v38  ;;  %2644 = vmatpush.bf16.msrb.mxu2 %v5902_v12  ;;  %v2466_v12 = vld [vmem:[#allocation5 + $0x38] sm:$0xff] }
0x1655   :  { %2842 = vmatpush.bf16.msra.mxu0 %v5954_v37  ;;  %v2482_v31 = vpack.c.bf16 %v2466_v12, %v2465_v50 }
0x165a   :  { %v6441_v39 = vpop.eup %6440 }
0x165b   :  { %v2368_v63 = vmul.f32 %v6441_v39, %v2357_v52  ;;  %v5941_v39 = vld [vmem:[%s8875_s3 + $0xc0] sm:$0xf]  ;;  %v6166_v52 = vld [vmem:[%s8875_s3 + $0xc4] sm:$0xf0] }
0x165c   :  { %v5942_v60 = vor.u32 %v6166_v52, %v5941_v39  ;;  %v5995_v39 = vld [vmem:[%s8875_s3 + $0x108] sm:$0xf0] }
0x165d   :  { %2369 = vst.msk [vmem:[#allocation5 + $0x90] sm:$0xff] %vm783_vm15, %v2368_v63  ;;  %v2377_v53 = vpack.c.bf16 %v2368_v63, %v2368_v63 }
0x165e   :  { %2370 = vst.msk [vmem:[#allocation5 + $0x8] sm:$0xff] %vm785_vm0, %v2368_v63  ;;  %v6157_v63 = vld [vmem:[%s8875_s3 + $0x84] sm:$0xf]  ;;  %2784 = vmatpush.bf16.msra.mxu3 %v5942_v60 }
0x165f   :  { %5875 = vmatmul.msk.bf16.vlgmr.msrb.gmra.mxu3 %vm703_vm1, %v2377_v53  ;;  %5876 = vmatmul.msk.bf16.vlgmr.msrb.gmra.mxu0 %vm703_vm1, %v2377_v53  ;;  %v5890_v53 = vor.u32 %v6158_v15, %v5889_v30  ;;  %v5993_v30 = vld [vmem:[%s8875_s3 + $0x100] sm:$0xf]  ;;  %v6174_v15 = vld [vmem:[%s8875_s3 + $0x104] sm:$0xf0] }
0x1660   :  { %v7903_v37 = vor.u32 %v6174_v15, %v5993_v30 }
0x1661   :  { %2586 = vmatpush.bf16.msra.mxu1 %v5890_v53  ;;  %v2468_v53 = vld [vmem:[#allocation5 + $0x48] sm:$0xff] }
0x1665   :  { %v2460_v2 = vld [vmem:[#allocation5 + $0x8] sm:$0xff] }
0x16dc   :  { %v2403_v34 = vpop.f32.mrf.mxu0 }
0x16dd   :  { %v2408_v35 = vadd.f32 %v2403_v34, %v2376_v29  ;;  %v5891_v34 = vld [vmem:[%s8875_s3 + $0x88] sm:$0xf0] }
0x16df   :  { %v5878_v26 = vmul.f32 -1.442695, %v2408_v35 }
0x16e2   :  { %v2390_v6 = vpop.f32.mrf.mxu3 }
0x16e3   :  { %v2407_v14 = vadd.f32 %v2390_v6, %v2375_v21  ;;  %v5894_v21 = vor.u32 %v6157_v63, %v5891_v34  ;;  %v5881_v6 = vld [vmem:[%s8875_s3 + $0x70] sm:$0xf] }
0x16e4   :  { %v2405_v33 = vpop.f32.mrf.mxu0  ;;  %v2467_v63 = vld [vmem:[#allocation5 + $0x40] sm:$0xff] }
0x16e5   :  { %v5877_v22 = vmul.f32 -1.442695, %v2407_v14  ;;  %v6156_v14 = vld [vmem:[%s8875_s3 + $0x74] sm:$0xf0]  ;;  %v5933_v33 = vld [vmem:[%s8875_s3 + $0xb0] sm:$0xf]  ;;  %2645 = vmatpush.bf16.msrb.mxu2 %v5894_v21  ;;  %v2483_v34 = vpack.c.bf16 %v2468_v53, %v2467_v63 }
0x16e6   :  { %v5882_v29 = vor.u32 %v6156_v14, %v5881_v6  ;;  %v5985_v21 = vld [vmem:[%s8875_s3 + $0xf0] sm:$0xf]  ;;  %v6172_v6 = vld [vmem:[%s8875_s3 + $0xf4] sm:$0xf0] }
0x16e7   :  { %6442 = vpow2.f32 %v5877_v22  ;;  %v7928_v14 = vor.u32 %v6172_v6, %v5985_v21 }
0x16e8   :  { %2587 = vmatpush.bf16.msra.mxu1 %v5882_v29 }
0x16ea   :  { %v2392_v32 = vpop.f32.mrf.mxu3 }
0x16eb   :  { %v5946_v32 = vor.u32 %v6165_v7, %v5943_v54  ;;  %v2470_v7 = vld [vmem:[#allocation5 + $0x58] sm:$0xff]  ;;  %v2469_v54 = vld [vmem:[#allocation5 + $0x50] sm:$0xff] }
0x16ec   :  { %v2484_v60 = vpack.c.bf16 %v2470_v7, %v2469_v54 }
0x16ed   :  { %v6443_v8 = vpop.eup %6442  ;;  %2843 = vmatpush.bf16.msra.mxu0 %v5946_v32 }
0x16ee   :  { %v2415_v20 = vadd.f32 1.0, %v6443_v8  ;;  %v6164_v8 = vld [vmem:[%s8875_s3 + $0xb4] sm:$0xf0] }
0x16f0   :  { %6444 = vrcp.f32 %v2415_v20  ;;  %v2428_v23 = vand.u32 2147483648, %v2415_v20  ;;  %v2426_v57 = vand.u32 2147483647, %v2415_v20  ;;  %vm2422_vm4 = vweird.f32 %v2415_v20 }
0x16f1   :  { %6446 = vtanh.f32 %v2408_v35  ;;  %v6178_v35 = vld [vmem:[%s8875_s3 + $0x124] sm:$0xf0] }
0x16f2   :  { %v2429_v24 = vor.u32 1.1754944e-38, %v2428_v23  ;;  %vm2427_vm6 = vcmp.eq.f32.partialorder %v2426_v57, 8.507059e+37  ;;  %6448 = vpow2.f32 %v5878_v26 }
0x16f6   :  { %v6445_v5 = vpop.eup %6444 }
0x16f7   :  { %v2418_v62 = vmul.f32 %v6445_v5, %v2415_v20  ;;  %vm2423_vm3 = vweird.f32 %v6445_v5  ;;  %v6447_v46 = vpop.eup %6446  ;;  %v6155_v20 = vld [vmem:[%s8875_s3 + $0x74] sm:$0xf] }
0x16f8   :  { %vm2424_vm5 = vmor %vm2422_vm4, %vm2423_vm3  ;;  %v6449_v18 = vpop.eup %6448  ;;  %v5886_v23 = vor.u32 %v6155_v20, %v5883_v47  ;;  %v5987_v20 = vld [vmem:[%s8875_s3 + $0xf8] sm:$0xf0] }
0x16f9   :  { %v2419_v1 = vsub.f32 1.0, %v2418_v62  ;;  %v7724_v41 = vadd.f32 1.0, %v6449_v18  ;;  %v6177_v62 = vld [vmem:[%s8875_s3 + $0x124] sm:$0xf] }
0x16fa   :  { %2646 = vmatpush.bf16.msrb.mxu2 %v5886_v23 }
0x16fb   :  { %v2420_v25 = vmul.f32 %v6445_v5, %v2419_v1  ;;  %6450 = vrcp.f32 %v7724_v41  ;;  %v5934_v1 = vor.u32 %v6164_v8, %v5933_v33  ;;  %v2443_v59 = vand.u32 2147483648, %v7724_v41  ;;  %v2472_v33 = vld [vmem:[#allocation5 + $0x68] sm:$0xff]  ;;  %v6171_v8 = vld [vmem:[%s8875_s3 + $0xf4] sm:$0xf] }
0x16fc   :  { %vm2437_vm8 = vweird.f32 %v7724_v41  ;;  %v2441_v36 = vand.u32 2147483647, %v7724_v41  ;;  %v7950_v47 = vor.u32 %v6171_v8, %v5987_v20 }
0x16fd   :  { %v2421_v45 = vadd.f32 %v6445_v5, %v2420_v25  ;;  %v6011_v25 = vld [vmem:[%s8875_s3 + $0x128] sm:$0xf0]  ;;  %2785 = vmatpush.bf16.msra.mxu3 %v5934_v1 }
0x16fe   :  { %vm2442_vm10 = vcmp.eq.f32.partialorder %v2441_v36, 8.507059e+37 }
0x16ff   :  { %v2425_v28 = vsel %vm2424_vm5, %v6445_v5, %v2421_v45  ;;  %v6009_v5 = vld [vmem:[%s8875_s3 + $0x120] sm:$0xf]  ;;  %v5938_v45 = vor.u32 %v6163_v56, %v5935_v42  ;;  %v2474_v56 = vld [vmem:[#allocation5 + $0x78] sm:$0xff] }
0x1700   :  { %v7720_v19 = vsel %vm2427_vm6, %v2429_v24, %v2425_v28  ;;  %v7839_v24 = vor.u32 %v6178_v35, %v6009_v5  ;;  %v7841_v28 = vor.u32 %v6177_v62, %v6011_v25  ;;  %v2473_v42 = vld [vmem:[#allocation5 + $0x70] sm:$0xff]  ;;  %v2476_v5 = vld [vmem:[#allocation5 + $0x88] sm:$0xff]  ;;  %v2475_v62 = vld [vmem:[#allocation5 + $0x80] sm:$0xff] }
0x1701   :  { %v2449_v48 = vmul.f32 %v6447_v46, %v7720_v19  ;;  %v7781_v58 = vpop.eup %6450  ;;  %2844 = vmatpush.bf16.msra.mxu0 %v5938_v45  ;;  %v2486_v29 = vpack.c.bf16 %v2474_v56, %v2473_v42  ;;  %v2487_v23 = vpack.c.bf16 %v2476_v5, %v2475_v62 }
0x1702   :  { %v2433_v22 = vmul.f32 %v7781_v58, %v7724_v41  ;;  %2994 = vmatpush.bf16.msrb.mxu1 %v7839_v24  ;;  %3007 = vmatpush.bf16.msra.mxu2 %v7841_v28  ;;  %vm2438_vm7 = vweird.f32 %v7781_v58  ;;  %v6001_v41 = vld [vmem:[%s8875_s3 + $0x110] sm:$0xf] }
0x1703   :  { %2451 = vrot.lane.b32.xlu1 %v2449_v48, %s6819_s23  ;;  %v2448_v48 = vmul.f32 %v7720_v19, %v7707_v38  ;;  %3082 = vmatpush.bf16.msrb.mxu3 %v7839_v24  ;;  %vm2439_vm9 = vmor %vm2437_vm8, %vm2438_vm7  ;;  %v2444_v19 = vor.u32 1.1754944e-38, %v2443_v59  ;;  %v7868_v17 = vor.u32 %v6176_v3, %v6001_v41  ;;  %v2477_v59 = vld [vmem:[#allocation5 + $0x90] sm:$0xff]  ;;  %v8957_v3 = vmov 0  }
0x1704   :  { %v2434_v57 = vsub.f32 1.0, %v2433_v22  ;;  %v2471_v22 = vld [vmem:[#allocation5 + $0x60] sm:$0xff] }
0x1705   :  { %3095 = vmatpush.bf16.msrb.mxu0 %v7841_v28  ;;  %v2485_v32 = vpack.c.bf16 %v2472_v33, %v2471_v22 }
0x1706   :  { %v2435_v46 = vmul.f32 %v7781_v58, %v2434_v57  ;;  %2995 = vmatpush.bf16.msrb.mxu1 %v7868_v17  ;;  %3008 = vmatpush.bf16.msra.mxu2 %v7882_v51 }
0x1707   :  { %3083 = vmatpush.bf16.msrb.mxu3 %v7868_v17 }
0x1708   :  { %v2436_v4 = vadd.f32 %v7781_v58, %v2435_v46 }
0x1709   :  { %3096 = vmatpush.bf16.msrb.mxu0 %v7882_v51 }
0x170a   :  { %v2440_v38 = vsel %vm2439_vm9, %v7781_v58, %v2436_v4  ;;  %v6173_v58 = vld [vmem:[%s8875_s3 + $0x104] sm:$0xf]  ;;  %2996 = vmatpush.bf16.msrb.mxu1 %v7903_v37 }
0x170b   :  { %v2445_v44 = vsel %vm2442_vm10, %v2444_v19, %v2440_v38  ;;  %v7908_v52 = vor.u32 %v6173_v58, %v5995_v39  ;;  %3084 = vmatpush.bf16.msrb.mxu3 %v7903_v37 }
0x170d   :  { %3009 = vmatpush.bf16.msra.mxu2 %v7908_v52  ;;  %3097 = vmatpush.bf16.msrb.mxu0 %v7908_v52 }
0x170e   :  { %2997 = vmatpush.bf16.msrb.mxu1 %v7928_v14 }
0x170f   :  { %3085 = vmatpush.bf16.msrb.mxu3 %v7928_v14 }
0x1711   :  { %3010 = vmatpush.bf16.msra.mxu2 %v7950_v47  ;;  %3098 = vmatpush.bf16.msrb.mxu0 %v7950_v47 }
0x1775   :  { %v2452_v26 = vpop.permute.xlu1 %2451 }
0x1776   :  { %v2454_v18 = vadd.f32 %v2452_v26, %v2448_v48 }
0x1778   :  { %6452 = vtanh.f32 %v2454_v18 }
0x177e   :  { %v6453_v55 = vpop.eup %6452 }
0x177f   :  { %v2456_v11 = vmul.f32 %v6453_v55, %v2445_v44 }
0x1781   :  { %2457 = vst.msk [vmem:[#allocation5 + $0x98] sm:$0xff] %vm783_vm15, %v2456_v11 }
0x1782   :  { %2458 = vst.msk [vmem:[#allocation5] sm:$0xff] %vm785_vm0, %v2456_v11 }
0x1788   :  { %v2478_v26 = vld [vmem:[#allocation5 + $0x98] sm:$0xff] }
0x1789   :  { %v2459_v10 = vld [vmem:[#allocation5] sm:$0xff]  ;;  %v2488_v38 = vpack.c.bf16 %v2478_v26, %v2477_v59 }
0x178a   :  { %v2479_v43 = vpack.c.bf16 %v2460_v2, %v2459_v10 }
0x178c   :  { %5911 = vmatmul.msk.bf16.vlgmr.msra.gmra.mxu1 %vm703_vm1, %v2479_v43  ;;  %5921 = vmatmul.msk.bf16.vlgmr.msrb.gmra.mxu2 %vm703_vm1, %v2479_v43 }
0x178d   :  { %5963 = vmatmul.msk.bf16.vlgmr.msra.gmra.mxu3 %vm703_vm1, %v2479_v43  ;;  %5973 = vmatmul.msk.bf16.vlgmr.msra.gmra.mxu0 %vm703_vm1, %v2479_v43 }
0x178e   :  { %3170 = vmatpush.bf16.msra.mxu1 %v7839_v24  ;;  %3258 = vmatpush.bf16.msra.mxu3 %v7839_v24 }
0x178f   :  { %3183 = vmatpush.bf16.msrb.mxu2 %v7841_v28  ;;  %3271 = vmatpush.bf16.msra.mxu0 %v7841_v28 }
0x1792   :  { %3171 = vmatpush.bf16.msra.mxu1 %v7868_v17  ;;  %3259 = vmatpush.bf16.msra.mxu3 %v7868_v17 }
0x1793   :  { %3184 = vmatpush.bf16.msrb.mxu2 %v7882_v51  ;;  %3272 = vmatpush.bf16.msra.mxu0 %v7882_v51 }
0x1796   :  { %3172 = vmatpush.bf16.msra.mxu1 %v7903_v37  ;;  %3260 = vmatpush.bf16.msra.mxu3 %v7903_v37 }
0x1797   :  { %3185 = vmatpush.bf16.msrb.mxu2 %v7908_v52  ;;  %3273 = vmatpush.bf16.msra.mxu0 %v7908_v52 }
0x179a   :  { %3173 = vmatpush.bf16.msra.mxu1 %v7928_v14  ;;  %3261 = vmatpush.bf16.msra.mxu3 %v7928_v14 }
0x179b   :  { %3186 = vmatpush.bf16.msrb.mxu2 %v7950_v47  ;;  %3274 = vmatpush.bf16.msra.mxu0 %v7950_v47 }
0x179c   :  { %5912 = vmatmul.msk.bf16.gmra.mxu1 %vm703_vm1, %v2480_v13  ;;  %5922 = vmatmul.msk.bf16.gmra.mxu2 %vm703_vm1, %v2480_v13 }
0x179d   :  { %5964 = vmatmul.msk.bf16.gmra.mxu3 %vm703_vm1, %v2480_v13  ;;  %5974 = vmatmul.msk.bf16.gmra.mxu0 %vm703_vm1, %v2480_v13 }
0x17ac   :  { %5913 = vmatmul.msk.bf16.gmra.mxu1 %vm703_vm1, %v2481_v27  ;;  %5923 = vmatmul.msk.bf16.gmra.mxu2 %vm703_vm1, %v2481_v27 }
0x17ad   :  { %5965 = vmatmul.msk.bf16.gmra.mxu3 %vm703_vm1, %v2481_v27  ;;  %5975 = vmatmul.msk.bf16.gmra.mxu0 %vm703_vm1, %v2481_v27 }
0x17bc   :  { %5914 = vmatmul.msk.bf16.gmra.mxu1 %vm703_vm1, %v2482_v31  ;;  %5924 = vmatmul.msk.bf16.gmra.mxu2 %vm703_vm1, %v2482_v31 }
0x17bd   :  { %5966 = vmatmul.msk.bf16.gmra.mxu3 %vm703_vm1, %v2482_v31  ;;  %5976 = vmatmul.msk.bf16.gmra.mxu0 %vm703_vm1, %v2482_v31 }
0x17cc   :  { %5915 = vmatmul.msk.bf16.gmra.mxu1 %vm703_vm1, %v2483_v34  ;;  %5925 = vmatmul.msk.bf16.gmra.mxu2 %vm703_vm1, %v2483_v34 }
0x17cd   :  { %5967 = vmatmul.msk.bf16.gmra.mxu3 %vm703_vm1, %v2483_v34  ;;  %5977 = vmatmul.msk.bf16.gmra.mxu0 %vm703_vm1, %v2483_v34 }
0x17dc   :  { %5916 = vmatmul.msk.bf16.gmra.mxu1 %vm703_vm1, %v2484_v60  ;;  %5926 = vmatmul.msk.bf16.gmra.mxu2 %vm703_vm1, %v2484_v60 }
0x17dd   :  { %5968 = vmatmul.msk.bf16.gmra.mxu3 %vm703_vm1, %v2484_v60  ;;  %5978 = vmatmul.msk.bf16.gmra.mxu0 %vm703_vm1, %v2484_v60 }
0x17ec   :  { %5917 = vmatmul.msk.bf16.gmra.mxu1 %vm703_vm1, %v2485_v32  ;;  %5927 = vmatmul.msk.bf16.gmra.mxu2 %vm703_vm1, %v2485_v32 }
0x17ed   :  { %5969 = vmatmul.msk.bf16.gmra.mxu3 %vm703_vm1, %v2485_v32  ;;  %5979 = vmatmul.msk.bf16.gmra.mxu0 %vm703_vm1, %v2485_v32 }
0x17fc   :  { %5918 = vmatmul.msk.bf16.gmra.mxu1 %vm703_vm1, %v2486_v29  ;;  %5928 = vmatmul.msk.bf16.gmra.mxu2 %vm703_vm1, %v2486_v29 }
0x17fd   :  { %5970 = vmatmul.msk.bf16.gmra.mxu3 %vm703_vm1, %v2486_v29  ;;  %5980 = vmatmul.msk.bf16.gmra.mxu0 %vm703_vm1, %v2486_v29 }
0x1809   :  { %v7966_v35 = vpop.f32.mrf.mxu1 }
0x180a   :  { %v7968_v1 = vpop.f32.mrf.mxu0 }
0x180b   :  { %8948 = vst [vmem:[#allocation27_spill] sm:$0xff] %v7968_v1 }
0x180c   :  { %5919 = vmatmul.msk.bf16.gmra.mxu1 %vm703_vm1, %v2487_v23  ;;  %5929 = vmatmul.msk.bf16.gmra.mxu2 %vm703_vm1, %v2487_v23 }
0x180d   :  { %5971 = vmatmul.msk.bf16.gmra.mxu3 %vm703_vm1, %v2487_v23  ;;  %5981 = vmatmul.msk.bf16.gmra.mxu0 %vm703_vm1, %v2487_v23 }
0x180f   :  { %v7974_v25 = vpop.f32.mrf.mxu2 }
0x1810   :  { %v7976_v57 = vpop.f32.mrf.mxu3 }
0x1811   :  { %8949 = vst [vmem:[#allocation26_spill] sm:$0xff] %v7976_v57  ;;  %v7978_v45 = vpop.f32.mrf.mxu1 }
0x1812   :  { %v7980_v46 = vpop.f32.mrf.mxu0 }
0x1813   :  { %8950 = vst [vmem:[#allocation36_spill] sm:$0xff] %v7980_v46 }
0x1817   :  { %v7982_v48 = vpop.f32.mrf.mxu2 }
0x1818   :  { %v7984_v18 = vpop.f32.mrf.mxu3 }
0x1819   :  { %8951 = vst [vmem:[#allocation25_spill] sm:$0xff] %v7984_v18  ;;  %v7986_v4 = vpop.f32.mrf.mxu1 }
0x181a   :  { %v7988_v36 = vpop.f32.mrf.mxu0 }
0x181b   :  { %8952 = vst [vmem:[#allocation28_spill] sm:$0xff] %v7988_v36 }
0x181c   :  { %5920 = vmatmul.msk.bf16.gmra.mxu1 %vm703_vm1, %v2488_v38  ;;  %5930 = vmatmul.msk.bf16.gmra.mxu2 %vm703_vm1, %v2488_v38 }
0x181d   :  { %5972 = vmatmul.msk.bf16.gmra.mxu3 %vm703_vm1, %v2488_v38  ;;  %5982 = vmatmul.msk.bf16.gmra.mxu0 %vm703_vm1, %v2488_v38 }
0x181f   :  { %v7994_v19 = vpop.f32.mrf.mxu2 }
0x1820   :  { %v7996_v55 = vpop.f32.mrf.mxu3 }
0x1821   :  { %8953 = vst [vmem:[#allocation24_spill] sm:$0xff] %v7996_v55  ;;  %v7998_v44 = vpop.f32.mrf.mxu1 }
0x1822   :  { %v8000_v11 = vpop.f32.mrf.mxu0 }
0x1823   :  { %8954 = vst [vmem:[#allocation37_spill] sm:$0xff] %v8000_v11 }
0x1827   :  { %v8002_v10 = vpop.f32.mrf.mxu2 }
0x1828   :  { %v8004_v2 = vpop.f32.mrf.mxu3 }
0x1829   :  { %8955 = vst [vmem:[#allocation23_spill] sm:$0xff] %v8004_v2  ;;  %v8006_v43 = vpop.f32.mrf.mxu1 }
0x182a   :  { %v8008_v41 = vpop.f32.mrf.mxu0 }
0x182b   :  { %8956 = vst [vmem:[#allocation29_spill] sm:$0xff] %v8008_v41 }
0x182c   :  { %2998 = vmatmul.bf16.vlgmr.msrb.gmra.mxu1 %v8957_v3  ;;  %3011 = vmatmul.bf16.vlgmr.msra.gmra.mxu2 %v8957_v3 }
0x182d   :  { %3346 = vmatpush.bf16.msrb.mxu1 %v7839_v24  ;;  %3359 = vmatpush.bf16.msra.mxu2 %v7841_v28 }
0x182f   :  { %v8014_v16 = vpop.f32.mrf.mxu2 }
0x1830   :  { %v8016_v40 = vpop.f32.mrf.mxu3 }
0x1831   :  { %8958 = vst [vmem:[#allocation22_spill] sm:$0xff] %v8016_v40  ;;  %v8018_v13 = vpop.f32.mrf.mxu1  ;;  %3347 = vmatpush.bf16.msrb.mxu1 %v7868_v17  ;;  %3360 = vmatpush.bf16.msra.mxu2 %v7882_v51 }
0x1832   :  { %v8022_v61 = vpop.f32.mrf.mxu0 }
0x1833   :  { %8959 = vst [vmem:[#allocation38_spill] sm:$0xff] %v8022_v61 }
0x1835   :  { %3348 = vmatpush.bf16.msrb.mxu1 %v7903_v37  ;;  %3361 = vmatpush.bf16.msra.mxu2 %v7908_v52 }
0x1837   :  { %v8026_v0 = vpop.f32.mrf.mxu2 }
0x1838   :  { %v8028_v9 = vpop.f32.mrf.mxu3 }
0x1839   :  { %8960 = vst [vmem:[#allocation21_spill] sm:$0xff] %v8028_v9  ;;  %v8030_v49 = vpop.f32.mrf.mxu1  ;;  %3349 = vmatpush.bf16.msrb.mxu1 %v7928_v14  ;;  %3362 = vmatpush.bf16.msra.mxu2 %v7950_v47 }
0x183a   :  { %v8034_v27 = vpop.f32.mrf.mxu0 }
0x183b   :  { %8961 = vst [vmem:[#allocation30_spill] sm:$0xff] %v8034_v27 }
0x183f   :  { %v8036_v50 = vpop.f32.mrf.mxu2 }
0x1840   :  { %v8038_v12 = vpop.f32.mrf.mxu3 }
0x1841   :  { %8962 = vst [vmem:[#allocation20_spill] sm:$0xff] %v8038_v12  ;;  %v8040_v31 = vpop.f32.mrf.mxu1 }
0x1842   :  { %v8042_v30 = vpop.f32.mrf.mxu0 }
0x1843   :  { %8963 = vst [vmem:[#allocation39_spill] sm:$0xff] %v8042_v30 }
0x1847   :  { %v8044_v15 = vpop.f32.mrf.mxu2 }
0x1848   :  { %v8046_v58 = vpop.f32.mrf.mxu3 }
0x1849   :  { %8964 = vst [vmem:[#allocation19_spill] sm:$0xff] %v8046_v58  ;;  %v8048_v39 = vpop.f32.mrf.mxu1 }
0x184a   :  { %v8050_v63 = vpop.f32.mrf.mxu0 }
0x184b   :  { %8965 = vst [vmem:[#allocation31_spill] sm:$0xff] %v8050_v63 }
0x184f   :  { %v8052_v53 = vpop.f32.mrf.mxu2 }
0x1850   :  { %v8054_v34 = vpop.f32.mrf.mxu3 }
0x1851   :  { %8966 = vst [vmem:[#allocation18_spill] sm:$0xff] %v8054_v34  ;;  %v8056_v7 = vpop.f32.mrf.mxu1 }
0x1852   :  { %v8058_v54 = vpop.f32.mrf.mxu0 }
0x1853   :  { %8967 = vst [vmem:[#allocation40_spill] sm:$0xff] %v8058_v54 }
0x1857   :  { %v8060_v60 = vpop.f32.mrf.mxu2 }
0x1858   :  { %8968 = vst [vmem:[#allocation17_spill] sm:$0xff] %v8060_v60  ;;  %v8062_v21 = vpop.f32.mrf.mxu3 }
0x1859   :  { %8969 = vst [vmem:[#allocation32_spill] sm:$0xff] %v8062_v21  ;;  %v8064_v6 = vpop.f32.mrf.mxu1 }
0x185a   :  { %8970 = vst [vmem:[#allocation16_spill] sm:$0xff] %v8064_v6  ;;  %v8066_v33 = vpop.f32.mrf.mxu0 }
0x185b   :  { %8971 = vst [vmem:[#allocation41_spill] sm:$0xff] %v8066_v33 }
0x185f   :  { %v8068_v22 = vpop.f32.mrf.mxu2 }
0x1860   :  { %8972 = vst [vmem:[#allocation15_spill] sm:$0xff] %v8068_v22  ;;  %v8070_v32 = vpop.f32.mrf.mxu3 }
0x1861   :  { %v8072_v8 = vpop.f32.mrf.mxu1 }
0x1862   :  { %8973 = vst [vmem:[#allocation33_spill] sm:$0xff] %v8072_v8  ;;  %v8078_v42 = vpop.f32.mrf.mxu0 }
0x1867   :  { %v8074_v20 = vpop.f32.mrf.mxu2 }
0x1868   :  { %8974 = vst [vmem:[#allocation14_spill] sm:$0xff] %v8074_v20  ;;  %v8076_v56 = vpop.f32.mrf.mxu3 }
0x1869   :  { %v8080_v29 = vpop.f32.mrf.mxu1 }
0x186a   :  { %8975 = vst [vmem:[#allocation42_spill] sm:$0xff] %v8080_v29  ;;  %v8088_v26 = vpop.f32.mrf.mxu0 }
0x186f   :  { %v8082_v5 = vpop.f32.mrf.mxu2 }
0x1870   :  { %8976 = vst [vmem:[#allocation13_spill] sm:$0xff] %v8082_v5  ;;  %v8084_v62 = vpop.f32.mrf.mxu3 }
0x1871   :  { %v8086_v23 = vpop.f32.mrf.mxu1 }
0x1872   :  { %8977 = vst [vmem:[#allocation34_spill] sm:$0xff] %v8086_v23  ;;  %v8096_v1 = vpop.f32.mrf.mxu0 }
0x1877   :  { %v8090_v59 = vpop.f32.mrf.mxu2 }
0x1878   :  { %8978 = vst [vmem:[#allocation12_spill] sm:$0xff] %v8090_v59  ;;  %v8092_v38 = vpop.f32.mrf.mxu3 }
0x1879   :  { %v8094_v3 = vpop.f32.mrf.mxu1 }
0x187a   :  { %8979 = vst [vmem:[#allocation43_spill] sm:$0xff] %v8094_v3  ;;  %v8104_v36 = vpop.f32.mrf.mxu0 }
0x187f   :  { %v8098_v57 = vpop.f32.mrf.mxu2 }
0x1880   :  { %8980 = vst [vmem:[#allocation11_spill] sm:$0xff] %v8098_v57  ;;  %v8100_v46 = vpop.f32.mrf.mxu3 }
0x1881   :  { %v8102_v18 = vpop.f32.mrf.mxu1 }
0x1882   :  { %8981 = vst [vmem:[#allocation35_spill] sm:$0xff] %v8102_v18  ;;  %v8116_v61 = vpop.f32.mrf.mxu0 }
0x1887   :  { %v8106_v55 = vpop.f32.mrf.mxu2 }
0x1888   :  { %8982 = vst [vmem:[#allocation10_spill] sm:$0xff] %v8106_v55  ;;  %v8108_v11 = vpop.f32.mrf.mxu3 }
0x1889   :  { %v8110_v2 = vpop.f32.mrf.mxu1 }
0x188a   :  { %8983 = vst [vmem:[#allocation44_spill] sm:$0xff] %v8110_v2  ;;  %v8126_v27 = vpop.f32.mrf.mxu0  ;;  %v2505_v2 = vld [vmem:[%s8875_s3 + $0x130] sm:$0x11] }
0x188b   :  { %v2506_v55 = vunpack.c.l.bf16 %v2505_v2 }
0x188f   :  { %v8112_v41 = vpop.f32.mrf.mxu2 }
0x1890   :  { %8984 = vst [vmem:[#allocation45_spill] sm:$0xff] %v8112_v41  ;;  %v8114_v40 = vpop.f32.mrf.mxu3 }
0x1891   :  { %v8118_v9 = vpop.f32.mrf.mxu1 }
0x1892   :  { %8985 = vst [vmem:[#allocation46_spill] sm:$0xff] %v8118_v9  ;;  %v8137_v9 = vperm.slane %v2506_v55, 0 }
0x1897   :  { %v8120_v57 = vpop.f32.mrf.mxu2 }
0x1898   :  { %8986 = vst [vmem:[#allocation47_spill] sm:$0xff] %v8120_v57  ;;  %v8122_v3 = vpop.f32.mrf.mxu3  ;;  %v8139_v57 = vpop.f32.mrf.mxu0 }
0x1899   :  { %v8124_v18 = vpop.f32.mrf.mxu1 }
0x189a   :  { %8987 = vst [vmem:[#allocation48_spill] sm:$0xff] %v8124_v18  ;;  %v2590_v18 = vadd.f32 %v7966_v35, %v8137_v9 }
0x189f   :  { %v8131_v41 = vpop.f32.mrf.mxu2 }
0x18a0   :  { %8988 = vst [vmem:[#allocation49_spill] sm:$0xff] %v8131_v41  ;;  %v8133_v59 = vpop.f32.mrf.mxu3  ;;  %v8145_v20 = vpop.f32.mrf.mxu0 }
0x18a1   :  { %v8135_v12 = vpop.f32.mrf.mxu1 }
0x18a2   :  { %8989 = vst [vmem:[#allocation50_spill] sm:$0xff] %v8135_v12  ;;  %v2507_v12 = vunpack.c.h.bf16 %v2505_v2 }
0x18a4   :  { %v8147_v8 = vperm.slane %v2507_v12, 0 }
0x18a7   :  { %v8143_v23 = vpop.f32.mrf.mxu2 }
0x18a8   :  { %8990 = vst [vmem:[#allocation51_spill] sm:$0xff] %v8143_v23  ;;  %v2834_v30 = vpop.f32.mrf.mxu3  ;;  %v2893_v35 = vpop.f32.mrf.mxu0  ;;  %v2649_v23 = vadd.f32 %v7974_v25, %v8147_v8 }
0x18a9   :  { %v2948_v5 = vadd.f32 %v2834_v30, %v2590_v18  ;;  %v2999_v58 = vpop.f32.mrf.mxu1 }
0x18aa   :  { %v2949_v18 = vadd.f32 %v2893_v35, %v2649_v23 }
0x18ab   :  { %v3016_v29 = vadd.f32 %v2999_v58, %v2948_v5 }
0x18ad   :  { %v6015_v63 = vmul.f32 -1.442695, %v3016_v29 }
0x18af   :  { %6454 = vpow2.f32 %v6015_v63  ;;  %v3012_v41 = vpop.f32.mrf.mxu2 }
0x18b0   :  { %v3017_v58 = vadd.f32 %v3012_v41, %v2949_v18 }
0x18b1   :  { %v3001_v34 = vpop.f32.mrf.mxu1 }
0x18b2   :  { %v6016_v25 = vmul.f32 -1.442695, %v3017_v58 }
0x18b5   :  { %v6455_v55 = vpop.eup %6454 }
0x18b6   :  { %v3024_v54 = vadd.f32 1.0, %v6455_v55 }
0x18b7   :  { %v3014_v22 = vpop.f32.mrf.mxu2 }
0x18b8   :  { %6456 = vrcp.f32 %v3024_v54  ;;  %v3037_v63 = vand.u32 2147483648, %v3024_v54  ;;  %v3035_v2 = vand.u32 2147483647, %v3024_v54  ;;  %vm3031_vm12 = vweird.f32 %v3024_v54 }
0x18b9   :  { %6458 = vtanh.f32 %v3017_v58 }
0x18ba   :  { %v3038_v12 = vor.u32 1.1754944e-38, %v3037_v63  ;;  %vm3036_vm14 = vcmp.eq.f32.partialorder %v3035_v2, 8.507059e+37  ;;  %6460 = vpow2.f32 %v6016_v25  ;;  %v2592_v25 = vadd.f32 %v7978_v45, %v8137_v9 }
0x18be   :  { %v6457_v30 = vpop.eup %6456 }
0x18bf   :  { %v3027_v29 = vmul.f32 %v6457_v30, %v3024_v54  ;;  %vm3032_vm11 = vweird.f32 %v6457_v30  ;;  %v6459_v55 = vpop.eup %6458 }
0x18c0   :  { %vm3033_vm13 = vmor %vm3031_vm12, %vm3032_vm11  ;;  %v6461_v41 = vpop.eup %6460 }
0x18c1   :  { %v3028_v5 = vsub.f32 1.0, %v3027_v29  ;;  %v3025_v23 = vadd.f32 1.0, %v6461_v41  ;;  %v3072_v41 = vadd.f32 %v8133_v59, %v2592_v25 }
0x18c3   :  { %v3029_v21 = vmul.f32 %v6457_v30, %v3028_v5  ;;  %6462 = vrcp.f32 %v3025_v23  ;;  %v3052_v63 = vand.u32 2147483648, %v3025_v23  ;;  %vm3046_vm3 = vweird.f32 %v3025_v23 }
0x18c5   :  { %v3030_v34 = vadd.f32 %v6457_v30, %v3029_v21  ;;  %v3053_v2 = vor.u32 1.1754944e-38, %v3052_v63 }
0x18c7   :  { %v3034_v22 = vsel %vm3033_vm13, %v6457_v30, %v3030_v34 }
0x18c8   :  { %v3039_v6 = vsel %vm3036_vm14, %v3038_v12, %v3034_v22 }
0x18c9   :  { %v3058_v33 = vmul.f32 %v6459_v55, %v3039_v6  ;;  %v6463_v35 = vpop.eup %6462  ;;  %v3057_v21 = vmul.f32 0.0, %v3039_v6 }
0x18ca   :  { %v3042_v18 = vmul.f32 %v6463_v35, %v3025_v23  ;;  %vm3047_vm2 = vweird.f32 %v6463_v35 }
0x18cb   :  { %3060 = vrot.lane.b32.xlu2 %v3058_v33, %s6819_s23  ;;  %v3050_v33 = vand.u32 2147483647, %v3025_v23  ;;  %vm3048_vm4 = vmor %vm3046_vm3, %vm3047_vm2 }
0x18cc   :  { %v3043_v29 = vsub.f32 1.0, %v3042_v18 }
0x18cd   :  { %vm3051_vm5 = vcmp.eq.f32.partialorder %v3050_v33, 8.507059e+37 }
0x18ce   :  { %v3044_v5 = vmul.f32 %v6463_v35, %v3043_v29 }
0x18d0   :  { %v3045_v30 = vadd.f32 %v6463_v35, %v3044_v5 }
0x18d2   :  { %v3049_v58 = vsel %vm3048_vm4, %v6463_v35, %v3045_v30  ;;  %v2651_v30 = vadd.f32 %v7982_v48, %v8147_v8 }
0x18d3   :  { %v3054_v12 = vsel %vm3051_vm5, %v3053_v2, %v3049_v58 }
0x18d4   :  { %v3073_v63 = vadd.f32 %v8145_v20, %v2651_v30 }
0x1925   :  { %v3061_v54 = vpop.permute.xlu2 %3060 }
0x1926   :  { %v8152_v60 = vadd.f32 %v3061_v54, %v3057_v21 }
0x1928   :  { %6464 = vtanh.f32 %v8152_v60 }
0x192e   :  { %v6465_v34 = vpop.eup %6464 }
0x192f   :  { %v3065_v22 = vmul.f32 %v6465_v34, %v3054_v12 }
0x1931   :  { %3066 = vst.msk [vmem:[#allocation6] sm:$0xff] %vm783_vm15, %v3065_v22  ;;  %v3074_v6 = vpack.c.bf16 %v3065_v22, %v3065_v22 }
0x1932   :  { %3067 = vst.msk [vmem:[#allocation6 + $0x98] sm:$0xff] %vm785_vm0, %v3065_v22 }
0x1933   :  { %6017 = vmatmul.msk.bf16.vlgmr.msrb.gmra.mxu3 %vm703_vm1, %v3074_v6  ;;  %6018 = vmatmul.msk.bf16.vlgmr.msrb.gmra.mxu0 %vm703_vm1, %v3074_v6 }
0x1934   :  { %3434 = vmatpush.bf16.msrb.mxu3 %v7839_v24  ;;  %3447 = vmatpush.bf16.msrb.mxu0 %v7841_v28 }
0x1938   :  { %3435 = vmatpush.bf16.msrb.mxu3 %v7868_v17  ;;  %3448 = vmatpush.bf16.msrb.mxu0 %v7882_v51 }
0x193c   :  { %3436 = vmatpush.bf16.msrb.mxu3 %v7903_v37  ;;  %3449 = vmatpush.bf16.msrb.mxu0 %v7908_v52 }
0x1940   :  { %3437 = vmatpush.bf16.msrb.mxu3 %v7928_v14  ;;  %3450 = vmatpush.bf16.msrb.mxu0 %v7950_v47 }
0x19b0   :  { %v3100_v55 = vpop.f32.mrf.mxu0 }
0x19b1   :  { %v3105_v58 = vadd.f32 %v3100_v55, %v3073_v63 }
0x19b3   :  { %v6020_v20 = vmul.f32 -1.442695, %v3105_v58 }
0x19b6   :  { %v3087_v23 = vpop.f32.mrf.mxu3 }
0x19b7   :  { %v3104_v35 = vadd.f32 %v3087_v23, %v3072_v41 }
0x19b8   :  { %v3102_v18 = vpop.f32.mrf.mxu0 }
0x19b9   :  { %v6019_v29 = vmul.f32 -1.442695, %v3104_v35 }
0x19bb   :  { %6466 = vpow2.f32 %v6019_v29 }
0x19be   :  { %v3089_v5 = vpop.f32.mrf.mxu3 }
0x19c1   :  { %v6467_v21 = vpop.eup %6466 }
0x19c2   :  { %v3112_v54 = vadd.f32 1.0, %v6467_v21 }
0x19c4   :  { %6468 = vrcp.f32 %v3112_v54  ;;  %v3125_v59 = vand.u32 2147483648, %v3112_v54  ;;  %v3123_v12 = vand.u32 2147483647, %v3112_v54  ;;  %vm3119_vm7 = vweird.f32 %v3112_v54 }
0x19c5   :  { %6470 = vtanh.f32 %v3105_v58 }
0x19c6   :  { %v3126_v6 = vor.u32 1.1754944e-38, %v3125_v59  ;;  %vm3124_vm9 = vcmp.eq.f32.partialorder %v3123_v12, 8.507059e+37  ;;  %6472 = vpow2.f32 %v6020_v20 }
0x19ca   :  { %v6469_v33 = vpop.eup %6468 }
0x19cb   :  { %v3115_v2 = vmul.f32 %v6469_v33, %v3112_v54  ;;  %vm3120_vm6 = vweird.f32 %v6469_v33  ;;  %v6471_v41 = vpop.eup %6470 }
0x19cc   :  { %vm3121_vm8 = vmor %vm3119_vm7, %vm3120_vm6  ;;  %v6473_v55 = vpop.eup %6472 }
0x19cd   :  { %v3116_v45 = vsub.f32 1.0, %v3115_v2  ;;  %v3113_v35 = vadd.f32 1.0, %v6473_v55 }
0x19cf   :  { %v3117_v34 = vmul.f32 %v6469_v33, %v3116_v45  ;;  %6474 = vrcp.f32 %v3113_v35  ;;  %v3140_v2 = vand.u32 2147483648, %v3113_v35  ;;  %vm3134_vm11 = vweird.f32 %v3113_v35 }
0x19d0   :  { %v3138_v58 = vand.u32 2147483647, %v3113_v35 }
0x19d1   :  { %v3118_v22 = vadd.f32 %v6469_v33, %v3117_v34  ;;  %v3141_v59 = vor.u32 1.1754944e-38, %v3140_v2 }
0x19d2   :  { %vm3139_vm13 = vcmp.eq.f32.partialorder %v3138_v58, 8.507059e+37 }
0x19d3   :  { %v3122_v25 = vsel %vm3121_vm8, %v6469_v33, %v3118_v22 }
0x19d4   :  { %v3127_v23 = vsel %vm3124_vm9, %v3126_v6, %v3122_v25  ;;  %v2595_v6 = vadd.f32 %v7986_v4, %v8137_v9 }
0x19d5   :  { %v3146_v48 = vmul.f32 %v6471_v41, %v3127_v23  ;;  %v6475_v18 = vpop.eup %6474  ;;  %v3145_v54 = vmul.f32 %v3127_v23, %v8152_v60 }
0x19d6   :  { %v3130_v29 = vmul.f32 %v6475_v18, %v3113_v35  ;;  %vm3135_vm10 = vweird.f32 %v6475_v18  ;;  %v3160_v25 = vadd.f32 %v8122_v3, %v2595_v6 }
0x19d7   :  { %3148 = vrot.lane.b32.xlu0 %v3146_v48, %s6819_s23  ;;  %vm3136_vm12 = vmor %vm3134_vm11, %vm3135_vm10 }
0x19d8   :  { %v3131_v5 = vsub.f32 1.0, %v3130_v29 }
0x19da   :  { %v3132_v21 = vmul.f32 %v6475_v18, %v3131_v5  ;;  %v2654_v5 = vadd.f32 %v7994_v19, %v8147_v8 }
0x19dc   :  { %v3133_v33 = vadd.f32 %v6475_v18, %v3132_v21  ;;  %v3161_v21 = vadd.f32 %v8139_v57, %v2654_v5 }
0x19de   :  { %v3137_v45 = vsel %vm3136_vm12, %v6475_v18, %v3133_v33 }
0x19df   :  { %v3142_v12 = vsel %vm3139_vm13, %v3141_v59, %v3137_v45 }
0x1a49   :  { %v3149_v30 = vpop.permute.xlu0 %3148 }
0x1a4a   :  { %v8175_v63 = vadd.f32 %v3149_v30, %v3145_v54 }
0x1a4c   :  { %6476 = vtanh.f32 %v8175_v63 }
0x1a52   :  { %v6477_v34 = vpop.eup %6476 }
0x1a53   :  { %v3153_v22 = vmul.f32 %v6477_v34, %v3142_v12 }
0x1a55   :  { %3154 = vst.msk [vmem:[#allocation6 + $0x8] sm:$0xff] %vm783_vm15, %v3153_v22  ;;  %v3162_v60 = vpack.c.bf16 %v3153_v22, %v3153_v22 }
0x1a56   :  { %3155 = vst.msk [vmem:[#allocation6 + $0x90] sm:$0xff] %vm785_vm0, %v3153_v22 }
0x1a57   :  { %6021 = vmatmul.msk.bf16.vlgmr.msra.gmra.mxu1 %vm703_vm1, %v3162_v60  ;;  %6022 = vmatmul.msk.bf16.vlgmr.msrb.gmra.mxu2 %vm703_vm1, %v3162_v60 }
0x1a58   :  { %3522 = vmatpush.bf16.msra.mxu1 %v7839_v24  ;;  %3535 = vmatpush.bf16.msrb.mxu2 %v7841_v28 }
0x1a5c   :  { %3523 = vmatpush.bf16.msra.mxu1 %v7868_v17  ;;  %3536 = vmatpush.bf16.msrb.mxu2 %v7882_v51 }
0x1a60   :  { %3524 = vmatpush.bf16.msra.mxu1 %v7903_v37  ;;  %3537 = vmatpush.bf16.msrb.mxu2 %v7908_v52 }
0x1a64   :  { %3525 = vmatpush.bf16.msra.mxu1 %v7928_v14  ;;  %3538 = vmatpush.bf16.msrb.mxu2 %v7950_v47 }
0x1ad4   :  { %v3175_v41 = vpop.f32.mrf.mxu1 }
0x1ad5   :  { %v3192_v23 = vadd.f32 %v3175_v41, %v3160_v25 }
0x1ad7   :  { %v6023_v48 = vmul.f32 -1.442695, %v3192_v23 }
0x1ad9   :  { %6478 = vpow2.f32 %v6023_v48 }
0x1ada   :  { %v3188_v20 = vpop.f32.mrf.mxu2 }
0x1adb   :  { %v3193_v30 = vadd.f32 %v3188_v20, %v3161_v21 }
0x1adc   :  { %v3177_v55 = vpop.f32.mrf.mxu1 }
0x1add   :  { %v6024_v57 = vmul.f32 -1.442695, %v3193_v30 }
0x1adf   :  { %v6479_v35 = vpop.eup %6478 }
0x1ae0   :  { %v3200_v18 = vadd.f32 1.0, %v6479_v35 }
0x1ae2   :  { %6480 = vrcp.f32 %v3200_v18  ;;  %v3190_v29 = vpop.f32.mrf.mxu2  ;;  %v3213_v3 = vand.u32 2147483648, %v3200_v18  ;;  %v3211_v58 = vand.u32 2147483647, %v3200_v18  ;;  %vm3207_vm2 = vweird.f32 %v3200_v18 }
0x1ae3   :  { %6482 = vtanh.f32 %v3193_v30 }
0x1ae4   :  { %v3214_v59 = vor.u32 1.1754944e-38, %v3213_v3  ;;  %vm3212_vm4 = vcmp.eq.f32.partialorder %v3211_v58, 8.507059e+37  ;;  %6484 = vpow2.f32 %v6024_v57 }
0x1ae8   :  { %v6481_v54 = vpop.eup %6480 }
0x1ae9   :  { %v3203_v4 = vmul.f32 %v6481_v54, %v3200_v18  ;;  %vm3208_vm14 = vweird.f32 %v6481_v54  ;;  %v6483_v12 = vpop.eup %6482 }
0x1aea   :  { %vm3209_vm3 = vmor %vm3207_vm2, %vm3208_vm14  ;;  %v6485_v60 = vpop.eup %6484 }
0x1aeb   :  { %v3204_v33 = vsub.f32 1.0, %v3203_v4  ;;  %v3201_v6 = vadd.f32 1.0, %v6485_v60  ;;  %v2656_v60 = vadd.f32 %v8002_v10, %v8147_v8 }
0x1aed   :  { %v3205_v2 = vmul.f32 %v6481_v54, %v3204_v33  ;;  %6486 = vrcp.f32 %v3201_v6  ;;  %v3228_v29 = vand.u32 2147483648, %v3201_v6  ;;  %vm3222_vm6 = vweird.f32 %v3201_v6 }
0x1aee   :  { %v3226_v5 = vand.u32 2147483647, %v3201_v6 }
0x1aef   :  { %v3206_v45 = vadd.f32 %v6481_v54, %v3205_v2  ;;  %v2597_v2 = vadd.f32 %v7998_v44, %v8137_v9 }
0x1af0   :  { %vm3227_vm8 = vcmp.eq.f32.partialorder %v3226_v5, 8.507059e+37 }
0x1af1   :  { %v3210_v34 = vsel %vm3209_vm3, %v6481_v54, %v3206_v45  ;;  %v3229_v54 = vor.u32 1.1754944e-38, %v3228_v29  ;;  %v3248_v58 = vadd.f32 %v8114_v40, %v2597_v2 }
0x1af2   :  { %v3215_v22 = vsel %vm3212_vm4, %v3214_v59, %v3210_v34 }
0x1af3   :  { %v3234_v19 = vmul.f32 %v6483_v12, %v3215_v22  ;;  %v6487_v25 = vpop.eup %6486  ;;  %v3233_v20 = vmul.f32 %v3215_v22, %v8175_v63 }
0x1af4   :  { %v3218_v41 = vmul.f32 %v6487_v25, %v3201_v6  ;;  %vm3223_vm5 = vweird.f32 %v6487_v25  ;;  %v3249_v6 = vadd.f32 %v8126_v27, %v2656_v60 }
0x1af5   :  { %3236 = vrot.lane.b32.xlu1 %v3234_v19, %s6819_s23  ;;  %vm3224_vm7 = vmor %vm3222_vm6, %vm3223_vm5 }
0x1af6   :  { %v3219_v23 = vsub.f32 1.0, %v3218_v41 }
0x1af8   :  { %v3220_v48 = vmul.f32 %v6487_v25, %v3219_v23 }
0x1afa   :  { %v3221_v18 = vadd.f32 %v6487_v25, %v3220_v48 }
0x1afc   :  { %v3225_v21 = vsel %vm3224_vm7, %v6487_v25, %v3221_v18 }
0x1afd   :  { %v3230_v4 = vsel %vm3227_vm8, %v3229_v54, %v3225_v21 }
0x1b67   :  { %v3237_v55 = vpop.permute.xlu1 %3236 }
0x1b68   :  { %v8198_v35 = vadd.f32 %v3237_v55, %v3233_v20 }
0x1b6a   :  { %6488 = vtanh.f32 %v8198_v35 }
0x1b70   :  { %v6489_v30 = vpop.eup %6488 }
0x1b71   :  { %v3241_v33 = vmul.f32 %v6489_v30, %v3230_v4 }
0x1b73   :  { %3242 = vst.msk [vmem:[#allocation6 + $0x10] sm:$0xff] %vm783_vm15, %v3241_v33  ;;  %v3250_v63 = vpack.c.bf16 %v3241_v33, %v3241_v33 }
0x1b74   :  { %3243 = vst.msk [vmem:[#allocation6 + $0x88] sm:$0xff] %vm785_vm0, %v3241_v33 }
0x1b75   :  { %6025 = vmatmul.msk.bf16.vlgmr.msra.gmra.mxu3 %vm703_vm1, %v3250_v63  ;;  %6026 = vmatmul.msk.bf16.vlgmr.msra.gmra.mxu0 %vm703_vm1, %v3250_v63 }
0x1b76   :  { %3610 = vmatpush.bf16.msra.mxu3 %v7839_v24  ;;  %3623 = vmatpush.bf16.msra.mxu0 %v7841_v28 }
0x1b7a   :  { %3611 = vmatpush.bf16.msra.mxu3 %v7868_v17  ;;  %3624 = vmatpush.bf16.msra.mxu0 %v7882_v51 }
0x1b7e   :  { %3612 = vmatpush.bf16.msra.mxu3 %v7903_v37  ;;  %3625 = vmatpush.bf16.msra.mxu0 %v7908_v52 }
0x1b82   :  { %3613 = vmatpush.bf16.msra.mxu3 %v7928_v14  ;;  %3626 = vmatpush.bf16.msra.mxu0 %v7950_v47 }
0x1bf2   :  { %v3276_v3 = vpop.f32.mrf.mxu0 }
0x1bf3   :  { %v3281_v41 = vadd.f32 %v3276_v3, %v3249_v6 }
0x1bf5   :  { %v6028_v27 = vmul.f32 -1.442695, %v3281_v41 }
0x1bf8   :  { %v3263_v45 = vpop.f32.mrf.mxu3 }
0x1bf9   :  { %v3280_v59 = vadd.f32 %v3263_v45, %v3248_v58 }
0x1bfa   :  { %v3278_v34 = vpop.f32.mrf.mxu0 }
0x1bfb   :  { %v6027_v12 = vmul.f32 -1.442695, %v3280_v59 }
0x1bfd   :  { %6490 = vpow2.f32 %v6027_v12 }
0x1c00   :  { %v3265_v22 = vpop.f32.mrf.mxu3 }
0x1c03   :  { %v6491_v19 = vpop.eup %6490 }
0x1c04   :  { %v3288_v57 = vadd.f32 1.0, %v6491_v19 }
0x1c06   :  { %6492 = vrcp.f32 %v3288_v57  ;;  %v3301_v40 = vand.u32 2147483648, %v3288_v57  ;;  %v3299_v20 = vand.u32 2147483647, %v3288_v57  ;;  %vm3295_vm10 = vweird.f32 %v3288_v57 }
0x1c07   :  { %6494 = vtanh.f32 %v3281_v41 }
0x1c08   :  { %v3302_v18 = vor.u32 1.1754944e-38, %v3301_v40  ;;  %vm3300_vm12 = vcmp.eq.f32.partialorder %v3299_v20, 8.507059e+37  ;;  %6496 = vpow2.f32 %v6028_v27 }
0x1c0c   :  { %v6493_v25 = vpop.eup %6492 }
0x1c0d   :  { %v3291_v23 = vmul.f32 %v6493_v25, %v3288_v57  ;;  %vm3296_vm9 = vweird.f32 %v6493_v25  ;;  %v6495_v5 = vpop.eup %6494 }
0x1c0e   :  { %vm3297_vm11 = vmor %vm3295_vm10, %vm3296_vm9  ;;  %v6497_v54 = vpop.eup %6496 }
0x1c0f   :  { %v3292_v44 = vsub.f32 1.0, %v3291_v23  ;;  %v3289_v30 = vadd.f32 1.0, %v6497_v54 }
0x1c11   :  { %v3293_v48 = vmul.f32 %v6493_v25, %v3292_v44  ;;  %6498 = vrcp.f32 %v3289_v30  ;;  %v3316_v34 = vand.u32 2147483648, %v3289_v30  ;;  %vm3310_vm14 = vweird.f32 %v3289_v30 }
0x1c12   :  { %v3314_v12 = vand.u32 2147483647, %v3289_v30 }
0x1c13   :  { %v3294_v55 = vadd.f32 %v6493_v25, %v3293_v48  ;;  %v3317_v19 = vor.u32 1.1754944e-38, %v3316_v34 }
0x1c14   :  { %vm3315_vm3 = vcmp.eq.f32.partialorder %v3314_v12, 8.507059e+37 }
0x1c15   :  { %v3298_v29 = vsel %vm3297_vm11, %v6493_v25, %v3294_v55  ;;  %v2600_v25 = vadd.f32 %v8006_v43, %v8137_v9 }
0x1c16   :  { %v3303_v21 = vsel %vm3300_vm12, %v3302_v18, %v3298_v29 }
0x1c17   :  { %v3322_v10 = vmul.f32 %v6495_v5, %v3303_v21  ;;  %v6499_v4 = vpop.eup %6498  ;;  %v3321_v2 = vmul.f32 %v3303_v21, %v8198_v35  ;;  %v3336_v41 = vadd.f32 %v8108_v11, %v2600_v25  ;;  %v2659_v5 = vadd.f32 %v8014_v16, %v8147_v8 }
0x1c18   :  { %v3306_v33 = vmul.f32 %v6499_v4, %v3289_v30  ;;  %vm3311_vm13 = vweird.f32 %v6499_v4 }
0x1c19   :  { %3324 = vrot.lane.b32.xlu2 %v3322_v10, %s6819_s23  ;;  %vm3312_vm2 = vmor %vm3310_vm14, %vm3311_vm13  ;;  %v3337_v21 = vadd.f32 %v8116_v61, %v2659_v5 }
0x1c1a   :  { %v3307_v63 = vsub.f32 1.0, %v3306_v33 }
0x1c1c   :  { %v3308_v3 = vmul.f32 %v6499_v4, %v3307_v63 }
0x1c1e   :  { %v3309_v59 = vadd.f32 %v6499_v4, %v3308_v3 }
0x1c20   :  { %v3313_v22 = vsel %vm3312_vm2, %v6499_v4, %v3309_v59 }
0x1c21   :  { %v3318_v60 = vsel %vm3315_vm3, %v3317_v19, %v3313_v22 }
0x1c73   :  { %v3325_v58 = vpop.permute.xlu2 %3324 }
0x1c74   :  { %v8221_v45 = vadd.f32 %v3325_v58, %v3321_v2 }
0x1c76   :  { %6500 = vtanh.f32 %v8221_v45 }
0x1c7c   :  { %v6501_v57 = vpop.eup %6500 }
0x1c7d   :  { %v3329_v6 = vmul.f32 %v6501_v57, %v3318_v60 }
0x1c7f   :  { %3330 = vst.msk [vmem:[#allocation6 + $0x18] sm:$0xff] %vm783_vm15, %v3329_v6  ;;  %v3338_v35 = vpack.c.bf16 %v3329_v6, %v3329_v6 }
0x1c80   :  { %3331 = vst.msk [vmem:[#allocation6 + $0x80] sm:$0xff] %vm785_vm0, %v3329_v6 }
0x1c81   :  { %6029 = vmatmul.msk.bf16.vlgmr.msrb.gmra.mxu1 %vm703_vm1, %v3338_v35  ;;  %6030 = vmatmul.msk.bf16.vlgmr.msra.gmra.mxu2 %vm703_vm1, %v3338_v35 }
0x1c82   :  { %3698 = vmatpush.bf16.msrb.mxu1 %v7839_v24  ;;  %3711 = vmatpush.bf16.msra.mxu2 %v7841_v28 }
0x1c86   :  { %3699 = vmatpush.bf16.msrb.mxu1 %v7868_v17  ;;  %3712 = vmatpush.bf16.msra.mxu2 %v7882_v51 }
0x1c8a   :  { %3700 = vmatpush.bf16.msrb.mxu1 %v7903_v37  ;;  %3713 = vmatpush.bf16.msra.mxu2 %v7908_v52 }
0x1c8e   :  { %3701 = vmatpush.bf16.msrb.mxu1 %v7928_v14  ;;  %3714 = vmatpush.bf16.msra.mxu2 %v7950_v47 }
0x1cfe   :  { %v3351_v23 = vpop.f32.mrf.mxu1 }
0x1cff   :  { %v3368_v44 = vadd.f32 %v3351_v23, %v3336_v41 }
0x1d01   :  { %v6031_v40 = vmul.f32 -1.442695, %v3368_v44 }
0x1d03   :  { %6502 = vpow2.f32 %v6031_v40 }
0x1d04   :  { %v3364_v48 = vpop.f32.mrf.mxu2 }
0x1d05   :  { %v3369_v27 = vadd.f32 %v3364_v48, %v3337_v21 }
0x1d06   :  { %v3353_v20 = vpop.f32.mrf.mxu1 }
0x1d07   :  { %v6032_v61 = vmul.f32 -1.442695, %v3369_v27 }
0x1d09   :  { %v6503_v55 = vpop.eup %6502 }
0x1d0a   :  { %v3376_v18 = vadd.f32 1.0, %v6503_v55 }
0x1d0c   :  { %6504 = vrcp.f32 %v3376_v18  ;;  %v3366_v29 = vpop.f32.mrf.mxu2  ;;  %v3389_v11 = vand.u32 2147483648, %v3376_v18  ;;  %v3387_v4 = vand.u32 2147483647, %v3376_v18  ;;  %vm3383_vm5 = vweird.f32 %v3376_v18 }
0x1d0d   :  { %6506 = vtanh.f32 %v3369_v27  ;;  %v2602_v29 = vadd.f32 %v8018_v13, %v8137_v9 }
0x1d0e   :  { %v3390_v63 = vor.u32 1.1754944e-38, %v3389_v11  ;;  %vm3388_vm7 = vcmp.eq.f32.partialorder %v3387_v4, 8.507059e+37  ;;  %6508 = vpow2.f32 %v6032_v61  ;;  %v2661_v4 = vadd.f32 %v8026_v0, %v8147_v8 }
0x1d0f   :  { %v3424_v5 = vadd.f32 %v8100_v46, %v2602_v29 }
0x1d12   :  { %v6505_v10 = vpop.eup %6504 }
0x1d13   :  { %v3379_v43 = vmul.f32 %v6505_v10, %v3376_v18  ;;  %vm3384_vm4 = vweird.f32 %v6505_v10  ;;  %v6507_v2 = vpop.eup %6506 }
0x1d14   :  { %vm3385_vm6 = vmor %vm3383_vm5, %vm3384_vm4  ;;  %v6509_v59 = vpop.eup %6508 }
0x1d15   :  { %v3380_v54 = vsub.f32 1.0, %v3379_v43  ;;  %v3377_v34 = vadd.f32 1.0, %v6509_v59 }
0x1d17   :  { %v3381_v30 = vmul.f32 %v6505_v10, %v3380_v54  ;;  %6510 = vrcp.f32 %v3377_v34  ;;  %v3404_v41 = vand.u32 2147483648, %v3377_v34  ;;  %vm3398_vm9 = vweird.f32 %v3377_v34 }
0x1d18   :  { %v3402_v23 = vand.u32 2147483647, %v3377_v34 }
0x1d19   :  { %v3382_v33 = vadd.f32 %v6505_v10, %v3381_v30  ;;  %v3405_v40 = vor.u32 1.1754944e-38, %v3404_v41 }
0x1d1a   :  { %vm3403_vm11 = vcmp.eq.f32.partialorder %v3402_v23, 8.507059e+37 }
0x1d1b   :  { %v3386_v3 = vsel %vm3385_vm6, %v6505_v10, %v3382_v33  ;;  %v3425_v33 = vadd.f32 %v8104_v36, %v2661_v4 }
0x1d1c   :  { %v3391_v58 = vsel %vm3388_vm7, %v3390_v63, %v3386_v3 }
0x1d1d   :  { %v3410_v16 = vmul.f32 %v6507_v2, %v3391_v58  ;;  %v6511_v12 = vpop.eup %6510  ;;  %v3409_v60 = vmul.f32 %v3391_v58, %v8221_v45 }
0x1d1e   :  { %v3394_v22 = vmul.f32 %v6511_v12, %v3377_v34  ;;  %vm3399_vm8 = vweird.f32 %v6511_v12 }
0x1d1f   :  { %3412 = vrot.lane.b32.xlu0 %v3410_v16, %s6819_s23  ;;  %vm3400_vm10 = vmor %vm3398_vm9, %vm3399_vm8 }
0x1d20   :  { %v3395_v19 = vsub.f32 1.0, %v3394_v22 }
0x1d22   :  { %v3396_v57 = vmul.f32 %v6511_v12, %v3395_v19 }
0x1d24   :  { %v3397_v25 = vadd.f32 %v6511_v12, %v3396_v57 }
0x1d26   :  { %v3401_v44 = vsel %vm3400_vm10, %v6511_v12, %v3397_v25 }
0x1d27   :  { %v3406_v20 = vsel %vm3403_vm11, %v3405_v40, %v3401_v44 }
0x1d91   :  { %v3413_v6 = vpop.permute.xlu0 %3412 }
0x1d92   :  { %v8244_v35 = vadd.f32 %v3413_v6, %v3409_v60 }
0x1d94   :  { %6512 = vtanh.f32 %v8244_v35 }
0x1d9a   :  { %v6513_v48 = vpop.eup %6512 }
0x1d9b   :  { %v3417_v55 = vmul.f32 %v6513_v48, %v3406_v20 }
0x1d9d   :  { %3418 = vst.msk [vmem:[#allocation6 + $0x20] sm:$0xff] %vm783_vm15, %v3417_v55  ;;  %v3426_v45 = vpack.c.bf16 %v3417_v55, %v3417_v55 }
0x1d9e   :  { %3419 = vst.msk [vmem:[#allocation6 + $0x78] sm:$0xff] %vm785_vm0, %v3417_v55 }
0x1d9f   :  { %6033 = vmatmul.msk.bf16.vlgmr.msrb.gmra.mxu3 %vm703_vm1, %v3426_v45  ;;  %6034 = vmatmul.msk.bf16.vlgmr.msrb.gmra.mxu0 %vm703_vm1, %v3426_v45 }
0x1da0   :  { %3786 = vmatpush.bf16.msrb.mxu3 %v7839_v24  ;;  %3799 = vmatpush.bf16.msrb.mxu0 %v7841_v28 }
0x1da4   :  { %3787 = vmatpush.bf16.msrb.mxu3 %v7868_v17  ;;  %3800 = vmatpush.bf16.msrb.mxu0 %v7882_v51 }
0x1da8   :  { %3788 = vmatpush.bf16.msrb.mxu3 %v7903_v37  ;;  %3801 = vmatpush.bf16.msrb.mxu0 %v7908_v52 }
0x1dac   :  { %3789 = vmatpush.bf16.msrb.mxu3 %v7928_v14  ;;  %3802 = vmatpush.bf16.msrb.mxu0 %v7950_v47 }
0x1e1c   :  { %v3452_v18 = vpop.f32.mrf.mxu0 }
0x1e1d   :  { %v3457_v3 = vadd.f32 %v3452_v18, %v3425_v33 }
0x1e1f   :  { %v6036_v36 = vmul.f32 -1.442695, %v3457_v3 }
0x1e22   :  { %v3439_v21 = vpop.f32.mrf.mxu3 }
0x1e23   :  { %v3456_v10 = vadd.f32 %v3439_v21, %v3424_v5 }
0x1e24   :  { %v3454_v27 = vpop.f32.mrf.mxu0 }
0x1e25   :  { %v6035_v43 = vmul.f32 -1.442695, %v3456_v10  ;;  %v2605_v10 = vadd.f32 %v8030_v49, %v8137_v9 }
0x1e27   :  { %6514 = vpow2.f32 %v6035_v43  ;;  %v3512_v27 = vadd.f32 %v8092_v38, %v2605_v10 }
0x1e2a   :  { %v3441_v54 = vpop.f32.mrf.mxu3 }
0x1e2d   :  { %v6515_v11 = vpop.eup %6514 }
0x1e2e   :  { %v3464_v30 = vadd.f32 1.0, %v6515_v11 }
0x1e30   :  { %6516 = vrcp.f32 %v3464_v30  ;;  %v3477_v46 = vand.u32 2147483648, %v3464_v30  ;;  %v3475_v16 = vand.u32 2147483647, %v3464_v30  ;;  %vm3471_vm13 = vweird.f32 %v3464_v30 }
0x1e31   :  { %6518 = vtanh.f32 %v3457_v3 }
0x1e32   :  { %v3478_v59 = vor.u32 1.1754944e-38, %v3477_v46  ;;  %vm3476_vm2 = vcmp.eq.f32.partialorder %v3475_v16, 8.507059e+37  ;;  %6520 = vpow2.f32 %v6036_v36 }
0x1e36   :  { %v6517_v63 = vpop.eup %6516 }
0x1e37   :  { %v3467_v2 = vmul.f32 %v6517_v63, %v3464_v30  ;;  %vm3472_vm12 = vweird.f32 %v6517_v63  ;;  %v6519_v12 = vpop.eup %6518 }
0x1e38   :  { %vm3473_vm14 = vmor %vm3471_vm13, %vm3472_vm12  ;;  %v6521_v19 = vpop.eup %6520 }
0x1e39   :  { %v3468_v13 = vsub.f32 1.0, %v3467_v2  ;;  %v3465_v57 = vadd.f32 1.0, %v6521_v19  ;;  %v2664_v2 = vadd.f32 %v8036_v50, %v8147_v8 }
0x1e3b   :  { %v3469_v58 = vmul.f32 %v6517_v63, %v3468_v13  ;;  %6522 = vrcp.f32 %v3465_v57  ;;  %v3492_v20 = vand.u32 2147483648, %v3465_v57  ;;  %vm3486_vm4 = vweird.f32 %v3465_v57 }
0x1e3c   :  { %v3490_v55 = vand.u32 2147483647, %v3465_v57  ;;  %v3513_v13 = vadd.f32 %v8096_v1, %v2664_v2  ;;  %v2666_v2 = vadd.f32 %v8044_v15, %v8147_v8 }
0x1e3d   :  { %v3470_v61 = vadd.f32 %v6517_v63, %v3469_v58  ;;  %v3493_v18 = vor.u32 1.1754944e-38, %v3492_v20 }
0x1e3e   :  { %vm3491_vm6 = vcmp.eq.f32.partialorder %v3490_v55, 8.507059e+37 }
0x1e3f   :  { %v3474_v34 = vsel %vm3473_vm14, %v6517_v63, %v3470_v61 }
0x1e40   :  { %v3479_v22 = vsel %vm3476_vm2, %v3478_v59, %v3474_v34 }
0x1e41   :  { %v3498_v0 = vmul.f32 %v6519_v12, %v3479_v22  ;;  %v6523_v60 = vpop.eup %6522  ;;  %v3497_v23 = vmul.f32 %v3479_v22, %v8244_v35 }
0x1e42   :  { %v3482_v6 = vmul.f32 %v6523_v60, %v3465_v57  ;;  %vm3487_vm3 = vweird.f32 %v6523_v60 }
0x1e43   :  { %3500 = vrot.lane.b32.xlu1 %v3498_v0, %s6819_s23  ;;  %vm3488_vm5 = vmor %vm3486_vm4, %vm3487_vm3 }
0x1e44   :  { %v3483_v25 = vsub.f32 1.0, %v3482_v6 }
0x1e46   :  { %v3484_v41 = vmul.f32 %v6523_v60, %v3483_v25 }
0x1e48   :  { %v3485_v48 = vadd.f32 %v6523_v60, %v3484_v41 }
0x1e4a   :  { %v3489_v45 = vsel %vm3488_vm5, %v6523_v60, %v3485_v48 }
0x1e4b   :  { %v3494_v5 = vsel %vm3491_vm6, %v3493_v18, %v3489_v45 }
0x1eb5   :  { %v3501_v44 = vpop.permute.xlu1 %3500 }
0x1eb6   :  { %v8267_v40 = vadd.f32 %v3501_v44, %v3497_v23 }
0x1eb8   :  { %6524 = vtanh.f32 %v8267_v40 }
0x1ebe   :  { %v6525_v29 = vpop.eup %6524 }
0x1ebf   :  { %v3505_v21 = vmul.f32 %v6525_v29, %v3494_v5 }
0x1ec1   :  { %3506 = vst.msk [vmem:[#allocation6 + $0x28] sm:$0xff] %vm783_vm15, %v3505_v21  ;;  %v3514_v35 = vpack.c.bf16 %v3505_v21, %v3505_v21 }
0x1ec2   :  { %3507 = vst.msk [vmem:[#allocation6 + $0x70] sm:$0xff] %vm785_vm0, %v3505_v21 }
0x1ec3   :  { %6037 = vmatmul.msk.bf16.vlgmr.msra.gmra.mxu1 %vm703_vm1, %v3514_v35  ;;  %6038 = vmatmul.msk.bf16.vlgmr.msrb.gmra.mxu2 %vm703_vm1, %v3514_v35 }
0x1ec4   :  { %3874 = vmatpush.bf16.msra.mxu1 %v7839_v24  ;;  %3887 = vmatpush.bf16.msrb.mxu2 %v7841_v28 }
0x1ec8   :  { %3875 = vmatpush.bf16.msra.mxu1 %v7868_v17  ;;  %3888 = vmatpush.bf16.msrb.mxu2 %v7882_v51 }
0x1ecc   :  { %3876 = vmatpush.bf16.msra.mxu1 %v7903_v37  ;;  %3889 = vmatpush.bf16.msrb.mxu2 %v7908_v52 }
0x1ed0   :  { %3877 = vmatpush.bf16.msra.mxu1 %v7928_v14  ;;  %3890 = vmatpush.bf16.msrb.mxu2 %v7950_v47 }
0x1f40   :  { %v3527_v43 = vpop.f32.mrf.mxu1 }
0x1f41   :  { %v3544_v54 = vadd.f32 %v3527_v43, %v3512_v27  ;;  %v2607_v27 = vadd.f32 %v8040_v31, %v8137_v9 }
0x1f43   :  { %v6039_v11 = vmul.f32 -1.442695, %v3544_v54  ;;  %v3600_v43 = vadd.f32 %v8084_v62, %v2607_v27 }
0x1f45   :  { %6526 = vpow2.f32 %v6039_v11 }
0x1f46   :  { %v3540_v30 = vpop.f32.mrf.mxu2 }
0x1f47   :  { %v3545_v58 = vadd.f32 %v3540_v30, %v3513_v13  ;;  %v3601_v13 = vadd.f32 %v8088_v26, %v2666_v2 }
0x1f48   :  { %v3529_v4 = vpop.f32.mrf.mxu1 }
0x1f49   :  { %v6040_v1 = vmul.f32 -1.442695, %v3545_v58 }
0x1f4b   :  { %v6527_v33 = vpop.eup %6526 }
0x1f4c   :  { %v3552_v63 = vadd.f32 1.0, %v6527_v33 }
0x1f4e   :  { %6528 = vrcp.f32 %v3552_v63  ;;  %v3542_v3 = vpop.f32.mrf.mxu2  ;;  %v3565_v38 = vand.u32 2147483648, %v3552_v63  ;;  %v3563_v59 = vand.u32 2147483647, %v3552_v63  ;;  %vm3559_vm8 = vweird.f32 %v3552_v63 }
0x1f4f   :  { %6530 = vtanh.f32 %v3545_v58 }
0x1f50   :  { %v3566_v12 = vor.u32 1.1754944e-38, %v3565_v38  ;;  %vm3564_vm10 = vcmp.eq.f32.partialorder %v3563_v59, 8.507059e+37  ;;  %6532 = vpow2.f32 %v6040_v1 }
0x1f54   :  { %v6529_v46 = vpop.eup %6528 }
0x1f55   :  { %v3555_v49 = vmul.f32 %v6529_v46, %v3552_v63  ;;  %vm3560_vm7 = vweird.f32 %v6529_v46  ;;  %v6531_v0 = vpop.eup %6530 }
0x1f56   :  { %vm3561_vm9 = vmor %vm3559_vm8, %vm3560_vm7  ;;  %v6533_v19 = vpop.eup %6532 }
0x1f57   :  { %v3556_v16 = vsub.f32 1.0, %v3555_v49  ;;  %v3553_v57 = vadd.f32 1.0, %v6533_v19 }
0x1f59   :  { %v3557_v61 = vmul.f32 %v6529_v46, %v3556_v16  ;;  %6534 = vrcp.f32 %v3553_v57  ;;  %v3580_v55 = vand.u32 2147483648, %v3553_v57  ;;  %vm3574_vm12 = vweird.f32 %v3553_v57 }
0x1f5a   :  { %v3578_v45 = vand.u32 2147483647, %v3553_v57 }
0x1f5b   :  { %v3558_v34 = vadd.f32 %v6529_v46, %v3557_v61  ;;  %v3581_v29 = vor.u32 1.1754944e-38, %v3580_v55 }
0x1f5c   :  { %vm3579_vm14 = vcmp.eq.f32.partialorder %v3578_v45, 8.507059e+37 }
0x1f5d   :  { %v3562_v22 = vsel %vm3561_vm9, %v6529_v46, %v3558_v34 }
0x1f5e   :  { %v3567_v36 = vsel %vm3564_vm10, %v3566_v12, %v3562_v22 }
0x1f5f   :  { %v3586_v50 = vmul.f32 %v6531_v0, %v3567_v36  ;;  %v6535_v60 = vpop.eup %6534  ;;  %v3585_v23 = vmul.f32 %v3567_v36, %v8267_v40 }
0x1f60   :  { %v3570_v6 = vmul.f32 %v6535_v60, %v3553_v57  ;;  %vm3575_vm11 = vweird.f32 %v6535_v60 }
0x1f61   :  { %3588 = vrot.lane.b32.xlu2 %v3586_v50, %s6819_s23  ;;  %vm3576_vm13 = vmor %vm3574_vm12, %vm3575_vm11 }
0x1f62   :  { %v3571_v25 = vsub.f32 1.0, %v3570_v6 }
0x1f64   :  { %v3572_v41 = vmul.f32 %v6535_v60, %v3571_v25 }
0x1f66   :  { %v3573_v20 = vadd.f32 %v6535_v60, %v3572_v41 }
0x1f68   :  { %v3577_v18 = vsel %vm3576_vm13, %v6535_v60, %v3573_v20 }
0x1f69   :  { %v3582_v21 = vsel %vm3579_vm14, %v3581_v29, %v3577_v18 }
0x1fbb   :  { %v3589_v44 = vpop.permute.xlu2 %3588 }
0x1fbc   :  { %v8290_v48 = vadd.f32 %v3589_v44, %v3585_v23 }
0x1fbe   :  { %6536 = vtanh.f32 %v8290_v48 }
0x1fc4   :  { %v6537_v5 = vpop.eup %6536 }
0x1fc5   :  { %v3593_v35 = vmul.f32 %v6537_v5, %v3582_v21  ;;  %v2610_v5 = vadd.f32 %v8048_v39, %v8137_v9 }
0x1fc7   :  { %3594 = vst.msk [vmem:[#allocation6 + $0x30] sm:$0xff] %vm783_vm15, %v3593_v35  ;;  %v3602_v40 = vpack.c.bf16 %v3593_v35, %v3593_v35  ;;  %v3688_v21 = vadd.f32 %v8076_v56, %v2610_v5 }
0x1fc8   :  { %3595 = vst.msk [vmem:[#allocation6 + $0x68] sm:$0xff] %vm785_vm0, %v3593_v35 }
0x1fc9   :  { %6041 = vmatmul.msk.bf16.vlgmr.msra.gmra.mxu3 %vm703_vm1, %v3602_v40  ;;  %6042 = vmatmul.msk.bf16.vlgmr.msra.gmra.mxu0 %vm703_vm1, %v3602_v40 }
0x1fca   :  { %3962 = vmatpush.bf16.msra.mxu3 %v7839_v24  ;;  %3975 = vmatpush.bf16.msra.mxu0 %v7841_v28 }
0x1fce   :  { %3963 = vmatpush.bf16.msra.mxu3 %v7868_v17  ;;  %3976 = vmatpush.bf16.msra.mxu0 %v7882_v51 }
0x1fd2   :  { %3964 = vmatpush.bf16.msra.mxu3 %v7903_v37  ;;  %3977 = vmatpush.bf16.msra.mxu0 %v7908_v52 }
0x1fd6   :  { %3965 = vmatpush.bf16.msra.mxu3 %v7928_v14  ;;  %3978 = vmatpush.bf16.msra.mxu0 %v7950_v47 }
0x2046   :  { %v3628_v10 = vpop.f32.mrf.mxu0 }
0x2047   :  { %v3633_v58 = vadd.f32 %v3628_v10, %v3601_v13 }
0x2049   :  { %v6044_v26 = vmul.f32 -1.442695, %v3633_v58 }
0x204c   :  { %v3615_v54 = vpop.f32.mrf.mxu3 }
0x204d   :  { %v3632_v11 = vadd.f32 %v3615_v54, %v3600_v43 }
0x204e   :  { %v3630_v30 = vpop.f32.mrf.mxu0 }
0x204f   :  { %v6043_v4 = vmul.f32 -1.442695, %v3632_v11 }
0x2051   :  { %6538 = vpow2.f32 %v6043_v4  ;;  %v2669_v4 = vadd.f32 %v8052_v53, %v8147_v8 }
0x2054   :  { %v3617_v33 = vpop.f32.mrf.mxu3 }
0x2055   :  { %v3689_v33 = vadd.f32 %v8078_v42, %v2669_v4 }
0x2057   :  { %v6539_v63 = vpop.eup %6538 }
0x2058   :  { %v3640_v3 = vadd.f32 1.0, %v6539_v63 }
0x205a   :  { %6540 = vrcp.f32 %v3640_v3  ;;  %v3653_v62 = vand.u32 2147483648, %v3640_v3  ;;  %v3651_v38 = vand.u32 2147483647, %v3640_v3  ;;  %vm3647_vm3 = vweird.f32 %v3640_v3 }
0x205b   :  { %6542 = vtanh.f32 %v3633_v58 }
0x205c   :  { %v3654_v59 = vor.u32 1.1754944e-38, %v3653_v62  ;;  %vm3652_vm5 = vcmp.eq.f32.partialorder %v3651_v38, 8.507059e+37  ;;  %6544 = vpow2.f32 %v6044_v26 }
0x2060   :  { %v6541_v46 = vpop.eup %6540 }
0x2061   :  { %v3643_v49 = vmul.f32 %v6541_v46, %v3640_v3  ;;  %vm3648_vm2 = vweird.f32 %v6541_v46  ;;  %v6543_v12 = vpop.eup %6542 }
0x2062   :  { %vm3649_vm4 = vmor %vm3647_vm3, %vm3648_vm2  ;;  %v6545_v0 = vpop.eup %6544 }
0x2063   :  { %v3644_v31 = vsub.f32 1.0, %v3643_v49  ;;  %v3641_v36 = vadd.f32 1.0, %v6545_v0 }
0x2065   :  { %v3645_v16 = vmul.f32 %v6541_v46, %v3644_v31  ;;  %6546 = vrcp.f32 %v3641_v36  ;;  %v3668_v23 = vand.u32 2147483648, %v3641_v36  ;;  %vm3662_vm7 = vweird.f32 %v3641_v36 }
0x2066   :  { %v3666_v44 = vand.u32 2147483647, %v3641_v36 }
0x2067   :  { %v3646_v61 = vadd.f32 %v6541_v46, %v3645_v16  ;;  %v3669_v55 = vor.u32 1.1754944e-38, %v3668_v23 }
0x2068   :  { %vm3667_vm9 = vcmp.eq.f32.partialorder %v3666_v44, 8.507059e+37  ;;  %v2612_v44 = vadd.f32 %v8056_v7, %v8137_v9 }
0x2069   :  { %v3650_v34 = vsel %vm3649_vm4, %v6541_v46, %v3646_v61 }
0x206a   :  { %v3655_v22 = vsel %vm3652_vm5, %v3654_v59, %v3650_v34 }
0x206b   :  { %v3674_v15 = vmul.f32 %v6543_v12, %v3655_v22  ;;  %v6547_v50 = vpop.eup %6546  ;;  %v3673_v60 = vmul.f32 %v3655_v22, %v8290_v48 }
0x206c   :  { %v3658_v1 = vmul.f32 %v6547_v50, %v3641_v36  ;;  %vm3663_vm6 = vweird.f32 %v6547_v50 }
0x206d   :  { %3676 = vrot.lane.b32.xlu0 %v3674_v15, %s6819_s23  ;;  %vm3664_vm8 = vmor %vm3662_vm7, %vm3663_vm6 }
0x206e   :  { %v3659_v19 = vsub.f32 1.0, %v3658_v1 }
0x2070   :  { %v3660_v57 = vmul.f32 %v6547_v50, %v3659_v19 }
0x2072   :  { %v3661_v41 = vadd.f32 %v6547_v50, %v3660_v57 }
0x2074   :  { %v3665_v20 = vsel %vm3664_vm8, %v6547_v50, %v3661_v41 }
0x2075   :  { %v3670_v18 = vsel %vm3667_vm9, %v3669_v55, %v3665_v20  ;;  %v3776_v20 = vadd.f32 %v8070_v32, %v2612_v44 }
0x20df   :  { %v3677_v6 = vpop.permute.xlu0 %3676 }
0x20e0   :  { %v8313_v25 = vadd.f32 %v3677_v6, %v3673_v60 }
0x20e2   :  { %6548 = vtanh.f32 %v8313_v25 }
0x20e8   :  { %v6549_v45 = vpop.eup %6548 }
0x20e9   :  { %v3681_v29 = vmul.f32 %v6549_v45, %v3670_v18 }
0x20eb   :  { %3682 = vst.msk [vmem:[#allocation6 + $0x38] sm:$0xff] %vm783_vm15, %v3681_v29  ;;  %v3690_v48 = vpack.c.bf16 %v3681_v29, %v3681_v29 }
0x20ec   :  { %3683 = vst.msk [vmem:[#allocation6 + $0x60] sm:$0xff] %vm785_vm0, %v3681_v29 }
0x20ed   :  { %6045 = vmatmul.msk.bf16.vlgmr.msrb.gmra.mxu1 %vm703_vm1, %v3690_v48  ;;  %6046 = vmatmul.msk.bf16.vlgmr.msra.gmra.mxu2 %vm703_vm1, %v3690_v48 }
0x20ee   :  { %4050 = vmatpush.bf16.msrb.mxu1 %v7839_v24  ;;  %4063 = vmatpush.bf16.msra.mxu2 %v7841_v28 }
0x20f2   :  { %4051 = vmatpush.bf16.msrb.mxu1 %v7868_v17  ;;  %4064 = vmatpush.bf16.msra.mxu2 %v7882_v51 }
0x20f6   :  { %4052 = vmatpush.bf16.msrb.mxu1 %v7903_v37  ;;  %4065 = vmatpush.bf16.msra.mxu2 %v7908_v52 }
0x20fa   :  { %4053 = vmatpush.bf16.msrb.mxu1 %v7928_v14  ;;  %4066 = vmatpush.bf16.msra.mxu2 %v7950_v47 }
0x216a   :  { %v3703_v35 = vpop.f32.mrf.mxu1 }
0x216b   :  { %v3720_v40 = vadd.f32 %v3703_v35, %v3688_v21  ;;  %v8991_v35 = vld [vmem:[#allocation17_spill] sm:$0xff] }
0x216d   :  { %v6047_v10 = vmul.f32 -1.442695, %v3720_v40  ;;  %v2671_v40 = vadd.f32 %v8991_v35, %v8147_v8 }
0x216f   :  { %6550 = vpow2.f32 %v6047_v10  ;;  %v8992_v10 = vld [vmem:[#allocation41_spill] sm:$0xff] }
0x2170   :  { %v3716_v27 = vpop.f32.mrf.mxu2 }
0x2171   :  { %v3721_v3 = vadd.f32 %v3716_v27, %v3689_v33  ;;  %v3777_v27 = vadd.f32 %v8992_v10, %v2671_v40 }
0x2172   :  { %v3705_v43 = vpop.f32.mrf.mxu1 }
0x2173   :  { %v6048_v42 = vmul.f32 -1.442695, %v3721_v3 }
0x2175   :  { %v6551_v54 = vpop.eup %6550 }
0x2176   :  { %v3728_v11 = vadd.f32 1.0, %v6551_v54 }
0x2178   :  { %6552 = vrcp.f32 %v3728_v11  ;;  %v3718_v30 = vpop.f32.mrf.mxu2  ;;  %v3741_v56 = vand.u32 2147483648, %v3728_v11  ;;  %v3739_v46 = vand.u32 2147483647, %v3728_v11  ;;  %vm3735_vm11 = vweird.f32 %v3728_v11 }
0x2179   :  { %6554 = vtanh.f32 %v3721_v3 }
0x217a   :  { %v3742_v49 = vor.u32 1.1754944e-38, %v3741_v56  ;;  %vm3740_vm13 = vcmp.eq.f32.partialorder %v3739_v46, 8.507059e+37  ;;  %6556 = vpow2.f32 %v6048_v42 }
0x217e   :  { %v6553_v63 = vpop.eup %6552 }
0x217f   :  { %v3731_v39 = vmul.f32 %v6553_v63, %v3728_v11  ;;  %vm3736_vm10 = vweird.f32 %v6553_v63  ;;  %v6555_v62 = vpop.eup %6554 }
0x2180   :  { %vm3737_vm12 = vmor %vm3735_vm11, %vm3736_vm10  ;;  %v6557_v38 = vpop.eup %6556 }
0x2181   :  { %v3732_v2 = vsub.f32 1.0, %v3731_v39  ;;  %v3729_v61 = vadd.f32 1.0, %v6557_v38 }
0x2183   :  { %v3733_v13 = vmul.f32 %v6553_v63, %v3732_v2  ;;  %6558 = vrcp.f32 %v3729_v61  ;;  %v3756_v50 = vand.u32 2147483648, %v3729_v61  ;;  %vm3750_vm2 = vweird.f32 %v3729_v61 }
0x2184   :  { %v3754_v1 = vand.u32 2147483647, %v3729_v61 }
0x2185   :  { %v3734_v58 = vadd.f32 %v6553_v63, %v3733_v13  ;;  %v3757_v57 = vor.u32 1.1754944e-38, %v3756_v50  ;;  %v8993_v50 = vld [vmem:[#allocation16_spill] sm:$0xff] }
0x2186   :  { %vm3755_vm4 = vcmp.eq.f32.partialorder %v3754_v1, 8.507059e+37  ;;  %v2615_v1 = vadd.f32 %v8993_v50, %v8137_v9 }
0x2187   :  { %v3738_v31 = vsel %vm3737_vm12, %v6553_v63, %v3734_v58 }
0x2188   :  { %v3743_v16 = vsel %vm3740_vm13, %v3742_v49, %v3738_v31 }
0x2189   :  { %v3762_v53 = vmul.f32 %v6555_v62, %v3743_v16  ;;  %v6559_v59 = vpop.eup %6558  ;;  %v3761_v15 = vmul.f32 %v3743_v16, %v8313_v25 }
0x218a   :  { %v3746_v34 = vmul.f32 %v6559_v59, %v3729_v61  ;;  %vm3751_vm14 = vweird.f32 %v6559_v59 }
0x218b   :  { %3764 = vrot.lane.b32.xlu1 %v3762_v53, %s6819_s23  ;;  %vm3752_vm3 = vmor %vm3750_vm2, %vm3751_vm14 }
0x218c   :  { %v3747_v12 = vsub.f32 1.0, %v3746_v34 }
0x218e   :  { %v3748_v22 = vmul.f32 %v6559_v59, %v3747_v12 }
0x2190   :  { %v3749_v36 = vadd.f32 %v6559_v59, %v3748_v22 }
0x2192   :  { %v3753_v19 = vsel %vm3752_vm3, %v6559_v59, %v3749_v36 }
0x2193   :  { %v3758_v6 = vsel %vm3755_vm4, %v3757_v57, %v3753_v19  ;;  %v8994_v19 = vld [vmem:[#allocation32_spill] sm:$0xff] }
0x2194   :  { %v3864_v57 = vadd.f32 %v8994_v19, %v2615_v1 }
0x21fd   :  { %v3765_v26 = vpop.permute.xlu1 %3764 }
0x21fe   :  { %v8336_v0 = vadd.f32 %v3765_v26, %v3761_v15 }
0x2200   :  { %6560 = vtanh.f32 %v8336_v0 }
0x2206   :  { %v6561_v60 = vpop.eup %6560 }
0x2207   :  { %v3769_v41 = vmul.f32 %v6561_v60, %v3758_v6 }
0x2209   :  { %3770 = vst.msk [vmem:[#allocation6 + $0x40] sm:$0xff] %vm783_vm15, %v3769_v41  ;;  %v3778_v25 = vpack.c.bf16 %v3769_v41, %v3769_v41 }
0x220a   :  { %3771 = vst.msk [vmem:[#allocation6 + $0x58] sm:$0xff] %vm785_vm0, %v3769_v41 }
0x220b   :  { %6049 = vmatmul.msk.bf16.vlgmr.msrb.gmra.mxu3 %vm703_vm1, %v3778_v25  ;;  %6050 = vmatmul.msk.bf16.vlgmr.msrb.gmra.mxu0 %vm703_vm1, %v3778_v25 }
0x220c   :  { %4138 = vmatpush.bf16.msrb.mxu3 %v7839_v24  ;;  %4151 = vmatpush.bf16.msrb.mxu0 %v7841_v28 }
0x2210   :  { %4139 = vmatpush.bf16.msrb.mxu3 %v7868_v17  ;;  %4152 = vmatpush.bf16.msrb.mxu0 %v7882_v51 }
0x2214   :  { %4140 = vmatpush.bf16.msrb.mxu3 %v7903_v37  ;;  %4153 = vmatpush.bf16.msrb.mxu0 %v7908_v52 }
0x2218   :  { %4141 = vmatpush.bf16.msrb.mxu3 %v7928_v14  ;;  %4154 = vmatpush.bf16.msrb.mxu0 %v7950_v47 }
0x2288   :  { %v3804_v23 = vpop.f32.mrf.mxu0 }
0x2289   :  { %v3809_v54 = vadd.f32 %v3804_v23, %v3777_v27 }
0x228b   :  { %v6052_v13 = vmul.f32 -1.442695, %v3809_v54 }
0x228e   :  { %v3791_v55 = vpop.f32.mrf.mxu3 }
0x228f   :  { %v3808_v45 = vadd.f32 %v3791_v55, %v3776_v20  ;;  %v8995_v55 = vld [vmem:[#allocation15_spill] sm:$0xff] }
0x2290   :  { %v3806_v18 = vpop.f32.mrf.mxu0 }
0x2291   :  { %v6051_v29 = vmul.f32 -1.442695, %v3808_v45  ;;  %v2674_v45 = vadd.f32 %v8995_v55, %v8147_v8 }
0x2293   :  { %6562 = vpow2.f32 %v6051_v29  ;;  %v8996_v29 = vld [vmem:[#allocation40_spill] sm:$0xff] }
0x2296   :  { %v3793_v48 = vpop.f32.mrf.mxu3 }
0x2297   :  { %v3865_v48 = vadd.f32 %v8996_v29, %v2674_v45 }
0x2299   :  { %v6563_v5 = vpop.eup %6562 }
0x229a   :  { %v3816_v21 = vadd.f32 1.0, %v6563_v5 }
0x229c   :  { %6564 = vrcp.f32 %v3816_v21  ;;  %v3829_v32 = vand.u32 2147483648, %v3816_v21  ;;  %v3827_v4 = vand.u32 2147483647, %v3816_v21  ;;  %vm3823_vm6 = vweird.f32 %v3816_v21 }
0x229d   :  { %6566 = vtanh.f32 %v3809_v54 }
0x229e   :  { %v3830_v63 = vor.u32 1.1754944e-38, %v3829_v32  ;;  %vm3828_vm8 = vcmp.eq.f32.partialorder %v3827_v4, 8.507059e+37  ;;  %6568 = vpow2.f32 %v6052_v13 }
0x22a2   :  { %v6565_v43 = vpop.eup %6564 }
0x22a3   :  { %v3819_v11 = vmul.f32 %v6565_v43, %v3816_v21  ;;  %vm3824_vm5 = vweird.f32 %v6565_v43  ;;  %v6567_v39 = vpop.eup %6566 }
0x22a4   :  { %vm3825_vm7 = vmor %vm3823_vm6, %vm3824_vm5  ;;  %v6569_v46 = vpop.eup %6568 }
0x22a5   :  { %v3820_v7 = vsub.f32 1.0, %v3819_v11  ;;  %v3817_v58 = vadd.f32 1.0, %v6569_v46 }
0x22a7   :  { %v3821_v30 = vmul.f32 %v6565_v43, %v3820_v7  ;;  %6570 = vrcp.f32 %v3817_v58  ;;  %v3844_v59 = vand.u32 2147483648, %v3817_v58  ;;  %vm3838_vm10 = vweird.f32 %v3817_v58 }
0x22a8   :  { %v3842_v34 = vand.u32 2147483647, %v3817_v58 }
0x22a9   :  { %v3822_v33 = vadd.f32 %v6565_v43, %v3821_v30  ;;  %v3845_v22 = vor.u32 1.1754944e-38, %v3844_v59 }
0x22aa   :  { %vm3843_vm12 = vcmp.eq.f32.partialorder %v3842_v34, 8.507059e+37 }
0x22ab   :  { %v3826_v3 = vsel %vm3825_vm7, %v6565_v43, %v3822_v33 }
0x22ac   :  { %v3831_v2 = vsel %vm3828_vm8, %v3830_v63, %v3826_v3 }
0x22ad   :  { %v3850_v56 = vmul.f32 %v6567_v39, %v3831_v2  ;;  %v6571_v49 = vpop.eup %6570  ;;  %v3849_v53 = vmul.f32 %v3831_v2, %v8336_v0 }
0x22ae   :  { %v3834_v31 = vmul.f32 %v6571_v49, %v3817_v58  ;;  %vm3839_vm9 = vweird.f32 %v6571_v49 }
0x22af   :  { %3852 = vrot.lane.b32.xlu2 %v3850_v56, %s6819_s23  ;;  %vm3840_vm11 = vmor %vm3838_vm10, %vm3839_vm9 }
0x22b0   :  { %v3835_v62 = vsub.f32 1.0, %v3834_v31 }
0x22b2   :  { %v3836_v16 = vmul.f32 %v6571_v49, %v3835_v62 }
0x22b4   :  { %v3837_v61 = vadd.f32 %v6571_v49, %v3836_v16 }
0x22b6   :  { %v3841_v12 = vsel %vm3840_vm11, %v6571_v49, %v3837_v61 }
0x22b7   :  { %v3846_v26 = vsel %vm3843_vm12, %v3845_v22, %v3841_v12  ;;  %v8997_v22 = vld [vmem:[#allocation33_spill] sm:$0xff] }
0x2309   :  { %v3853_v42 = vpop.permute.xlu2 %3852 }
0x230a   :  { %v8359_v38 = vadd.f32 %v3853_v42, %v3849_v53 }
0x230c   :  { %6572 = vtanh.f32 %v8359_v38 }
0x2312   :  { %v6573_v15 = vpop.eup %6572 }
0x2313   :  { %v3857_v36 = vmul.f32 %v6573_v15, %v3846_v26  ;;  %v2617_v15 = vadd.f32 %v8997_v22, %v8137_v9  ;;  %v8998_v26 = vld [vmem:[#allocation18_spill] sm:$0xff] }
0x2315   :  { %3858 = vst.msk [vmem:[#allocation6 + $0x48] sm:$0xff] %vm783_vm15, %v3857_v36  ;;  %v3866_v0 = vpack.c.bf16 %v3857_v36, %v3857_v36 }
0x2316   :  { %3859 = vst.msk [vmem:[#allocation6 + $0x50] sm:$0xff] %vm785_vm0, %v3857_v36  ;;  %v3952_v36 = vadd.f32 %v8998_v26, %v2617_v15 }
0x2317   :  { %6053 = vmatmul.msk.bf16.vlgmr.msra.gmra.mxu1 %vm703_vm1, %v3866_v0  ;;  %6054 = vmatmul.msk.bf16.vlgmr.msrb.gmra.mxu2 %vm703_vm1, %v3866_v0 }
0x2318   :  { %4226 = vmatpush.bf16.msra.mxu1 %v7839_v24  ;;  %4239 = vmatpush.bf16.msrb.mxu2 %v7841_v28 }
0x231c   :  { %4227 = vmatpush.bf16.msra.mxu1 %v7868_v17  ;;  %4240 = vmatpush.bf16.msrb.mxu2 %v7882_v51 }
0x2320   :  { %4228 = vmatpush.bf16.msra.mxu1 %v7903_v37  ;;  %4241 = vmatpush.bf16.msrb.mxu2 %v7908_v52 }
0x2324   :  { %4229 = vmatpush.bf16.msra.mxu1 %v7928_v14  ;;  %4242 = vmatpush.bf16.msrb.mxu2 %v7950_v47 }
0x2394   :  { %v3879_v60 = vpop.f32.mrf.mxu1 }
0x2395   :  { %v3896_v6 = vadd.f32 %v3879_v60, %v3864_v57 }
0x2397   :  { %v6055_v41 = vmul.f32 -1.442695, %v3896_v6 }
0x2399   :  { %6574 = vpow2.f32 %v6055_v41  ;;  %v8999_v41 = vld [vmem:[#allocation14_spill] sm:$0xff] }
0x239a   :  { %v3892_v25 = vpop.f32.mrf.mxu2 }
0x239b   :  { %v3897_v21 = vadd.f32 %v3892_v25, %v3865_v48  ;;  %v2676_v25 = vadd.f32 %v8999_v41, %v8147_v8 }
0x239c   :  { %v3881_v23 = vpop.f32.mrf.mxu1 }
0x239d   :  { %v6056_v33 = vmul.f32 -1.442695, %v3897_v21  ;;  %v9000_v23 = vld [vmem:[#allocation31_spill] sm:$0xff] }
0x239f   :  { %v6575_v44 = vpop.eup %6574 }
0x23a0   :  { %v3904_v20 = vadd.f32 1.0, %v6575_v44  ;;  %v3953_v44 = vadd.f32 %v9000_v23, %v2676_v25 }
0x23a2   :  { %6576 = vrcp.f32 %v3904_v20  ;;  %v3894_v18 = vpop.f32.mrf.mxu2  ;;  %v3917_v10 = vand.u32 2147483648, %v3904_v20  ;;  %v3915_v43 = vand.u32 2147483647, %v3904_v20  ;;  %vm3911_vm14 = vweird.f32 %v3904_v20 }
0x23a3   :  { %6578 = vtanh.f32 %v3897_v21 }
0x23a4   :  { %v3918_v11 = vor.u32 1.1754944e-38, %v3917_v10  ;;  %vm3916_vm3 = vcmp.eq.f32.partialorder %v3915_v43, 8.507059e+37  ;;  %6580 = vpow2.f32 %v6056_v33 }
0x23a8   :  { %v6577_v5 = vpop.eup %6576 }
0x23a9   :  { %v3907_v35 = vmul.f32 %v6577_v5, %v3904_v20  ;;  %vm3912_vm13 = vweird.f32 %v6577_v5  ;;  %v6579_v32 = vpop.eup %6578 }
0x23aa   :  { %vm3913_vm2 = vmor %vm3911_vm14, %vm3912_vm13  ;;  %v6581_v63 = vpop.eup %6580 }
0x23ab   :  { %v3908_v40 = vsub.f32 1.0, %v3907_v35  ;;  %v3905_v3 = vadd.f32 1.0, %v6581_v63 }
0x23ad   :  { %v3909_v27 = vmul.f32 %v6577_v5, %v3908_v40  ;;  %6582 = vrcp.f32 %v3905_v3  ;;  %v3932_v62 = vand.u32 2147483648, %v3905_v3  ;;  %vm3926_vm5 = vweird.f32 %v3905_v3 }
0x23ae   :  { %v3930_v16 = vand.u32 2147483647, %v3905_v3 }
0x23af   :  { %v3910_v54 = vadd.f32 %v6577_v5, %v3909_v27  ;;  %v3933_v42 = vor.u32 1.1754944e-38, %v3932_v62 }
0x23b0   :  { %vm3931_vm7 = vcmp.eq.f32.partialorder %v3930_v16, 8.507059e+37 }
0x23b1   :  { %v3914_v7 = vsel %vm3913_vm2, %v6577_v5, %v3910_v54 }
0x23b2   :  { %v3919_v30 = vsel %vm3916_vm3, %v3918_v11, %v3914_v7 }
0x23b3   :  { %v3938_v4 = vmul.f32 %v6579_v32, %v3919_v30  ;;  %v6583_v39 = vpop.eup %6582  ;;  %v3937_v46 = vmul.f32 %v3919_v30, %v8359_v38 }
0x23b4   :  { %v3922_v2 = vmul.f32 %v6583_v39, %v3905_v3  ;;  %vm3927_vm4 = vweird.f32 %v6583_v39 }
0x23b5   :  { %3940 = vrot.lane.b32.xlu0 %v3938_v4, %s6819_s23  ;;  %vm3928_vm6 = vmor %vm3926_vm5, %vm3927_vm4 }
0x23b6   :  { %v3923_v56 = vsub.f32 1.0, %v3922_v2 }
0x23b8   :  { %v3924_v13 = vmul.f32 %v6583_v39, %v3923_v56 }
0x23ba   :  { %v3925_v31 = vadd.f32 %v6583_v39, %v3924_v13 }
0x23bc   :  { %v3929_v53 = vsel %vm3928_vm6, %v6583_v39, %v3925_v31 }
0x23bd   :  { %v3934_v59 = vsel %vm3931_vm7, %v3933_v42, %v3929_v53  ;;  %v9001_v53 = vld [vmem:[#allocation42_spill] sm:$0xff] }
0x23be   :  { %v2620_v42 = vadd.f32 %v9001_v53, %v8137_v9 }
0x2427   :  { %v3941_v58 = vpop.permute.xlu0 %3940 }
0x2428   :  { %v8382_v49 = vadd.f32 %v3941_v58, %v3937_v46 }
0x242a   :  { %6584 = vtanh.f32 %v8382_v49 }
0x2430   :  { %v6585_v61 = vpop.eup %6584 }
0x2431   :  { %v3945_v34 = vmul.f32 %v6585_v61, %v3934_v59  ;;  %v9002_v61 = vld [vmem:[#allocation19_spill] sm:$0xff] }
0x2432   :  { %v4040_v59 = vadd.f32 %v9002_v61, %v2620_v42 }
0x2433   :  { %3946 = vst.msk [vmem:[#allocation6 + $0x50] sm:$0xff] %vm783_vm15, %v3945_v34  ;;  %v3954_v38 = vpack.c.bf16 %v3945_v34, %v3945_v34 }
0x2434   :  { %3947 = vst.msk [vmem:[#allocation6 + $0x48] sm:$0xff] %vm785_vm0, %v3945_v34 }
0x2435   :  { %6057 = vmatmul.msk.bf16.vlgmr.msra.gmra.mxu3 %vm703_vm1, %v3954_v38  ;;  %6058 = vmatmul.msk.bf16.vlgmr.msra.gmra.mxu0 %vm703_vm1, %v3954_v38 }
0x2436   :  { %4314 = vmatpush.bf16.msra.mxu3 %v7839_v24  ;;  %4327 = vmatpush.bf16.msra.mxu0 %v7841_v28 }
0x243a   :  { %4315 = vmatpush.bf16.msra.mxu3 %v7868_v17  ;;  %4328 = vmatpush.bf16.msra.mxu0 %v7882_v51 }
0x243e   :  { %4316 = vmatpush.bf16.msra.mxu3 %v7903_v37  ;;  %4329 = vmatpush.bf16.msra.mxu0 %v7908_v52 }
0x2442   :  { %4317 = vmatpush.bf16.msra.mxu3 %v7928_v14  ;;  %4330 = vmatpush.bf16.msra.mxu0 %v7950_v47 }
0x24b2   :  { %v3980_v12 = vpop.f32.mrf.mxu0 }
0x24b3   :  { %v3985_v55 = vadd.f32 %v3980_v12, %v3953_v44 }
0x24b5   :  { %v6060_v54 = vmul.f32 -1.442695, %v3985_v55 }
0x24b8   :  { %v3967_v0 = vpop.f32.mrf.mxu3 }
0x24b9   :  { %v3984_v50 = vadd.f32 %v3967_v0, %v3952_v36  ;;  %v9003_v0 = vld [vmem:[#allocation13_spill] sm:$0xff] }
0x24ba   :  { %v3982_v1 = vpop.f32.mrf.mxu0 }
0x24bb   :  { %v6059_v19 = vmul.f32 -1.442695, %v3984_v50  ;;  %v2679_v50 = vadd.f32 %v9003_v0, %v8147_v8 }
0x24bd   :  { %6586 = vpow2.f32 %v6059_v19  ;;  %v9004_v19 = vld [vmem:[#allocation39_spill] sm:$0xff] }
0x24c0   :  { %v3969_v57 = vpop.f32.mrf.mxu3 }
0x24c1   :  { %v4041_v57 = vadd.f32 %v9004_v19, %v2679_v50 }
0x24c3   :  { %v6587_v60 = vpop.eup %6586 }
0x24c4   :  { %v3992_v6 = vadd.f32 1.0, %v6587_v60 }
0x24c6   :  { %6588 = vrcp.f32 %v3992_v6  ;;  %v4005_v29 = vand.u32 2147483648, %v3992_v6  ;;  %v4003_v5 = vand.u32 2147483647, %v3992_v6  ;;  %vm3999_vm9 = vweird.f32 %v3992_v6 }
0x24c7   :  { %6590 = vtanh.f32 %v3985_v55 }
0x24c8   :  { %v4006_v35 = vor.u32 1.1754944e-38, %v4005_v29  ;;  %vm4004_vm11 = vcmp.eq.f32.partialorder %v4003_v5, 8.507059e+37  ;;  %6592 = vpow2.f32 %v6060_v54 }
0x24cc   :  { %v6589_v20 = vpop.eup %6588 }
0x24cd   :  { %v3995_v45 = vmul.f32 %v6589_v20, %v3992_v6  ;;  %vm4000_vm8 = vweird.f32 %v6589_v20  ;;  %v6591_v10 = vpop.eup %6590 }
0x24ce   :  { %vm4001_vm10 = vmor %vm3999_vm9, %vm4000_vm8  ;;  %v6593_v11 = vpop.eup %6592 }
0x24cf   :  { %v3996_v18 = vsub.f32 1.0, %v3995_v45  ;;  %v3993_v7 = vadd.f32 1.0, %v6593_v11 }
0x24d1   :  { %v3997_v48 = vmul.f32 %v6589_v20, %v3996_v18  ;;  %6594 = vrcp.f32 %v3993_v7  ;;  %v4020_v56 = vand.u32 2147483648, %v3993_v7  ;;  %vm4014_vm13 = vweird.f32 %v3993_v7 }
0x24d2   :  { %v4018_v13 = vand.u32 2147483647, %v3993_v7 }
0x24d3   :  { %v3998_v21 = vadd.f32 %v6589_v20, %v3997_v48  ;;  %v4021_v58 = vor.u32 1.1754944e-38, %v4020_v56 }
0x24d4   :  { %vm4019_vm2 = vcmp.eq.f32.partialorder %v4018_v13, 8.507059e+37 }
0x24d5   :  { %v4002_v40 = vsel %vm4001_vm10, %v6589_v20, %v3998_v21 }
0x24d6   :  { %v4007_v27 = vsel %vm4004_vm11, %v4006_v35, %v4002_v40 }
0x24d7   :  { %v4026_v43 = vmul.f32 %v6591_v10, %v4007_v27  ;;  %v6595_v32 = vpop.eup %6594  ;;  %v4025_v63 = vmul.f32 %v4007_v27, %v8382_v49 }
0x24d8   :  { %v4010_v30 = vmul.f32 %v6595_v32, %v3993_v7  ;;  %vm4015_vm12 = vweird.f32 %v6595_v32 }
0x24d9   :  { %4028 = vrot.lane.b32.xlu1 %v4026_v43, %s6819_s23  ;;  %vm4016_vm14 = vmor %vm4014_vm13, %vm4015_vm12 }
0x24da   :  { %v4011_v4 = vsub.f32 1.0, %v4010_v30 }
0x24dc   :  { %v4012_v33 = vmul.f32 %v6595_v32, %v4011_v4 }
0x24de   :  { %v4013_v2 = vadd.f32 %v6595_v32, %v4012_v33 }
0x24e0   :  { %v4017_v46 = vsel %vm4016_vm14, %v6595_v32, %v4013_v2 }
0x24e1   :  { %v4022_v62 = vsel %vm4019_vm2, %v4021_v58, %v4017_v46  ;;  %v9005_v58 = vld [vmem:[#allocation34_spill] sm:$0xff] }
0x254b   :  { %v4029_v3 = vpop.permute.xlu1 %4028 }
0x254c   :  { %v8405_v39 = vadd.f32 %v4029_v3, %v4025_v63 }
0x254e   :  { %6596 = vtanh.f32 %v8405_v39 }
0x2554   :  { %v6597_v31 = vpop.eup %6596 }
0x2555   :  { %v4033_v16 = vmul.f32 %v6597_v31, %v4022_v62  ;;  %v2622_v31 = vadd.f32 %v9005_v58, %v8137_v9  ;;  %v9006_v62 = vld [vmem:[#allocation20_spill] sm:$0xff] }
0x2557   :  { %4034 = vst.msk [vmem:[#allocation6 + $0x58] sm:$0xff] %vm783_vm15, %v4033_v16  ;;  %v4042_v49 = vpack.c.bf16 %v4033_v16, %v4033_v16 }
0x2558   :  { %4035 = vst.msk [vmem:[#allocation6 + $0x40] sm:$0xff] %vm785_vm0, %v4033_v16  ;;  %v4128_v16 = vadd.f32 %v9006_v62, %v2622_v31 }
0x2559   :  { %6061 = vmatmul.msk.bf16.vlgmr.msrb.gmra.mxu1 %vm703_vm1, %v4042_v49  ;;  %6062 = vmatmul.msk.bf16.vlgmr.msra.gmra.mxu2 %vm703_vm1, %v4042_v49 }
0x255a   :  { %4402 = vmatpush.bf16.msrb.mxu1 %v7839_v24  ;;  %4415 = vmatpush.bf16.msra.mxu2 %v7841_v28 }
0x255e   :  { %4403 = vmatpush.bf16.msrb.mxu1 %v7868_v17  ;;  %4416 = vmatpush.bf16.msra.mxu2 %v7882_v51 }
0x2562   :  { %4404 = vmatpush.bf16.msrb.mxu1 %v7903_v37  ;;  %4417 = vmatpush.bf16.msra.mxu2 %v7908_v52 }
0x2566   :  { %4405 = vmatpush.bf16.msrb.mxu1 %v7928_v14  ;;  %4418 = vmatpush.bf16.msra.mxu2 %v7950_v47 }
0x25d6   :  { %v4055_v34 = vpop.f32.mrf.mxu1 }
0x25d7   :  { %v4072_v38 = vadd.f32 %v4055_v34, %v4040_v59 }
0x25d9   :  { %v6063_v12 = vmul.f32 -1.442695, %v4072_v38 }
0x25db   :  { %6598 = vpow2.f32 %v6063_v12  ;;  %v9007_v12 = vld [vmem:[#allocation12_spill] sm:$0xff] }
0x25dc   :  { %v4068_v22 = vpop.f32.mrf.mxu2 }
0x25dd   :  { %v4073_v6 = vadd.f32 %v4068_v22, %v4041_v57  ;;  %v2681_v22 = vadd.f32 %v9007_v12, %v8147_v8 }
0x25de   :  { %v4057_v15 = vpop.f32.mrf.mxu1 }
0x25df   :  { %v6064_v21 = vmul.f32 -1.442695, %v4073_v6  ;;  %v9008_v15 = vld [vmem:[#allocation30_spill] sm:$0xff] }
0x25e1   :  { %v6599_v26 = vpop.eup %6598 }
0x25e2   :  { %v4080_v36 = vadd.f32 1.0, %v6599_v26  ;;  %v4129_v26 = vadd.f32 %v9008_v15, %v2681_v22 }
0x25e4   :  { %6600 = vrcp.f32 %v4080_v36  ;;  %v4070_v1 = vpop.f32.mrf.mxu2  ;;  %v4093_v23 = vand.u32 2147483648, %v4080_v36  ;;  %v4091_v20 = vand.u32 2147483647, %v4080_v36  ;;  %vm4087_vm4 = vweird.f32 %v4080_v36 }
0x25e5   :  { %6602 = vtanh.f32 %v4073_v6 }
0x25e6   :  { %v4094_v45 = vor.u32 1.1754944e-38, %v4093_v23  ;;  %vm4092_vm6 = vcmp.eq.f32.partialorder %v4091_v20, 8.507059e+37  ;;  %6604 = vpow2.f32 %v6064_v21 }
0x25ea   :  { %v6601_v60 = vpop.eup %6600 }
0x25eb   :  { %v4083_v41 = vmul.f32 %v6601_v60, %v4080_v36  ;;  %vm4088_vm3 = vweird.f32 %v6601_v60  ;;  %v6603_v29 = vpop.eup %6602 }
0x25ec   :  { %vm4089_vm5 = vmor %vm4087_vm4, %vm4088_vm3  ;;  %v6605_v35 = vpop.eup %6604 }
0x25ed   :  { %v4084_v25 = vsub.f32 1.0, %v4083_v41  ;;  %v4081_v40 = vadd.f32 1.0, %v6605_v35 }
0x25ef   :  { %v4085_v44 = vmul.f32 %v6601_v60, %v4084_v25  ;;  %6606 = vrcp.f32 %v4081_v40  ;;  %v4108_v4 = vand.u32 2147483648, %v4081_v40  ;;  %vm4102_vm8 = vweird.f32 %v4081_v40 }
0x25f0   :  { %v4106_v33 = vand.u32 2147483647, %v4081_v40 }
0x25f1   :  { %v4086_v55 = vadd.f32 %v6601_v60, %v4085_v44  ;;  %v4109_v3 = vor.u32 1.1754944e-38, %v4108_v4 }
0x25f2   :  { %vm4107_vm10 = vcmp.eq.f32.partialorder %v4106_v33, 8.507059e+37 }
0x25f3   :  { %v4090_v18 = vsel %vm4089_vm5, %v6601_v60, %v4086_v55 }
0x25f4   :  { %v4095_v48 = vsel %vm4092_vm6, %v4094_v45, %v4090_v18 }
0x25f5   :  { %v4114_v5 = vmul.f32 %v6603_v29, %v4095_v48  ;;  %v6607_v10 = vpop.eup %6606  ;;  %v4113_v11 = vmul.f32 %v4095_v48, %v8405_v39 }
0x25f6   :  { %v4098_v27 = vmul.f32 %v6607_v10, %v4081_v40  ;;  %vm4103_vm7 = vweird.f32 %v6607_v10 }
0x25f7   :  { %4116 = vrot.lane.b32.xlu2 %v4114_v5, %s6819_s23  ;;  %vm4104_vm9 = vmor %vm4102_vm8, %vm4103_vm7 }
0x25f8   :  { %v4099_v43 = vsub.f32 1.0, %v4098_v27 }
0x25fa   :  { %v4100_v54 = vmul.f32 %v6607_v10, %v4099_v43 }
0x25fc   :  { %v4101_v30 = vadd.f32 %v6607_v10, %v4100_v54 }
0x25fe   :  { %v4105_v63 = vsel %vm4104_vm9, %v6607_v10, %v4101_v30 }
0x25ff   :  { %v4110_v56 = vsel %vm4107_vm10, %v4109_v3, %v4105_v63  ;;  %v9009_v63 = vld [vmem:[#allocation43_spill] sm:$0xff] }
0x2600   :  { %v2625_v3 = vadd.f32 %v9009_v63, %v8137_v9 }
0x2651   :  { %v4117_v7 = vpop.permute.xlu2 %4116 }
0x2652   :  { %v8428_v32 = vadd.f32 %v4117_v7, %v4113_v11 }
0x2654   :  { %6608 = vtanh.f32 %v8428_v32 }
0x265a   :  { %v6609_v2 = vpop.eup %6608 }
0x265b   :  { %v4121_v13 = vmul.f32 %v6609_v2, %v4110_v56  ;;  %v9010_v2 = vld [vmem:[#allocation21_spill] sm:$0xff] }
0x265c   :  { %v4216_v56 = vadd.f32 %v9010_v2, %v2625_v3 }
0x265d   :  { %4122 = vst.msk [vmem:[#allocation6 + $0x60] sm:$0xff] %vm783_vm15, %v4121_v13  ;;  %v4130_v39 = vpack.c.bf16 %v4121_v13, %v4121_v13 }
0x265e   :  { %4123 = vst.msk [vmem:[#allocation6 + $0x38] sm:$0xff] %vm785_vm0, %v4121_v13 }
0x265f   :  { %6065 = vmatmul.msk.bf16.vlgmr.msrb.gmra.mxu3 %vm703_vm1, %v4130_v39  ;;  %6066 = vmatmul.msk.bf16.vlgmr.msrb.gmra.mxu0 %vm703_vm1, %v4130_v39 }
0x2660   :  { %4490 = vmatpush.bf16.msrb.mxu3 %v7839_v24  ;;  %4503 = vmatpush.bf16.msrb.mxu0 %v7841_v28 }
0x2664   :  { %4491 = vmatpush.bf16.msrb.mxu3 %v7868_v17  ;;  %4504 = vmatpush.bf16.msrb.mxu0 %v7882_v51 }
0x2668   :  { %4492 = vmatpush.bf16.msrb.mxu3 %v7903_v37  ;;  %4505 = vmatpush.bf16.msrb.mxu0 %v7908_v52 }
0x266c   :  { %4493 = vmatpush.bf16.msrb.mxu3 %v7928_v14  ;;  %4506 = vmatpush.bf16.msrb.mxu0 %v7950_v47 }
0x26dc   :  { %v4156_v46 = vpop.f32.mrf.mxu0 }
0x26dd   :  { %v4161_v0 = vadd.f32 %v4156_v46, %v4129_v26 }
0x26df   :  { %v6068_v55 = vmul.f32 -1.442695, %v4161_v0 }
0x26e2   :  { %v4143_v49 = vpop.f32.mrf.mxu3 }
0x26e3   :  { %v4160_v53 = vadd.f32 %v4143_v49, %v4128_v16  ;;  %v9011_v49 = vld [vmem:[#allocation11_spill] sm:$0xff] }
0x26e4   :  { %v4158_v42 = vpop.f32.mrf.mxu0 }
0x26e5   :  { %v6067_v61 = vmul.f32 -1.442695, %v4160_v53  ;;  %v2684_v53 = vadd.f32 %v9011_v49, %v8147_v8 }
0x26e7   :  { %6610 = vpow2.f32 %v6067_v61  ;;  %v9012_v61 = vld [vmem:[#allocation38_spill] sm:$0xff] }
0x26ea   :  { %v4145_v59 = vpop.f32.mrf.mxu3 }
0x26eb   :  { %v4217_v59 = vadd.f32 %v9012_v61, %v2684_v53 }
0x26ed   :  { %v6611_v34 = vpop.eup %6610 }
0x26ee   :  { %v4168_v38 = vadd.f32 1.0, %v6611_v34 }
0x26f0   :  { %6612 = vrcp.f32 %v4168_v38  ;;  %v4181_v19 = vand.u32 2147483648, %v4168_v38  ;;  %v4179_v60 = vand.u32 2147483647, %v4168_v38  ;;  %vm4175_vm12 = vweird.f32 %v4168_v38 }
0x26f1   :  { %6614 = vtanh.f32 %v4161_v0 }
0x26f2   :  { %v4182_v41 = vor.u32 1.1754944e-38, %v4181_v19  ;;  %vm4180_vm14 = vcmp.eq.f32.partialorder %v4179_v60, 8.507059e+37  ;;  %6616 = vpow2.f32 %v6068_v55 }
0x26f6   :  { %v6613_v36 = vpop.eup %6612 }
0x26f7   :  { %v4171_v50 = vmul.f32 %v6613_v36, %v4168_v38  ;;  %vm4176_vm11 = vweird.f32 %v6613_v36  ;;  %v6615_v23 = vpop.eup %6614 }
0x26f8   :  { %vm4177_vm13 = vmor %vm4175_vm12, %vm4176_vm11  ;;  %v6617_v45 = vpop.eup %6616 }
0x26f9   :  { %v4172_v1 = vsub.f32 1.0, %v4171_v50  ;;  %v4169_v18 = vadd.f32 1.0, %v6617_v45 }
0x26fb   :  { %v4173_v57 = vmul.f32 %v6613_v36, %v4172_v1  ;;  %6618 = vrcp.f32 %v4169_v18  ;;  %v4196_v43 = vand.u32 2147483648, %v4169_v18  ;;  %vm4190_vm3 = vweird.f32 %v4169_v18 }
0x26fc   :  { %v4194_v54 = vand.u32 2147483647, %v4169_v18 }
0x26fd   :  { %v4174_v6 = vadd.f32 %v6613_v36, %v4173_v57  ;;  %v4197_v7 = vor.u32 1.1754944e-38, %v4196_v43 }
0x26fe   :  { %vm4195_vm5 = vcmp.eq.f32.partialorder %v4194_v54, 8.507059e+37 }
0x26ff   :  { %v4178_v25 = vsel %vm4177_vm13, %v6613_v36, %v4174_v6 }
0x2700   :  { %v4183_v44 = vsel %vm4180_vm14, %v4182_v41, %v4178_v25 }
0x2701   :  { %v4202_v20 = vmul.f32 %v6615_v23, %v4183_v44  ;;  %v6619_v29 = vpop.eup %6618  ;;  %v4201_v35 = vmul.f32 %v4183_v44, %v8428_v32 }
0x2702   :  { %v4186_v48 = vmul.f32 %v6619_v29, %v4169_v18  ;;  %vm4191_vm2 = vweird.f32 %v6619_v29 }
0x2703   :  { %4204 = vrot.lane.b32.xlu0 %v4202_v20, %s6819_s23  ;;  %vm4192_vm4 = vmor %vm4190_vm3, %vm4191_vm2 }
0x2704   :  { %v4187_v5 = vsub.f32 1.0, %v4186_v48 }
0x2706   :  { %v4188_v21 = vmul.f32 %v6619_v29, %v4187_v5 }
0x2708   :  { %v4189_v27 = vadd.f32 %v6619_v29, %v4188_v21 }
0x270a   :  { %v4193_v11 = vsel %vm4192_vm4, %v6619_v29, %v4189_v27 }
0x270b   :  { %v4198_v4 = vsel %vm4195_vm5, %v4197_v7, %v4193_v11  ;;  %v9013_v7 = vld [vmem:[#allocation35_spill] sm:$0xff] }
0x2775   :  { %v4205_v40 = vpop.permute.xlu0 %4204 }
0x2776   :  { %v8451_v10 = vadd.f32 %v4205_v40, %v4201_v35 }
0x2778   :  { %6620 = vtanh.f32 %v8451_v10 }
0x277e   :  { %v6621_v30 = vpop.eup %6620 }
0x277f   :  { %v4209_v33 = vmul.f32 %v6621_v30, %v4198_v4  ;;  %v2627_v30 = vadd.f32 %v9013_v7, %v8137_v9  ;;  %v9014_v4 = vld [vmem:[#allocation22_spill] sm:$0xff] }
0x2781   :  { %4210 = vst.msk [vmem:[#allocation6 + $0x68] sm:$0xff] %vm783_vm15, %v4209_v33  ;;  %v4218_v32 = vpack.c.bf16 %v4209_v33, %v4209_v33 }
0x2782   :  { %4211 = vst.msk [vmem:[#allocation6 + $0x30] sm:$0xff] %vm785_vm0, %v4209_v33 }
0x2783   :  { %6069 = vmatmul.msk.bf16.vlgmr.msra.gmra.mxu1 %vm703_vm1, %v4218_v32  ;;  %6070 = vmatmul.msk.bf16.vlgmr.msrb.gmra.mxu2 %vm703_vm1, %v4218_v32 }
0x2784   :  { %4578 = vmatpush.bf16.msra.mxu1 %v7839_v24  ;;  %4591 = vmatpush.bf16.msrb.mxu2 %v7841_v28 }
0x2788   :  { %4579 = vmatpush.bf16.msra.mxu1 %v7868_v17  ;;  %4592 = vmatpush.bf16.msrb.mxu2 %v7882_v51 }
0x278c   :  { %4580 = vmatpush.bf16.msra.mxu1 %v7903_v37  ;;  %4593 = vmatpush.bf16.msrb.mxu2 %v7908_v52 }
0x2790   :  { %4581 = vmatpush.bf16.msra.mxu1 %v7928_v14  ;;  %4594 = vmatpush.bf16.msrb.mxu2 %v7950_v47 }
0x2800   :  { %v4231_v13 = vpop.f32.mrf.mxu1 }
0x2801   :  { %v4248_v39 = vadd.f32 %v4231_v13, %v4216_v56 }
0x2803   :  { %v6071_v46 = vmul.f32 -1.442695, %v4248_v39 }
0x2805   :  { %6622 = vpow2.f32 %v6071_v46 }
0x2806   :  { %v4244_v58 = vpop.f32.mrf.mxu2 }
0x2807   :  { %v4249_v38 = vadd.f32 %v4244_v58, %v4217_v59 }
0x2808   :  { %v4233_v31 = vpop.f32.mrf.mxu1 }
0x2809   :  { %v6072_v6 = vmul.f32 -1.442695, %v4249_v38 }
0x280b   :  { %v6623_v62 = vpop.eup %6622 }
0x280c   :  { %v4256_v16 = vadd.f32 1.0, %v6623_v62 }
0x280e   :  { %6624 = vrcp.f32 %v4256_v16  ;;  %v4246_v42 = vpop.f32.mrf.mxu2  ;;  %v4269_v15 = vand.u32 2147483648, %v4256_v16  ;;  %v4267_v36 = vand.u32 2147483647, %v4256_v16  ;;  %vm4263_vm7 = vweird.f32 %v4256_v16 }
0x280f   :  { %6626 = vtanh.f32 %v4249_v38 }
0x2810   :  { %v4270_v50 = vor.u32 1.1754944e-38, %v4269_v15  ;;  %vm4268_vm9 = vcmp.eq.f32.partialorder %v4267_v36, 8.507059e+37  ;;  %6628 = vpow2.f32 %v6072_v6 }
0x2814   :  { %v6625_v34 = vpop.eup %6624 }
0x2815   :  { %v4259_v12 = vmul.f32 %v6625_v34, %v4256_v16  ;;  %vm4264_vm6 = vweird.f32 %v6625_v34  ;;  %v6627_v19 = vpop.eup %6626 }
0x2816   :  { %vm4265_vm8 = vmor %vm4263_vm7, %vm4264_vm6  ;;  %v6629_v41 = vpop.eup %6628 }
0x2817   :  { %v4260_v22 = vsub.f32 1.0, %v4259_v12  ;;  %v4257_v25 = vadd.f32 1.0, %v6629_v41 }
0x2819   :  { %v4261_v26 = vmul.f32 %v6625_v34, %v4260_v22  ;;  %6630 = vrcp.f32 %v4257_v25  ;;  %v4284_v5 = vand.u32 2147483648, %v4257_v25  ;;  %vm4278_vm11 = vweird.f32 %v4257_v25 }
0x281a   :  { %v4282_v21 = vand.u32 2147483647, %v4257_v25 }
0x281b   :  { %v4262_v0 = vadd.f32 %v6625_v34, %v4261_v26  ;;  %v4285_v40 = vor.u32 1.1754944e-38, %v4284_v5 }
0x281c   :  { %vm4283_vm13 = vcmp.eq.f32.partialorder %v4282_v21, 8.507059e+37 }
0x281d   :  { %v4266_v1 = vsel %vm4265_vm8, %v6625_v34, %v4262_v0 }
0x281e   :  { %v4271_v57 = vsel %vm4268_vm9, %v4270_v50, %v4266_v1 }
0x281f   :  { %v4290_v60 = vmul.f32 %v6627_v19, %v4271_v57  ;;  %v6631_v23 = vpop.eup %6630  ;;  %v4289_v45 = vmul.f32 %v4271_v57, %v8451_v10 }
0x2820   :  { %v4274_v44 = vmul.f32 %v6631_v23, %v4257_v25  ;;  %vm4279_vm10 = vweird.f32 %v6631_v23 }
0x2821   :  { %4292 = vrot.lane.b32.xlu1 %v4290_v60, %s6819_s23  ;;  %vm4280_vm12 = vmor %vm4278_vm11, %vm4279_vm10 }
0x2822   :  { %v4275_v20 = vsub.f32 1.0, %v4274_v44 }
0x2824   :  { %v4276_v55 = vmul.f32 %v6631_v23, %v4275_v20  ;;  %v9017_v20 = vld [vmem:[#allocation44_spill] sm:$0xff] }
0x2826   :  { %v4277_v48 = vadd.f32 %v6631_v23, %v4276_v55  ;;  %v2630_v55 = vadd.f32 %v9017_v20, %v8137_v9  ;;  %v9024_v20 = vld [vmem:[#allocation28_spill] sm:$0xff] }
0x2828   :  { %v4281_v35 = vsel %vm4280_vm12, %v6631_v23, %v4277_v48 }
0x2829   :  { %v4286_v43 = vsel %vm4283_vm13, %v4285_v40, %v4281_v35 }
0x2893   :  { %v4293_v18 = vpop.permute.xlu1 %4292 }
0x2894   :  { %v8474_v29 = vadd.f32 %v4293_v18, %v4289_v45  ;;  %v9018_v45 = vld [vmem:[#allocation23_spill] sm:$0xff] }
0x2895   :  { %v4392_v18 = vadd.f32 %v9018_v45, %v2630_v55 }
0x2896   :  { %6632 = vtanh.f32 %v8474_v29 }
0x289c   :  { %v6633_v27 = vpop.eup %6632 }
0x289d   :  { %v4297_v54 = vmul.f32 %v6633_v27, %v4286_v43  ;;  %v9019_v43 = vld [vmem:[#allocation45_spill] sm:$0xff] }
0x289f   :  { %4298 = vst.msk [vmem:[#allocation6 + $0x70] sm:$0xff] %vm783_vm15, %v4297_v54  ;;  %v4306_v10 = vpack.c.bf16 %v4297_v54, %v4297_v54 }
0x28a0   :  { %4299 = vst.msk [vmem:[#allocation6 + $0x28] sm:$0xff] %vm785_vm0, %v4297_v54  ;;  %v2689_v54 = vadd.f32 %v9019_v43, %v8147_v8 }
0x28a1   :  { %6073 = vmatmul.msk.bf16.vlgmr.msra.gmra.mxu3 %vm703_vm1, %v4306_v10  ;;  %6074 = vmatmul.msk.bf16.vlgmr.msra.gmra.mxu0 %vm703_vm1, %v4306_v10 }
0x28a2   :  { %4666 = vmatpush.bf16.msra.mxu3 %v7839_v24  ;;  %4679 = vmatpush.bf16.msra.mxu0 %v7841_v28  ;;  %v4304_v24 = vadd.f32 %v9014_v4, %v2627_v30 }
0x28a6   :  { %4667 = vmatpush.bf16.msra.mxu3 %v7868_v17  ;;  %4680 = vmatpush.bf16.msra.mxu0 %v7882_v51 }
0x28aa   :  { %4668 = vmatpush.bf16.msra.mxu3 %v7903_v37  ;;  %4681 = vmatpush.bf16.msra.mxu0 %v7908_v52  ;;  %v9015_v52 = vld [vmem:[#allocation10_spill] sm:$0xff] }
0x28ab   :  { %v2686_v3 = vadd.f32 %v9015_v52, %v8147_v8 }
0x28ae   :  { %4669 = vmatpush.bf16.msra.mxu3 %v7928_v14  ;;  %4682 = vmatpush.bf16.msra.mxu0 %v7950_v47  ;;  %v9016_v14 = vld [vmem:[#allocation29_spill] sm:$0xff] }
0x28af   :  { %v4305_v47 = vadd.f32 %v9016_v14, %v2686_v3 }
0x291e   :  { %v4332_v11 = vpop.f32.mrf.mxu0 }
0x291f   :  { %v4337_v56 = vadd.f32 %v4332_v11, %v4305_v47  ;;  %v9020_v11 = vld [vmem:[#allocation37_spill] sm:$0xff] }
0x2920   :  { %v4393_v7 = vadd.f32 %v9020_v11, %v2689_v54 }
0x2921   :  { %v6076_v59 = vmul.f32 -1.442695, %v4337_v56 }
0x2924   :  { %v4319_v33 = vpop.f32.mrf.mxu3 }
0x2925   :  { %v4336_v28 = vadd.f32 %v4319_v33, %v4304_v24 }
0x2926   :  { %v4334_v32 = vpop.f32.mrf.mxu0 }
0x2927   :  { %v6075_v17 = vmul.f32 -1.442695, %v4336_v28 }
0x2929   :  { %6634 = vpow2.f32 %v6075_v17 }
0x292c   :  { %v4321_v51 = vpop.f32.mrf.mxu3 }
0x292f   :  { %v6635_v63 = vpop.eup %6634 }
0x2930   :  { %v4344_v37 = vadd.f32 1.0, %v6635_v63 }
0x2932   :  { %6636 = vrcp.f32 %v4344_v37  ;;  %v4357_v46 = vand.u32 2147483648, %v4344_v37  ;;  %v4355_v31 = vand.u32 2147483647, %v4344_v37  ;;  %vm4351_vm2 = vweird.f32 %v4344_v37 }
0x2933   :  { %6638 = vtanh.f32 %v4337_v56 }
0x2934   :  { %v4358_v16 = vor.u32 1.1754944e-38, %v4357_v46  ;;  %vm4356_vm4 = vcmp.eq.f32.partialorder %v4355_v31, 8.507059e+37  ;;  %6640 = vpow2.f32 %v6076_v59 }
0x2938   :  { %v6637_v2 = vpop.eup %6636 }
0x2939   :  { %v4347_v13 = vmul.f32 %v6637_v2, %v4344_v37  ;;  %vm4352_vm14 = vweird.f32 %v6637_v2  ;;  %v6639_v53 = vpop.eup %6638 }
0x293a   :  { %vm4353_vm3 = vmor %vm4351_vm2, %vm4352_vm14  ;;  %v6641_v34 = vpop.eup %6640 }
0x293b   :  { %v4348_v39 = vsub.f32 1.0, %v4347_v13  ;;  %v4345_v38 = vadd.f32 1.0, %v6641_v34 }
0x293d   :  { %v4349_v58 = vmul.f32 %v6637_v2, %v4348_v39  ;;  %6642 = vrcp.f32 %v4345_v38  ;;  %v4372_v19 = vand.u32 2147483648, %v4345_v38  ;;  %vm4366_vm6 = vweird.f32 %v4345_v38 }
0x293e   :  { %v4370_v57 = vand.u32 2147483647, %v4345_v38 }
0x293f   :  { %v4350_v62 = vadd.f32 %v6637_v2, %v4349_v58  ;;  %v4373_v6 = vor.u32 1.1754944e-38, %v4372_v19 }
0x2940   :  { %vm4371_vm8 = vcmp.eq.f32.partialorder %v4370_v57, 8.507059e+37 }
0x2941   :  { %v4354_v49 = vsel %vm4353_vm3, %v6637_v2, %v4350_v62 }
0x2942   :  { %v4359_v42 = vsel %vm4356_vm4, %v4358_v16, %v4354_v49 }
0x2943   :  { %v4378_v61 = vmul.f32 %v6639_v53, %v4359_v42  ;;  %v6643_v12 = vpop.eup %6642  ;;  %v4377_v36 = vmul.f32 %v4359_v42, %v8474_v29 }
0x2944   :  { %v4362_v22 = vmul.f32 %v6643_v12, %v4345_v38  ;;  %vm4367_vm5 = vweird.f32 %v6643_v12 }
0x2945   :  { %4380 = vrot.lane.b32.xlu2 %v4378_v61, %s6819_s23  ;;  %vm4368_vm7 = vmor %vm4366_vm6, %vm4367_vm5 }
0x2946   :  { %v4363_v15 = vsub.f32 1.0, %v4362_v22 }
0x2948   :  { %v4364_v26 = vmul.f32 %v6643_v12, %v4363_v15 }
0x294a   :  { %v4365_v1 = vadd.f32 %v6643_v12, %v4364_v26  ;;  %v9021_v26 = vld [vmem:[#allocation46_spill] sm:$0xff] }
0x294c   :  { %v4369_v60 = vsel %vm4368_vm7, %v6643_v12, %v4365_v1 }
0x294d   :  { %v4374_v25 = vsel %vm4371_vm8, %v4373_v6, %v4369_v60 }
0x299f   :  { %v4381_v0 = vpop.permute.xlu2 %4380 }
0x29a0   :  { %v4383_v50 = vadd.f32 %v4381_v0, %v4377_v36  ;;  %v2632_v36 = vadd.f32 %v9021_v26, %v8137_v9  ;;  %v9022_v0 = vld [vmem:[#allocation24_spill] sm:$0xff] }
0x29a2   :  { %6644 = vtanh.f32 %v4383_v50 }
0x29a8   :  { %v6645_v41 = vpop.eup %6644 }
0x29a9   :  { %v4385_v23 = vmul.f32 %v6645_v41, %v4374_v25 }
0x29ab   :  { %4386 = vst.msk [vmem:[#allocation6 + $0x78] sm:$0xff] %vm783_vm15, %v4385_v23  ;;  %v4394_v44 = vpack.c.bf16 %v4385_v23, %v4385_v23 }
0x29ac   :  { %4387 = vst.msk [vmem:[#allocation6 + $0x20] sm:$0xff] %vm785_vm0, %v4385_v23  ;;  %v9023_v23 = vld [vmem:[#allocation47_spill] sm:$0xff] }
0x29ad   :  { %6077 = vmatmul.msk.bf16.vlgmr.msrb.gmra.mxu1 %vm703_vm1, %v4394_v44  ;;  %6078 = vmatmul.msk.bf16.vlgmr.msra.gmra.mxu2 %vm703_vm1, %v4394_v44  ;;  %v2691_v44 = vadd.f32 %v9023_v23, %v8147_v8 }
0x29af   :  { %v4481_v55 = vadd.f32 %v9024_v20, %v2691_v44 }
0x2a2a   :  { %v4407_v29 = vpop.f32.mrf.mxu1 }
0x2a2b   :  { %v4424_v48 = vadd.f32 %v4407_v29, %v4392_v18 }
0x2a2d   :  { %v6079_v5 = vmul.f32 -1.442695, %v4424_v48 }
0x2a2f   :  { %6646 = vpow2.f32 %v6079_v5 }
0x2a30   :  { %v4420_v21 = vpop.f32.mrf.mxu2 }
0x2a31   :  { %v4425_v4 = vadd.f32 %v4420_v21, %v4393_v7  ;;  %v5091_v7 = vld [vmem:[%s8874_s2] sm:$0xff] }
0x2a32   :  { %v4409_v35 = vpop.f32.mrf.mxu1 }
0x2a33   :  { %v6080_v47 = vmul.f32 -1.442695, %v4425_v4 }
0x2a35   :  { %v6647_v40 = vpop.eup %6646 }
0x2a36   :  { %v4432_v27 = vadd.f32 1.0, %v6647_v40 }
0x2a38   :  { %6648 = vrcp.f32 %v4432_v27  ;;  %v4422_v10 = vpop.f32.mrf.mxu2  ;;  %v4445_v28 = vand.u32 2147483648, %v4432_v27  ;;  %v4443_v17 = vand.u32 2147483647, %v4432_v27  ;;  %vm4439_vm10 = vweird.f32 %v4432_v27 }
0x2a39   :  { %6650 = vtanh.f32 %v4425_v4  ;;  %v5096_v4 = vld [vmem:[%s8874_s2 + $0x28] sm:$0xff] }
0x2a3a   :  { %v4446_v63 = vor.u32 1.1754944e-38, %v4445_v28  ;;  %vm4444_vm12 = vcmp.eq.f32.partialorder %v4443_v17, 8.507059e+37  ;;  %6652 = vpow2.f32 %v6080_v47  ;;  %v5105_v28 = vld [vmem:[%s8874_s2 + $0x70] sm:$0xff] }
0x2a3e   :  { %v6649_v30 = vpop.eup %6648 }
0x2a3f   :  { %v4435_v24 = vmul.f32 %v6649_v30, %v4432_v27  ;;  %vm4440_vm9 = vweird.f32 %v6649_v30  ;;  %v6651_v52 = vpop.eup %6650 }
0x2a40   :  { %vm4441_vm11 = vmor %vm4439_vm10, %vm4440_vm9  ;;  %v6653_v2 = vpop.eup %6652 }
0x2a41   :  { %v4436_v33 = vsub.f32 1.0, %v4435_v24  ;;  %v4433_v56 = vadd.f32 1.0, %v6653_v2  ;;  %v5099_v24 = vld [vmem:[%s8874_s2 + $0x40] sm:$0xff] }
0x2a43   :  { %v4437_v32 = vmul.f32 %v6649_v30, %v4436_v33  ;;  %6654 = vrcp.f32 %v4433_v56  ;;  %v4460_v53 = vand.u32 2147483648, %v4433_v56  ;;  %vm4454_vm14 = vweird.f32 %v4433_v56  ;;  %v5102_v33 = vld [vmem:[%s8874_s2 + $0x58] sm:$0xff] }
0x2a44   :  { %v4458_v42 = vand.u32 2147483647, %v4433_v56 }
0x2a45   :  { %v4438_v51 = vadd.f32 %v6649_v30, %v4437_v32  ;;  %v4461_v59 = vor.u32 1.1754944e-38, %v4460_v53  ;;  %v5108_v32 = vld [vmem:[%s8874_s2 + $0x88] sm:$0xff] }
0x2a46   :  { %vm4459_vm3 = vcmp.eq.f32.partialorder %v4458_v42, 8.507059e+37  ;;  %v9025_v42 = vld [vmem:[#allocation48_spill] sm:$0xff] }
0x2a47   :  { %v4442_v37 = vsel %vm4441_vm11, %v6649_v30, %v4438_v51  ;;  %v5094_v30 = vld [vmem:[%s8874_s2 + $0x18] sm:$0xff] }
0x2a48   :  { %v4447_v3 = vsel %vm4444_vm12, %v4446_v63, %v4442_v37 }
0x2a49   :  { %v4466_v14 = vmul.f32 %v6651_v52, %v4447_v3  ;;  %v6655_v13 = vpop.eup %6654  ;;  %v4465_v31 = vmul.f32 %v4447_v3, %v4383_v50  ;;  %v4480_v50 = vadd.f32 %v9022_v0, %v2632_v36 }
0x2a4a   :  { %v4450_v39 = vmul.f32 %v6655_v13, %v4433_v56  ;;  %vm4455_vm13 = vweird.f32 %v6655_v13 }
0x2a4b   :  { %4468 = vrot.lane.b32.xlu0 %v4466_v14, %s6819_s23  ;;  %vm4456_vm2 = vmor %vm4454_vm14, %vm4455_vm13 }
0x2a4c   :  { %v4451_v46 = vsub.f32 1.0, %v4450_v39 }
0x2a4e   :  { %v4452_v58 = vmul.f32 %v6655_v13, %v4451_v46 }
0x2a50   :  { %v4453_v49 = vadd.f32 %v6655_v13, %v4452_v58 }
0x2a52   :  { %v4457_v61 = vsel %vm4456_vm2, %v6655_v13, %v4453_v49 }
0x2a53   :  { %v4462_v38 = vsel %vm4459_vm3, %v4461_v59, %v4457_v61  ;;  %v2635_v61 = vadd.f32 %v9025_v42, %v8137_v9  ;;  %v9026_v59 = vld [vmem:[#allocation25_spill] sm:$0xff] }
0x2abd   :  { %v4469_v62 = vpop.permute.xlu0 %4468 }
0x2abe   :  { %v8508_v16 = vadd.f32 %v4469_v62, %v4465_v31 }
0x2ac0   :  { %6656 = vtanh.f32 %v8508_v16 }
0x2ac6   :  { %v6657_v34 = vpop.eup %6656 }
0x2ac7   :  { %v4473_v12 = vmul.f32 %v6657_v34, %v4462_v38  ;;  %v4568_v34 = vadd.f32 %v9026_v59, %v2635_v61  ;;  %v8587_v61 = vld [vmem:[#allocation6 + $0x68] sm:$0xff]  ;;  %v8591_v59 = vld [vmem:[#allocation6 + $0x70] sm:$0xff] }
0x2ac9   :  { %4474 = vst.msk [vmem:[#allocation6 + $0x80] sm:$0xff] %vm783_vm15, %v4473_v12  ;;  %v4482_v22 = vpack.c.bf16 %v4473_v12, %v4473_v12 }
0x2aca   :  { %4475 = vst.msk [vmem:[#allocation6 + $0x18] sm:$0xff] %vm785_vm0, %v4473_v12 }
0x2acb   :  { %6081 = vmatmul.msk.bf16.vlgmr.msrb.gmra.mxu3 %vm703_vm1, %v4482_v22  ;;  %6082 = vmatmul.msk.bf16.vlgmr.msrb.gmra.mxu0 %vm703_vm1, %v4482_v22 }
0x2b48   :  { %v4508_v15 = vpop.f32.mrf.mxu0 }
0x2b49   :  { %v4513_v18 = vadd.f32 %v4508_v15, %v4481_v55 }
0x2b4b   :  { %v6084_v17 = vmul.f32 -1.442695, %v4513_v18 }
0x2b4e   :  { %v4495_v1 = vpop.f32.mrf.mxu3 }
0x2b4f   :  { %v4512_v19 = vadd.f32 %v4495_v1, %v4480_v50  ;;  %v9027_v50 = vld [vmem:[#allocation49_spill] sm:$0xff] }
0x2b50   :  { %v4510_v57 = vpop.f32.mrf.mxu0  ;;  %v2694_v1 = vadd.f32 %v9027_v50, %v8147_v8 }
0x2b51   :  { %v6083_v60 = vmul.f32 -1.442695, %v4512_v19  ;;  %v9028_v57 = vld [vmem:[#allocation36_spill] sm:$0xff] }
0x2b53   :  { %6658 = vpow2.f32 %v6083_v60  ;;  %v4569_v60 = vadd.f32 %v9028_v57, %v2694_v1 }
0x2b56   :  { %v4497_v6 = vpop.f32.mrf.mxu3 }
0x2b59   :  { %v6659_v41 = vpop.eup %6658 }
0x2b5a   :  { %v4520_v25 = vadd.f32 1.0, %v6659_v41 }
0x2b5c   :  { %6660 = vrcp.f32 %v4520_v25  ;;  %v4533_v5 = vand.u32 2147483648, %v4520_v25  ;;  %v4531_v35 = vand.u32 2147483647, %v4520_v25  ;;  %vm4527_vm5 = vweird.f32 %v4520_v25 }
0x2b5d   :  { %6662 = vtanh.f32 %v4513_v18 }
0x2b5e   :  { %v4534_v27 = vor.u32 1.1754944e-38, %v4533_v5  ;;  %vm4532_vm7 = vcmp.eq.f32.partialorder %v4531_v35, 8.507059e+37  ;;  %6664 = vpow2.f32 %v6084_v17  ;;  %v5092_v35 = vld [vmem:[%s8874_s2 + $0x8] sm:$0xff] }
0x2b5f   :  { %v4765_v17 = vld [vmem:[#allocation7 + $0x38] sm:$0xff] }
0x2b62   :  { %v6661_v45 = vpop.eup %6660 }
0x2b63   :  { %v4523_v29 = vmul.f32 %v6661_v45, %v4520_v25  ;;  %vm4528_vm4 = vweird.f32 %v6661_v45  ;;  %v6663_v54 = vpop.eup %6662 }
0x2b64   :  { %vm4529_vm6 = vmor %vm4527_vm5, %vm4528_vm4  ;;  %v6665_v51 = vpop.eup %6664 }
0x2b65   :  { %v4524_v48 = vsub.f32 1.0, %v4523_v29  ;;  %v4521_v63 = vadd.f32 1.0, %v6665_v51  ;;  %v4764_v51 = vld [vmem:[#allocation7 + $0x30] sm:$0xff] }
0x2b67   :  { %v4525_v21 = vmul.f32 %v6661_v45, %v4524_v48  ;;  %6666 = vrcp.f32 %v4521_v63  ;;  %v4548_v39 = vand.u32 2147483648, %v4521_v63  ;;  %vm4542_vm9 = vweird.f32 %v4521_v63 }
0x2b68   :  { %v4546_v46 = vand.u32 2147483647, %v4521_v63 }
0x2b69   :  { %v4526_v40 = vadd.f32 %v6661_v45, %v4525_v21  ;;  %v4549_v31 = vor.u32 1.1754944e-38, %v4548_v39  ;;  %v4760_v39 = vld [vmem:[#allocation7 + $0x10] sm:$0xff] }
0x2b6a   :  { %vm4547_vm11 = vcmp.eq.f32.partialorder %v4546_v46, 8.507059e+37 }
0x2b6b   :  { %v4530_v43 = vsel %vm4529_vm6, %v6661_v45, %v4526_v40  ;;  %v5095_v40 = vld [vmem:[%s8874_s2 + $0x20] sm:$0xff] }
0x2b6c   :  { %v4535_v10 = vsel %vm4532_vm7, %v4534_v27, %v4530_v43  ;;  %v5097_v27 = vld [vmem:[%s8874_s2 + $0x30] sm:$0xff]  ;;  %v5100_v43 = vld [vmem:[%s8874_s2 + $0x48] sm:$0xff] }
0x2b6d   :  { %v4554_v11 = vmul.f32 %v6663_v54, %v4535_v10  ;;  %v6667_v37 = vpop.eup %6666  ;;  %v4553_v47 = vmul.f32 %v4535_v10, %v8508_v16  ;;  %v5103_v54 = vld [vmem:[%s8874_s2 + $0x60] sm:$0xff]  ;;  %v5106_v10 = vld [vmem:[%s8874_s2 + $0x78] sm:$0xff] }
0x2b6e   :  { %v4538_v52 = vmul.f32 %v6667_v37, %v4521_v63  ;;  %vm4543_vm8 = vweird.f32 %v6667_v37 }
0x2b6f   :  { %4556 = vrot.lane.b32.xlu1 %v4554_v11, %s6819_s23  ;;  %vm4544_vm10 = vmor %vm4542_vm9, %vm4543_vm8  ;;  %v5109_v11 = vld [vmem:[%s8874_s2 + $0x90] sm:$0xff] }
0x2b70   :  { %v4539_v3 = vsub.f32 1.0, %v4538_v52  ;;  %v4762_v52 = vld [vmem:[#allocation7 + $0x20] sm:$0xff] }
0x2b72   :  { %v4540_v14 = vmul.f32 %v6667_v37, %v4539_v3 }
0x2b74   :  { %v4541_v13 = vadd.f32 %v6667_v37, %v4540_v14 }
0x2b76   :  { %v4545_v58 = vsel %vm4544_vm10, %v6667_v37, %v4541_v13  ;;  %v4763_v37 = vld [vmem:[#allocation7 + $0x28] sm:$0xff] }
0x2b77   :  { %5125 = vperm.xlu1 %6201, %v5091_v7   ;;  %v4550_v49 = vsel %vm4547_vm11, %v4549_v31, %v4545_v58 }
0x2b7f   :  { %5182 = vperm.xlu1 %6201, %v5094_v30  }
0x2b87   :  { %5220 = vperm.xlu1 %6201, %v5096_v4  }
0x2b8f   :  { %5277 = vperm.xlu1 %6201, %v5099_v24  }
0x2b97   :  { %5334 = vperm.xlu1 %6201, %v5102_v33   ;;  %v4767_v33 = vld [vmem:[#allocation7 + $0x48] sm:$0xff] }
0x2b98   :  { %6179 = vmatpush.msrb.mxu3 %v4767_v33  ;;  %4838 = vmatpush.msrb.mxu1 %v4767_v33 }
0x2b9f   :  { %5391 = vperm.xlu1 %6201, %v5105_v28   ;;  %v4766_v28 = vld [vmem:[#allocation7 + $0x40] sm:$0xff] }
0x2ba0   :  { %6180 = vmatpush.msrb.mxu3 %v4766_v28  ;;  %4839 = vmatpush.msrb.mxu1 %v4766_v28 }
0x2ba2   :  { %6181 = vmatpush.msrb.mxu3 %v4765_v17  ;;  %4840 = vmatpush.msrb.mxu1 %v4765_v17 }
0x2ba4   :  { %6182 = vmatpush.msrb.mxu3 %v4764_v51  ;;  %4841 = vmatpush.msrb.mxu1 %v4764_v51 }
0x2ba6   :  { %6183 = vmatpush.msrb.mxu3 %v4763_v37  ;;  %4842 = vmatpush.msrb.mxu1 %v4763_v37 }
0x2ba7   :  { %5448 = vperm.xlu1 %6201, %v5108_v32  }
0x2ba8   :  { %6184 = vmatpush.msrb.mxu3 %v4762_v52  ;;  %4843 = vmatpush.msrb.mxu1 %v4762_v52 }
0x2be1   :  { %v4557_v2 = vpop.permute.xlu1 %4556 }
0x2be2   :  { %v8544_v56 = vadd.f32 %v4557_v2, %v4553_v47  ;;  %v4761_v47 = vld [vmem:[#allocation7 + $0x18] sm:$0xff] }
0x2be3   :  { %6185 = vmatpush.msrb.mxu3 %v4761_v47  ;;  %4844 = vmatpush.msrb.mxu1 %v4761_v47 }
0x2be4   :  { %6668 = vtanh.f32 %v8544_v56 }
0x2be5   :  { %6186 = vmatpush.msrb.mxu3 %v4760_v39  ;;  %4845 = vmatpush.msrb.mxu1 %v4760_v39 }
0x2be9   :  { %v5126_v51 = vpop.permute.xlu1 %5125 }
0x2bea   :  { %v6669_v62 = vpop.eup %6668 }
0x2beb   :  { %v4561_v53 = vmul.f32 %v6669_v62, %v4550_v49 }
0x2bed   :  { %4562 = vst.msk [vmem:[#allocation6 + $0x88] sm:$0xff] %vm783_vm15, %v4561_v53  ;;  %v4570_v16 = vpack.c.bf16 %v4561_v53, %v4561_v53 }
0x2bee   :  { %4563 = vst.msk [vmem:[#allocation6 + $0x10] sm:$0xff] %vm785_vm0, %v4561_v53 }
0x2bef   :  { %6085 = vmatmul.msk.bf16.vlgmr.msra.gmra.mxu1 %vm703_vm1, %v4570_v16  ;;  %6086 = vmatmul.msk.bf16.vlgmr.msrb.gmra.mxu2 %vm703_vm1, %v4570_v16 }
0x2bf1   :  { %v5183_v47 = vpop.permute.xlu1 %5182 }
0x2c6c   :  { %v4583_v38 = vpop.f32.mrf.mxu1 }
0x2c6d   :  { %v4600_v12 = vadd.f32 %v4583_v38, %v4568_v34  ;;  %v8595_v34 = vld [vmem:[#allocation6 + $0x78] sm:$0xff]  ;;  %v8599_v38 = vld [vmem:[#allocation6 + $0x80] sm:$0xff] }
0x2c6f   :  { %v6087_v22 = vmul.f32 -1.442695, %v4600_v12  ;;  %v8603_v12 = vld [vmem:[#allocation6 + $0x88] sm:$0xff] }
0x2c71   :  { %6670 = vpow2.f32 %v6087_v22 }
0x2c72   :  { %v4596_v15 = vpop.f32.mrf.mxu2 }
0x2c73   :  { %v4601_v41 = vadd.f32 %v4596_v15, %v4569_v60 }
0x2c74   :  { %v4585_v26 = vpop.f32.mrf.mxu1 }
0x2c75   :  { %v6088_v7 = vmul.f32 -1.442695, %v4601_v41  ;;  %v9029_v26 = vld [vmem:[#allocation50_spill] sm:$0xff] }
0x2c77   :  { %v6671_v36 = vpop.eup %6670 }
0x2c78   :  { %v4608_v0 = vadd.f32 1.0, %v6671_v36  ;;  %v2637_v36 = vadd.f32 %v9029_v26, %v8137_v9 }
0x2c7a   :  { %6672 = vrcp.f32 %v4608_v0  ;;  %v4598_v19 = vpop.f32.mrf.mxu2  ;;  %v4621_v44 = vand.u32 2147483648, %v4608_v0  ;;  %v4619_v55 = vand.u32 2147483647, %v4608_v0  ;;  %vm4615_vm13 = vweird.f32 %v4608_v0 }
0x2c7b   :  { %6674 = vtanh.f32 %v4601_v41 }
0x2c7c   :  { %v4622_v18 = vor.u32 1.1754944e-38, %v4621_v44  ;;  %vm4620_vm2 = vcmp.eq.f32.partialorder %v4619_v55, 8.507059e+37  ;;  %6676 = vpow2.f32 %v6088_v7  ;;  %v5101_v7 = vld [vmem:[%s8874_s2 + $0x50] sm:$0xff] }
0x2c80   :  { %v6673_v6 = vpop.eup %6672 }
0x2c81   :  { %v4611_v25 = vmul.f32 %v6673_v6, %v4608_v0  ;;  %vm4616_vm12 = vweird.f32 %v6673_v6  ;;  %v6675_v48 = vpop.eup %6674  ;;  %v9030_v0 = vld [vmem:[#allocation26_spill] sm:$0xff] }
0x2c82   :  { %vm4617_vm14 = vmor %vm4615_vm13, %vm4616_vm12  ;;  %v6677_v30 = vpop.eup %6676  ;;  %v4656_v50 = vadd.f32 %v9030_v0, %v2637_v36 }
0x2c83   :  { %v4612_v23 = vsub.f32 1.0, %v4611_v25  ;;  %v4609_v4 = vadd.f32 1.0, %v6677_v30  ;;  %v5104_v30 = vld [vmem:[%s8874_s2 + $0x68] sm:$0xff] }
0x2c85   :  { %v4613_v20 = vmul.f32 %v6673_v6, %v4612_v23  ;;  %6678 = vrcp.f32 %v4609_v4  ;;  %v4636_v58 = vand.u32 2147483648, %v4609_v4  ;;  %vm4630_vm4 = vweird.f32 %v4609_v4  ;;  %v9031_v23 = vld [vmem:[#allocation51_spill] sm:$0xff] }
0x2c86   :  { %v4634_v31 = vand.u32 2147483647, %v4609_v4  ;;  %v2696_v44 = vadd.f32 %v9031_v23, %v8147_v8 }
0x2c87   :  { %v4614_v45 = vadd.f32 %v6673_v6, %v4613_v20  ;;  %v4637_v62 = vor.u32 1.1754944e-38, %v4636_v58  ;;  %v9032_v20 = vld [vmem:[#allocation27_spill] sm:$0xff] }
0x2c88   :  { %vm4635_vm6 = vcmp.eq.f32.partialorder %v4634_v31, 8.507059e+37  ;;  %v4657_v55 = vadd.f32 %v9032_v20, %v2696_v44  ;;  %v8654_v44 = vld [vmem:[#allocation6 + $0x18] sm:$0xff] }
0x2c89   :  { %v4618_v29 = vsel %vm4617_vm14, %v6673_v6, %v4614_v45 }
0x2c8a   :  { %v4623_v5 = vsel %vm4620_vm2, %v4622_v18, %v4618_v29 }
0x2c8b   :  { %v4642_v21 = vmul.f32 %v6675_v48, %v4623_v5  ;;  %v6679_v24 = vpop.eup %6678  ;;  %v4641_v14 = vmul.f32 %v4623_v5, %v8544_v56 }
0x2c8c   :  { %v4626_v32 = vmul.f32 %v6679_v24, %v4609_v4  ;;  %vm4631_vm3 = vweird.f32 %v6679_v24  ;;  %v5107_v4 = vld [vmem:[%s8874_s2 + $0x80] sm:$0xff] }
0x2c8d   :  { %4644 = vrot.lane.b32.xlu2 %v4642_v21, %s6819_s23  ;;  %vm4632_vm5 = vmor %vm4630_vm4, %vm4631_vm3 }
0x2c8e   :  { %v4627_v63 = vsub.f32 1.0, %v4626_v32 }
0x2c90   :  { %v4628_v3 = vmul.f32 %v6679_v24, %v4627_v63 }
0x2c92   :  { %v4629_v46 = vadd.f32 %v6679_v24, %v4628_v3 }
0x2c94   :  { %v4633_v56 = vsel %vm4632_vm5, %v6679_v24, %v4629_v46  ;;  %v5110_v24 = vld [vmem:[%s8874_s2 + $0x98] sm:$0xff] }
0x2c95   :  { %5144 = vperm.xlu2 %6202, %v5092_v35   ;;  %v4638_v53 = vsel %vm4635_vm6, %v4637_v62, %v4633_v56 }
0x2c9d   :  { %5201 = vperm.xlu2 %6202, %v5095_v40  }
0x2ca5   :  { %5239 = vperm.xlu2 %6202, %v5097_v27  }
0x2cad   :  { %5296 = vperm.xlu2 %6202, %v5100_v43  }
0x2cb5   :  { %5353 = vperm.xlu2 %6202, %v5103_v54  }
0x2cbd   :  { %5410 = vperm.xlu2 %6202, %v5106_v10   ;;  %v5093_v10 = vld [vmem:[%s8874_s2 + $0x10] sm:$0xff] }
0x2cc5   :  { %5467 = vperm.xlu2 %6202, %v5109_v11   ;;  %v5098_v11 = vld [vmem:[%s8874_s2 + $0x38] sm:$0xff]  ;;  %s6820_s2 = smov 127  }
0x2ce7   :  { %v4645_v2 = vpop.permute.xlu2 %4644 }
0x2ce8   :  { %v8580_v13 = vadd.f32 %v4645_v2, %v4641_v14 }
0x2cea   :  { %6680 = vtanh.f32 %v8580_v13 }
0x2cef   :  { %v5145_v37 = vpop.permute.xlu2 %5144 }
0x2cf0   :  { %v6681_v49 = vpop.eup %6680 }
0x2cf1   :  { %v4649_v16 = vmul.f32 %v6681_v49, %v4638_v53 }
0x2cf3   :  { %4650 = vst.msk [vmem:[#allocation6 + $0x90] sm:$0xff] %vm783_vm15, %v4649_v16  ;;  %v4658_v42 = vpack.c.bf16 %v4649_v16, %v4649_v16 }
0x2cf4   :  { %4651 = vst.msk [vmem:[#allocation6 + $0x8] sm:$0xff] %vm785_vm0, %v4649_v16 }
0x2cf5   :  { %6089 = vmatmul.msk.bf16.vlgmr.msra.gmra.mxu3 %vm703_vm1, %v4658_v42  ;;  %6090 = vmatmul.msk.bf16.vlgmr.msra.gmra.mxu0 %vm703_vm1, %v4658_v42 }
0x2cf7   :  { %v5202_v46 = vpop.permute.xlu2 %5201 }
0x2cfa   :  { %v8607_v22 = vld [vmem:[#allocation6 + $0x90] sm:$0xff] }
0x2cfb   :  { %v8639_v0 = vld [vmem:[#allocation6 + $0x8] sm:$0xff] }
0x2d05   :  { %6106 = vmatmul.msk.f32.vlgmr.msrb.gmra.mxu3 %vm703_vm1, %v8587_v61 }
0x2d0d   :  { %6107 = vmatmul.msk.f32.gmra.mxu3 %vm703_vm1, %v8591_v59 }
0x2d15   :  { %6108 = vmatmul.msk.f32.gmra.mxu3 %vm703_vm1, %v8595_v34 }
0x2d1d   :  { %6109 = vmatmul.msk.f32.gmra.mxu3 %vm703_vm1, %v8599_v38 }
0x2d25   :  { %6110 = vmatmul.msk.f32.gmra.mxu3 %vm703_vm1, %v8603_v12 }
0x2d2d   :  { %6111 = vmatmul.msk.f32.gmra.mxu3 %vm703_vm1, %v8607_v22 }
0x2d72   :  { %v4684_v15 = vpop.f32.mrf.mxu0 }
0x2d73   :  { %v4689_v18 = vadd.f32 %v4684_v15, %v4657_v55  ;;  %v5221_v15 = vpop.permute.xlu1 %5220  ;;  %v5185_v55 = vmul.f32 %v5183_v47, %v8654_v44  ;;  %v8685_v47 = vld [vmem:[#allocation6 + $0x60] sm:$0xff] }
0x2d75   :  { %v6092_v33 = vmul.f32 -1.442695, %v4689_v18 }
0x2d78   :  { %v4671_v1 = vpop.f32.mrf.mxu3 }
0x2d79   :  { %v4688_v19 = vadd.f32 %v4671_v1, %v4656_v50 }
0x2d7a   :  { %v4686_v57 = vpop.f32.mrf.mxu0 }
0x2d7b   :  { %v6091_v60 = vmul.f32 -1.442695, %v4688_v19  ;;  %v5278_v1 = vpop.permute.xlu1 %5277  ;;  %v5147_v57 = vmul.f32 %v5145_v37, %v8639_v0  ;;  %v8682_v37 = vld [vmem:[#allocation6 + $0x58] sm:$0xff] }
0x2d7d   :  { %6682 = vpow2.f32 %v6091_v60 }
0x2d80   :  { %v4673_v6 = vpop.f32.mrf.mxu3 }
0x2d83   :  { %v6683_v41 = vpop.eup %6682 }
0x2d84   :  { %v4696_v25 = vadd.f32 1.0, %v6683_v41  ;;  %v8651_v41 = vld [vmem:[#allocation6 + $0x10] sm:$0xff] }
0x2d86   :  { %6684 = vrcp.f32 %v4696_v25  ;;  %v4709_v48 = vand.u32 2147483648, %v4696_v25  ;;  %v4707_v21 = vand.u32 2147483647, %v4696_v25  ;;  %vm4703_vm8 = vweird.f32 %v4696_v25 }
0x2d87   :  { %6686 = vtanh.f32 %v4689_v18  ;;  %v8657_v18 = vld [vmem:[#allocation6 + $0x20] sm:$0xff] }
0x2d88   :  { %v4710_v40 = vor.u32 1.1754944e-38, %v4709_v48  ;;  %vm4708_vm10 = vcmp.eq.f32.partialorder %v4707_v21, 8.507059e+37  ;;  %6688 = vpow2.f32 %v6092_v33  ;;  %v8660_v48 = vld [vmem:[#allocation6 + $0x28] sm:$0xff] }
0x2d89   :  { %v8674_v33 = vld [vmem:[#allocation6 + $0x48] sm:$0xff] }
0x2d8c   :  { %v6685_v45 = vpop.eup %6684 }
0x2d8d   :  { %v4699_v29 = vmul.f32 %v6685_v45, %v4696_v25  ;;  %vm4704_vm7 = vweird.f32 %v6685_v45  ;;  %v6687_v43 = vpop.eup %6686 }
0x2d8e   :  { %vm4705_vm9 = vmor %vm4703_vm8, %vm4704_vm7  ;;  %v6689_v28 = vpop.eup %6688 }
0x2d8f   :  { %v4700_v9 = vsub.f32 1.0, %v4699_v29  ;;  %v4697_v32 = vadd.f32 1.0, %v6689_v28  ;;  %v5204_v29 = vmul.f32 %v5202_v46, %v8657_v18 }
0x2d91   :  { %v4701_v5 = vmul.f32 %v6685_v45, %v4700_v9  ;;  %6690 = vrcp.f32 %v4697_v32  ;;  %v4724_v31 = vand.u32 2147483648, %v4697_v32  ;;  %vm4718_vm12 = vweird.f32 %v4697_v32 }
0x2d92   :  { %v4722_v56 = vand.u32 2147483647, %v4697_v32 }
0x2d93   :  { %v4702_v35 = vadd.f32 %v6685_v45, %v4701_v5  ;;  %v4725_v49 = vor.u32 1.1754944e-38, %v4724_v31  ;;  %v5223_v5 = vmul.f32 %v5221_v15, %v8660_v48  ;;  %v5536_v15 = vld [vmem:[#allocation7 + $0xb0] sm:$0xff] }
0x2d94   :  { %vm4723_vm14 = vcmp.eq.f32.partialorder %v4722_v56, 8.507059e+37 }
0x2d95   :  { %v4706_v27 = vsel %vm4705_vm9, %v6685_v45, %v4702_v35  ;;  %v5335_v35 = vpop.permute.xlu1 %5334 }
0x2d96   :  { %v4711_v8 = vsel %vm4708_vm10, %v4710_v40, %v4706_v27  ;;  %v8665_v40 = vld [vmem:[#allocation6 + $0x30] sm:$0xff] }
0x2d97   :  { %v4730_v54 = vmul.f32 %v6687_v43, %v4711_v8  ;;  %v6691_v17 = vpop.eup %6690  ;;  %v4729_v14 = vmul.f32 %v4711_v8, %v8580_v13  ;;  %v5240_v13 = vpop.permute.xlu2 %5239 }
0x2d98   :  { %v4714_v63 = vmul.f32 %v6691_v17, %v4697_v32  ;;  %vm4719_vm11 = vweird.f32 %v6691_v17  ;;  %v5242_v27 = vmul.f32 %v5240_v13, %v8665_v40 }
0x2d99   :  { %4732 = vrot.lane.b32.xlu0 %v4730_v54, %s6819_s23  ;;  %vm4720_vm13 = vmor %vm4718_vm12, %vm4719_vm11  ;;  %v8668_v54 = vld [vmem:[#allocation6 + $0x38] sm:$0xff] }
0x2d9a   :  { %v4715_v52 = vsub.f32 1.0, %v4714_v63 }
0x2d9c   :  { %v4716_v3 = vmul.f32 %v6691_v17, %v4715_v52 }
0x2d9d   :  { %v5392_v52 = vpop.permute.xlu1 %5391 }
0x2d9e   :  { %v4717_v58 = vadd.f32 %v6691_v17, %v4716_v3  ;;  %v5337_v3 = vmul.f32 %v5335_v35, %v8682_v37 }
0x2d9f   :  { %v5297_v6 = vpop.permute.xlu2 %5296 }
0x2da0   :  { %v4721_v62 = vsel %vm4720_vm13, %v6691_v17, %v4717_v58  ;;  %v5299_v28 = vmul.f32 %v5297_v6, %v8674_v33  ;;  %v8679_v17 = vld [vmem:[#allocation6 + $0x50] sm:$0xff] }
0x2da1   :  { %5163 = vperm.xlu0 %6203, %v5093_v10   ;;  %v4726_v42 = vsel %vm4723_vm14, %v4725_v49, %v4721_v62  ;;  %v5538_v49 = vld [vmem:[#allocation7 + $0xc0] sm:$0xff] }
0x2da7   :  { %v5354_v8 = vpop.permute.xlu2 %5353 }
0x2da8   :  { %v5356_v46 = vmul.f32 %v5354_v8, %v8685_v47 }
0x2da9   :  { %5258 = vperm.xlu0 %6203, %v5098_v11  }
0x2db1   :  { %5315 = vperm.xlu0 %6203, %v5101_v7   ;;  %v8671_v7 = vld [vmem:[#allocation6 + $0x40] sm:$0xff] }
0x2db9   :  { %5372 = vperm.xlu0 %6203, %v5104_v30  }
0x2dc1   :  { %5429 = vperm.xlu0 %6203, %v5107_v4   ;;  %v5280_v4 = vmul.f32 %v5278_v1, %v8671_v7  ;;  %v5449_v1 = vpop.permute.xlu1 %5448 }
0x2dc2   :  { %v5451_v6 = vmul.f32 %v5449_v1, %v8603_v12 }
0x2dc9   :  { %5485 = vperm.xlu0 %6203, %v5110_v24  }
0x2e0b   :  { %v4733_v2 = vpop.permute.xlu0 %4732 }
0x2e0c   :  { %v4735_v39 = vadd.f32 %v4733_v2, %v4729_v14  ;;  %v5411_v2 = vpop.permute.xlu2 %5410 }
0x2e0e   :  { %6692 = vtanh.f32 %v4735_v39  ;;  %v5539_v39 = vld [vmem:[#allocation7 + $0xc8] sm:$0xff] }
0x2e0f   :  { %5553 = vmatpush.msra.mxu3 %v5539_v39  ;;  %v4927_v39 = vld [vmem:[#allocation7 + $0x50] sm:$0xff] }
0x2e11   :  { %5554 = vmatpush.msra.mxu3 %v5538_v49 }
0x2e13   :  { %v5164_v53 = vpop.permute.xlu0 %5163 }
0x2e14   :  { %v6693_v16 = vpop.eup %6692  ;;  %v5166_v23 = vmul.f32 %v5164_v53, %v8651_v41  ;;  %v5537_v53 = vld [vmem:[#allocation7 + $0xb8] sm:$0xff] }
0x2e15   :  { %v4737_v26 = vmul.f32 %v6693_v16, %v4726_v42  ;;  %v5394_v16 = vmul.f32 %v5392_v52, %v8591_v59  ;;  %5555 = vmatpush.msra.mxu3 %v5537_v53  ;;  %v5534_v59 = vld [vmem:[#allocation7 + $0xa0] sm:$0xff]  ;;  %v4931_v52 = vld [vmem:[#allocation7 + $0x70] sm:$0xff]  ;;  %v8720_v53 = vpop.f32.mrf.mxu3 }
0x2e17   :  { %4738 = vst.msk [vmem:[#allocation6 + $0x98] sm:$0xff] %vm783_vm15, %v4737_v26  ;;  %5556 = vmatpush.msra.mxu3 %v5536_v15 }
0x2e18   :  { %4739 = vst.msk [vmem:[#allocation6] sm:$0xff] %vm785_vm0, %v4737_v26  ;;  %v5413_v26 = vmul.f32 %v5411_v2, %v8595_v34  ;;  %v4928_v2 = vld [vmem:[#allocation7 + $0x58] sm:$0xff] }
0x2e1b   :  { %v5259_v36 = vpop.permute.xlu0 %5258 }
0x2e1c   :  { %v5261_v11 = vmul.f32 %v5259_v36, %v8668_v54  ;;  %v5535_v36 = vld [vmem:[#allocation7 + $0xa8] sm:$0xff] }
0x2e1d   :  { %5557 = vmatpush.msra.mxu3 %v5535_v36 }
0x2e1e   :  { %v8641_v50 = vld [vmem:[#allocation6 + $0x98] sm:$0xff] }
0x2e1f   :  { %v8643_v19 = vld [vmem:[#allocation6] sm:$0xff]  ;;  %6112 = vmatmul.msk.f32.gmra.mxu3 %vm703_vm1, %v8641_v50 }
0x2e20   :  { %v5128_v60 = vmul.f32 %v5126_v51, %v8643_v19  ;;  %6093 = vmatmul.msk.f32.vlgmr.msrb.gmra.mxu1 %vm703_vm1, %v8643_v19  ;;  %5558 = vmatpush.msra.mxu3 %v5534_v59  ;;  %v5579_v59 = vld [vmem:[#allocation7 + $0x140] sm:$0xff] }
0x2e22   :  { %v5148_v25 = vadd.f32 %v5147_v57, %v5128_v60  ;;  %v5468_v60 = vpop.permute.xlu2 %5467 }
0x2e23   :  { %v5316_v20 = vpop.permute.xlu0 %5315  ;;  %v5470_v34 = vmul.f32 %v5468_v60, %v8607_v22 }
0x2e24   :  { %v5167_v45 = vadd.f32 %v5166_v23, %v5148_v25  ;;  %v5318_v63 = vmul.f32 %v5316_v20, %v8679_v17  ;;  %v5533_v23 = vld [vmem:[#allocation7 + $0x98] sm:$0xff] }
0x2e25   :  { %5559 = vmatpush.msra.mxu3 %v5533_v23  ;;  %v5578_v23 = vld [vmem:[#allocation7 + $0x138] sm:$0xff] }
0x2e26   :  { %v5186_v9 = vadd.f32 %v5185_v55, %v5167_v45  ;;  %v5532_v45 = vld [vmem:[#allocation7 + $0x90] sm:$0xff] }
0x2e27   :  { %5560 = vmatpush.msra.mxu3 %v5532_v45 }
0x2e28   :  { %v5205_v21 = vadd.f32 %v5204_v29, %v5186_v9  ;;  %6094 = vmatmul.msk.f32.gmra.mxu1 %vm703_vm1, %v8639_v0  ;;  %v6206_v29 = vld [vmem:[#allocation7 + $0xa] ss:$0 sm:$0xff] }
0x2e2a   :  { %v5224_v43 = vadd.f32 %v5223_v5, %v5205_v21 }
0x2e2b   :  { %v5373_v30 = vpop.permute.xlu0 %5372 }
0x2e2c   :  { %v5243_v10 = vadd.f32 %v5242_v27, %v5224_v43  ;;  %v5375_v62 = vmul.f32 %v5373_v30, %v8587_v61  ;;  %v4934_v30 = vld [vmem:[#allocation7 + $0x88] sm:$0xff] }
0x2e2d   :  { %5003 = vmatpush.msrb.mxu0 %v4934_v30  ;;  %6187 = vmatpush.msra.mxu2 %v4934_v30 }
0x2e2e   :  { %v5262_v24 = vadd.f32 %v5261_v11, %v5243_v10 }
0x2e30   :  { %v5281_v32 = vadd.f32 %v5280_v4, %v5262_v24  ;;  %6095 = vmatmul.msk.f32.gmra.mxu1 %vm703_vm1, %v8651_v41  ;;  %v4933_v4 = vld [vmem:[#allocation7 + $0x80] sm:$0xff] }
0x2e31   :  { %5004 = vmatpush.msrb.mxu0 %v4933_v4  ;;  %6188 = vmatpush.msra.mxu2 %v4933_v4 }
0x2e32   :  { %v5300_v51 = vadd.f32 %v5299_v28, %v5281_v32  ;;  %v4932_v28 = vld [vmem:[#allocation7 + $0x78] sm:$0xff] }
0x2e33   :  { %v5430_v31 = vpop.permute.xlu0 %5429  ;;  %5005 = vmatpush.msrb.mxu0 %v4932_v28  ;;  %6189 = vmatpush.msra.mxu2 %v4932_v28 }
0x2e34   :  { %v5319_v14 = vadd.f32 %v5318_v63, %v5300_v51  ;;  %v5432_v61 = vmul.f32 %v5430_v31, %v8599_v38 }
0x2e35   :  { %5006 = vmatpush.msrb.mxu0 %v4931_v52  ;;  %6190 = vmatpush.msra.mxu2 %v4931_v52 }
0x2e36   :  { %v5338_v58 = vadd.f32 %v5337_v3, %v5319_v14  ;;  %v4930_v3 = vld [vmem:[#allocation7 + $0x68] sm:$0xff]  ;;  %v4929_v14 = vld [vmem:[#allocation7 + $0x60] sm:$0xff] }
0x2e37   :  { %5007 = vmatpush.msrb.mxu0 %v4930_v3  ;;  %6191 = vmatpush.msra.mxu2 %v4930_v3 }
0x2e38   :  { %v5357_v56 = vadd.f32 %v5356_v46, %v5338_v58  ;;  %6096 = vmatmul.msk.f32.gmra.mxu1 %vm703_vm1, %v8654_v44  ;;  %v8716_v46 = vld [vmem:[#allocation7 + $0x9] ss:$0 sm:$0xff] }
0x2e39   :  { %5008 = vmatpush.msrb.mxu0 %v4929_v14  ;;  %6192 = vmatpush.msra.mxu2 %v4929_v14 }
0x2e3a   :  { %v5376_v42 = vadd.f32 %v5375_v62, %v5357_v56 }
0x2e3b   :  { %v5486_v20 = vpop.permute.xlu0 %5485  ;;  %5009 = vmatpush.msrb.mxu0 %v4928_v2  ;;  %6193 = vmatpush.msra.mxu2 %v4928_v2 }
0x2e3c   :  { %v5395_v13 = vadd.f32 %v5394_v16, %v5376_v42  ;;  %v5488_v38 = vmul.f32 %v5486_v20, %v8641_v50 }
0x2e3d   :  { %5010 = vmatpush.msrb.mxu0 %v4927_v39  ;;  %6194 = vmatpush.msra.mxu2 %v4927_v39 }
0x2e3e   :  { %v5414_v57 = vadd.f32 %v5413_v26, %v5395_v13  ;;  %v8725_v26 = vpop.f32.mrf.mxu3 }
0x2e40   :  { %v5433_v25 = vadd.f32 %v5432_v61, %v5414_v57  ;;  %6097 = vmatmul.msk.f32.gmra.mxu1 %vm703_vm1, %v8657_v18 }
0x2e42   :  { %v5452_v55 = vadd.f32 %v5451_v6, %v5433_v25  ;;  %v5580_v25 = vld [vmem:[#allocation7 + $0x148] sm:$0xff] }
0x2e43   :  { %5593 = vmatpush.msra.mxu0 %v5580_v25 }
0x2e44   :  { %v5471_v9 = vadd.f32 %v5470_v34, %v5452_v55  ;;  %v5577_v55 = vld [vmem:[#allocation7 + $0x130] sm:$0xff] }
0x2e45   :  { %5594 = vmatpush.msra.mxu0 %v5579_v59 }
0x2e46   :  { %v5489_v5 = vadd.f32 %v5488_v38, %v5471_v9  ;;  %v8729_v57 = vpop.f32.mrf.mxu3  ;;  %v5576_v9 = vld [vmem:[#allocation7 + $0x128] sm:$0xff]  ;;  %v5575_v38 = vld [vmem:[#allocation7 + $0x120] sm:$0xff] }
0x2e47   :  { %5595 = vmatpush.msra.mxu0 %v5578_v23 }
0x2e48   :  { %v5512_v12 = vadd.f32 %v6206_v29, %v5489_v5  ;;  %6098 = vmatmul.msk.f32.gmra.mxu1 %vm703_vm1, %v8660_v48  ;;  %v5574_v5 = vld [vmem:[#allocation7 + $0x118] sm:$0xff] }
0x2e49   :  { %5596 = vmatpush.msra.mxu0 %v5577_v55 }
0x2e4a   :  { %v6133_v21 = vmul.f32 -1.442695, %v5512_v12 }
0x2e4b   :  { %5597 = vmatpush.msra.mxu0 %v5576_v9 }
0x2e4c   :  { %6694 = vpow2.f32 %v6133_v21  ;;  %v5573_v21 = vld [vmem:[#allocation7 + $0x110] sm:$0xff] }
0x2e4d   :  { %5598 = vmatpush.msra.mxu0 %v5575_v38 }
0x2e4e   :  { %v8733_v20 = vpop.f32.mrf.mxu3 }
0x2e4f   :  { %5599 = vmatpush.msra.mxu0 %v5574_v5 }
0x2e50   :  { %6099 = vmatmul.msk.f32.gmra.mxu1 %vm703_vm1, %v8665_v40 }
0x2e51   :  { %5600 = vmatpush.msra.mxu0 %v5573_v21 }
0x2e52   :  { %v6695_v35 = vpop.eup %6694 }
0x2e53   :  { %v5516_v22 = vadd.f32 1.0, %v6695_v35 }
0x2e55   :  { %6696 = vrcp.f32 %v5516_v22  ;;  %v5528_v8 = vand.u32 2147483648, %v5516_v22  ;;  %v5526_v11 = vand.u32 2147483647, %v5516_v22  ;;  %vm5522_vm0 = vweird.f32 %v5516_v22 }
0x2e57   :  { %v5529_v32 = vor.u32 1.1754944e-38, %v5528_v8  ;;  %vm5527_vm3 = vcmp.eq.f32.partialorder %v5526_v11, 8.507059e+37 }
0x2e58   :  { %6100 = vmatmul.msk.f32.gmra.mxu1 %vm703_vm1, %v8668_v54 }
0x2e5b   :  { %v6697_v27 = vpop.eup %6696 }
0x2e5c   :  { %v5518_v43 = vmul.f32 %v6697_v27, %v5516_v22  ;;  %vm5523_vm15 = vweird.f32 %v6697_v27 }
0x2e5d   :  { %vm5524_vm2 = vmor %vm5522_vm0, %vm5523_vm15 }
0x2e5e   :  { %v5519_v50 = vsub.f32 1.0, %v5518_v43 }
0x2e60   :  { %6101 = vmatmul.msk.f32.gmra.mxu1 %vm703_vm1, %v8671_v7  ;;  %v5520_v10 = vmul.f32 %v6697_v27, %v5519_v50 }
0x2e62   :  { %v5521_v24 = vadd.f32 %v6697_v27, %v5520_v10 }
0x2e64   :  { %v5525_v51 = vsel %vm5524_vm2, %v6697_v27, %v5521_v24  ;;  %v4898_v27 = vpop.f32.mrf.mxu3 }
0x2e65   :  { %v5530_v63 = vsel %vm5527_vm3, %v5529_v32, %v5525_v51 }
0x2e66   :  { %6134 = vmatmul.msk.f32.vlgmr.msra.gmra.mxu3 %vm703_vm1, %v5530_v63  ;;  %v6207_v63 = vld [vmem:[#allocation7 + $0xb] ss:$0 sm:$0xff] }
0x2e68   :  { %6102 = vmatmul.msk.f32.gmra.mxu1 %vm703_vm1, %v8674_v33 }
0x2e6c   :  { %v4901_v10 = vpop.f32.mrf.mxu3 }
0x2e6d   :  { %v4902_v25 = vadd.f32 %v8716_v46, %v4901_v10 }
0x2e70   :  { %6103 = vmatmul.msk.f32.gmra.mxu1 %vm703_vm1, %v8679_v17 }
0x2e78   :  { %6104 = vmatmul.msk.f32.gmra.mxu1 %vm703_vm1, %v8682_v37 }
0x2e80   :  { %6105 = vmatmul.msk.f32.gmra.mxu1 %vm703_vm1, %v8685_v47 }
0x2e9d   :  { %v4847_v58 = vpop.f32.mrf.mxu1 }
0x2e9e   :  { %v4848_v31 = vadd.f32 %v8716_v46, %v4847_v58 }
0x2ea0   :  { %6698 = vtanh.f32 %v4848_v31 }
0x2ea2   :  { %v4904_v24 = vpop.f32.mrf.mxu3 }
0x2ea3   :  { %v4905_v59 = vadd.f32 %v8716_v46, %v4904_v24 }
0x2ea5   :  { %v4850_v56 = vpop.f32.mrf.mxu1 }
0x2ea6   :  { %v6699_v62 = vpop.eup %6698  ;;  %v4851_v49 = vadd.f32 %v8716_v46, %v4850_v56 }
0x2ea7   :  { %6113 = vmatmul.msk.f32.vlgmr.msrb.gmra.mxu0 %vm703_vm1, %v6699_v62 }
0x2ea8   :  { %6700 = vtanh.f32 %v4851_v49 }
0x2ead   :  { %v4853_v16 = vpop.f32.mrf.mxu1 }
0x2eae   :  { %v6701_v42 = vpop.eup %6700  ;;  %v4854_v15 = vadd.f32 %v8716_v46, %v4853_v16 }
0x2eaf   :  { %6114 = vmatmul.msk.f32.gmra.mxu0 %vm703_vm1, %v6701_v42  ;;  %v4887_v42 = vadd.f32 %v8716_v46, %v8720_v53  ;;  %v4896_v53 = vadd.f32 %v8716_v46, %v8733_v20 }
0x2eb0   :  { %6702 = vtanh.f32 %v4854_v15 }
0x2eb5   :  { %v4856_v13 = vpop.f32.mrf.mxu1 }
0x2eb6   :  { %v6703_v36 = vpop.eup %6702  ;;  %v4857_v1 = vadd.f32 %v8716_v46, %v4856_v13  ;;  %v4890_v13 = vadd.f32 %v8716_v46, %v8725_v26  ;;  %v4899_v26 = vadd.f32 %v8716_v46, %v4898_v27 }
0x2eb7   :  { %6115 = vmatmul.msk.f32.gmra.mxu0 %vm703_vm1, %v6703_v36 }
0x2eb8   :  { %6704 = vtanh.f32 %v4857_v1  ;;  %v4893_v1 = vadd.f32 %v8716_v46, %v8729_v57 }
0x2ebd   :  { %v4859_v61 = vpop.f32.mrf.mxu1 }
0x2ebe   :  { %v6705_v60 = vpop.eup %6704  ;;  %v4860_v6 = vadd.f32 %v8716_v46, %v4859_v61 }
0x2ebf   :  { %6116 = vmatmul.msk.f32.gmra.mxu0 %vm703_vm1, %v6705_v60 }
0x2ec0   :  { %6706 = vtanh.f32 %v4860_v6 }
0x2ec5   :  { %v4862_v34 = vpop.f32.mrf.mxu1 }
0x2ec6   :  { %v6707_v45 = vpop.eup %6706  ;;  %v4863_v29 = vadd.f32 %v8716_v46, %v4862_v34 }
0x2ec7   :  { %6117 = vmatmul.msk.f32.gmra.mxu0 %vm703_vm1, %v6707_v45 }
0x2ec8   :  { %6708 = vtanh.f32 %v4863_v29 }
0x2ecd   :  { %v4865_v12 = vpop.f32.mrf.mxu1 }
0x2ece   :  { %v6709_v35 = vpop.eup %6708  ;;  %v4866_v22 = vadd.f32 %v8716_v46, %v4865_v12 }
0x2ecf   :  { %6118 = vmatmul.msk.f32.gmra.mxu0 %vm703_vm1, %v6709_v35 }
0x2ed0   :  { %6710 = vtanh.f32 %v4866_v22 }
0x2ed5   :  { %v4868_v43 = vpop.f32.mrf.mxu1 }
0x2ed6   :  { %v6711_v50 = vpop.eup %6710  ;;  %v4869_v8 = vadd.f32 %v8716_v46, %v4868_v43 }
0x2ed7   :  { %6119 = vmatmul.msk.f32.gmra.mxu0 %vm703_vm1, %v6711_v50 }
0x2ed8   :  { %6712 = vtanh.f32 %v4869_v8 }
0x2edd   :  { %v4871_v11 = vpop.f32.mrf.mxu1 }
0x2ede   :  { %v6713_v30 = vpop.eup %6712  ;;  %v4872_v4 = vadd.f32 %v8716_v46, %v4871_v11 }
0x2edf   :  { %6120 = vmatmul.msk.f32.vlgmr.msra.gmra.mxu2 %vm703_vm1, %v6713_v30 }
0x2ee0   :  { %6714 = vtanh.f32 %v4872_v4 }
0x2ee5   :  { %v4874_v28 = vpop.f32.mrf.mxu1 }
0x2ee6   :  { %v6715_v32 = vpop.eup %6714  ;;  %v4875_v51 = vadd.f32 %v8716_v46, %v4874_v28 }
0x2ee7   :  { %6121 = vmatmul.msk.f32.gmra.mxu2 %vm703_vm1, %v6715_v32 }
0x2ee8   :  { %6716 = vtanh.f32 %v4875_v51 }
0x2ee9   :  { %v5562_v52 = vpop.f32.mrf.mxu3 }
0x2eea   :  { %v5563_v3 = vadd.f32 %v6207_v63, %v5562_v52 }
0x2eec   :  { %6135 = vmatmul.msk.f32.vlgmr.msra.gmra.mxu0 %vm703_vm1, %v5563_v3 }
0x2eed   :  { %v4877_v14 = vpop.f32.mrf.mxu1 }
0x2eee   :  { %v6717_v2 = vpop.eup %6716  ;;  %v4878_v39 = vadd.f32 %v8716_v46, %v4877_v14 }
0x2eef   :  { %6122 = vmatmul.msk.f32.gmra.mxu2 %vm703_vm1, %v6717_v2 }
0x2ef0   :  { %6718 = vtanh.f32 %v4878_v39 }
0x2ef5   :  { %v4880_v58 = vpop.f32.mrf.mxu1 }
0x2ef6   :  { %v6719_v31 = vpop.eup %6718  ;;  %v4881_v56 = vadd.f32 %v8716_v46, %v4880_v58 }
0x2ef7   :  { %6123 = vmatmul.msk.f32.gmra.mxu2 %vm703_vm1, %v6719_v31 }
0x2ef8   :  { %6720 = vtanh.f32 %v4881_v56 }
0x2efd   :  { %v4883_v62 = vpop.f32.mrf.mxu1 }
0x2efe   :  { %v6721_v49 = vpop.eup %6720  ;;  %v4884_v16 = vadd.f32 %v8716_v46, %v4883_v62 }
0x2eff   :  { %6124 = vmatmul.msk.f32.gmra.mxu2 %vm703_vm1, %v6721_v49 }
0x2f00   :  { %6722 = vtanh.f32 %v4884_v16 }
0x2f01   :  { %6724 = vtanh.f32 %v4887_v42 }
0x2f02   :  { %6726 = vtanh.f32 %v4890_v13 }
0x2f03   :  { %6728 = vtanh.f32 %v4893_v1 }
0x2f04   :  { %6730 = vtanh.f32 %v4896_v53 }
0x2f05   :  { %6732 = vtanh.f32 %v4899_v26 }
0x2f06   :  { %v6723_v15 = vpop.eup %6722  ;;  %6734 = vtanh.f32 %v4902_v25 }
0x2f07   :  { %6125 = vmatmul.msk.f32.gmra.mxu2 %vm703_vm1, %v6723_v15  ;;  %v6725_v36 = vpop.eup %6724  ;;  %6736 = vtanh.f32 %v4905_v59 }
0x2f08   :  { %v6727_v61 = vpop.eup %6726 }
0x2f09   :  { %v6729_v60 = vpop.eup %6728 }
0x2f0a   :  { %v6731_v6 = vpop.eup %6730 }
0x2f0b   :  { %v6733_v57 = vpop.eup %6732 }
0x2f0c   :  { %v6735_v23 = vpop.eup %6734 }
0x2f0d   :  { %v6737_v20 = vpop.eup %6736 }
0x2f0f   :  { %6126 = vmatmul.msk.f32.gmra.mxu2 %vm703_vm1, %v6725_v36 }
0x2f17   :  { %6127 = vmatmul.msk.f32.gmra.mxu2 %vm703_vm1, %v6727_v61 }
0x2f1f   :  { %6128 = vmatmul.msk.f32.gmra.mxu2 %vm703_vm1, %v6729_v60 }
0x2f24   :  { %v5012_v55 = vpop.f32.mrf.mxu0 }
0x2f27   :  { %6129 = vmatmul.msk.f32.gmra.mxu2 %vm703_vm1, %v6731_v6 }
0x2f2c   :  { %v5015_v9 = vpop.f32.mrf.mxu0 }
0x2f2d   :  { %v5072_v50 = vmax.f32 %v5012_v55, %v5015_v9 }
0x2f2f   :  { %6130 = vmatmul.msk.f32.gmra.mxu2 %vm703_vm1, %v6733_v57 }
0x2f34   :  { %v5018_v5 = vpop.f32.mrf.mxu0 }
0x2f35   :  { %v5073_v8 = vmax.f32 %v5072_v50, %v5018_v5 }
0x2f37   :  { %6131 = vmatmul.msk.f32.gmra.mxu2 %vm703_vm1, %v6735_v23 }
0x2f3c   :  { %v5021_v46 = vpop.f32.mrf.mxu0 }
0x2f3d   :  { %v5074_v11 = vmax.f32 %v5073_v8, %v5021_v46 }
0x2f3f   :  { %6132 = vmatmul.msk.f32.gmra.mxu2 %vm703_vm1, %v6737_v20 }
0x2f44   :  { %v5024_v35 = vpop.f32.mrf.mxu0 }
0x2f45   :  { %v5075_v30 = vmax.f32 %v5074_v11, %v5024_v35 }
0x2f4c   :  { %v5027_v43 = vpop.f32.mrf.mxu0 }
0x2f4d   :  { %v5076_v24 = vmax.f32 %v5075_v30, %v5027_v43 }
0x2f54   :  { %v5030_v4 = vpop.f32.mrf.mxu0 }
0x2f55   :  { %v5077_v28 = vmax.f32 %v5076_v24, %v5030_v4 }
0x2f62   :  { %v8771_v34 = vpop.f32.mrf.mxu2 }
0x2f63   :  { %v5078_v51 = vmax.f32 %v5077_v28, %v8771_v34 }
0x2f6a   :  { %v8773_v45 = vpop.f32.mrf.mxu2 }
0x2f6b   :  { %v5079_v63 = vmax.f32 %v5078_v51, %v8773_v45 }
0x2f72   :  { %v8775_v29 = vpop.f32.mrf.mxu2 }
0x2f73   :  { %v5080_v52 = vmax.f32 %v5079_v63, %v8775_v29 }
0x2f7a   :  { %v8777_v38 = vpop.f32.mrf.mxu2 }
0x2f7b   :  { %v5081_v3 = vmax.f32 %v5080_v52, %v8777_v38 }
0x2f82   :  { %v8779_v12 = vpop.f32.mrf.mxu2 }
0x2f83   :  { %v5082_v2 = vmax.f32 %v5081_v3, %v8779_v12 }
0x2f8a   :  { %v8781_v21 = vpop.f32.mrf.mxu2 }
0x2f8b   :  { %v5083_v39 = vmax.f32 %v5082_v2, %v8781_v21 }
0x2f92   :  { %v8783_v22 = vpop.f32.mrf.mxu2 }
0x2f93   :  { %v5084_v58 = vmax.f32 %v5083_v39, %v8783_v22 }
0x2f9a   :  { %v8785_v27 = vpop.f32.mrf.mxu2 }
0x2f9b   :  { %v5085_v31 = vmax.f32 %v5084_v58, %v8785_v27 }
0x2fa2   :  { %v8787_v10 = vpop.f32.mrf.mxu2 }
0x2fa3   :  { %v5086_v62 = vmax.f32 %v5085_v31, %v8787_v10 }
0x2faa   :  { %v8789_v32 = vpop.f32.mrf.mxu2 }
0x2fab   :  { %v5087_v49 = vmax.f32 %v5086_v62, %v8789_v32 }
0x2fb2   :  { %v8795_v14 = vpop.f32.mrf.mxu2 }
0x2fb3   :  { %v5088_v16 = vmax.f32 %v5087_v49, %v8795_v14 }
0x2fba   :  { %v8801_v56 = vpop.f32.mrf.mxu2 }
0x2fbb   :  { %v5089_v42 = vmax.f32 %v5088_v16, %v8801_v56 }
0x2fc2   :  { %v8807_v15 = vpop.f32.mrf.mxu2 }
0x2fc3   :  { %v8810_v13 = vmax.f32 %v5089_v42, %v8807_v15 }
0x2fc5   :  { %v5150_v36 = vsub.f32 %v5018_v5, %v8810_v13  ;;  %v5131_v1 = vsub.f32 %v5015_v9, %v8810_v13  ;;  %v5112_v61 = vsub.f32 %v5012_v55, %v8810_v13  ;;  %v5169_v6 = vsub.f32 %v5021_v46, %v8810_v13 }
0x2fc6   :  { %v5207_v25 = vsub.f32 %v5027_v43, %v8810_v13  ;;  %v5188_v57 = vsub.f32 %v5024_v35, %v8810_v13  ;;  %v5226_v5 = vsub.f32 %v5030_v4, %v8810_v13  ;;  %v5245_v55 = vsub.f32 %v8771_v34, %v8810_v13 }
0x2fc7   :  { %v5151_v53 = vmul.f32 1.442695, %v5150_v36  ;;  %v5132_v60 = vmul.f32 1.442695, %v5131_v1  ;;  %v5113_v26 = vmul.f32 1.442695, %v5112_v61  ;;  %v5264_v35 = vsub.f32 %v8773_v45, %v8810_v13 }
0x2fc8   :  { %v5170_v59 = vmul.f32 1.442695, %v5169_v6  ;;  %v5208_v23 = vmul.f32 1.442695, %v5207_v25  ;;  %v5189_v20 = vmul.f32 1.442695, %v5188_v57  ;;  %v5283_v30 = vsub.f32 %v8775_v29, %v8810_v13 }
0x2fc9   :  { %6738 = vpow2.f32 %v5151_v53  ;;  %v5227_v43 = vmul.f32 1.442695, %v5226_v5  ;;  %v5246_v11 = vmul.f32 1.442695, %v5245_v55  ;;  %v5265_v28 = vmul.f32 1.442695, %v5264_v35 }
0x2fca   :  { %6740 = vpow2.f32 %v5132_v60  ;;  %v5302_v34 = vsub.f32 %v8777_v38, %v8810_v13  ;;  %v5321_v45 = vsub.f32 %v8779_v12, %v8810_v13  ;;  %v5284_v3 = vmul.f32 1.442695, %v5283_v30 }
0x2fcb   :  { %6742 = vpow2.f32 %v5113_v26  ;;  %v5340_v39 = vsub.f32 %v8781_v21, %v8810_v13  ;;  %v5359_v62 = vsub.f32 %v8783_v22, %v8810_v13  ;;  %v5378_v42 = vsub.f32 %v8785_v27, %v8810_v13 }
0x2fcc   :  { %6744 = vpow2.f32 %v5170_v59  ;;  %v5303_v29 = vmul.f32 1.442695, %v5302_v34  ;;  %v5322_v38 = vmul.f32 1.442695, %v5321_v45  ;;  %v5397_v21 = vsub.f32 %v8787_v10, %v8810_v13 }
0x2fcd   :  { %6746 = vpow2.f32 %v5208_v23  ;;  %v5341_v12 = vmul.f32 1.442695, %v5340_v39  ;;  %v5360_v61 = vmul.f32 1.442695, %v5359_v62  ;;  %v5379_v22 = vmul.f32 1.442695, %v5378_v42 }
0x2fce   :  { %6748 = vpow2.f32 %v5189_v20  ;;  %v5416_v26 = vsub.f32 %v8789_v32, %v8810_v13  ;;  %v5398_v27 = vmul.f32 1.442695, %v5397_v21  ;;  %v5435_v57 = vsub.f32 %v8795_v14, %v8810_v13  ;;  %v5571_v21 = vld [vmem:[#allocation7 + $0x100] sm:$0xff] }
0x2fcf   :  { %v6739_v9 = vpop.eup %6738  ;;  %6750 = vpow2.f32 %v5227_v43  ;;  %v5454_v20 = vsub.f32 %v8801_v56, %v8810_v13  ;;  %v5472_v32 = vsub.f32 %v8807_v15, %v8810_v13 }
0x2fd0   :  { %v6741_v50 = vpop.eup %6740  ;;  %5156 = vperm.xlu0 %6203, %v6739_v9   ;;  %6752 = vpow2.f32 %v5246_v11  ;;  %v5417_v10 = vmul.f32 1.442695, %v5416_v26  ;;  %v5436_v55 = vmul.f32 1.442695, %v5435_v57 }
0x2fd1   :  { %v6743_v46 = vpop.eup %6742  ;;  %5137 = vperm.xlu2 %6202, %v6741_v50   ;;  %6754 = vpow2.f32 %v5265_v28  ;;  %v5455_v14 = vmul.f32 1.442695, %v5454_v20  ;;  %v5568_v20 = vld [vmem:[#allocation7 + $0xe8] sm:$0xff] }
0x2fd2   :  { %5118 = vperm.xlu1 %6201, %v6743_v46   ;;  %v5134_v8 = vadd.f32 %v6743_v46, %v6741_v50  ;;  %v6745_v24 = vpop.eup %6744  ;;  %6756 = vpow2.f32 %v5284_v3 }
0x2fd3   :  { %v6747_v51 = vpop.eup %6746  ;;  %6758 = vpow2.f32 %v5303_v29 }
0x2fd4   :  { %v5153_v4 = vadd.f32 %v6739_v9, %v5134_v8  ;;  %v6749_v52 = vpop.eup %6748  ;;  %6760 = vpow2.f32 %v5322_v38  ;;  %v5473_v8 = vmul.f32 1.442695, %v5472_v32  ;;  %v5645_v32 = vld [vmem:[#allocation7 + $0x1c0] sm:$0xff] }
0x2fd5   :  { %v6751_v31 = vpop.eup %6750  ;;  %6762 = vpow2.f32 %v5341_v12 }
0x2fd6   :  { %v5172_v63 = vadd.f32 %v6745_v24, %v5153_v4  ;;  %v6753_v16 = vpop.eup %6752  ;;  %6764 = vpow2.f32 %v5360_v61  ;;  %v5572_v61 = vld [vmem:[#allocation7 + $0x108] sm:$0xff] }
0x2fd7   :  { %v6755_v1 = vpop.eup %6754  ;;  %6766 = vpow2.f32 %v5379_v22  ;;  %5616 = vmatpush.msrb.mxu3 %v5572_v61 }
0x2fd8   :  { %5213 = vperm.xlu0 %6203, %v6747_v51   ;;  %v5191_v2 = vadd.f32 %v6749_v52, %v5172_v63  ;;  %v6757_v60 = vpop.eup %6756  ;;  %6768 = vpow2.f32 %v5398_v27 }
0x2fd9   :  { %5194 = vperm.xlu2 %6202, %v6749_v52   ;;  %v6759_v25 = vpop.eup %6758  ;;  %6770 = vpow2.f32 %v5417_v10  ;;  %5617 = vmatpush.msrb.mxu3 %v5571_v21  ;;  %v5569_v10 = vld [vmem:[#allocation7 + $0xf0] sm:$0xff] }
0x2fda   :  { %5175 = vperm.xlu1 %6201, %v6745_v24   ;;  %v5210_v58 = vadd.f32 %v6747_v51, %v5191_v2  ;;  %v6761_v23 = vpop.eup %6760  ;;  %6772 = vpow2.f32 %v5436_v55  ;;  %v5644_v55 = vld [vmem:[#allocation7 + $0x1b8] sm:$0xff] }
0x2fdb   :  { %v6763_v9 = vpop.eup %6762  ;;  %6774 = vpow2.f32 %v5455_v14  ;;  %v5643_v14 = vld [vmem:[#allocation7 + $0x1b0] sm:$0xff] }
0x2fdc   :  { %v5229_v49 = vadd.f32 %v6751_v31, %v5210_v58  ;;  %v6765_v46 = vpop.eup %6764  ;;  %6776 = vpow2.f32 %v5473_v8 }
0x2fdd   :  { %v6767_v43 = vpop.eup %6766 }
0x2fde   :  { %v5248_v36 = vadd.f32 %v6753_v16, %v5229_v49  ;;  %v6769_v56 = vpop.eup %6768 }
0x2fdf   :  { %v6771_v4 = vpop.eup %6770 }
0x2fe0   :  { %5270 = vperm.xlu0 %6203, %v6755_v1   ;;  %v5267_v53 = vadd.f32 %v6755_v1, %v5248_v36  ;;  %v6773_v13 = vpop.eup %6772 }
0x2fe1   :  { %5251 = vperm.xlu2 %6202, %v6753_v16   ;;  %v6775_v28 = vpop.eup %6774 }
0x2fe2   :  { %5232 = vperm.xlu1 %6201, %v6751_v31   ;;  %v5286_v6 = vadd.f32 %v6757_v60, %v5267_v53  ;;  %v6777_v51 = vpop.eup %6776 }
0x2fe4   :  { %v5305_v59 = vadd.f32 %v6759_v25, %v5286_v6 }
0x2fe6   :  { %v5324_v5 = vadd.f32 %v6761_v23, %v5305_v59 }
0x2fe8   :  { %5327 = vperm.xlu0 %6203, %v6761_v23   ;;  %v5343_v50 = vadd.f32 %v6763_v9, %v5324_v5 }
0x2fe9   :  { %5308 = vperm.xlu2 %6202, %v6759_v25  }
0x2fea   :  { %5289 = vperm.xlu1 %6201, %v6757_v60   ;;  %v5362_v35 = vadd.f32 %v6765_v46, %v5343_v50 }
0x2fec   :  { %v5381_v11 = vadd.f32 %v6767_v43, %v5362_v35 }
0x2fee   :  { %v5400_v30 = vadd.f32 %v6769_v56, %v5381_v11  ;;  %v5642_v11 = vld [vmem:[#allocation7 + $0x1a8] sm:$0xff] }
0x2ff0   :  { %5365 = vperm.xlu0 %6203, %v6765_v46   ;;  %v5419_v15 = vadd.f32 %v6771_v4, %v5400_v30  ;;  %v5641_v30 = vld [vmem:[#allocation7 + $0x1a0] sm:$0xff] }
0x2ff2   :  { %5346 = vperm.xlu1 %6201, %v6763_v9   ;;  %v5438_v24 = vadd.f32 %v6773_v13, %v5419_v15  ;;  %v5567_v9 = vld [vmem:[#allocation7 + $0xe0] sm:$0xff] }
0x2ff4   :  { %v5457_v34 = vadd.f32 %v6775_v28, %v5438_v24 }
0x2ff6   :  { %v5475_v63 = vadd.f32 %v6777_v51, %v5457_v34 }
0x2ff8   :  { %5492 = vperm.xlu2 %6202, %v5475_v63   ;;  %5422 = vperm.xlu0 %6203, %v6771_v4  }
0x2ffa   :  { %5384 = vperm.xlu1 %6201, %v6767_v43  }
0x3000   :  { %5403 = vperm.xlu2 %6202, %v6769_v56   ;;  %5478 = vperm.xlu0 %6203, %v6777_v51   ;;  %v5639_v51 = vld [vmem:[#allocation7 + $0x190] sm:$0xff] }
0x3002   :  { %5441 = vperm.xlu1 %6201, %v6773_v13   ;;  %v5640_v13 = vld [vmem:[#allocation7 + $0x198] sm:$0xff] }
0x3008   :  { %5460 = vperm.xlu2 %6202, %v6775_v28   ;;  %v6782_v28 = vld [vmem:[#allocation6 + $0x68] sm:$0xff] }
0x302b   :  { %v5138_v52 = vpop.permute.xlu2 %5137 }
0x302c   :  { %v5140_v39 = vmul.f32 %v5138_v52, %v8639_v0  ;;  %v5570_v0 = vld [vmem:[#allocation7 + $0xf8] sm:$0xff] }
0x302d   :  { %5618 = vmatpush.msrb.mxu3 %v5570_v0 }
0x302f   :  { %5619 = vmatpush.msrb.mxu3 %v5569_v10 }
0x3031   :  { %5620 = vmatpush.msrb.mxu3 %v5568_v20  ;;  %v5634_v20 = vld [vmem:[#allocation7 + $0x168] sm:$0xff] }
0x3033   :  { %v5195_v45 = vpop.permute.xlu2 %5194  ;;  %5621 = vmatpush.msrb.mxu3 %v5567_v9  ;;  %v5632_v9 = vld [vmem:[#allocation7 + $0x158] sm:$0xff] }
0x3034   :  { %v5197_v42 = vmul.f32 %v5195_v45, %v8657_v18  ;;  %v6783_v45 = vld [vmem:[#allocation6 + $0x70] sm:$0xff] }
0x303b   :  { %v5252_v38 = vpop.permute.xlu2 %5251 }
0x3042   :  { %v5157_v3 = vpop.permute.xlu0 %5156 }
0x3043   :  { %v5159_v62 = vmul.f32 %v5157_v3, %v8651_v41  ;;  %v5309_v22 = vpop.permute.xlu2 %5308 }
0x3044   :  { %v5119_v2 = vpop.permute.xlu1 %5118 }
0x3045   :  { %v5121_v29 = vmul.f32 %v5119_v2, %v8643_v19  ;;  %v5638_v2 = vld [vmem:[#allocation7 + $0x188] sm:$0xff] }
0x3047   :  { %v5141_v58 = vadd.f32 %v5140_v39, %v5121_v29  ;;  %v6784_v29 = vld [vmem:[#allocation6 + $0x78] sm:$0xff] }
0x3049   :  { %v5160_v16 = vadd.f32 %v5159_v62, %v5141_v58 }
0x304a   :  { %v5214_v31 = vpop.permute.xlu0 %5213 }
0x304b   :  { %v5216_v19 = vmul.f32 %v5214_v31, %v8660_v48  ;;  %v5637_v31 = vld [vmem:[#allocation7 + $0x180] sm:$0xff] }
0x304c   :  { %v5176_v49 = vpop.permute.xlu1 %5175 }
0x304d   :  { %v5178_v12 = vmul.f32 %v5176_v49, %v8654_v44  ;;  %v5254_v44 = vmul.f32 %v5252_v38, %v8668_v54  ;;  %v5311_v54 = vmul.f32 %v5309_v22, %v8679_v17  ;;  %v5636_v49 = vld [vmem:[#allocation7 + $0x178] sm:$0xff] }
0x304f   :  { %v5179_v36 = vadd.f32 %v5178_v12, %v5160_v16  ;;  %v6785_v16 = vld [vmem:[#allocation6 + $0x80] sm:$0xff] }
0x3051   :  { %v5198_v1 = vadd.f32 %v5197_v42, %v5179_v36  ;;  %v5635_v42 = vld [vmem:[#allocation7 + $0x170] sm:$0xff] }
0x3052   :  { %v5271_v53 = vpop.permute.xlu0 %5270  ;;  %v8854_v59 = vpop.permute.xlu2 %5492 }
0x3053   :  { %v5217_v26 = vadd.f32 %v5216_v19, %v5198_v1  ;;  %v5273_v27 = vmul.f32 %v5271_v53, %v8671_v7  ;;  %6778 = vrcp.f32 %v8854_v59  ;;  %v5566_v7 = vld [vmem:[#allocation7 + $0xd8] sm:$0xff]  ;;  %v6786_v53 = vld [vmem:[#allocation6 + $0x88] sm:$0xff]  ;;  %v5506_v0 = vand.u32 2147483648, %v8854_v59 }
0x3054   :  { %v5233_v60 = vpop.permute.xlu1 %5232  ;;  %5622 = vmatpush.msrb.mxu3 %v5566_v7  ;;  %vm5500_vm5 = vweird.f32 %v8854_v59  ;;  %v5504_v22 = vand.u32 2147483647, %v8854_v59 }
0x3055   :  { %v5235_v41 = vmul.f32 %v5233_v60, %v8665_v40  ;;  %v5646_v40 = vld [vmem:[#allocation7 + $0x1c8] sm:$0xff] }
0x3056   :  { %5649 = vmatpush.msrb.mxu0 %v5646_v40  ;;  %vm5505_vm7 = vcmp.eq.f32.partialorder %v5504_v22, 8.507059e+37  ;;  %v6208_v40 = vld [vmem:[#allocation7 + $0xc] ss:$0 sm:$0xff] }
0x3057   :  { %v5236_v6 = vadd.f32 %v5235_v41, %v5217_v26  ;;  %v6787_v26 = vld [vmem:[#allocation6 + $0x90] sm:$0xff] }
0x3058   :  { %5650 = vmatpush.msrb.mxu0 %v5645_v32  ;;  %v5602_v32 = vpop.f32.mrf.mxu0 }
0x3059   :  { %v5255_v18 = vadd.f32 %v5254_v44, %v5236_v6  ;;  %v6779_v56 = vpop.eup %6778  ;;  %v6788_v6 = vld [vmem:[#allocation6 + $0x98] sm:$0xff] }
0x305a   :  { %v5328_v25 = vpop.permute.xlu0 %5327  ;;  %5651 = vmatpush.msrb.mxu0 %v5644_v55  ;;  %v5496_v4 = vmul.f32 %v6779_v56, %v8854_v59  ;;  %v5404_v24 = vpop.permute.xlu2 %5403  ;;  %vm5501_vm4 = vweird.f32 %v6779_v56  ;;  %v5631_v59 = vld [vmem:[#allocation7 + $0x150] sm:$0xff] }
0x305b   :  { %v5274_v23 = vadd.f32 %v5273_v27, %v5255_v18  ;;  %v5330_v43 = vmul.f32 %v5328_v25, %v8682_v37  ;;  %v5406_v39 = vmul.f32 %v6784_v29, %v5404_v24  ;;  %vm5502_vm6 = vmor %vm5500_vm5, %vm5501_vm4 }
0x305c   :  { %v5290_v57 = vpop.permute.xlu1 %5289  ;;  %5652 = vmatpush.msrb.mxu0 %v5643_v14 }
0x305d   :  { %v5292_v48 = vmul.f32 %v5290_v57, %v8674_v33  ;;  %v5565_v33 = vld [vmem:[#allocation7 + $0xd0] sm:$0xff]  ;;  %v5507_v57 = vor.u32 1.1754944e-38, %v5506_v0 }
0x305e   :  { %5623 = vmatpush.msrb.mxu3 %v5565_v33  ;;  %5653 = vmatpush.msrb.mxu0 %v5642_v11  ;;  %v5669_v11 = vld [vmem:[%s8873_s1] sm:$0xff] }
0x305f   :  { %v5293_v5 = vadd.f32 %v5292_v48, %v5274_v23 }
0x3060   :  { %5654 = vmatpush.msrb.mxu0 %v5641_v30 }
0x3061   :  { %v5312_v46 = vadd.f32 %v5311_v54, %v5293_v5  ;;  %v5633_v5 = vld [vmem:[#allocation7 + $0x160] sm:$0xff] }
0x3062   :  { %v5366_v50 = vpop.permute.xlu0 %5365  ;;  %5655 = vmatpush.msrb.mxu0 %v5640_v13  ;;  %v5461_v36 = vpop.permute.xlu2 %5460 }
0x3063   :  { %v5331_v17 = vadd.f32 %v5330_v43, %v5312_v46  ;;  %v5368_v34 = vmul.f32 %v6782_v28, %v5366_v50  ;;  %v5463_v41 = vmul.f32 %v6787_v26, %v5461_v36  ;;  %v6209_v46 = vld [vmem:[#allocation7 + $0xd] ss:$0 sm:$0xff] }
0x3064   :  { %v5347_v35 = vpop.permute.xlu1 %5346  ;;  %5656 = vmatpush.msrb.mxu0 %v5639_v51 }
0x3065   :  { %v5349_v8 = vmul.f32 %v5347_v35, %v8685_v47  ;;  %v5497_v47 = vsub.f32 1.0, %v5496_v4 }
0x3066   :  { %5657 = vmatpush.msrb.mxu0 %v5638_v2 }
0x3067   :  { %v5350_v15 = vadd.f32 %v5349_v8, %v5331_v17  ;;  %v5498_v38 = vmul.f32 %v6779_v56, %v5497_v47 }
0x3068   :  { %5658 = vmatpush.msrb.mxu0 %v5637_v31 }
0x3069   :  { %v5369_v52 = vadd.f32 %v5368_v34, %v5350_v15  ;;  %v5499_v61 = vadd.f32 %v6779_v56, %v5498_v38 }
0x306a   :  { %v5423_v63 = vpop.permute.xlu0 %5422  ;;  %5659 = vmatpush.msrb.mxu0 %v5636_v49 }
0x306b   :  { %v5425_v12 = vmul.f32 %v6785_v16, %v5423_v63  ;;  %v5503_v27 = vsel %vm5502_vm6, %v6779_v56, %v5499_v61  ;;  %v5670_v56 = vmul.f32 0.1, %v5669_v11 }
0x306c   :  { %v5385_v37 = vpop.permute.xlu1 %5384  ;;  %5660 = vmatpush.msrb.mxu0 %v5635_v42  ;;  %v5508_v48 = vsel %vm5505_vm7, %v5507_v57, %v5503_v27 }
0x306d   :  { %v5387_v3 = vmul.f32 %v6783_v45, %v5385_v37 }
0x306e   :  { %5661 = vmatpush.msrb.mxu0 %v5634_v20 }
0x306f   :  { %v5388_v58 = vadd.f32 %v5387_v3, %v5369_v52 }
0x3070   :  { %5662 = vmatpush.msrb.mxu0 %v5633_v5 }
0x3071   :  { %v5407_v62 = vadd.f32 %v5406_v39, %v5388_v58 }
0x3072   :  { %v5479_v60 = vpop.permute.xlu0 %5478  ;;  %5663 = vmatpush.msrb.mxu0 %v5632_v9 }
0x3073   :  { %v5426_v21 = vadd.f32 %v5425_v12, %v5407_v62  ;;  %v5481_v18 = vmul.f32 %v6788_v6, %v5479_v60 }
0x3074   :  { %v5442_v1 = vpop.permute.xlu1 %5441  ;;  %5664 = vmatpush.msrb.mxu0 %v5631_v59 }
0x3075   :  { %v5444_v19 = vmul.f32 %v6786_v53, %v5442_v1 }
0x3077   :  { %v5445_v44 = vadd.f32 %v5444_v19, %v5426_v21 }
0x3079   :  { %v5464_v25 = vadd.f32 %v5463_v41, %v5445_v44 }
0x307b   :  { %v5482_v23 = vadd.f32 %v5481_v18, %v5464_v25 }
0x307d   :  { %v5509_v10 = vmul.f32 %v5508_v48, %v5482_v23 }
0x307f   :  { %6136 = vmatmul.msk.f32.vlgmr.msrb.gmra.mxu3 %vm703_vm1, %v5509_v10  ;;  %vm5680_vm1 = vcmask 7168  }
0x3102   :  { %v5625_v54 = vpop.f32.mrf.mxu3 }
0x3103   :  { %v5626_v7 = vadd.f32 %v5625_v54, %v5602_v32 }
0x3105   :  { %v5629_v55 = vadd.f32 %v6208_v40, %v5626_v7 }
0x3107   :  { %v5630_v50 = vmax.f32 %v5629_v55, 0.0 }
0x3109   :  { %5665 = vmatmul.f32.vlgmr.msrb.gmra.mxu0 %v5630_v50 }
0x3186   :  { %v5666_v33 = vpop.f32.mrf.mxu0 }
0x3187   :  { %v5667_v14 = vadd.f32 %v6209_v46, %v5666_v33 }
0x3189   :  { %v5671_v35 = vmul.f32 0.5, %v5667_v14 }
0x318b   :  { %v5672_v43 = vmul.f32 1.442695, %v5671_v35 }
0x318d   :  { %6780 = vpow2.f32 %v5672_v43 }
0x3193   :  { %v6781_v8 = vpop.eup %6780 }
0x3194   :  { %5675 = vrot.lane.b32.xlu1 %v6781_v8, %s6820_s2 }
0x3206   :  { %v5676_v17 = vpop.permute.xlu1 %5675 }
0x3207   :  { %v5678_v30 = vmul.f32 %v5676_v17, %v5670_v56 }
0x3209   :  { %v5679_v4 = vadd.f32 %v5678_v30, %v5667_v14 }
0x320b   :  { %5681 = vst.msk [vmem:[%s8877_s5] sm:$0xff] %vm5680_vm1, %v5679_v4 }
0x320c   :  { %5686 = vsyncpa [#allocation8], 1 }

</bundles_post_ra>
